<compile_context>
chip_gen: v6e
topology: v6e:2x2x1
jax: 0.10.0
libtpu: 0.0.40
codegen_flags: <defaults>
</compile_context>

<pallas_src>
import jax
import jax.numpy as jnp
from jax import lax
from jax.experimental import pallas as pl
from jax.experimental.pallas import tpu as pltpu

EPS = 1e-5  # PyTorch LayerNorm default eps


def vision_mamba_kernel(x_ref, ln_ref, wio_ref, bio_ref, conv_ref, wout_ref, o_ref):
    TB, S, C = x_ref.shape
    Hd = conv_ref.shape[1]
    R = TB * S
    inv_c = 1.0 / C

    # ones column reused by all three LayerNorms: row reductions become tiny
    # MXU matmuls instead of XLU cross-lane reduce trees.
    ones_col = jnp.ones((C, 1), jnp.float32)

    def layernorm(v, w, b):
        mu = jnp.dot(v, ones_col, preferred_element_type=jnp.float32) * inv_c   # (R,1)
        cen = v - mu
        var = jnp.dot(cen * cen, ones_col, preferred_element_type=jnp.float32) * inv_c
        return cen * lax.rsqrt(var + EPS) * w + b

    # flatten (TB, S, C) -> (TB*S, C); leading-dim collapse, free layout-wise
    x = x_ref[...].reshape(R, C)

    # packed LayerNorm params / output bias (rows of an (8, C) array)
    norm_w, norm_b = ln_ref[0:1, :], ln_ref[1:2, :]
    mnorm_w, mnorm_b = ln_ref[2:3, :], ln_ref[3:4, :]
    n2_w, n2_b = ln_ref[4:5, :], ln_ref[5:6, :]
    b_out = ln_ref[6:7, :]

    # outer LayerNorm, then mamba's LayerNorm
    xn = layernorm(x, norm_w, norm_b)
    xm = layernorm(xn, mnorm_w, mnorm_b)

    # fused input_proj || gate projection: single (C, 2*Hd) MXU matmul
    ug = jnp.dot(xm, wio_ref[...], preferred_element_type=jnp.float32) + bio_ref[0:1, :]
    u = ug[:, :Hd]
    gate = jax.nn.sigmoid(ug[:, Hd:])

    # depthwise Conv1d along the sequence, kernel=3, padding=1, groups=hidden.
    # single (R, 1) iota column; (row % S) masks stop rolls leaking across the
    # TB images packed into this block (matches zero padding of the conv).
    pos = lax.broadcasted_iota(jnp.int32, (R, 1), 0) % S
    u_prev = jnp.where(pos == 0, 0.0, pltpu.roll(u, shift=1, axis=0))        # u[s-1]
    u_next = jnp.where(pos == S - 1, 0.0, pltpu.roll(u, shift=R - 1, axis=0))  # u[s+1]
    uc = (u_prev * conv_ref[0:1, :]
          + u * conv_ref[1:2, :]
          + u_next * conv_ref[2:3, :]
          + conv_ref[3:4, :])

    # gate, output projection, residuals, final LayerNorm
    y = uc * gate
    mamba_out = (jnp.dot(y, wout_ref[...], preferred_element_type=jnp.float32)
                 + b_out + xn)                    # + residual inside SimpleMambaBlock
    x2 = mamba_out + x                            # + residual in VisionMambaBlock
    o_ref[...] = layernorm(x2, n2_w, n2_b).reshape(TB, S, C)


def _pack_params(params):
    """Collapse the 15 small parameter tensors into 5 packed arrays."""
    ln_pack = jnp.concatenate(
        [params["norm_w"], params["norm_b"],
         params["mnorm_w"], params["mnorm_b"],
         params["norm2_w"], params["norm2_b"],
         params["b_out"],
         jnp.zeros_like(params["norm_w"])],            # pad to 8 sublanes
        axis=0).astype(jnp.float32)                    # (8, C)
    w_io = jnp.concatenate([params["w_in"], params["w_gate"]], axis=1).astype(jnp.float32)   # (C, 2*Hd)
    b_io = jnp.concatenate([params["b_in"], params["b_gate"]], axis=1).astype(jnp.float32)   # (1, 2*Hd)
    conv_pack = jnp.concatenate([params["conv_w"], params["conv_b"]], axis=0).astype(jnp.float32)  # (4, Hd)
    w_out = params["w_out"].astype(jnp.float32)        # (Hd, C)
    return ln_pack, w_io, b_io, conv_pack, w_out


def _chip_info():
    """(is_v7x, vmem_limit_bytes) from the local device kind (conservative default)."""
    try:
        kind = jax.devices()[0].device_kind.lower()
    except Exception:
        kind = ""
    is_v7x = "7" in kind
    if (not is_v7x) and (("v5" in kind) or ("v6" in kind)):
        vmem_limit = 96 * 1024 * 1024     # v5e/v6e: 128 MiB physical VMEM
    else:
        vmem_limit = 48 * 1024 * 1024     # v7x (64 MiB physical) / unknown
    return is_v7x, vmem_limit


def _choose_tb(B, S, is_v7x):
    """Batch-tile: divisor of B (no padding), targeting large row counts.

    v5e/v6e are single-TensorCore, so one big block is best; v7x has 2 TCs,
    so keep >= 2 'parallel' grid steps when B permits and cap R near ~2K rows
    to respect its smaller (64 MiB) VMEM.
    """
    target_rows = 2048 if is_v7x else 4096
    max_tb = max(1, min(B, target_rows // max(S, 1)))
    if is_v7x and B >= 2:
        max_tb = min(max_tb, max(1, B // 2))
    tb = 1
    for d in range(1, max_tb + 1):
        if B % d == 0:
            tb = d
    return tb


def vision_mamba_block_nhwc(x_seq, params, tb=None):
    """x_seq: (B, S, C) channel-last tokens.  Returns (B, S, C)."""
    B, S, C = x_seq.shape
    x_seq = x_seq.astype(jnp.float32)
    ln_pack, w_io, b_io, conv_pack, w_out = _pack_params(params)

    is_v7x, vmem_limit = _chip_info()
    TB = tb if tb is not None else _choose_tb(B, S, is_v7x)
    assert B % TB == 0, "batch tile must divide B (no padding pass)"
    grid = (B // TB,)

    def full_spec(p):
        nd = p.ndim
        return pl.BlockSpec(p.shape, lambda b, _n=nd: (0,) * _n)

    param_list = [ln_pack, w_io, b_io, conv_pack, w_out]
    in_specs = [pl.BlockSpec((TB, S, C), lambda b: (b, 0, 0))]
    in_specs += [full_spec(p) for p in param_list]

    return pl.pallas_call(
        vision_mamba_kernel,
        out_shape=jax.ShapeDtypeStruct((B, S, C), jnp.float32),
        grid_spec=pltpu.PrefetchScalarGridSpec(
            num_scalar_prefetch=0,
            grid=grid,
            in_specs=in_specs,
            out_specs=pl.BlockSpec((TB, S, C), lambda b: (b, 0, 0)),
        ),
        compiler_params=pltpu.CompilerParams(
            dimension_semantics=("parallel",),
            vmem_limit_bytes=vmem_limit,
        ),
    )(x_seq, *param_list)


def vision_mamba_block(x_nchw, params, tb=None):
    """NCHW interface matching the PyTorch module.  Prefer the NHWC entry
    point when the caller already has channel-last data (skips two full-HBM
    transpose passes)."""
    B, C, H, W = x_nchw.shape
    x_seq = jnp.transpose(x_nchw, (0, 2, 3, 1)).reshape(B, H * W, C)
    out_seq = vision_mamba_block_nhwc(x_seq, params, tb=tb)
    return jnp.transpose(out_seq.reshape(B, H, W, C), (0, 3, 1, 2))


def make_params(key, dim, hidden_dim):
    ks = jax.random.split(key, 16)
    n = lambda k, shape, s=0.1: (s * jax.random.normal(k, shape)).astype(jnp.float32)
    return {
        "norm_w": 1.0 + n(ks[0], (1, dim)),
        "norm_b": n(ks[1], (1, dim)),
        "mnorm_w": 1.0 + n(ks[2], (1, dim)),
        "mnorm_b": n(ks[3], (1, dim)),
        "w_in": n(ks[4], (dim, hidden_dim)),
        "b_in": n(ks[5], (1, hidden_dim)),
        "conv_w": n(ks[6], (3, hidden_dim)),
        "conv_b": n(ks[7], (1, hidden_dim)),
        "w_gate": n(ks[8], (dim, hidden_dim)),
        "b_gate": n(ks[9], (1, hidden_dim)),
        "w_out": n(ks[10], (hidden_dim, dim)),
        "b_out": n(ks[11], (1, dim)),
        "norm2_w": 1.0 + n(ks[12], (1, dim)),
        "norm2_b": n(ks[13], (1, dim)),
    }


def reference(x_nchw, p):
    # pure-JAX reference mirroring the PyTorch forward exactly.
    # HIGHEST matmul precision so the reference is true-f32 like the kernel's
    # multi-pass f32 MXU matmuls (default XLA precision would truncate to bf16).
    B, C, H, W = x_nchw.shape
    x = jnp.transpose(x_nchw, (0, 2, 3, 1)).reshape(B, H * W, C)
    hp = jax.lax.Precision.HIGHEST

    def ln(v, w, b):
        mu = v.mean(-1, keepdims=True)
        var = ((v - mu) ** 2).mean(-1, keepdims=True)
        return (v - mu) / jnp.sqrt(var + EPS) * w + b

    xn = ln(x, p["norm_w"][0], p["norm_b"][0])
    xm = ln(xn, p["mnorm_w"][0], p["mnorm_b"][0])
    u = jnp.dot(xm, p["w_in"], precision=hp) + p["b_in"][0]
    gate = jax.nn.sigmoid(jnp.dot(xm, p["w_gate"], precision=hp) + p["b_gate"][0])
    up = jnp.pad(u, ((0, 0), (1, 1), (0, 0)))
    uc = (up[:, :-2] * p["conv_w"][0] + up[:, 1:-1] * p["conv_w"][1]
          + up[:, 2:] * p["conv_w"][2] + p["conv_b"][0])
    y = uc * gate
    mo = jnp.dot(y, p["w_out"], precision=hp) + p["b_out"][0] + xn
    x2 = mo + x
    o = ln(x2, p["norm2_w"][0], p["norm2_b"][0])
    return jnp.transpose(o.reshape(B, H, W, C), (0, 3, 1, 2))


if __name__ == "__main__":
    # Module uses VisionMambaBlock(dim=ngf*4, hidden_dim=ngf*4); small,
    # lane-dense test shapes: dim = hidden = 128, 16x16 spatial (S = 256).
    B, C, H, W = 2, 128, 16, 16
    hidden_dim = 128

    key = jax.random.PRNGKey(0)
    kx, kp = jax.random.split(key)
    x = jax.random.normal(kx, (B, C, H, W), dtype=jnp.float32)
    params = make_params(kp, C, hidden_dim)

    out = vision_mamba_block(x, params)
    out = jax.block_until_ready(out)

    ref = reference(x, params)
    assert out.shape == (B, C, H, W)
    max_err = float(jnp.max(jnp.abs(out - ref)))
    assert max_err < 1e-3, f"max abs err {max_err}"
    print("KERNEL_OK")
</pallas_src>

<mosaic_0001>
module attributes {stable_mosaic.version = 11 : i64} {
  func.func @vision_mamba_kernel(%arg0: i32, %arg1: memref<2x256x128xf32, #tpu.memory_space<vmem>>, %arg2: memref<8x128xf32, #tpu.memory_space<vmem>>, %arg3: memref<128x256xf32, #tpu.memory_space<vmem>>, %arg4: memref<1x256xf32, #tpu.memory_space<vmem>>, %arg5: memref<4x128xf32, #tpu.memory_space<vmem>>, %arg6: memref<128x128xf32, #tpu.memory_space<vmem>>, %arg7: memref<2x256x128xf32, #tpu.memory_space<vmem>>) attributes {dimension_semantics = [#tpu.dimension_semantics<parallel>], iteration_bounds = array<i64: 1>, scalar_prefetch = 0 : i64, scratch_operands = 0 : i64, tpu.core_type = #tpu.core_type<tc>, window_params = [{transform_indices = @transform_0, window_bounds = array<i64: 2, 256, 128>}, {pipeline_mode = #tpu.pipeline_mode<synchronous>, transform_indices = @transform_1, window_bounds = array<i64: 8, 128>}, {pipeline_mode = #tpu.pipeline_mode<synchronous>, transform_indices = @transform_2, window_bounds = array<i64: 128, 256>}, {pipeline_mode = #tpu.pipeline_mode<synchronous>, transform_indices = @transform_3, window_bounds = array<i64: 1, 256>}, {pipeline_mode = #tpu.pipeline_mode<synchronous>, transform_indices = @transform_4, window_bounds = array<i64: 4, 128>}, {pipeline_mode = #tpu.pipeline_mode<synchronous>, transform_indices = @transform_5, window_bounds = array<i64: 128, 128>}, {transform_indices = @transform_6, window_bounds = array<i64: 2, 256, 128>}]} {
    %cst = arith.constant 1.000000e+00 : f32
    %0 = vector.broadcast %cst : f32 to vector<128x1xf32>
    %c0 = arith.constant 0 : index
    %c0_0 = arith.constant 0 : index
    %c0_1 = arith.constant 0 : index
    %1 = vector.load %arg1[%c0, %c0_0, %c0_1] : memref<2x256x128xf32, #tpu.memory_space<vmem>>, vector<2x256x128xf32>
    %2 = vector.shape_cast %1 : vector<2x256x128xf32> to vector<512x128xf32>
    %c0_2 = arith.constant 0 : index
    %c0_3 = arith.constant 0 : index
    %3 = vector.load %arg2[%c0_2, %c0_3] : memref<8x128xf32, #tpu.memory_space<vmem>>, vector<1x128xf32>
    %c1 = arith.constant 1 : index
    %c0_4 = arith.constant 0 : index
    %4 = vector.load %arg2[%c1, %c0_4] : memref<8x128xf32, #tpu.memory_space<vmem>>, vector<1x128xf32>
    %c2 = arith.constant 2 : index
    %c0_5 = arith.constant 0 : index
    %5 = vector.load %arg2[%c2, %c0_5] : memref<8x128xf32, #tpu.memory_space<vmem>>, vector<1x128xf32>
    %c3 = arith.constant 3 : index
    %c0_6 = arith.constant 0 : index
    %6 = vector.load %arg2[%c3, %c0_6] : memref<8x128xf32, #tpu.memory_space<vmem>>, vector<1x128xf32>
    %c4 = arith.constant 4 : index
    %c0_7 = arith.constant 0 : index
    %7 = vector.load %arg2[%c4, %c0_7] : memref<8x128xf32, #tpu.memory_space<vmem>>, vector<1x128xf32>
    %c5 = arith.constant 5 : index
    %c0_8 = arith.constant 0 : index
    %8 = vector.load %arg2[%c5, %c0_8] : memref<8x128xf32, #tpu.memory_space<vmem>>, vector<1x128xf32>
    %c6 = arith.constant 6 : index
    %c0_9 = arith.constant 0 : index
    %9 = vector.load %arg2[%c6, %c0_9] : memref<8x128xf32, #tpu.memory_space<vmem>>, vector<1x128xf32>
    %cst_10 = arith.constant dense<0.000000e+00> : vector<512x1xf32>
    %10 = tpu.matmul %2, %0, %cst_10 {dimension_numbers = #tpu.dot_dimension_numbers<[1], [0], [0], [1], [0, 0, 1, 1], [], []>} : vector<512x128xf32>, vector<128x1xf32>, vector<512x1xf32> -> vector<512x1xf32>
    %cst_11 = arith.constant 7.812500e-03 : f32
    %11 = vector.broadcast %cst_11 : f32 to vector<512x1xf32>
    %12 = arith.mulf %10, %11 : vector<512x1xf32>
    %13 = vector.broadcast %12 : vector<512x1xf32> to vector<512x128xf32>
    %14 = arith.subf %2, %13 : vector<512x128xf32>
    %15 = arith.mulf %14, %14 : vector<512x128xf32>
    %cst_12 = arith.constant dense<0.000000e+00> : vector<512x1xf32>
    %16 = tpu.matmul %15, %0, %cst_12 {dimension_numbers = #tpu.dot_dimension_numbers<[1], [0], [0], [1], [0, 0, 1, 1], [], []>} : vector<512x128xf32>, vector<128x1xf32>, vector<512x1xf32> -> vector<512x1xf32>
    %cst_13 = arith.constant 7.812500e-03 : f32
    %17 = vector.broadcast %cst_13 : f32 to vector<512x1xf32>
    %18 = arith.mulf %16, %17 : vector<512x1xf32>
    %cst_14 = arith.constant 9.99999974E-6 : f32
    %19 = vector.broadcast %cst_14 : f32 to vector<512x1xf32>
    %20 = arith.addf %18, %19 : vector<512x1xf32>
    %21 = math.rsqrt %20 : vector<512x1xf32>
    %22 = vector.broadcast %21 : vector<512x1xf32> to vector<512x128xf32>
    %23 = arith.mulf %14, %22 : vector<512x128xf32>
    %24 = vector.broadcast %3 : vector<1x128xf32> to vector<512x128xf32>
    %25 = arith.mulf %23, %24 : vector<512x128xf32>
    %26 = vector.broadcast %4 : vector<1x128xf32> to vector<512x128xf32>
    %27 = arith.addf %25, %26 : vector<512x128xf32>
    %cst_15 = arith.constant dense<0.000000e+00> : vector<512x1xf32>
    %28 = tpu.matmul %27, %0, %cst_15 {dimension_numbers = #tpu.dot_dimension_numbers<[1], [0], [0], [1], [0, 0, 1, 1], [], []>} : vector<512x128xf32>, vector<128x1xf32>, vector<512x1xf32> -> vector<512x1xf32>
    %cst_16 = arith.constant 7.812500e-03 : f32
    %29 = vector.broadcast %cst_16 : f32 to vector<512x1xf32>
    %30 = arith.mulf %28, %29 : vector<512x1xf32>
    %31 = vector.broadcast %30 : vector<512x1xf32> to vector<512x128xf32>
    %32 = arith.subf %27, %31 : vector<512x128xf32>
    %33 = arith.mulf %32, %32 : vector<512x128xf32>
    %cst_17 = arith.constant dense<0.000000e+00> : vector<512x1xf32>
    %34 = tpu.matmul %33, %0, %cst_17 {dimension_numbers = #tpu.dot_dimension_numbers<[1], [0], [0], [1], [0, 0, 1, 1], [], []>} : vector<512x128xf32>, vector<128x1xf32>, vector<512x1xf32> -> vector<512x1xf32>
    %cst_18 = arith.constant 7.812500e-03 : f32
    %35 = vector.broadcast %cst_18 : f32 to vector<512x1xf32>
    %36 = arith.mulf %34, %35 : vector<512x1xf32>
    %cst_19 = arith.constant 9.99999974E-6 : f32
    %37 = vector.broadcast %cst_19 : f32 to vector<512x1xf32>
    %38 = arith.addf %36, %37 : vector<512x1xf32>
    %39 = math.rsqrt %38 : vector<512x1xf32>
    %40 = vector.broadcast %39 : vector<512x1xf32> to vector<512x128xf32>
    %41 = arith.mulf %32, %40 : vector<512x128xf32>
    %42 = vector.broadcast %5 : vector<1x128xf32> to vector<512x128xf32>
    %43 = arith.mulf %41, %42 : vector<512x128xf32>
    %44 = vector.broadcast %6 : vector<1x128xf32> to vector<512x128xf32>
    %45 = arith.addf %43, %44 : vector<512x128xf32>
    %c0_20 = arith.constant 0 : index
    %c0_21 = arith.constant 0 : index
    %46 = vector.load %arg3[%c0_20, %c0_21] : memref<128x256xf32, #tpu.memory_space<vmem>>, vector<128x256xf32>
    %cst_22 = arith.constant dense<0.000000e+00> : vector<512x256xf32>
    %47 = tpu.matmul %45, %46, %cst_22 {dimension_numbers = #tpu.dot_dimension_numbers<[1], [0], [0], [1], [0, 0, 1, 1], [], []>} : vector<512x128xf32>, vector<128x256xf32>, vector<512x256xf32> -> vector<512x256xf32>
    %c0_23 = arith.constant 0 : index
    %c0_24 = arith.constant 0 : index
    %48 = vector.load %arg4[%c0_23, %c0_24] : memref<1x256xf32, #tpu.memory_space<vmem>>, vector<1x256xf32>
    %49 = vector.broadcast %48 : vector<1x256xf32> to vector<512x256xf32>
    %50 = arith.addf %47, %49 : vector<512x256xf32>
    %51 = vector.extract_strided_slice %50 {offsets = [0, 0], sizes = [512, 128], strides = [1, 1]} : vector<512x256xf32> to vector<512x128xf32>
    %52 = vector.extract_strided_slice %50 {offsets = [0, 128], sizes = [512, 128], strides = [1, 1]} : vector<512x256xf32> to vector<512x128xf32>
    %53 = arith.negf %52 : vector<512x128xf32>
    %54 = math.exp %53 : vector<512x128xf32>
    %cst_25 = arith.constant 1.000000e+00 : f32
    %55 = vector.broadcast %cst_25 : f32 to vector<512x128xf32>
    %56 = arith.addf %55, %54 : vector<512x128xf32>
    %57 = arith.divf %55, %56 : vector<512x128xf32>
    %58 = tpu.iota {dimensions = array<i32: 0>} : vector<512x1xi32>
    %c256_i32 = arith.constant 256 : i32
    %c0_i32 = arith.constant 0 : i32
    %59 = arith.cmpi eq, %c256_i32, %c0_i32 : i32
    %c1_i32 = arith.constant 1 : i32
    %60 = arith.select %59, %c1_i32, %c256_i32 : i32
    %61 = vector.broadcast %60 : i32 to vector<512x1xi32>
    %62 = arith.remsi %58, %61 : vector<512x1xi32>
    %c0_i32_26 = arith.constant 0 : i32
    %63 = vector.broadcast %c0_i32_26 : i32 to vector<512x1xi32>
    %64 = arith.cmpi ne, %62, %63 : vector<512x1xi32>
    %c0_i32_27 = arith.constant 0 : i32
    %65 = vector.broadcast %c0_i32_27 : i32 to vector<512x1xi32>
    %66 = arith.cmpi slt, %62, %65 : vector<512x1xi32>
    %c0_i32_28 = arith.constant 0 : i32
    %67 = arith.cmpi slt, %60, %c0_i32_28 : i32
    %68 = vector.broadcast %67 : i1 to vector<512x1xi1>
    %69 = vector.broadcast %68 : vector<512x1xi1> to vector<512x1xi1>
    %70 = arith.xori %66, %69 : vector<512x1xi1>
    %71 = arith.andi %70, %64 : vector<512x1xi1>
    %72 = vector.broadcast %60 : i32 to vector<512x1xi32>
    %73 = arith.addi %62, %72 : vector<512x1xi32>
    %74 = arith.select %71, %73, %62 : vector<512x1xi1>, vector<512x1xi32>
    %c0_i32_29 = arith.constant 0 : i32
    %75 = vector.broadcast %c0_i32_29 : i32 to vector<512x1xi32>
    %76 = arith.cmpi eq, %74, %75 : vector<512x1xi32>
    %c1_i32_30 = arith.constant 1 : i32
    %77 = tpu.dynamic_rotate %51 by %c1_i32_30 dim 0 : vector<512x128xf32>, i32 -> vector<512x128xf32>
    %cst_31 = arith.constant 0.000000e+00 : f32
    %78 = vector.shape_cast %76 : vector<512x1xi1> to vector<512x1xi1>
    %79 = vector.broadcast %78 : vector<512x1xi1> to vector<512x128xi1>
    %80 = vector.broadcast %cst_31 : f32 to vector<512x128xf32>
    %81 = arith.select %79, %80, %77 : vector<512x128xi1>, vector<512x128xf32>
    %c255_i32 = arith.constant 255 : i32
    %82 = vector.broadcast %c255_i32 : i32 to vector<512x1xi32>
    %83 = arith.cmpi eq, %74, %82 : vector<512x1xi32>
    %c511_i32 = arith.constant 511 : i32
    %84 = tpu.dynamic_rotate %51 by %c511_i32 dim 0 : vector<512x128xf32>, i32 -> vector<512x128xf32>
    %cst_32 = arith.constant 0.000000e+00 : f32
    %85 = vector.shape_cast %83 : vector<512x1xi1> to vector<512x1xi1>
    %86 = vector.broadcast %85 : vector<512x1xi1> to vector<512x128xi1>
    %87 = vector.broadcast %cst_32 : f32 to vector<512x128xf32>
    %88 = arith.select %86, %87, %84 : vector<512x128xi1>, vector<512x128xf32>
    %c0_33 = arith.constant 0 : index
    %c0_34 = arith.constant 0 : index
    %89 = vector.load %arg5[%c0_33, %c0_34] : memref<4x128xf32, #tpu.memory_space<vmem>>, vector<1x128xf32>
    %90 = vector.broadcast %89 : vector<1x128xf32> to vector<512x128xf32>
    %91 = arith.mulf %81, %90 : vector<512x128xf32>
    %c1_35 = arith.constant 1 : index
    %c0_36 = arith.constant 0 : index
    %92 = vector.load %arg5[%c1_35, %c0_36] : memref<4x128xf32, #tpu.memory_space<vmem>>, vector<1x128xf32>
    %93 = vector.broadcast %92 : vector<1x128xf32> to vector<512x128xf32>
    %94 = arith.mulf %51, %93 : vector<512x128xf32>
    %95 = arith.addf %91, %94 : vector<512x128xf32>
    %c2_37 = arith.constant 2 : index
    %c0_38 = arith.constant 0 : index
    %96 = vector.load %arg5[%c2_37, %c0_38] : memref<4x128xf32, #tpu.memory_space<vmem>>, vector<1x128xf32>
    %97 = vector.broadcast %96 : vector<1x128xf32> to vector<512x128xf32>
    %98 = arith.mulf %88, %97 : vector<512x128xf32>
    %99 = arith.addf %95, %98 : vector<512x128xf32>
    %c3_39 = arith.constant 3 : index
    %c0_40 = arith.constant 0 : index
    %100 = vector.load %arg5[%c3_39, %c0_40] : memref<4x128xf32, #tpu.memory_space<vmem>>, vector<1x128xf32>
    %101 = vector.broadcast %100 : vector<1x128xf32> to vector<512x128xf32>
    %102 = arith.addf %99, %101 : vector<512x128xf32>
    %103 = arith.mulf %102, %57 : vector<512x128xf32>
    %c0_41 = arith.constant 0 : index
    %c0_42 = arith.constant 0 : index
    %104 = vector.load %arg6[%c0_41, %c0_42] : memref<128x128xf32, #tpu.memory_space<vmem>>, vector<128x128xf32>
    %cst_43 = arith.constant dense<0.000000e+00> : vector<512x128xf32>
    %105 = tpu.matmul %103, %104, %cst_43 {dimension_numbers = #tpu.dot_dimension_numbers<[1], [0], [0], [1], [0, 0, 1, 1], [], []>} : vector<512x128xf32>, vector<128x128xf32>, vector<512x128xf32> -> vector<512x128xf32>
    %106 = vector.broadcast %9 : vector<1x128xf32> to vector<512x128xf32>
    %107 = arith.addf %105, %106 : vector<512x128xf32>
    %108 = arith.addf %107, %27 : vector<512x128xf32>
    %109 = arith.addf %108, %2 : vector<512x128xf32>
    %cst_44 = arith.constant dense<0.000000e+00> : vector<512x1xf32>
    %110 = tpu.matmul %109, %0, %cst_44 {dimension_numbers = #tpu.dot_dimension_numbers<[1], [0], [0], [1], [0, 0, 1, 1], [], []>} : vector<512x128xf32>, vector<128x1xf32>, vector<512x1xf32> -> vector<512x1xf32>
    %cst_45 = arith.constant 7.812500e-03 : f32
    %111 = vector.broadcast %cst_45 : f32 to vector<512x1xf32>
    %112 = arith.mulf %110, %111 : vector<512x1xf32>
    %113 = vector.broadcast %112 : vector<512x1xf32> to vector<512x128xf32>
    %114 = arith.subf %109, %113 : vector<512x128xf32>
    %115 = arith.mulf %114, %114 : vector<512x128xf32>
    %cst_46 = arith.constant dense<0.000000e+00> : vector<512x1xf32>
    %116 = tpu.matmul %115, %0, %cst_46 {dimension_numbers = #tpu.dot_dimension_numbers<[1], [0], [0], [1], [0, 0, 1, 1], [], []>} : vector<512x128xf32>, vector<128x1xf32>, vector<512x1xf32> -> vector<512x1xf32>
    %cst_47 = arith.constant 7.812500e-03 : f32
    %117 = vector.broadcast %cst_47 : f32 to vector<512x1xf32>
    %118 = arith.mulf %116, %117 : vector<512x1xf32>
    %cst_48 = arith.constant 9.99999974E-6 : f32
    %119 = vector.broadcast %cst_48 : f32 to vector<512x1xf32>
    %120 = arith.addf %118, %119 : vector<512x1xf32>
    %121 = math.rsqrt %120 : vector<512x1xf32>
    %122 = vector.broadcast %121 : vector<512x1xf32> to vector<512x128xf32>
    %123 = arith.mulf %114, %122 : vector<512x128xf32>
    %124 = vector.broadcast %7 : vector<1x128xf32> to vector<512x128xf32>
    %125 = arith.mulf %123, %124 : vector<512x128xf32>
    %126 = vector.broadcast %8 : vector<1x128xf32> to vector<512x128xf32>
    %127 = arith.addf %125, %126 : vector<512x128xf32>
    %128 = vector.shape_cast %127 : vector<512x128xf32> to vector<2x256x128xf32>
    %c0_49 = arith.constant 0 : index
    %c0_50 = arith.constant 0 : index
    %c0_51 = arith.constant 0 : index
    %129 = vector.load %arg7[%c0_49, %c0_50, %c0_51] : memref<2x256x128xf32, #tpu.memory_space<vmem>>, vector<2x256x128xf32>
    tpu.vector_store %arg7[%c0_49, %c0_50, %c0_51], %128 {strides = array<i32>} : memref<2x256x128xf32, #tpu.memory_space<vmem>>, vector<2x256x128xf32>,
    return
  }
  func.func @transform_0(%arg0: i32) -> (i32, i32, i32) {
    %c0_i32 = arith.constant 0 : i32
    %c0_i32_0 = arith.constant 0 : i32
    %c0_i32_1 = arith.constant 0 : i32
    return %arg0, %c0_i32, %c0_i32_0 : i32, i32, i32
  }
  func.func @transform_1(%arg0: i32) -> (i32, i32) {
    %c0_i32 = arith.constant 0 : i32
    %c0_i32_0 = arith.constant 0 : i32
    %c0_i32_1 = arith.constant 0 : i32
    return %c0_i32, %c0_i32_0 : i32, i32
  }
  func.func @transform_2(%arg0: i32) -> (i32, i32) {
    %c0_i32 = arith.constant 0 : i32
    %c0_i32_0 = arith.constant 0 : i32
    %c0_i32_1 = arith.constant 0 : i32
    return %c0_i32, %c0_i32_0 : i32, i32
  }
  func.func @transform_3(%arg0: i32) -> (i32, i32) {
    %c0_i32 = arith.constant 0 : i32
    %c0_i32_0 = arith.constant 0 : i32
    %c0_i32_1 = arith.constant 0 : i32
    return %c0_i32, %c0_i32_0 : i32, i32
  }
  func.func @transform_4(%arg0: i32) -> (i32, i32) {
    %c0_i32 = arith.constant 0 : i32
    %c0_i32_0 = arith.constant 0 : i32
    %c0_i32_1 = arith.constant 0 : i32
    return %c0_i32, %c0_i32_0 : i32, i32
  }
  func.func @transform_5(%arg0: i32) -> (i32, i32) {
    %c0_i32 = arith.constant 0 : i32
    %c0_i32_0 = arith.constant 0 : i32
    %c0_i32_1 = arith.constant 0 : i32
    return %c0_i32, %c0_i32_0 : i32, i32
  }
  func.func @transform_6(%arg0: i32) -> (i32, i32, i32) {
    %c0_i32 = arith.constant 0 : i32
    %c0_i32_0 = arith.constant 0 : i32
    %c0_i32_1 = arith.constant 0 : i32
    return %arg0, %c0_i32, %c0_i32_0 : i32, i32, i32
  }
}

</mosaic_0001>

<bundles_post_ra>
// kernel: tpu_custom_call.1
= control target key start
LH: loop header
LB: loop body
LE: loop exit
PB: predicated region body
PF: predicated region fallthrough
CT: control target
= control target key end

     0   :  { %11 = vsyncpa [#allocation3], 0  ;;  %s16286_s0 = inlined_call_operand.hbm [shape: f32[2,256,128], index: 0, kind: input, shape index: {}]   ;;  %s16287_s1 = inlined_call_operand.hbm [shape: f32[8,128], index: 1, kind: input, shape index: {}]   ;;  %s16288_s2 = inlined_call_operand.hbm [shape: f32[128,256], index: 2, kind: input, shape index: {}]   ;;  %s16289_s3 = inlined_call_operand.vmem [shape: f32[1,256], index: 3, kind: input, shape index: {}]   ;;  %s16290_s4 = inlined_call_operand.vmem [shape: f32[4,128], index: 4, kind: input, shape index: {}]   ;;  %s16291_s5 = inlined_call_operand.hbm [shape: f32[128,128], index: 5, kind: input, shape index: {}]   ;;  %s16292_s6 = inlined_call_operand.hbm [shape: f32[2,256,128], index: 6, kind: output, shape index: {}]  }
   0x1   :  { %12 = vsyncpa [#allocation6], 0 }
   0x2   :  { %13 = vsyncpa [#allocation9], 0 }
   0x3   :  { %14 = vsyncpa [#allocation4], 0  ;;  %s12113_s21 = smov [#allocation5]   ;;  %s12114_s23 = smov [#allocation2]  }
   0x4   :  { %s33_s22 = sshll.u32 %s12113_s21, 4  ;;  %s20_s24 = sshll.u32 %s12114_s23, 4  ;;  %s34_s22 = int_to_ptr.vmem [resolvable:$true] %s33_s22  ;;  %s21_s24 = int_to_ptr.vmem [resolvable:$true] %s20_s24 }
   0x5   :  { %s12013_s25 = scalar_lea.vmem %s34_s22, 128  ;;  %p12018_p1 = scmp.lt.s32.totalorder %s34_s22, %s34_s22 }
   0x6   :  { %p12014_p0 = scmp.ne.s32.totalorder %s34_s22, %s12013_s25  ;;  %p12019_p2 = scmp.lt.s32.totalorder %s12013_s25, %s12013_s25 }
   0x8   :  { %p12020_p3 = por %p12019_p2, %p12018_p1 }
   0xa   :  { %p12021_p4 = pnand %p12020_p3, %p12014_p0 }
   0xc   :  { %12024 = shalt.err (!%p12021_p4)
}
   0xd   :  { %36 = dma.hbm_to_vmem [thread:$0]  %s16287_s1, 128, %s34_s22, [#allocation6]  }
   0xe   :  { %s12033_s28 = scalar_lea.vmem %s21_s24, 8192  ;;  %p12038_p6 = scmp.lt.s32.totalorder %s21_s24, %s21_s24 }
   0xf   :  { %p12034_p5 = scmp.ne.s32.totalorder %s21_s24, %s12033_s28  ;;  %p12039_p7 = scmp.lt.s32.totalorder %s12033_s28, %s12033_s28 }
  0x11   :  { %p12040_p8 = por %p12039_p7, %p12038_p6 }
  0x13   :  { %p12041_p9 = pnand %p12040_p8, %p12034_p5 }
  0x15   :  { %12044 = shalt.err (!%p12041_p9)
}
  0x16   :  { %s12115_s29 = smov 128   ;;  %s12116_s30 = smov 8  }
  0x17   :  { %26 = dma.hbm_to_vmem [thread:$0]  %s16286_s0, 8192, %s21_s24, [#allocation3], %s12115_s29, %s12115_s29, %s12116_s30  }
  0x18   :  { %s12117_s9 = smov [#allocation7]  }
  0x19   :  { %s42_s10 = sshll.u32 %s12117_s9, 4  ;;  %s43_s10 = int_to_ptr.vmem [resolvable:$true] %s42_s10 }
  0x1a   :  { %s12053_s1 = scalar_lea.vmem %s43_s10, 4096  ;;  %p12058_p11 = scmp.lt.s32.totalorder %s43_s10, %s43_s10 }
  0x1b   :  { %p12054_p10 = scmp.ne.s32.totalorder %s43_s10, %s12053_s1  ;;  %p12059_p12 = scmp.lt.s32.totalorder %s12053_s1, %s12053_s1 }
  0x1d   :  { %p12060_p13 = por %p12059_p12, %p12058_p11 }
  0x1f   :  { %p12061_p0 = pnand %p12060_p13, %p12054_p10 }
  0x21   :  { %12064 = shalt.err (!%p12061_p0)
}
  0x22   :  { %s12118_s11 = smov 256   ;;  %s12119_s12 = smov 16  }
  0x23   :  { %48 = dma.hbm_to_vmem [thread:$0]  %s16288_s2, 4096, %s43_s10, [#allocation6], %s12118_s11, %s12118_s11, %s12119_s12  }
  0x24   :  { %s12120_s15 = smov [#allocation8]  }
  0x25   :  { %s58_s16 = sshll.u32 %s12120_s15, 4  ;;  %s59_s16 = int_to_ptr.vmem [resolvable:$true] %s58_s16 }
  0x26   :  { %s12073_s0 = scalar_lea.vmem %s59_s16, 2048  ;;  %p12078_p2 = scmp.lt.s32.totalorder %s59_s16, %s59_s16 }
  0x27   :  { %p12074_p1 = scmp.ne.s32.totalorder %s59_s16, %s12073_s0  ;;  %p12079_p3 = scmp.lt.s32.totalorder %s12073_s0, %s12073_s0 }
  0x29   :  { %p12080_p4 = por %p12079_p3, %p12078_p2 }
  0x2b   :  { %p12081_p5 = pnand %p12080_p4, %p12074_p1 }
  0x2d   :  { %12084 = shalt.err (!%p12081_p5)
}
  0x2e   :  { %64 = dma.hbm_to_vmem [thread:$0]  %s16291_s5, 2048, %s59_s16, [#allocation9], %s12115_s29, %s12115_s29, %s12116_s30  }
  0x2f   :  { %12105 = dma.done.wait [#allocation3], 8192  }
  0x30   :  { %12106 = vsyncadd [#allocation3], 4294959104 }
  0x31   :  { %12107 = dma.done.wait [#allocation6], 4224  }
  0x32   :  { %12108 = vsyncadd [#allocation6], 4294963072 }
  0x33   :  { %12109 = dma.done.wait [#allocation9], 2048  }
  0x34   :  { %12110 = vsyncadd [#allocation9], 4294965248  ;;  %v16293_v0 = vmov 1.0   ;;  %v12191_v1 = vld [vmem:[#allocation2] sm:$0xff]  ;;  %v12239_v2 = vld [vmem:[#allocation2 + $0x8] sm:$0xff] }
  0x35   :  { %10329 = vmatprep.subr.mxu0 %v16293_v0  ;;  %11225 = vmatprep.subr.mxu1 %v16293_v0  ;;  %v12243_v3 = vld [vmem:[#allocation2 + $0x10] sm:$0xff]  ;;  %v109_v4 = vld [vmem:[#allocation2 + $0x100] sm:$0xff]  ;;  %v110_v5 = vld [vmem:[#allocation2 + $0x108] sm:$0xff] }
  0x36   :  { %10330 = vmatpush3.msra.mxu0 %v16293_v0  ;;  %11241 = vmatpush3.msra.mxu1 %v16293_v0  ;;  %v111_v6 = vld [vmem:[#allocation2 + $0x110] sm:$0xff]  ;;  %v12251_v7 = vld [vmem:[#allocation2 + $0x18] sm:$0xff]  ;;  %v12253_v8 = vld [vmem:[#allocation2 + $0x20] sm:$0xff] }
  0x37   :  { %10331 = vmatprep.subr.mxu0 %v16293_v0  ;;  %11226 = vmatprep.subr.mxu1 %v16293_v0  ;;  %v112_v9 = vld [vmem:[#allocation2 + $0x118] sm:$0xff]  ;;  %v113_v10 = vld [vmem:[#allocation2 + $0x120] sm:$0xff]  ;;  %v12260_v11 = vld [vmem:[#allocation2 + $0x28] sm:$0xff] }
  0x38   :  { %10332 = vmatpush3.msra.mxu0 %v16293_v0  ;;  %11242 = vmatpush3.msra.mxu1 %v16293_v0  ;;  %v12263_v12 = vld [vmem:[#allocation2 + $0x30] sm:$0xff]  ;;  %v114_v13 = vld [vmem:[#allocation2 + $0x128] sm:$0xff]  ;;  %v12270_v15 = vld [vmem:[#allocation2 + $0x38] sm:$0xff] }
  0x39   :  { %10333 = vmatprep.subr.mxu0 %v16293_v0  ;;  %11227 = vmatprep.subr.mxu1 %v16293_v0  ;;  %v115_v14 = vld [vmem:[#allocation2 + $0x130] sm:$0xff]  ;;  %v12273_v16 = vld [vmem:[#allocation2 + $0x40] sm:$0xff]  ;;  %v116_v17 = vld [vmem:[#allocation2 + $0x138] sm:$0xff] }
  0x3a   :  { %10334 = vmatpush3.msra.mxu0 %v16293_v0  ;;  %11243 = vmatpush3.msra.mxu1 %v16293_v0  ;;  %v117_v18 = vld [vmem:[#allocation2 + $0x140] sm:$0xff]  ;;  %v12280_v19 = vld [vmem:[#allocation2 + $0x48] sm:$0xff]  ;;  %v12283_v20 = vld [vmem:[#allocation2 + $0x50] sm:$0xff] }
  0x3b   :  { %10335 = vmatprep.subr.mxu0 %v16293_v0  ;;  %11228 = vmatprep.subr.mxu1 %v16293_v0  ;;  %v118_v21 = vld [vmem:[#allocation2 + $0x148] sm:$0xff]  ;;  %v119_v22 = vld [vmem:[#allocation2 + $0x150] sm:$0xff]  ;;  %v12290_v23 = vld [vmem:[#allocation2 + $0x58] sm:$0xff] }
  0x3c   :  { %10336 = vmatpush3.msra.mxu0 %v16293_v0  ;;  %10361 = vmatprep.mubr.f32.mxu0 %v12191_v1  ;;  %v12293_v24 = vld [vmem:[#allocation2 + $0x60] sm:$0xff]  ;;  %v120_v25 = vld [vmem:[#allocation2 + $0x158] sm:$0xff]  ;;  %v12300_v27 = vld [vmem:[#allocation2 + $0x68] sm:$0xff] }
  0x3d   :  { %10337 = vmatprep.subr.mxu0 %v16293_v0  ;;  %11244 = vmatpush3.msra.mxu1 %v16293_v0  ;;  %v121_v26 = vld [vmem:[#allocation2 + $0x160] sm:$0xff]  ;;  %v12303_v28 = vld [vmem:[#allocation2 + $0x70] sm:$0xff]  ;;  %v122_v29 = vld [vmem:[#allocation2 + $0x168] sm:$0xff] }
  0x3e   :  { %10338 = vmatpush3.msra.mxu0 %v16293_v0  ;;  %11229 = vmatprep.subr.mxu1 %v16293_v0  ;;  %v123_v30 = vld [vmem:[#allocation2 + $0x170] sm:$0xff]  ;;  %v12310_v31 = vld [vmem:[#allocation2 + $0x78] sm:$0xff]  ;;  %v12313_v32 = vld [vmem:[#allocation2 + $0x80] sm:$0xff] }
  0x3f   :  { %10339 = vmatprep.subr.mxu0 %v16293_v0  ;;  %11245 = vmatpush3.msra.mxu1 %v16293_v0  ;;  %v124_v33 = vld [vmem:[#allocation2 + $0x178] sm:$0xff]  ;;  %v125_v34 = vld [vmem:[#allocation2 + $0x180] sm:$0xff]  ;;  %v12320_v35 = vld [vmem:[#allocation2 + $0x88] sm:$0xff] }
  0x40   :  { %10340 = vmatpush3.msra.mxu0 %v16293_v0  ;;  %11230 = vmatprep.subr.mxu1 %v16293_v0  ;;  %v12323_v36 = vld [vmem:[#allocation2 + $0x90] sm:$0xff]  ;;  %v126_v37 = vld [vmem:[#allocation2 + $0x188] sm:$0xff]  ;;  %v12330_v39 = vld [vmem:[#allocation2 + $0x98] sm:$0xff] }
  0x41   :  { %10341 = vmatprep.subr.mxu0 %v16293_v0  ;;  %11246 = vmatpush3.msra.mxu1 %v16293_v0  ;;  %v127_v38 = vld [vmem:[#allocation2 + $0x190] sm:$0xff]  ;;  %v12333_v40 = vld [vmem:[#allocation2 + $0xa0] sm:$0xff]  ;;  %v128_v41 = vld [vmem:[#allocation2 + $0x198] sm:$0xff] }
  0x42   :  { %10342 = vmatpush3.msra.mxu0 %v16293_v0  ;;  %11231 = vmatprep.subr.mxu1 %v16293_v0  ;;  %v12338_v42 = vld [vmem:[#allocation2 + $0x1a0] sm:$0xff]  ;;  %v12342_v43 = vld [vmem:[#allocation2 + $0xa8] sm:$0xff]  ;;  %v12345_v44 = vld [vmem:[#allocation2 + $0xb0] sm:$0xff] }
  0x43   :  { %10343 = vmatprep.subr.mxu0 %v16293_v0  ;;  %11247 = vmatpush3.msra.mxu1 %v16293_v0  ;;  %16465 = vst [vmem:[#allocation15_spill] sm:$0xff] %v12338_v42  ;;  %v12349_v45 = vld [vmem:[#allocation2 + $0x1a8] sm:$0xff]  ;;  %v12353_v46 = vld [vmem:[#allocation2 + $0x1b0] sm:$0xff]  ;;  %v12357_v47 = vld [vmem:[#allocation2 + $0xb8] sm:$0xff] }
  0x44   :  { %10344 = vmatpush3.msra.mxu0 %v16293_v0  ;;  %11232 = vmatprep.subr.mxu1 %v16293_v0  ;;  %16466 = vst [vmem:[#allocation16_spill] sm:$0xff] %v12349_v45  ;;  %16467 = vst [vmem:[#allocation17_spill] sm:$0xff] %v12353_v46  ;;  %v12360_v48 = vld [vmem:[#allocation2 + $0xc0] sm:$0xff]  ;;  %v12365_v49 = vld [vmem:[#allocation2 + $0x1b8] sm:$0xff] }
  0x45   :  { %10345 = vmatprep.subr.mxu0 %v16293_v0  ;;  %11248 = vmatpush3.msra.mxu1 %v16293_v0  ;;  %16468 = vst [vmem:[#allocation18_spill] sm:$0xff] %v12365_v49  ;;  %v12369_v50 = vld [vmem:[#allocation2 + $0x1c0] sm:$0xff]  ;;  %v12373_v51 = vld [vmem:[#allocation2 + $0xc8] sm:$0xff]  ;;  %v12376_v52 = vld [vmem:[#allocation2 + $0xd0] sm:$0xff] }
  0x46   :  { %10346 = vmatpush3.msra.mxu0 %v16293_v0  ;;  %11233 = vmatprep.subr.mxu1 %v16293_v0  ;;  %16469 = vst [vmem:[#allocation19_spill] sm:$0xff] %v12369_v50  ;;  %v12381_v53 = vld [vmem:[#allocation2 + $0x1c8] sm:$0xff]  ;;  %v12385_v54 = vld [vmem:[#allocation2 + $0x1d0] sm:$0xff]  ;;  %v12389_v55 = vld [vmem:[#allocation2 + $0xd8] sm:$0xff] }
  0x47   :  { %10347 = vmatprep.subr.mxu0 %v16293_v0  ;;  %11249 = vmatpush3.msra.mxu1 %v16293_v0  ;;  %16470 = vst [vmem:[#allocation20_spill] sm:$0xff] %v12381_v53  ;;  %16471 = vst [vmem:[#allocation21_spill] sm:$0xff] %v12385_v54  ;;  %v12392_v56 = vld [vmem:[#allocation2 + $0xe0] sm:$0xff]  ;;  %v12397_v57 = vld [vmem:[#allocation2 + $0x1d8] sm:$0xff] }
  0x48   :  { %10348 = vmatpush3.msra.mxu0 %v16293_v0  ;;  %11234 = vmatprep.subr.mxu1 %v16293_v0  ;;  %16472 = vst [vmem:[#allocation22_spill] sm:$0xff] %v12397_v57  ;;  %v12401_v58 = vld [vmem:[#allocation2 + $0x1e0] sm:$0xff]  ;;  %v12405_v59 = vld [vmem:[#allocation2 + $0xe8] sm:$0xff]  ;;  %v12408_v60 = vld [vmem:[#allocation2 + $0xf0] sm:$0xff] }
  0x49   :  { %10349 = vmatprep.subr.mxu0 %v16293_v0  ;;  %11250 = vmatpush3.msra.mxu1 %v16293_v0  ;;  %16473 = vst [vmem:[#allocation23_spill] sm:$0xff] %v12401_v58  ;;  %v12413_v61 = vld [vmem:[#allocation2 + $0x1e8] sm:$0xff]  ;;  %v12417_v62 = vld [vmem:[#allocation2 + $0x1f0] sm:$0xff]  ;;  %v12421_v63 = vld [vmem:[#allocation2 + $0xf8] sm:$0xff] }
  0x4a   :  { %10350 = vmatpush3.msra.mxu0 %v16293_v0  ;;  %11235 = vmatprep.subr.mxu1 %v16293_v0  ;;  %16474 = vst [vmem:[#allocation24_spill] sm:$0xff] %v12413_v61  ;;  %16475 = vst [vmem:[#allocation25_spill] sm:$0xff] %v12417_v62 }
  0x4b   :  { %10351 = vmatprep.subr.mxu0 %v16293_v0  ;;  %11251 = vmatpush3.msra.mxu1 %v16293_v0 }
  0x4c   :  { %10352 = vmatpush3.msra.mxu0 %v16293_v0  ;;  %11236 = vmatprep.subr.mxu1 %v16293_v0 }
  0x4d   :  { %10353 = vmatprep.subr.mxu0 %v16293_v0  ;;  %11252 = vmatpush3.msra.mxu1 %v16293_v0 }
  0x4e   :  { %10354 = vmatpush3.msra.mxu0 %v16293_v0  ;;  %11237 = vmatprep.subr.mxu1 %v16293_v0 }
  0x4f   :  { %10355 = vmatprep.subr.mxu0 %v16293_v0  ;;  %11253 = vmatpush3.msra.mxu1 %v16293_v0 }
  0x50   :  { %10356 = vmatpush3.msra.mxu0 %v16293_v0  ;;  %11238 = vmatprep.subr.mxu1 %v16293_v0 }
  0x51   :  { %10357 = vmatprep.subr.mxu0 %v16293_v0  ;;  %11254 = vmatpush3.msra.mxu1 %v16293_v0 }
  0x52   :  { %10358 = vmatpush3.msra.mxu0 %v16293_v0  ;;  %11239 = vmatprep.subr.mxu1 %v16293_v0 }
  0x53   :  { %10359 = vmatprep.subr.mxu0 %v16293_v0  ;;  %11255 = vmatpush3.msra.mxu1 %v16293_v0 }
  0x54   :  { %10360 = vmatpush3.msra.mxu0 %v16293_v0  ;;  %11240 = vmatprep.subr.mxu1 %v16293_v0 }
  0x55   :  { %10362 = vmatmul.mubr.f32.vlgmr.msra.gmra.mxu0 %v12239_v2  ;;  %11256 = vmatpush3.msra.mxu1 %v16293_v0 }
  0x56   :  { %10364 = vmatprep.mubr.f32.mxu0 %v12243_v3  ;;  %10409 = vmatprep.mubr.f32.mxu1 %v109_v4  ;;  %v12427_v4 = vld [vmem:[#allocation2 + $0x1f8] sm:$0xff] }
  0x57   :  { %10410 = vmatmul.mubr.f32.vlgmr.msra.gmra.mxu1 %v110_v5  ;;  %10457 = vmatprep.subr.mxu1 %v16293_v0  ;;  %16476 = vst [vmem:[#allocation26_spill] sm:$0xff] %v12427_v4  ;;  %v12122_v5 = vmov 0  }
  0x58   :  { %10412 = vmatprep.mubr.f32.mxu1 %v111_v6  ;;  %10458 = vmatpush3.msra.mxu1 %v16293_v0 }
  0x59   :  { %10365 = vmatmul.mubr.f32.gmra.mxu0 %v12251_v7  ;;  %10459 = vmatprep.subr.mxu1 %v16293_v0 }
  0x5a   :  { %10367 = vmatprep.mubr.f32.mxu0 %v12253_v8  ;;  %10460 = vmatpush3.msra.mxu1 %v16293_v0 }
  0x5b   :  { %10413 = vmatmul.mubr.f32.gmra.mxu1 %v112_v9  ;;  %10461 = vmatprep.subr.mxu1 %v16293_v0 }
  0x5c   :  { %10415 = vmatprep.mubr.f32.mxu1 %v113_v10  ;;  %10462 = vmatpush3.msra.mxu1 %v16293_v0 }
  0x5d   :  { %10368 = vmatmul.mubr.f32.gmra.mxu0 %v12260_v11  ;;  %10463 = vmatprep.subr.mxu1 %v16293_v0 }
  0x5e   :  { %10370 = vmatprep.mubr.f32.mxu0 %v12263_v12  ;;  %10464 = vmatpush3.msra.mxu1 %v16293_v0 }
  0x5f   :  { %10416 = vmatmul.mubr.f32.gmra.mxu1 %v114_v13  ;;  %10465 = vmatprep.subr.mxu1 %v16293_v0 }
  0x60   :  { %10418 = vmatprep.mubr.f32.mxu1 %v115_v14  ;;  %10466 = vmatpush3.msra.mxu1 %v16293_v0 }
  0x61   :  { %10371 = vmatmul.mubr.f32.gmra.mxu0 %v12270_v15  ;;  %10467 = vmatprep.subr.mxu1 %v16293_v0 }
  0x62   :  { %10373 = vmatprep.mubr.f32.mxu0 %v12273_v16  ;;  %10468 = vmatpush3.msra.mxu1 %v16293_v0 }
  0x63   :  { %10419 = vmatmul.mubr.f32.gmra.mxu1 %v116_v17  ;;  %10469 = vmatprep.subr.mxu1 %v16293_v0 }
  0x64   :  { %10421 = vmatprep.mubr.f32.mxu1 %v117_v18  ;;  %10470 = vmatpush3.msra.mxu1 %v16293_v0 }
  0x65   :  { %10374 = vmatmul.mubr.f32.gmra.mxu0 %v12280_v19  ;;  %10471 = vmatprep.subr.mxu1 %v16293_v0 }
  0x66   :  { %10376 = vmatprep.mubr.f32.mxu0 %v12283_v20  ;;  %10472 = vmatpush3.msra.mxu1 %v16293_v0 }
  0x67   :  { %10422 = vmatmul.mubr.f32.gmra.mxu1 %v118_v21  ;;  %10473 = vmatprep.subr.mxu1 %v16293_v0 }
  0x68   :  { %10424 = vmatprep.mubr.f32.mxu1 %v119_v22  ;;  %10474 = vmatpush3.msra.mxu1 %v16293_v0 }
  0x69   :  { %10377 = vmatmul.mubr.f32.gmra.mxu0 %v12290_v23  ;;  %10475 = vmatprep.subr.mxu1 %v16293_v0 }
  0x6a   :  { %10379 = vmatprep.mubr.f32.mxu0 %v12293_v24  ;;  %10476 = vmatpush3.msra.mxu1 %v16293_v0 }
  0x6b   :  { %10425 = vmatmul.mubr.f32.gmra.mxu1 %v120_v25  ;;  %10477 = vmatprep.subr.mxu1 %v16293_v0 }
  0x6c   :  { %10427 = vmatprep.mubr.f32.mxu1 %v121_v26  ;;  %10478 = vmatpush3.msra.mxu1 %v16293_v0 }
  0x6d   :  { %10380 = vmatmul.mubr.f32.gmra.mxu0 %v12300_v27  ;;  %10479 = vmatprep.subr.mxu1 %v16293_v0 }
  0x6e   :  { %10382 = vmatprep.mubr.f32.mxu0 %v12303_v28  ;;  %10480 = vmatpush3.msra.mxu1 %v16293_v0 }
  0x6f   :  { %10428 = vmatmul.mubr.f32.gmra.mxu1 %v122_v29  ;;  %10481 = vmatprep.subr.mxu1 %v16293_v0 }
  0x70   :  { %10430 = vmatprep.mubr.f32.mxu1 %v123_v30  ;;  %10482 = vmatpush3.msra.mxu1 %v16293_v0 }
  0x71   :  { %10383 = vmatmul.mubr.f32.gmra.mxu0 %v12310_v31  ;;  %10483 = vmatprep.subr.mxu1 %v16293_v0 }
  0x72   :  { %10385 = vmatprep.mubr.f32.mxu0 %v12313_v32  ;;  %10484 = vmatpush3.msra.mxu1 %v16293_v0 }
  0x73   :  { %10431 = vmatmul.mubr.f32.gmra.mxu1 %v124_v33  ;;  %10485 = vmatprep.subr.mxu1 %v16293_v0 }
  0x74   :  { %10433 = vmatprep.mubr.f32.mxu1 %v125_v34  ;;  %10486 = vmatpush3.msra.mxu1 %v16293_v0 }
  0x75   :  { %10386 = vmatmul.mubr.f32.gmra.mxu0 %v12320_v35  ;;  %10487 = vmatprep.subr.mxu1 %v16293_v0 }
  0x76   :  { %10388 = vmatprep.mubr.f32.mxu0 %v12323_v36  ;;  %10488 = vmatpush3.msra.mxu1 %v16293_v0 }
  0x77   :  { %10434 = vmatmul.mubr.f32.gmra.mxu1 %v126_v37  ;;  %10585 = vmatprep.subr.mxu0 %v16293_v0 }
  0x78   :  { %10436 = vmatprep.mubr.f32.mxu1 %v127_v38  ;;  %10586 = vmatpush3.msra.mxu0 %v16293_v0 }
  0x79   :  { %10389 = vmatmul.mubr.f32.gmra.mxu0 %v12330_v39  ;;  %10587 = vmatprep.subr.mxu0 %v16293_v0 }
  0x7a   :  { %10391 = vmatprep.mubr.f32.mxu0 %v12333_v40  ;;  %10588 = vmatpush3.msra.mxu0 %v16293_v0 }
  0x7b   :  { %10437 = vmatmul.mubr.f32.gmra.mxu1 %v128_v41  ;;  %10589 = vmatprep.subr.mxu0 %v16293_v0 }
  0x7c   :  { %10439 = vmatprep.mubr.f32.mxu1 %v12338_v42  ;;  %10590 = vmatpush3.msra.mxu0 %v16293_v0 }
  0x7d   :  { %10392 = vmatmul.mubr.f32.gmra.mxu0 %v12342_v43  ;;  %10591 = vmatprep.subr.mxu0 %v16293_v0 }
  0x7e   :  { %10394 = vmatprep.mubr.f32.mxu0 %v12345_v44  ;;  %10592 = vmatpush3.msra.mxu0 %v16293_v0 }
  0x7f   :  { %10440 = vmatmul.mubr.f32.gmra.mxu1 %v12349_v45  ;;  %10593 = vmatprep.subr.mxu0 %v16293_v0 }
  0x80   :  { %10442 = vmatprep.mubr.f32.mxu1 %v12353_v46  ;;  %10594 = vmatpush3.msra.mxu0 %v16293_v0 }
  0x81   :  { %10395 = vmatmul.mubr.f32.gmra.mxu0 %v12357_v47  ;;  %10595 = vmatprep.subr.mxu0 %v16293_v0 }
  0x82   :  { %10397 = vmatprep.mubr.f32.mxu0 %v12360_v48  ;;  %10596 = vmatpush3.msra.mxu0 %v16293_v0 }
  0x83   :  { %10443 = vmatmul.mubr.f32.gmra.mxu1 %v12365_v49  ;;  %10597 = vmatprep.subr.mxu0 %v16293_v0 }
  0x84   :  { %10445 = vmatprep.mubr.f32.mxu1 %v12369_v50  ;;  %10598 = vmatpush3.msra.mxu0 %v16293_v0 }
  0x85   :  { %10398 = vmatmul.mubr.f32.gmra.mxu0 %v12373_v51  ;;  %10599 = vmatprep.subr.mxu0 %v16293_v0 }
  0x86   :  { %10400 = vmatprep.mubr.f32.mxu0 %v12376_v52  ;;  %10600 = vmatpush3.msra.mxu0 %v16293_v0 }
  0x87   :  { %10446 = vmatmul.mubr.f32.gmra.mxu1 %v12381_v53  ;;  %10601 = vmatprep.subr.mxu0 %v16293_v0 }
  0x88   :  { %10448 = vmatprep.mubr.f32.mxu1 %v12385_v54  ;;  %10602 = vmatpush3.msra.mxu0 %v16293_v0 }
  0x89   :  { %10401 = vmatmul.mubr.f32.gmra.mxu0 %v12389_v55  ;;  %10603 = vmatprep.subr.mxu0 %v16293_v0 }
  0x8a   :  { %10403 = vmatprep.mubr.f32.mxu0 %v12392_v56  ;;  %10604 = vmatpush3.msra.mxu0 %v16293_v0 }
  0x8b   :  { %10449 = vmatmul.mubr.f32.gmra.mxu1 %v12397_v57  ;;  %10605 = vmatprep.subr.mxu0 %v16293_v0 }
  0x8c   :  { %10451 = vmatprep.mubr.f32.mxu1 %v12401_v58  ;;  %10606 = vmatpush3.msra.mxu0 %v16293_v0 }
  0x8d   :  { %10404 = vmatmul.mubr.f32.gmra.mxu0 %v12405_v59  ;;  %10607 = vmatprep.subr.mxu0 %v16293_v0 }
  0x8e   :  { %10406 = vmatprep.mubr.f32.mxu0 %v12408_v60  ;;  %10608 = vmatpush3.msra.mxu0 %v16293_v0 }
  0x8f   :  { %10452 = vmatmul.mubr.f32.gmra.mxu1 %v12413_v61  ;;  %10609 = vmatprep.subr.mxu0 %v16293_v0 }
  0x90   :  { %10454 = vmatprep.mubr.f32.mxu1 %v12417_v62  ;;  %10610 = vmatpush3.msra.mxu0 %v16293_v0 }
  0x91   :  { %10407 = vmatmul.mubr.f32.gmra.mxu0 %v12421_v63  ;;  %10611 = vmatprep.subr.mxu0 %v16293_v0 }
  0x92   :  { %10612 = vmatpush3.msra.mxu0 %v16293_v0  ;;  %10713 = vmatprep.subr.mxu1 %v16293_v0 }
  0x93   :  { %10455 = vmatmul.mubr.f32.gmra.mxu1 %v12427_v4  ;;  %10613 = vmatprep.subr.mxu0 %v16293_v0 }
  0x94   :  { %10614 = vmatpush3.msra.mxu0 %v16293_v0  ;;  %11269 = vset.pattern.permute.xlu0 %v12122_v5 }
  0x95   :  { %10615 = vmatprep.subr.mxu0 %v16293_v0  ;;  %11270 = vset.pattern.permute.xlu1 %v12122_v5 }
  0x96   :  { %10616 = vmatpush3.msra.mxu0 %v16293_v0 }
 0x115   :  { %v10363_v6 = vpop.f32.mrf.mxu0 }
 0x116   :  { %v534_v22 = vmul.f32 0.0078125, %v10363_v6 }
 0x117   :  { %v214_v9 = vpop.f32.mrf.mxu0  ;;  %v12439_v10 = vpop.f32.mrf.mxu1 }
 0x118   :  { %v533_v13 = vmul.f32 0.0078125, %v214_v9 }
 0x119   :  { %v10366_v14 = vpop.f32.mrf.mxu0  ;;  %v12441_v17 = vpop.f32.mrf.mxu1 }
 0x11a   :  { %599 = vperm.xlu0 %11269, %v533_v13   ;;  %v536_v33 = vmul.f32 0.0078125, %v10366_v14 }
 0x11b   :  { %v224_v18 = vpop.f32.mrf.mxu0  ;;  %v12443_v21 = vpop.f32.mrf.mxu1 }
 0x11c   :  { %v535_v25 = vmul.f32 0.0078125, %v224_v18 }
 0x11d   :  { %v10369_v26 = vpop.f32.mrf.mxu0  ;;  %v12445_v30 = vpop.f32.mrf.mxu1 }
 0x11e   :  { %604 = vperm.xlu0 %11269, %v534_v22   ;;  %609 = vperm.xlu1 %11270, %v535_v25   ;;  %v538_v38 = vmul.f32 0.0078125, %v10369_v26 }
 0x11f   :  { %v234_v29 = vpop.f32.mrf.mxu0  ;;  %v12447_v5 = vpop.f32.mrf.mxu1 }
 0x120   :  { %v537_v34 = vmul.f32 0.0078125, %v234_v29 }
 0x121   :  { %v10372_v37 = vpop.f32.mrf.mxu0  ;;  %v12449_v18 = vpop.f32.mrf.mxu1 }
 0x122   :  { %614 = vperm.xlu1 %11270, %v536_v33   ;;  %619 = vperm.xlu0 %11269, %v537_v34   ;;  %v540_v0 = vmul.f32 0.0078125, %v10372_v37 }
 0x123   :  { %v244_v41 = vpop.f32.mrf.mxu0  ;;  %v12451_v26 = vpop.f32.mrf.mxu1 }
 0x124   :  { %v539_v9 = vmul.f32 0.0078125, %v244_v41 }
 0x125   :  { %v10375_v13 = vpop.f32.mrf.mxu0  ;;  %v12453_v37 = vpop.f32.mrf.mxu1 }
 0x126   :  { %624 = vperm.xlu1 %11270, %v538_v38   ;;  %629 = vperm.xlu0 %11269, %v539_v9   ;;  %v542_v4 = vmul.f32 0.0078125, %v10375_v13 }
 0x127   :  { %v254_v6 = vpop.f32.mrf.mxu0  ;;  %v12455_v13 = vpop.f32.mrf.mxu1 }
 0x128   :  { %v541_v22 = vmul.f32 0.0078125, %v254_v6 }
 0x129   :  { %v10378_v25 = vpop.f32.mrf.mxu0 }
 0x12a   :  { %634 = vperm.xlu1 %11270, %v540_v0   ;;  %639 = vperm.xlu0 %11269, %v541_v22   ;;  %v544_v34 = vmul.f32 0.0078125, %v10378_v25  ;;  %v12457_v25 = vpop.f32.mrf.mxu1 }
 0x12b   :  { %v264_v14 = vpop.f32.mrf.mxu0 }
 0x12c   :  { %v543_v29 = vmul.f32 0.0078125, %v264_v14 }
 0x12d   :  { %v10381_v33 = vpop.f32.mrf.mxu0 }
 0x12e   :  { %644 = vperm.xlu1 %11270, %v542_v4   ;;  %649 = vperm.xlu0 %11269, %v543_v29   ;;  %v546_v62 = vmul.f32 0.0078125, %v10381_v33  ;;  %v12459_v33 = vpop.f32.mrf.mxu1 }
 0x12f   :  { %v274_v41 = vpop.f32.mrf.mxu0 }
 0x130   :  { %v545_v38 = vmul.f32 0.0078125, %v274_v41 }
 0x131   :  { %v10384_v9 = vpop.f32.mrf.mxu0 }
 0x132   :  { %654 = vperm.xlu1 %11270, %v544_v34   ;;  %659 = vperm.xlu0 %11269, %v545_v38   ;;  %v548_v61 = vmul.f32 0.0078125, %v10384_v9  ;;  %v12461_v9 = vpop.f32.mrf.mxu1 }
 0x133   :  { %v284_v6 = vpop.f32.mrf.mxu0 }
 0x134   :  { %v547_v0 = vmul.f32 0.0078125, %v284_v6 }
 0x135   :  { %v10387_v22 = vpop.f32.mrf.mxu0 }
 0x136   :  { %664 = vperm.xlu1 %11270, %v546_v62   ;;  %669 = vperm.xlu0 %11269, %v547_v0   ;;  %v550_v58 = vmul.f32 0.0078125, %v10387_v22  ;;  %v12463_v22 = vpop.f32.mrf.mxu1 }
 0x137   :  { %v294_v14 = vpop.f32.mrf.mxu0 }
 0x138   :  { %v549_v4 = vmul.f32 0.0078125, %v294_v14 }
 0x139   :  { %v10390_v29 = vpop.f32.mrf.mxu0 }
 0x13a   :  { %674 = vperm.xlu1 %11270, %v548_v61   ;;  %679 = vperm.xlu0 %11269, %v549_v4   ;;  %v552_v57 = vmul.f32 0.0078125, %v10390_v29  ;;  %v434_v29 = vpop.f32.mrf.mxu1 }
 0x13b   :  { %v304_v41 = vpop.f32.mrf.mxu0 }
 0x13c   :  { %v551_v34 = vmul.f32 0.0078125, %v304_v41  ;;  %v10432_v49 = vpop.f32.mrf.mxu1 }
 0x13d   :  { %v10393_v38 = vpop.f32.mrf.mxu0 }
 0x13e   :  { %684 = vperm.xlu1 %11270, %v550_v58   ;;  %689 = vperm.xlu0 %11269, %v551_v34   ;;  %v554_v54 = vmul.f32 0.0078125, %v10393_v38 }
 0x13f   :  { %v314_v6 = vpop.f32.mrf.mxu0 }
 0x140   :  { %v553_v62 = vmul.f32 0.0078125, %v314_v6 }
 0x141   :  { %v10396_v0 = vpop.f32.mrf.mxu0 }
 0x142   :  { %694 = vperm.xlu1 %11270, %v552_v57   ;;  %699 = vperm.xlu0 %11269, %v553_v62   ;;  %v556_v53 = vmul.f32 0.0078125, %v10396_v0 }
 0x143   :  { %v324_v14 = vpop.f32.mrf.mxu0 }
 0x144   :  { %v555_v61 = vmul.f32 0.0078125, %v324_v14  ;;  %v444_v14 = vpop.f32.mrf.mxu1 }
 0x145   :  { %v10399_v4 = vpop.f32.mrf.mxu0 }
 0x146   :  { %704 = vperm.xlu1 %11270, %v554_v54   ;;  %709 = vperm.xlu0 %11269, %v555_v61   ;;  %v558_v50 = vmul.f32 0.0078125, %v10399_v4 }
 0x147   :  { %v334_v41 = vpop.f32.mrf.mxu0 }
 0x148   :  { %v557_v58 = vmul.f32 0.0078125, %v334_v41  ;;  %v10435_v41 = vpop.f32.mrf.mxu1 }
 0x149   :  { %v10402_v34 = vpop.f32.mrf.mxu0 }
 0x14a   :  { %714 = vperm.xlu1 %11270, %v556_v53   ;;  %719 = vperm.xlu0 %11269, %v557_v58   ;;  %v560_v62 = vmul.f32 0.0078125, %v10402_v34  ;;  %v565_v53 = vmul.f32 0.0078125, %v12441_v17  ;;  %v454_v58 = vpop.f32.mrf.mxu1  ;;  %v566_v34 = vmul.f32 0.0078125, %v12439_v10  ;;  %v572_v10 = vmul.f32 0.0078125, %v12451_v26 }
 0x14b   :  { %v344_v6 = vpop.f32.mrf.mxu0  ;;  %v578_v26 = vmul.f32 0.0078125, %v12463_v22 }
 0x14c   :  { %v559_v38 = vmul.f32 0.0078125, %v344_v6  ;;  %v568_v6 = vmul.f32 0.0078125, %v12443_v21  ;;  %v574_v21 = vmul.f32 0.0078125, %v12455_v13  ;;  %v581_v13 = vmul.f32 0.0078125, %v454_v58 }
 0x14d   :  { %v10405_v57 = vpop.f32.mrf.mxu0 }
 0x14e   :  { %724 = vperm.xlu1 %11270, %v558_v50   ;;  %729 = vperm.xlu0 %11269, %v559_v38   ;;  %v562_v54 = vmul.f32 0.0078125, %v10405_v57  ;;  %v567_v50 = vmul.f32 0.0078125, %v12445_v30  ;;  %v570_v57 = vmul.f32 0.0078125, %v12447_v5  ;;  %v573_v30 = vmul.f32 0.0078125, %v12457_v25 }
 0x14f   :  { %v354_v46 = vpop.f32.mrf.mxu0  ;;  %v576_v5 = vmul.f32 0.0078125, %v12459_v33 }
 0x150   :  { %v561_v45 = vmul.f32 0.0078125, %v354_v46  ;;  %v10438_v46 = vpop.f32.mrf.mxu1 }
 0x151   :  { %v10408_v0 = vpop.f32.mrf.mxu0 }
 0x152   :  { %734 = vperm.xlu1 %11270, %v560_v62   ;;  %739 = vperm.xlu0 %11269, %v561_v45   ;;  %v564_v4 = vmul.f32 0.0078125, %v10408_v0  ;;  %v569_v45 = vmul.f32 0.0078125, %v12449_v18  ;;  %v464_v38 = vpop.f32.mrf.mxu1  ;;  %v575_v18 = vmul.f32 0.0078125, %v12461_v9 }
 0x153   :  { %v364_v61 = vpop.f32.mrf.mxu0  ;;  %v583_v9 = vmul.f32 0.0078125, %v464_v38 }
 0x154   :  { %v563_v42 = vmul.f32 0.0078125, %v364_v61  ;;  %v10441_v17 = vpop.f32.mrf.mxu1  ;;  %v579_v61 = vmul.f32 0.0078125, %v444_v14 }
 0x155   :  { %v586_v22 = vmul.f32 0.0078125, %v10441_v17 }
 0x156   :  { %744 = vperm.xlu1 %11270, %v562_v54   ;;  %749 = vperm.xlu0 %11269, %v563_v42   ;;  %v571_v42 = vmul.f32 0.0078125, %v12453_v37  ;;  %v474_v62 = vpop.f32.mrf.mxu1  ;;  %v577_v37 = vmul.f32 0.0078125, %v434_v29 }
 0x157   :  { %v585_v29 = vmul.f32 0.0078125, %v474_v62 }
 0x158   :  { %v10444_v0 = vpop.f32.mrf.mxu1 }
 0x15a   :  { %754 = vperm.xlu1 %11270, %v564_v4   ;;  %759 = vperm.xlu0 %11269, %v565_v53   ;;  %v484_v54 = vpop.f32.mrf.mxu1  ;;  %v580_v4 = vmul.f32 0.0078125, %v10432_v49  ;;  %v588_v49 = vmul.f32 0.0078125, %v10444_v0 }
 0x15b   :  { %v587_v14 = vmul.f32 0.0078125, %v484_v54 }
 0x15c   :  { %v10447_v25 = vpop.f32.mrf.mxu1 }
 0x15e   :  { %764 = vperm.xlu1 %11270, %v566_v34   ;;  %769 = vperm.xlu0 %11269, %v567_v50   ;;  %v494_v53 = vpop.f32.mrf.mxu1  ;;  %v582_v34 = vmul.f32 0.0078125, %v10435_v41  ;;  %v584_v50 = vmul.f32 0.0078125, %v10438_v46  ;;  %v590_v41 = vmul.f32 0.0078125, %v10447_v25 }
 0x15f   :  { %v589_v58 = vmul.f32 0.0078125, %v494_v53 }
 0x160   :  { %v10450_v33 = vpop.f32.mrf.mxu1 }
 0x161   :  { %v592_v46 = vmul.f32 0.0078125, %v10450_v33 }
 0x162   :  { %774 = vperm.xlu1 %11270, %v568_v6   ;;  %779 = vperm.xlu0 %11269, %v569_v45   ;;  %v504_v6 = vpop.f32.mrf.mxu1 }
 0x163   :  { %v591_v38 = vmul.f32 0.0078125, %v504_v6 }
 0x164   :  { %v10453_v45 = vpop.f32.mrf.mxu1 }
 0x165   :  { %v594_v17 = vmul.f32 0.0078125, %v10453_v45 }
 0x166   :  { %784 = vperm.xlu1 %11270, %v570_v57   ;;  %789 = vperm.xlu0 %11269, %v571_v42   ;;  %v514_v57 = vpop.f32.mrf.mxu1 }
 0x168   :  { %v10456_v42 = vpop.f32.mrf.mxu1 }
 0x16a   :  { %794 = vperm.xlu1 %11270, %v572_v10   ;;  %799 = vperm.xlu0 %11269, %v573_v30   ;;  %v593_v10 = vmul.f32 0.0078125, %v514_v57  ;;  %v524_v30 = vpop.f32.mrf.mxu1 }
 0x16b   :  { %v595_v62 = vmul.f32 0.0078125, %v524_v30 }
 0x16e   :  { %804 = vperm.xlu1 %11270, %v574_v21   ;;  %809 = vperm.xlu0 %11269, %v575_v18   ;;  %v596_v18 = vmul.f32 0.0078125, %v10456_v42 }
 0x172   :  { %814 = vperm.xlu1 %11270, %v576_v5   ;;  %819 = vperm.xlu0 %11269, %v577_v37  }
 0x176   :  { %824 = vperm.xlu1 %11270, %v578_v26   ;;  %829 = vperm.xlu0 %11269, %v579_v61  }
 0x17a   :  { %834 = vperm.xlu1 %11270, %v580_v4   ;;  %839 = vperm.xlu0 %11269, %v581_v13  }
 0x17e   :  { %844 = vperm.xlu1 %11270, %v582_v34   ;;  %849 = vperm.xlu0 %11269, %v583_v9  }
 0x182   :  { %854 = vperm.xlu1 %11270, %v584_v50   ;;  %859 = vperm.xlu0 %11269, %v585_v29  }
 0x186   :  { %864 = vperm.xlu1 %11270, %v586_v22   ;;  %869 = vperm.xlu0 %11269, %v587_v14  }
 0x18a   :  { %874 = vperm.xlu1 %11270, %v588_v49   ;;  %879 = vperm.xlu0 %11269, %v589_v58  }
 0x18e   :  { %884 = vperm.xlu1 %11270, %v590_v41   ;;  %889 = vperm.xlu0 %11269, %v591_v38  }
 0x192   :  { %894 = vperm.xlu1 %11270, %v592_v46   ;;  %899 = vperm.xlu0 %11269, %v593_v10  }
 0x195   :  { %v600_v21 = vpop.permute.xlu0 %599 }
 0x196   :  { %v12479_v0 = vsub.f32 %v12191_v1, %v600_v21  ;;  %904 = vperm.xlu1 %11270, %v594_v17   ;;  %909 = vperm.xlu0 %11269, %v595_v62  }
 0x198   :  { %v981_v5 = vmul.f32 %v12479_v0, %v12479_v0 }
 0x199   :  { %v605_v37 = vpop.permute.xlu0 %604  ;;  %v610_v54 = vpop.permute.xlu1 %609 }
 0x19a   :  { %v12484_v26 = vsub.f32 %v12239_v2, %v605_v37  ;;  %v12487_v61 = vsub.f32 %v12243_v3, %v610_v54  ;;  %10489 = vmatprep.mubr.f32.mxu1 %v981_v5  ;;  %914 = vperm.xlu1 %11270, %v596_v18   ;;  %v16477_v2 = vmov 1.0  }
 0x19c   :  { %v982_v25 = vmul.f32 %v12484_v26, %v12484_v26  ;;  %v983_v1 = vmul.f32 %v12487_v61, %v12487_v61 }
 0x19d   :  { %v615_v4 = vpop.permute.xlu1 %614  ;;  %v620_v13 = vpop.permute.xlu0 %619 }
 0x19e   :  { %v12494_v53 = vsub.f32 %v12251_v7, %v615_v4  ;;  %v12497_v34 = vsub.f32 %v12253_v8, %v620_v13  ;;  %10490 = vmatmul.mubr.f32.vlgmr.msra.gmra.mxu1 %v982_v25 }
 0x19f   :  { %10492 = vmatprep.mubr.f32.mxu1 %v983_v1  ;;  %10714 = vmatpush3.msra.mxu1 %v16477_v2 }
 0x1a0   :  { %v984_v3 = vmul.f32 %v12494_v53, %v12494_v53  ;;  %v985_v9 = vmul.f32 %v12497_v34, %v12497_v34  ;;  %10715 = vmatprep.subr.mxu1 %v16477_v2 }
 0x1a1   :  { %v625_v33 = vpop.permute.xlu1 %624  ;;  %v630_v50 = vpop.permute.xlu0 %629  ;;  %10716 = vmatpush3.msra.mxu1 %v16477_v2 }
 0x1a2   :  { %v12507_v7 = vsub.f32 %v12260_v11, %v625_v33  ;;  %v12510_v8 = vsub.f32 %v12263_v12, %v630_v50  ;;  %10493 = vmatmul.mubr.f32.gmra.mxu1 %v984_v3  ;;  %10717 = vmatprep.subr.mxu1 %v16477_v2 }
 0x1a3   :  { %10495 = vmatprep.mubr.f32.mxu1 %v985_v9  ;;  %10718 = vmatpush3.msra.mxu1 %v16477_v2 }
 0x1a4   :  { %v986_v29 = vmul.f32 %v12507_v7, %v12507_v7  ;;  %v987_v6 = vmul.f32 %v12510_v8, %v12510_v8  ;;  %10719 = vmatprep.subr.mxu1 %v16477_v2 }
 0x1a5   :  { %v635_v22 = vpop.permute.xlu1 %634  ;;  %v640_v11 = vpop.permute.xlu0 %639  ;;  %10720 = vmatpush3.msra.mxu1 %v16477_v2 }
 0x1a6   :  { %v12521_v12 = vsub.f32 %v12270_v15, %v635_v22  ;;  %v12524_v14 = vsub.f32 %v12273_v16, %v640_v11  ;;  %10496 = vmatmul.mubr.f32.gmra.mxu1 %v986_v29  ;;  %10721 = vmatprep.subr.mxu1 %v16477_v2 }
 0x1a7   :  { %10498 = vmatprep.mubr.f32.mxu1 %v987_v6  ;;  %10722 = vmatpush3.msra.mxu1 %v16477_v2 }
 0x1a8   :  { %v988_v45 = vmul.f32 %v12521_v12, %v12521_v12  ;;  %v989_v49 = vmul.f32 %v12524_v14, %v12524_v14  ;;  %10723 = vmatprep.subr.mxu1 %v16477_v2 }
 0x1a9   :  { %v645_v58 = vpop.permute.xlu1 %644  ;;  %v650_v15 = vpop.permute.xlu0 %649  ;;  %10724 = vmatpush3.msra.mxu1 %v16477_v2 }
 0x1aa   :  { %v12535_v16 = vsub.f32 %v12280_v19, %v645_v58  ;;  %v12538_v57 = vsub.f32 %v12283_v20, %v650_v15  ;;  %10499 = vmatmul.mubr.f32.gmra.mxu1 %v988_v45  ;;  %10725 = vmatprep.subr.mxu1 %v16477_v2 }
 0x1ab   :  { %10501 = vmatprep.mubr.f32.mxu1 %v989_v49  ;;  %10726 = vmatpush3.msra.mxu1 %v16477_v2 }
 0x1ac   :  { %v990_v41 = vmul.f32 %v12535_v16, %v12535_v16  ;;  %v991_v38 = vmul.f32 %v12538_v57, %v12538_v57  ;;  %10727 = vmatprep.subr.mxu1 %v16477_v2 }
 0x1ad   :  { %v655_v42 = vpop.permute.xlu1 %654  ;;  %v660_v19 = vpop.permute.xlu0 %659  ;;  %10728 = vmatpush3.msra.mxu1 %v16477_v2 }
 0x1ae   :  { %v12549_v20 = vsub.f32 %v12290_v23, %v655_v42  ;;  %v12552_v46 = vsub.f32 %v12293_v24, %v660_v19  ;;  %10502 = vmatmul.mubr.f32.gmra.mxu1 %v990_v41  ;;  %10729 = vmatprep.subr.mxu1 %v16477_v2 }
 0x1af   :  { %10504 = vmatprep.mubr.f32.mxu1 %v991_v38  ;;  %10730 = vmatpush3.msra.mxu1 %v16477_v2 }
 0x1b0   :  { %v992_v10 = vmul.f32 %v12549_v20, %v12549_v20  ;;  %v993_v30 = vmul.f32 %v12552_v46, %v12552_v46  ;;  %10731 = vmatprep.subr.mxu1 %v16477_v2 }
 0x1b1   :  { %v665_v17 = vpop.permute.xlu1 %664  ;;  %v670_v23 = vpop.permute.xlu0 %669  ;;  %10732 = vmatpush3.msra.mxu1 %v16477_v2 }
 0x1b2   :  { %v12563_v24 = vsub.f32 %v12300_v27, %v665_v17  ;;  %v12566_v62 = vsub.f32 %v12303_v28, %v670_v23  ;;  %10505 = vmatmul.mubr.f32.gmra.mxu1 %v992_v10  ;;  %10733 = vmatprep.subr.mxu1 %v16477_v2 }
 0x1b3   :  { %10507 = vmatprep.mubr.f32.mxu1 %v993_v30  ;;  %10734 = vmatpush3.msra.mxu1 %v16477_v2 }
 0x1b4   :  { %v994_v21 = vmul.f32 %v12563_v24, %v12563_v24  ;;  %v995_v18 = vmul.f32 %v12566_v62, %v12566_v62  ;;  %10735 = vmatprep.subr.mxu1 %v16477_v2 }
 0x1b5   :  { %v675_v5 = vpop.permute.xlu1 %674  ;;  %v680_v27 = vpop.permute.xlu0 %679  ;;  %10736 = vmatpush3.msra.mxu1 %v16477_v2 }
 0x1b6   :  { %v12577_v28 = vsub.f32 %v12310_v31, %v675_v5  ;;  %v12580_v37 = vsub.f32 %v12313_v32, %v680_v27  ;;  %10508 = vmatmul.mubr.f32.gmra.mxu1 %v994_v21  ;;  %10737 = vmatprep.subr.mxu1 %v16477_v2 }
 0x1b7   :  { %10510 = vmatprep.mubr.f32.mxu1 %v995_v18  ;;  %10738 = vmatpush3.msra.mxu1 %v16477_v2 }
 0x1b8   :  { %v996_v54 = vmul.f32 %v12577_v28, %v12577_v28  ;;  %v997_v25 = vmul.f32 %v12580_v37, %v12580_v37  ;;  %10739 = vmatprep.subr.mxu1 %v16477_v2 }
 0x1b9   :  { %v685_v1 = vpop.permute.xlu1 %684  ;;  %v690_v31 = vpop.permute.xlu0 %689  ;;  %10740 = vmatpush3.msra.mxu1 %v16477_v2 }
 0x1ba   :  { %v12591_v32 = vsub.f32 %v12320_v35, %v685_v1  ;;  %v12594_v4 = vsub.f32 %v12323_v36, %v690_v31  ;;  %10511 = vmatmul.mubr.f32.gmra.mxu1 %v996_v54  ;;  %10741 = vmatprep.subr.mxu1 %v16477_v2 }
 0x1bb   :  { %10513 = vmatprep.mubr.f32.mxu1 %v997_v25  ;;  %10742 = vmatpush3.msra.mxu1 %v16477_v2 }
 0x1bc   :  { %v998_v13 = vmul.f32 %v12591_v32, %v12591_v32  ;;  %v999_v3 = vmul.f32 %v12594_v4, %v12594_v4  ;;  %10743 = vmatprep.subr.mxu1 %v16477_v2 }
 0x1bd   :  { %v695_v9 = vpop.permute.xlu1 %694  ;;  %v700_v35 = vpop.permute.xlu0 %699  ;;  %10744 = vmatpush3.msra.mxu1 %v16477_v2  ;;  %v16484_v2 = vld [vmem:[#allocation15_spill] sm:$0xff] }
 0x1be   :  { %v12605_v36 = vsub.f32 %v12330_v39, %v695_v9  ;;  %v12608_v33 = vsub.f32 %v12333_v40, %v700_v35  ;;  %10514 = vmatmul.mubr.f32.gmra.mxu1 %v998_v13  ;;  %v11911_v13 = vld [vmem:[#allocation2 + $0x100] sm:$0xff] }
 0x1bf   :  { %10516 = vmatprep.mubr.f32.mxu1 %v999_v3 }
 0x1c0   :  { %v1000_v50 = vmul.f32 %v12605_v36, %v12605_v36  ;;  %v1001_v29 = vmul.f32 %v12608_v33, %v12608_v33 }
 0x1c1   :  { %v705_v6 = vpop.permute.xlu1 %704  ;;  %v710_v22 = vpop.permute.xlu0 %709 }
 0x1c2   :  { %v12615_v11 = vsub.f32 %v12342_v43, %v705_v6  ;;  %v12618_v45 = vsub.f32 %v12345_v44, %v710_v22  ;;  %10517 = vmatmul.mubr.f32.gmra.mxu1 %v1000_v50  ;;  %v11912_v50 = vld [vmem:[#allocation2 + $0x108] sm:$0xff]  ;;  %v11913_v6 = vld [vmem:[#allocation2 + $0x110] sm:$0xff] }
 0x1c3   :  { %10519 = vmatprep.mubr.f32.mxu1 %v1001_v29 }
 0x1c4   :  { %v1002_v39 = vmul.f32 %v12615_v11, %v12615_v11  ;;  %v1003_v40 = vmul.f32 %v12618_v45, %v12618_v45 }
 0x1c5   :  { %v715_v49 = vpop.permute.xlu1 %714  ;;  %v720_v58 = vpop.permute.xlu0 %719 }
 0x1c6   :  { %v12625_v15 = vsub.f32 %v12357_v47, %v715_v49  ;;  %v12628_v41 = vsub.f32 %v12360_v48, %v720_v58  ;;  %10520 = vmatmul.mubr.f32.gmra.mxu1 %v1002_v39  ;;  %v11914_v58 = vld [vmem:[#allocation2 + $0x118] sm:$0xff] }
 0x1c7   :  { %10522 = vmatprep.mubr.f32.mxu1 %v1003_v40 }
 0x1c8   :  { %v1004_v43 = vmul.f32 %v12625_v15, %v12625_v15  ;;  %v1005_v44 = vmul.f32 %v12628_v41, %v12628_v41 }
 0x1c9   :  { %v725_v38 = vpop.permute.xlu1 %724  ;;  %v730_v42 = vpop.permute.xlu0 %729 }
 0x1ca   :  { %v12635_v19 = vsub.f32 %v12373_v51, %v725_v38  ;;  %v12638_v10 = vsub.f32 %v12376_v52, %v730_v42  ;;  %10523 = vmatmul.mubr.f32.gmra.mxu1 %v1004_v43 }
 0x1cb   :  { %10525 = vmatprep.mubr.f32.mxu1 %v1005_v44  ;;  %v11915_v44 = vld [vmem:[#allocation2 + $0x120] sm:$0xff] }
 0x1cc   :  { %v1006_v47 = vmul.f32 %v12635_v19, %v12635_v19  ;;  %v1007_v48 = vmul.f32 %v12638_v10, %v12638_v10 }
 0x1cd   :  { %v735_v30 = vpop.permute.xlu1 %734  ;;  %v740_v17 = vpop.permute.xlu0 %739 }
 0x1ce   :  { %v12645_v23 = vsub.f32 %v12389_v55, %v735_v30  ;;  %v12648_v21 = vsub.f32 %v12392_v56, %v740_v17  ;;  %10526 = vmatmul.mubr.f32.gmra.mxu1 %v1006_v47  ;;  %v11916_v17 = vld [vmem:[#allocation2 + $0x128] sm:$0xff] }
 0x1cf   :  { %10528 = vmatprep.mubr.f32.mxu1 %v1007_v48 }
 0x1d0   :  { %v1008_v51 = vmul.f32 %v12645_v23, %v12645_v23  ;;  %v1009_v52 = vmul.f32 %v12648_v21, %v12648_v21 }
 0x1d1   :  { %v745_v18 = vpop.permute.xlu1 %744  ;;  %v750_v5 = vpop.permute.xlu0 %749 }
 0x1d2   :  { %v12655_v27 = vsub.f32 %v12405_v59, %v745_v18  ;;  %v12658_v54 = vsub.f32 %v12408_v60, %v750_v5  ;;  %10529 = vmatmul.mubr.f32.gmra.mxu1 %v1008_v51 }
 0x1d3   :  { %10531 = vmatprep.mubr.f32.mxu1 %v1009_v52  ;;  %v11917_v52 = vld [vmem:[#allocation2 + $0x130] sm:$0xff] }
 0x1d4   :  { %v1010_v55 = vmul.f32 %v12655_v27, %v12655_v27  ;;  %v1011_v56 = vmul.f32 %v12658_v54, %v12658_v54 }
 0x1d5   :  { %v755_v25 = vpop.permute.xlu1 %754  ;;  %v760_v1 = vpop.permute.xlu0 %759 }
 0x1d6   :  { %v12665_v31 = vsub.f32 %v12421_v63, %v755_v25  ;;  %v12667_v3 = vsub.f32 %v11911_v13, %v760_v1  ;;  %10532 = vmatmul.mubr.f32.gmra.mxu1 %v1010_v55  ;;  %v11918_v1 = vld [vmem:[#allocation2 + $0x138] sm:$0xff] }
 0x1d7   :  { %10534 = vmatprep.mubr.f32.mxu1 %v1011_v56 }
 0x1d8   :  { %v1012_v59 = vmul.f32 %v12665_v31, %v12665_v31  ;;  %v1013_v60 = vmul.f32 %v12667_v3, %v12667_v3 }
 0x1d9   :  { %v765_v9 = vpop.permute.xlu1 %764  ;;  %v770_v35 = vpop.permute.xlu0 %769 }
 0x1da   :  { %v12673_v29 = vsub.f32 %v11912_v50, %v765_v9  ;;  %v12675_v22 = vsub.f32 %v11913_v6, %v770_v35  ;;  %10535 = vmatmul.mubr.f32.gmra.mxu1 %v1012_v59  ;;  %v11919_v59 = vld [vmem:[#allocation2 + $0x140] sm:$0xff] }
 0x1db   :  { %10537 = vmatprep.mubr.f32.mxu1 %v1013_v60 }
 0x1dc   :  { %v1014_v63 = vmul.f32 %v12673_v29, %v12673_v29  ;;  %v1015_v39 = vmul.f32 %v12675_v22, %v12675_v22 }
 0x1dd   :  { %v775_v40 = vpop.permute.xlu1 %774  ;;  %v780_v49 = vpop.permute.xlu0 %779 }
 0x1de   :  { %v12681_v43 = vsub.f32 %v11914_v58, %v775_v40  ;;  %v12683_v38 = vsub.f32 %v11915_v44, %v780_v49  ;;  %10538 = vmatmul.mubr.f32.gmra.mxu1 %v1014_v63  ;;  %v11920_v63 = vld [vmem:[#allocation2 + $0x148] sm:$0xff]  ;;  %v11921_v40 = vld [vmem:[#allocation2 + $0x150] sm:$0xff] }
 0x1df   :  { %10540 = vmatprep.mubr.f32.mxu1 %v1015_v39 }
 0x1e0   :  { %v1016_v42 = vmul.f32 %v12681_v43, %v12681_v43  ;;  %v1017_v47 = vmul.f32 %v12683_v38, %v12683_v38 }
 0x1e1   :  { %v785_v48 = vpop.permute.xlu1 %784  ;;  %v790_v30 = vpop.permute.xlu0 %789 }
 0x1e2   :  { %v12689_v51 = vsub.f32 %v11916_v17, %v785_v48  ;;  %v12691_v18 = vsub.f32 %v11917_v52, %v790_v30  ;;  %10541 = vmatmul.mubr.f32.gmra.mxu1 %v1016_v42  ;;  %v11922_v48 = vld [vmem:[#allocation2 + $0x158] sm:$0xff]  ;;  %v11923_v17 = vld [vmem:[#allocation2 + $0x160] sm:$0xff] }
 0x1e3   :  { %10543 = vmatprep.mubr.f32.mxu1 %v1017_v47 }
 0x1e4   :  { %v1018_v5 = vmul.f32 %v12689_v51, %v12689_v51  ;;  %v1019_v55 = vmul.f32 %v12691_v18, %v12691_v18 }
 0x1e5   :  { %v795_v56 = vpop.permute.xlu1 %794  ;;  %v800_v25 = vpop.permute.xlu0 %799 }
 0x1e6   :  { %v12697_v13 = vsub.f32 %v11918_v1, %v795_v56  ;;  %v12699_v60 = vsub.f32 %v11919_v59, %v800_v25  ;;  %10544 = vmatmul.mubr.f32.gmra.mxu1 %v1018_v5  ;;  %v11924_v1 = vld [vmem:[#allocation2 + $0x168] sm:$0xff] }
 0x1e7   :  { %10546 = vmatprep.mubr.f32.mxu1 %v1019_v55 }
 0x1e8   :  { %v1020_v9 = vmul.f32 %v12697_v13, %v12697_v13  ;;  %v1021_v35 = vmul.f32 %v12699_v60, %v12699_v60 }
 0x1e9   :  { %v805_v50 = vpop.permute.xlu1 %804  ;;  %v810_v6 = vpop.permute.xlu0 %809 }
 0x1ea   :  { %v12705_v39 = vsub.f32 %v11920_v63, %v805_v50  ;;  %v12707_v49 = vsub.f32 %v11921_v40, %v810_v6  ;;  %10547 = vmatmul.mubr.f32.gmra.mxu1 %v1020_v9  ;;  %v11925_v9 = vld [vmem:[#allocation2 + $0x170] sm:$0xff] }
 0x1eb   :  { %10549 = vmatprep.mubr.f32.mxu1 %v1021_v35 }
 0x1ec   :  { %v1022_v58 = vmul.f32 %v12705_v39, %v12705_v39  ;;  %v1023_v44 = vmul.f32 %v12707_v49, %v12707_v49 }
 0x1ed   :  { %v815_v42 = vpop.permute.xlu1 %814  ;;  %v820_v47 = vpop.permute.xlu0 %819 }
 0x1ee   :  { %v12713_v30 = vsub.f32 %v11922_v48, %v815_v42  ;;  %v12715_v52 = vsub.f32 %v11923_v17, %v820_v47  ;;  %10550 = vmatmul.mubr.f32.gmra.mxu1 %v1022_v58  ;;  %v11926_v58 = vld [vmem:[#allocation2 + $0x178] sm:$0xff]  ;;  %v11927_v42 = vld [vmem:[#allocation2 + $0x180] sm:$0xff] }
 0x1ef   :  { %10552 = vmatprep.mubr.f32.mxu1 %v1023_v44 }
 0x1f0   :  { %v1024_v5 = vmul.f32 %v12713_v30, %v12713_v30  ;;  %v1025_v55 = vmul.f32 %v12715_v52, %v12715_v52 }
 0x1f1   :  { %v825_v56 = vpop.permute.xlu1 %824  ;;  %v830_v25 = vpop.permute.xlu0 %829 }
 0x1f2   :  { %v12721_v59 = vsub.f32 %v11924_v1, %v825_v56  ;;  %v12723_v35 = vsub.f32 %v11925_v9, %v830_v25  ;;  %10553 = vmatmul.mubr.f32.gmra.mxu1 %v1024_v5  ;;  %v11928_v56 = vld [vmem:[#allocation2 + $0x188] sm:$0xff]  ;;  %v11929_v1 = vld [vmem:[#allocation2 + $0x190] sm:$0xff] }
 0x1f3   :  { %10555 = vmatprep.mubr.f32.mxu1 %v1025_v55 }
 0x1f4   :  { %16478 = vst [vmem:[#allocation27_spill] sm:$0xff] %v12723_v35  ;;  %v1026_v50 = vmul.f32 %v12721_v59, %v12721_v59  ;;  %v1027_v6 = vmul.f32 %v12723_v35, %v12723_v35 }
 0x1f5   :  { %v835_v63 = vpop.permute.xlu1 %834  ;;  %v840_v40 = vpop.permute.xlu0 %839 }
 0x1f6   :  { %v12729_v44 = vsub.f32 %v11926_v58, %v835_v63  ;;  %v12731_v47 = vsub.f32 %v11927_v42, %v840_v40  ;;  %10556 = vmatmul.mubr.f32.gmra.mxu1 %v1026_v50  ;;  %v11930_v58 = vld [vmem:[#allocation2 + $0x198] sm:$0xff] }
 0x1f7   :  { %10558 = vmatprep.mubr.f32.mxu1 %v1027_v6 }
 0x1f8   :  { %16479 = vst [vmem:[#allocation28_spill] sm:$0xff] %v12729_v44  ;;  %16480 = vst [vmem:[#allocation29_spill] sm:$0xff] %v12731_v47  ;;  %v1028_v48 = vmul.f32 %v12729_v44, %v12729_v44  ;;  %v1029_v17 = vmul.f32 %v12731_v47, %v12731_v47 }
 0x1f9   :  { %v845_v5 = vpop.permute.xlu1 %844  ;;  %v850_v55 = vpop.permute.xlu0 %849 }
 0x1fa   :  { %v12737_v25 = vsub.f32 %v11928_v56, %v845_v5  ;;  %v12739_v9 = vsub.f32 %v11929_v1, %v850_v55  ;;  %10559 = vmatmul.mubr.f32.gmra.mxu1 %v1028_v48  ;;  %v16486_v56 = vld [vmem:[#allocation16_spill] sm:$0xff] }
 0x1fb   :  { %10561 = vmatprep.mubr.f32.mxu1 %v1029_v17 }
 0x1fc   :  { %16481 = vst [vmem:[#allocation30_spill] sm:$0xff] %v12737_v25  ;;  %16482 = vst [vmem:[#allocation31_spill] sm:$0xff] %v12739_v9  ;;  %v1030_v50 = vmul.f32 %v12737_v25, %v12737_v25  ;;  %v1031_v6 = vmul.f32 %v12739_v9, %v12739_v9  ;;  %v16488_v9 = vld [vmem:[#allocation17_spill] sm:$0xff] }
 0x1fd   :  { %v855_v63 = vpop.permute.xlu1 %854  ;;  %v860_v40 = vpop.permute.xlu0 %859 }
 0x1fe   :  { %v12745_v42 = vsub.f32 %v11930_v58, %v855_v63  ;;  %v12748_v47 = vsub.f32 %v16484_v2, %v860_v40  ;;  %10562 = vmatmul.mubr.f32.gmra.mxu1 %v1030_v50  ;;  %v16490_v40 = vld [vmem:[#allocation18_spill] sm:$0xff] }
 0x1ff   :  { %10564 = vmatprep.mubr.f32.mxu1 %v1031_v6 }
 0x200   :  { %16483 = vst [vmem:[#allocation32_spill] sm:$0xff] %v12745_v42  ;;  %16485 = vst [vmem:[#allocation15_spill] sm:$0xff] %v12748_v47  ;;  %v1032_v48 = vmul.f32 %v12745_v42, %v12745_v42  ;;  %v1033_v17 = vmul.f32 %v12748_v47, %v12748_v47  ;;  %v16492_v47 = vld [vmem:[#allocation19_spill] sm:$0xff] }
 0x201   :  { %v865_v5 = vpop.permute.xlu1 %864  ;;  %v870_v55 = vpop.permute.xlu0 %869 }
 0x202   :  { %v12755_v1 = vsub.f32 %v16486_v56, %v865_v5  ;;  %v12758_v25 = vsub.f32 %v16488_v9, %v870_v55  ;;  %10565 = vmatmul.mubr.f32.gmra.mxu1 %v1032_v48  ;;  %v16494_v55 = vld [vmem:[#allocation20_spill] sm:$0xff] }
 0x203   :  { %10567 = vmatprep.mubr.f32.mxu1 %v1033_v17 }
 0x204   :  { %16487 = vst [vmem:[#allocation16_spill] sm:$0xff] %v12755_v1  ;;  %16489 = vst [vmem:[#allocation17_spill] sm:$0xff] %v12758_v25  ;;  %v1034_v2 = vmul.f32 %v12755_v1, %v12755_v1  ;;  %v1035_v50 = vmul.f32 %v12758_v25, %v12758_v25  ;;  %v16496_v25 = vld [vmem:[#allocation21_spill] sm:$0xff] }
 0x205   :  { %v875_v6 = vpop.permute.xlu1 %874  ;;  %v880_v63 = vpop.permute.xlu0 %879 }
 0x206   :  { %v12765_v58 = vsub.f32 %v16490_v40, %v875_v6  ;;  %v12768_v42 = vsub.f32 %v16492_v47, %v880_v63  ;;  %10568 = vmatmul.mubr.f32.gmra.mxu1 %v1034_v2  ;;  %v16498_v63 = vld [vmem:[#allocation22_spill] sm:$0xff] }
 0x207   :  { %10570 = vmatprep.mubr.f32.mxu1 %v1035_v50 }
 0x208   :  { %16491 = vst [vmem:[#allocation18_spill] sm:$0xff] %v12765_v58  ;;  %16493 = vst [vmem:[#allocation19_spill] sm:$0xff] %v12768_v42  ;;  %v1036_v9 = vmul.f32 %v12765_v58, %v12765_v58  ;;  %v1037_v48 = vmul.f32 %v12768_v42, %v12768_v42  ;;  %v16500_v42 = vld [vmem:[#allocation23_spill] sm:$0xff] }
 0x209   :  { %v885_v17 = vpop.permute.xlu1 %884  ;;  %v890_v5 = vpop.permute.xlu0 %889 }
 0x20a   :  { %v12775_v56 = vsub.f32 %v16494_v55, %v885_v17  ;;  %v12778_v1 = vsub.f32 %v16496_v25, %v890_v5  ;;  %10571 = vmatmul.mubr.f32.gmra.mxu1 %v1036_v9  ;;  %v16502_v5 = vld [vmem:[#allocation24_spill] sm:$0xff] }
 0x20b   :  { %10573 = vmatprep.mubr.f32.mxu1 %v1037_v48 }
 0x20c   :  { %16495 = vst [vmem:[#allocation20_spill] sm:$0xff] %v12775_v56  ;;  %16497 = vst [vmem:[#allocation21_spill] sm:$0xff] %v12778_v1  ;;  %v1038_v47 = vmul.f32 %v12775_v56, %v12775_v56  ;;  %v1039_v2 = vmul.f32 %v12778_v1, %v12778_v1  ;;  %v16504_v1 = vld [vmem:[#allocation25_spill] sm:$0xff] }
 0x20d   :  { %v895_v50 = vpop.permute.xlu1 %894  ;;  %v900_v6 = vpop.permute.xlu0 %899 }
 0x20e   :  { %v12785_v40 = vsub.f32 %v16498_v63, %v895_v50  ;;  %v12788_v58 = vsub.f32 %v16500_v42, %v900_v6  ;;  %10574 = vmatmul.mubr.f32.gmra.mxu1 %v1038_v47  ;;  %v16506_v50 = vld [vmem:[#allocation26_spill] sm:$0xff] }
 0x20f   :  { %10576 = vmatprep.mubr.f32.mxu1 %v1039_v2 }
 0x210   :  { %16499 = vst [vmem:[#allocation22_spill] sm:$0xff] %v12785_v40  ;;  %16501 = vst [vmem:[#allocation23_spill] sm:$0xff] %v12788_v58  ;;  %v1040_v25 = vmul.f32 %v12785_v40, %v12785_v40  ;;  %v1041_v9 = vmul.f32 %v12788_v58, %v12788_v58 }
 0x211   :  { %v905_v48 = vpop.permute.xlu1 %904  ;;  %v910_v17 = vpop.permute.xlu0 %909 }
 0x212   :  { %v12795_v55 = vsub.f32 %v16502_v5, %v905_v48  ;;  %v12798_v56 = vsub.f32 %v16504_v1, %v910_v17  ;;  %10577 = vmatmul.mubr.f32.gmra.mxu1 %v1040_v25 }
 0x213   :  { %10579 = vmatprep.mubr.f32.mxu1 %v1041_v9 }
 0x214   :  { %16503 = vst [vmem:[#allocation24_spill] sm:$0xff] %v12795_v55  ;;  %16505 = vst [vmem:[#allocation25_spill] sm:$0xff] %v12798_v56  ;;  %v1042_v42 = vmul.f32 %v12795_v55, %v12795_v55  ;;  %v1043_v47 = vmul.f32 %v12798_v56, %v12798_v56 }
 0x215   :  { %v915_v2 = vpop.permute.xlu1 %914 }
 0x216   :  { %v12805_v6 = vsub.f32 %v16506_v50, %v915_v2  ;;  %10580 = vmatmul.mubr.f32.gmra.mxu1 %v1042_v42 }
 0x217   :  { %10582 = vmatprep.mubr.f32.mxu1 %v1043_v47 }
 0x218   :  { %16507 = vst [vmem:[#allocation26_spill] sm:$0xff] %v12805_v6  ;;  %v1044_v63 = vmul.f32 %v12805_v6, %v12805_v6 }
 0x21a   :  { %10583 = vmatmul.mubr.f32.gmra.mxu1 %v1044_v63 }
 0x25e   :  { %v10491_v1 = vpop.f32.mrf.mxu1 }
 0x25f   :  { %v1431_v48 = vmul.f32 0.0078125, %v10491_v1 }
 0x260   :  { %v1111_v25 = vpop.f32.mrf.mxu1 }
 0x261   :  { %v1495_v9 = vadd.f32 1e-05, %v1431_v48  ;;  %v1430_v17 = vmul.f32 0.0078125, %v1111_v25 }
 0x262   :  { %v10494_v5 = vpop.f32.mrf.mxu1 }
 0x263   :  { %11271 = vrsqrt.f32 %v1495_v9  ;;  %v1494_v58 = vadd.f32 1e-05, %v1430_v17  ;;  %v1433_v55 = vmul.f32 0.0078125, %v10494_v5 }
 0x264   :  { %v1121_v56 = vpop.f32.mrf.mxu1 }
 0x265   :  { %11273 = vrsqrt.f32 %v1494_v58  ;;  %v1497_v40 = vadd.f32 1e-05, %v1433_v55  ;;  %v1432_v2 = vmul.f32 0.0078125, %v1121_v56 }
 0x266   :  { %v10497_v50 = vpop.f32.mrf.mxu1 }
 0x267   :  { %11275 = vrsqrt.f32 %v1497_v40  ;;  %v1496_v42 = vadd.f32 1e-05, %v1432_v2  ;;  %v1435_v47 = vmul.f32 0.0078125, %v10497_v50 }
 0x268   :  { %v1131_v35 = vpop.f32.mrf.mxu1 }
 0x269   :  { %11277 = vrsqrt.f32 %v1496_v42  ;;  %v1499_v63 = vadd.f32 1e-05, %v1435_v47  ;;  %v1434_v6 = vmul.f32 0.0078125, %v1131_v35 }
 0x26a   :  { %v10500_v1 = vpop.f32.mrf.mxu1 }
 0x26b   :  { %11279 = vrsqrt.f32 %v1499_v63  ;;  %v1498_v48 = vadd.f32 1e-05, %v1434_v6  ;;  %v1437_v25 = vmul.f32 0.0078125, %v10500_v1 }
 0x26c   :  { %v1141_v44 = vpop.f32.mrf.mxu1 }
 0x26d   :  { %11281 = vrsqrt.f32 %v1498_v48  ;;  %v1501_v9 = vadd.f32 1e-05, %v1437_v25  ;;  %v1436_v17 = vmul.f32 0.0078125, %v1141_v44 }
 0x26e   :  { %v10503_v5 = vpop.f32.mrf.mxu1 }
 0x26f   :  { %11283 = vrsqrt.f32 %v1501_v9  ;;  %v1500_v58 = vadd.f32 1e-05, %v1436_v17  ;;  %v1439_v56 = vmul.f32 0.0078125, %v10503_v5 }
 0x270   :  { %v11272_v55 = vpop.eup %11271  ;;  %v1151_v40 = vpop.f32.mrf.mxu1 }
 0x271   :  { %11285 = vrsqrt.f32 %v1500_v58  ;;  %v1503_v2 = vadd.f32 1e-05, %v1439_v56  ;;  %v1438_v50 = vmul.f32 0.0078125, %v1151_v40  ;;  %1629 = vperm.xlu1 %11270, %v11272_v55  }
 0x272   :  { %v11274_v42 = vpop.eup %11273  ;;  %v10506_v35 = vpop.f32.mrf.mxu1 }
 0x273   :  { %11287 = vrsqrt.f32 %v1503_v2  ;;  %v1502_v47 = vadd.f32 1e-05, %v1438_v50  ;;  %v1441_v6 = vmul.f32 0.0078125, %v10506_v35  ;;  %1624 = vperm.xlu0 %11269, %v11274_v42  }
 0x274   :  { %v11276_v63 = vpop.eup %11275  ;;  %v1161_v1 = vpop.f32.mrf.mxu1 }
 0x275   :  { %11289 = vrsqrt.f32 %v1502_v47  ;;  %v1505_v44 = vadd.f32 1e-05, %v1441_v6  ;;  %v1440_v48 = vmul.f32 0.0078125, %v1161_v1  ;;  %1639 = vperm.xlu1 %11270, %v11276_v63  }
 0x276   :  { %v11278_v25 = vpop.eup %11277  ;;  %v10509_v9 = vpop.f32.mrf.mxu1 }
 0x277   :  { %11291 = vrsqrt.f32 %v1505_v44  ;;  %v1504_v17 = vadd.f32 1e-05, %v1440_v48  ;;  %v1443_v5 = vmul.f32 0.0078125, %v10509_v9  ;;  %1634 = vperm.xlu0 %11269, %v11278_v25  }
 0x278   :  { %v11280_v58 = vpop.eup %11279  ;;  %v1171_v56 = vpop.f32.mrf.mxu1 }
 0x279   :  { %11293 = vrsqrt.f32 %v1504_v17  ;;  %v1507_v55 = vadd.f32 1e-05, %v1443_v5  ;;  %v1442_v40 = vmul.f32 0.0078125, %v1171_v56  ;;  %1649 = vperm.xlu1 %11270, %v11280_v58  }
 0x27a   :  { %v11282_v2 = vpop.eup %11281  ;;  %v10512_v50 = vpop.f32.mrf.mxu1 }
 0x27b   :  { %11295 = vrsqrt.f32 %v1507_v55  ;;  %v1506_v42 = vadd.f32 1e-05, %v1442_v40  ;;  %v1445_v35 = vmul.f32 0.0078125, %v10512_v50  ;;  %1644 = vperm.xlu0 %11269, %v11282_v2  }
 0x27c   :  { %v11284_v47 = vpop.eup %11283  ;;  %v1181_v6 = vpop.f32.mrf.mxu1 }
 0x27d   :  { %11297 = vrsqrt.f32 %v1506_v42  ;;  %v1509_v63 = vadd.f32 1e-05, %v1445_v35  ;;  %v1444_v1 = vmul.f32 0.0078125, %v1181_v6  ;;  %1659 = vperm.xlu1 %11270, %v11284_v47  }
 0x27e   :  { %v11286_v44 = vpop.eup %11285  ;;  %v10515_v48 = vpop.f32.mrf.mxu1 }
 0x27f   :  { %11299 = vrsqrt.f32 %v1509_v63  ;;  %v1508_v25 = vadd.f32 1e-05, %v1444_v1  ;;  %v1447_v9 = vmul.f32 0.0078125, %v10515_v48  ;;  %1654 = vperm.xlu0 %11269, %v11286_v44  }
 0x280   :  { %v11288_v17 = vpop.eup %11287  ;;  %v1191_v5 = vpop.f32.mrf.mxu1 }
 0x281   :  { %11301 = vrsqrt.f32 %v1508_v25  ;;  %v1511_v58 = vadd.f32 1e-05, %v1447_v9  ;;  %v1446_v56 = vmul.f32 0.0078125, %v1191_v5  ;;  %1669 = vperm.xlu1 %11270, %v11288_v17  }
 0x282   :  { %v11290_v55 = vpop.eup %11289  ;;  %v10518_v40 = vpop.f32.mrf.mxu1 }
 0x283   :  { %11303 = vrsqrt.f32 %v1511_v58  ;;  %v1510_v2 = vadd.f32 1e-05, %v1446_v56  ;;  %v1449_v50 = vmul.f32 0.0078125, %v10518_v40  ;;  %1664 = vperm.xlu0 %11269, %v11290_v55  }
 0x284   :  { %v11292_v42 = vpop.eup %11291  ;;  %v1201_v35 = vpop.f32.mrf.mxu1 }
 0x285   :  { %11305 = vrsqrt.f32 %v1510_v2  ;;  %v1513_v47 = vadd.f32 1e-05, %v1449_v50  ;;  %v1448_v6 = vmul.f32 0.0078125, %v1201_v35  ;;  %1679 = vperm.xlu1 %11270, %v11292_v42  }
 0x286   :  { %v11294_v63 = vpop.eup %11293  ;;  %v10521_v1 = vpop.f32.mrf.mxu1 }
 0x287   :  { %11307 = vrsqrt.f32 %v1513_v47  ;;  %v1512_v44 = vadd.f32 1e-05, %v1448_v6  ;;  %v1451_v48 = vmul.f32 0.0078125, %v10521_v1  ;;  %1674 = vperm.xlu0 %11269, %v11294_v63  }
 0x288   :  { %v11296_v25 = vpop.eup %11295  ;;  %v1211_v9 = vpop.f32.mrf.mxu1 }
 0x289   :  { %11309 = vrsqrt.f32 %v1512_v44  ;;  %v1515_v17 = vadd.f32 1e-05, %v1451_v48  ;;  %v1450_v5 = vmul.f32 0.0078125, %v1211_v9  ;;  %1689 = vperm.xlu1 %11270, %v11296_v25  }
 0x28a   :  { %v11298_v58 = vpop.eup %11297  ;;  %v10524_v56 = vpop.f32.mrf.mxu1 }
 0x28b   :  { %11311 = vrsqrt.f32 %v1515_v17  ;;  %v1514_v55 = vadd.f32 1e-05, %v1450_v5  ;;  %v1453_v40 = vmul.f32 0.0078125, %v10524_v56  ;;  %1684 = vperm.xlu0 %11269, %v11298_v58  }
 0x28c   :  { %v11300_v2 = vpop.eup %11299  ;;  %v1221_v50 = vpop.f32.mrf.mxu1 }
 0x28d   :  { %11313 = vrsqrt.f32 %v1514_v55  ;;  %v1517_v42 = vadd.f32 1e-05, %v1453_v40  ;;  %v1452_v35 = vmul.f32 0.0078125, %v1221_v50  ;;  %1699 = vperm.xlu1 %11270, %v11300_v2  }
 0x28e   :  { %v11302_v47 = vpop.eup %11301  ;;  %v10527_v6 = vpop.f32.mrf.mxu1 }
 0x28f   :  { %11315 = vrsqrt.f32 %v1517_v42  ;;  %v1516_v63 = vadd.f32 1e-05, %v1452_v35  ;;  %v1455_v1 = vmul.f32 0.0078125, %v10527_v6  ;;  %1694 = vperm.xlu0 %11269, %v11302_v47  }
 0x290   :  { %v11304_v44 = vpop.eup %11303  ;;  %v1231_v48 = vpop.f32.mrf.mxu1 }
 0x291   :  { %11317 = vrsqrt.f32 %v1516_v63  ;;  %v1519_v25 = vadd.f32 1e-05, %v1455_v1  ;;  %v1454_v9 = vmul.f32 0.0078125, %v1231_v48  ;;  %1709 = vperm.xlu1 %11270, %v11304_v44  }
 0x292   :  { %v11306_v17 = vpop.eup %11305  ;;  %v10530_v5 = vpop.f32.mrf.mxu1 }
 0x293   :  { %11319 = vrsqrt.f32 %v1519_v25  ;;  %v1518_v58 = vadd.f32 1e-05, %v1454_v9  ;;  %v1457_v56 = vmul.f32 0.0078125, %v10530_v5  ;;  %1704 = vperm.xlu0 %11269, %v11306_v17  }
 0x294   :  { %v11308_v55 = vpop.eup %11307  ;;  %v1241_v40 = vpop.f32.mrf.mxu1 }
 0x295   :  { %11321 = vrsqrt.f32 %v1518_v58  ;;  %v1521_v2 = vadd.f32 1e-05, %v1457_v56  ;;  %v1456_v50 = vmul.f32 0.0078125, %v1241_v40  ;;  %1719 = vperm.xlu1 %11270, %v11308_v55  }
 0x296   :  { %v11310_v42 = vpop.eup %11309  ;;  %v10533_v35 = vpop.f32.mrf.mxu1 }
 0x297   :  { %11323 = vrsqrt.f32 %v1521_v2  ;;  %v1520_v47 = vadd.f32 1e-05, %v1456_v50  ;;  %v1459_v6 = vmul.f32 0.0078125, %v10533_v35  ;;  %1714 = vperm.xlu0 %11269, %v11310_v42  }
 0x298   :  { %v11312_v63 = vpop.eup %11311  ;;  %v1251_v1 = vpop.f32.mrf.mxu1 }
 0x299   :  { %11325 = vrsqrt.f32 %v1520_v47  ;;  %v1523_v44 = vadd.f32 1e-05, %v1459_v6  ;;  %v1458_v48 = vmul.f32 0.0078125, %v1251_v1  ;;  %1729 = vperm.xlu1 %11270, %v11312_v63  }
 0x29a   :  { %v11314_v25 = vpop.eup %11313  ;;  %v10536_v9 = vpop.f32.mrf.mxu1 }
 0x29b   :  { %11327 = vrsqrt.f32 %v1523_v44  ;;  %v1522_v17 = vadd.f32 1e-05, %v1458_v48  ;;  %v1461_v5 = vmul.f32 0.0078125, %v10536_v9  ;;  %1724 = vperm.xlu0 %11269, %v11314_v25  }
 0x29c   :  { %v11316_v58 = vpop.eup %11315  ;;  %v1261_v56 = vpop.f32.mrf.mxu1 }
 0x29d   :  { %11329 = vrsqrt.f32 %v1522_v17  ;;  %v1525_v55 = vadd.f32 1e-05, %v1461_v5  ;;  %v1460_v40 = vmul.f32 0.0078125, %v1261_v56  ;;  %1739 = vperm.xlu1 %11270, %v11316_v58  }
 0x29e   :  { %v11318_v2 = vpop.eup %11317  ;;  %v10539_v50 = vpop.f32.mrf.mxu1 }
 0x29f   :  { %11331 = vrsqrt.f32 %v1525_v55  ;;  %v1524_v42 = vadd.f32 1e-05, %v1460_v40  ;;  %v1463_v35 = vmul.f32 0.0078125, %v10539_v50  ;;  %1734 = vperm.xlu0 %11269, %v11318_v2  }
 0x2a0   :  { %v11320_v47 = vpop.eup %11319  ;;  %v1271_v6 = vpop.f32.mrf.mxu1 }
 0x2a1   :  { %11333 = vrsqrt.f32 %v1524_v42  ;;  %v1527_v63 = vadd.f32 1e-05, %v1463_v35  ;;  %v1462_v1 = vmul.f32 0.0078125, %v1271_v6  ;;  %1749 = vperm.xlu1 %11270, %v11320_v47  }
 0x2a2   :  { %v11322_v44 = vpop.eup %11321  ;;  %v10542_v48 = vpop.f32.mrf.mxu1 }
 0x2a3   :  { %11335 = vrsqrt.f32 %v1527_v63  ;;  %v1526_v25 = vadd.f32 1e-05, %v1462_v1  ;;  %v1465_v9 = vmul.f32 0.0078125, %v10542_v48  ;;  %1744 = vperm.xlu0 %11269, %v11322_v44  }
 0x2a4   :  { %v11324_v17 = vpop.eup %11323  ;;  %v1281_v5 = vpop.f32.mrf.mxu1 }
 0x2a5   :  { %11337 = vrsqrt.f32 %v1526_v25  ;;  %v1529_v58 = vadd.f32 1e-05, %v1465_v9  ;;  %v1464_v56 = vmul.f32 0.0078125, %v1281_v5  ;;  %1759 = vperm.xlu1 %11270, %v11324_v17  }
 0x2a6   :  { %v11326_v55 = vpop.eup %11325  ;;  %v10545_v40 = vpop.f32.mrf.mxu1 }
 0x2a7   :  { %11339 = vrsqrt.f32 %v1529_v58  ;;  %v1528_v2 = vadd.f32 1e-05, %v1464_v56  ;;  %v1467_v50 = vmul.f32 0.0078125, %v10545_v40  ;;  %1754 = vperm.xlu0 %11269, %v11326_v55  }
 0x2a8   :  { %v11328_v42 = vpop.eup %11327  ;;  %v1291_v35 = vpop.f32.mrf.mxu1 }
 0x2a9   :  { %11341 = vrsqrt.f32 %v1528_v2  ;;  %v1531_v47 = vadd.f32 1e-05, %v1467_v50  ;;  %v1466_v6 = vmul.f32 0.0078125, %v1291_v35  ;;  %1769 = vperm.xlu1 %11270, %v11328_v42  }
 0x2aa   :  { %v11330_v63 = vpop.eup %11329  ;;  %v10548_v1 = vpop.f32.mrf.mxu1 }
 0x2ab   :  { %11343 = vrsqrt.f32 %v1531_v47  ;;  %v1530_v44 = vadd.f32 1e-05, %v1466_v6  ;;  %v1469_v48 = vmul.f32 0.0078125, %v10548_v1  ;;  %1764 = vperm.xlu0 %11269, %v11330_v63  }
 0x2ac   :  { %v11332_v25 = vpop.eup %11331  ;;  %v1301_v9 = vpop.f32.mrf.mxu1 }
 0x2ad   :  { %11345 = vrsqrt.f32 %v1530_v44  ;;  %v1533_v17 = vadd.f32 1e-05, %v1469_v48  ;;  %v1468_v5 = vmul.f32 0.0078125, %v1301_v9  ;;  %1779 = vperm.xlu1 %11270, %v11332_v25  }
 0x2ae   :  { %v11334_v58 = vpop.eup %11333  ;;  %v10551_v56 = vpop.f32.mrf.mxu1 }
 0x2af   :  { %11347 = vrsqrt.f32 %v1533_v17  ;;  %v1532_v55 = vadd.f32 1e-05, %v1468_v5  ;;  %v1471_v40 = vmul.f32 0.0078125, %v10551_v56  ;;  %1774 = vperm.xlu0 %11269, %v11334_v58  }
 0x2b0   :  { %v11336_v2 = vpop.eup %11335  ;;  %v1311_v50 = vpop.f32.mrf.mxu1 }
 0x2b1   :  { %11349 = vrsqrt.f32 %v1532_v55  ;;  %v1535_v42 = vadd.f32 1e-05, %v1471_v40  ;;  %v1470_v35 = vmul.f32 0.0078125, %v1311_v50  ;;  %1789 = vperm.xlu1 %11270, %v11336_v2  }
 0x2b2   :  { %v11338_v47 = vpop.eup %11337  ;;  %v10554_v6 = vpop.f32.mrf.mxu1 }
 0x2b3   :  { %11351 = vrsqrt.f32 %v1535_v42  ;;  %v1534_v63 = vadd.f32 1e-05, %v1470_v35  ;;  %v1473_v1 = vmul.f32 0.0078125, %v10554_v6  ;;  %1784 = vperm.xlu0 %11269, %v11338_v47  }
 0x2b4   :  { %v11340_v44 = vpop.eup %11339  ;;  %v1321_v48 = vpop.f32.mrf.mxu1 }
 0x2b5   :  { %11353 = vrsqrt.f32 %v1534_v63  ;;  %v1537_v25 = vadd.f32 1e-05, %v1473_v1  ;;  %v1472_v9 = vmul.f32 0.0078125, %v1321_v48  ;;  %1799 = vperm.xlu1 %11270, %v11340_v44  }
 0x2b6   :  { %v11342_v17 = vpop.eup %11341  ;;  %v10557_v5 = vpop.f32.mrf.mxu1 }
 0x2b7   :  { %11355 = vrsqrt.f32 %v1537_v25  ;;  %v1536_v58 = vadd.f32 1e-05, %v1472_v9  ;;  %v1475_v56 = vmul.f32 0.0078125, %v10557_v5  ;;  %1794 = vperm.xlu0 %11269, %v11342_v17  }
 0x2b8   :  { %v11344_v55 = vpop.eup %11343  ;;  %v1331_v40 = vpop.f32.mrf.mxu1 }
 0x2b9   :  { %11357 = vrsqrt.f32 %v1536_v58  ;;  %v1539_v2 = vadd.f32 1e-05, %v1475_v56  ;;  %v1474_v50 = vmul.f32 0.0078125, %v1331_v40  ;;  %1809 = vperm.xlu1 %11270, %v11344_v55  }
 0x2ba   :  { %v11346_v42 = vpop.eup %11345  ;;  %v10560_v35 = vpop.f32.mrf.mxu1 }
 0x2bb   :  { %11359 = vrsqrt.f32 %v1539_v2  ;;  %v1538_v47 = vadd.f32 1e-05, %v1474_v50  ;;  %v1477_v6 = vmul.f32 0.0078125, %v10560_v35  ;;  %1804 = vperm.xlu0 %11269, %v11346_v42  }
 0x2bc   :  { %v11348_v63 = vpop.eup %11347  ;;  %v1341_v1 = vpop.f32.mrf.mxu1 }
 0x2bd   :  { %11361 = vrsqrt.f32 %v1538_v47  ;;  %v1541_v44 = vadd.f32 1e-05, %v1477_v6  ;;  %v1476_v48 = vmul.f32 0.0078125, %v1341_v1  ;;  %1819 = vperm.xlu1 %11270, %v11348_v63  }
 0x2be   :  { %v11350_v25 = vpop.eup %11349  ;;  %v10563_v9 = vpop.f32.mrf.mxu1 }
 0x2bf   :  { %11363 = vrsqrt.f32 %v1541_v44  ;;  %v1540_v17 = vadd.f32 1e-05, %v1476_v48  ;;  %v1479_v5 = vmul.f32 0.0078125, %v10563_v9  ;;  %1814 = vperm.xlu0 %11269, %v11350_v25  }
 0x2c0   :  { %v11352_v58 = vpop.eup %11351  ;;  %v1351_v56 = vpop.f32.mrf.mxu1 }
 0x2c1   :  { %11365 = vrsqrt.f32 %v1540_v17  ;;  %v1543_v55 = vadd.f32 1e-05, %v1479_v5  ;;  %v1478_v40 = vmul.f32 0.0078125, %v1351_v56  ;;  %1829 = vperm.xlu1 %11270, %v11352_v58  }
 0x2c2   :  { %v11354_v2 = vpop.eup %11353  ;;  %v10566_v50 = vpop.f32.mrf.mxu1 }
 0x2c3   :  { %11367 = vrsqrt.f32 %v1543_v55  ;;  %v1542_v42 = vadd.f32 1e-05, %v1478_v40  ;;  %v1481_v35 = vmul.f32 0.0078125, %v10566_v50  ;;  %1824 = vperm.xlu0 %11269, %v11354_v2  }
 0x2c4   :  { %v11356_v47 = vpop.eup %11355  ;;  %v1361_v6 = vpop.f32.mrf.mxu1 }
 0x2c5   :  { %11369 = vrsqrt.f32 %v1542_v42  ;;  %v1545_v63 = vadd.f32 1e-05, %v1481_v35  ;;  %v1480_v1 = vmul.f32 0.0078125, %v1361_v6  ;;  %1839 = vperm.xlu1 %11270, %v11356_v47  }
 0x2c6   :  { %v11358_v44 = vpop.eup %11357  ;;  %v10569_v48 = vpop.f32.mrf.mxu1 }
 0x2c7   :  { %11371 = vrsqrt.f32 %v1545_v63  ;;  %v1544_v25 = vadd.f32 1e-05, %v1480_v1  ;;  %v1483_v9 = vmul.f32 0.0078125, %v10569_v48  ;;  %1834 = vperm.xlu0 %11269, %v11358_v44  }
 0x2c8   :  { %v11360_v17 = vpop.eup %11359  ;;  %v1371_v5 = vpop.f32.mrf.mxu1 }
 0x2c9   :  { %11373 = vrsqrt.f32 %v1544_v25  ;;  %v1547_v58 = vadd.f32 1e-05, %v1483_v9  ;;  %v1482_v56 = vmul.f32 0.0078125, %v1371_v5  ;;  %1849 = vperm.xlu1 %11270, %v11360_v17  }
 0x2ca   :  { %v11362_v55 = vpop.eup %11361  ;;  %v10572_v40 = vpop.f32.mrf.mxu1 }
 0x2cb   :  { %11375 = vrsqrt.f32 %v1547_v58  ;;  %v1546_v2 = vadd.f32 1e-05, %v1482_v56  ;;  %v1485_v50 = vmul.f32 0.0078125, %v10572_v40  ;;  %1844 = vperm.xlu0 %11269, %v11362_v55  }
 0x2cc   :  { %v11364_v42 = vpop.eup %11363  ;;  %v1381_v35 = vpop.f32.mrf.mxu1 }
 0x2cd   :  { %11377 = vrsqrt.f32 %v1546_v2  ;;  %v1549_v47 = vadd.f32 1e-05, %v1485_v50  ;;  %v1484_v6 = vmul.f32 0.0078125, %v1381_v35  ;;  %1859 = vperm.xlu1 %11270, %v11364_v42  }
 0x2ce   :  { %v11366_v63 = vpop.eup %11365  ;;  %v10575_v1 = vpop.f32.mrf.mxu1 }
 0x2cf   :  { %11379 = vrsqrt.f32 %v1549_v47  ;;  %v1548_v44 = vadd.f32 1e-05, %v1484_v6  ;;  %v1487_v48 = vmul.f32 0.0078125, %v10575_v1  ;;  %1854 = vperm.xlu0 %11269, %v11366_v63  }
 0x2d0   :  { %v11368_v25 = vpop.eup %11367  ;;  %v1391_v9 = vpop.f32.mrf.mxu1 }
 0x2d1   :  { %11381 = vrsqrt.f32 %v1548_v44  ;;  %v1551_v17 = vadd.f32 1e-05, %v1487_v48  ;;  %v1486_v5 = vmul.f32 0.0078125, %v1391_v9  ;;  %1869 = vperm.xlu1 %11270, %v11368_v25  }
 0x2d2   :  { %v11370_v58 = vpop.eup %11369  ;;  %v10578_v56 = vpop.f32.mrf.mxu1 }
 0x2d3   :  { %11383 = vrsqrt.f32 %v1551_v17  ;;  %v1550_v55 = vadd.f32 1e-05, %v1486_v5  ;;  %v1489_v40 = vmul.f32 0.0078125, %v10578_v56  ;;  %1864 = vperm.xlu0 %11269, %v11370_v58  }
 0x2d4   :  { %v11372_v2 = vpop.eup %11371  ;;  %v1401_v50 = vpop.f32.mrf.mxu1 }
 0x2d5   :  { %11385 = vrsqrt.f32 %v1550_v55  ;;  %v1553_v42 = vadd.f32 1e-05, %v1489_v40  ;;  %v1488_v35 = vmul.f32 0.0078125, %v1401_v50  ;;  %1879 = vperm.xlu1 %11270, %v11372_v2  }
 0x2d6   :  { %v11374_v47 = vpop.eup %11373  ;;  %v10581_v6 = vpop.f32.mrf.mxu1 }
 0x2d7   :  { %11387 = vrsqrt.f32 %v1553_v42  ;;  %v1552_v63 = vadd.f32 1e-05, %v1488_v35  ;;  %v1491_v1 = vmul.f32 0.0078125, %v10581_v6  ;;  %1874 = vperm.xlu0 %11269, %v11374_v47  }
 0x2d8   :  { %v11376_v44 = vpop.eup %11375  ;;  %v1411_v48 = vpop.f32.mrf.mxu1 }
 0x2d9   :  { %11389 = vrsqrt.f32 %v1552_v63  ;;  %v1555_v25 = vadd.f32 1e-05, %v1491_v1  ;;  %v1490_v9 = vmul.f32 0.0078125, %v1411_v48  ;;  %1889 = vperm.xlu1 %11270, %v11376_v44  }
 0x2da   :  { %v11378_v17 = vpop.eup %11377  ;;  %v10584_v5 = vpop.f32.mrf.mxu1 }
 0x2db   :  { %11391 = vrsqrt.f32 %v1555_v25  ;;  %v1554_v58 = vadd.f32 1e-05, %v1490_v9  ;;  %v1493_v56 = vmul.f32 0.0078125, %v10584_v5  ;;  %1884 = vperm.xlu0 %11269, %v11378_v17   ;;  %v12809_v17 = vld [vmem:[#allocation5] ss:$0 sm:$0xff] }
 0x2dc   :  { %v11380_v55 = vpop.eup %11379  ;;  %v1421_v40 = vpop.f32.mrf.mxu1 }
 0x2dd   :  { %11393 = vrsqrt.f32 %v1554_v58  ;;  %v1557_v2 = vadd.f32 1e-05, %v1493_v56  ;;  %v1492_v50 = vmul.f32 0.0078125, %v1421_v40  ;;  %1899 = vperm.xlu1 %11270, %v11380_v55  }
 0x2de   :  { %v11382_v42 = vpop.eup %11381 }
 0x2df   :  { %11395 = vrsqrt.f32 %v1557_v2  ;;  %v1556_v35 = vadd.f32 1e-05, %v1492_v50  ;;  %1894 = vperm.xlu0 %11269, %v11382_v42   ;;  %v12814_v50 = vld [vmem:[#allocation5 + $0x1] ss:$0 sm:$0xff] }
 0x2e0   :  { %v11384_v47 = vpop.eup %11383 }
 0x2e1   :  { %11397 = vrsqrt.f32 %v1556_v35  ;;  %1909 = vperm.xlu1 %11270, %v11384_v47  }
 0x2e2   :  { %v11386_v6 = vpop.eup %11385 }
 0x2e3   :  { %1904 = vperm.xlu0 %11269, %v11386_v6  }
 0x2e4   :  { %v11388_v63 = vpop.eup %11387 }
 0x2e5   :  { %1919 = vperm.xlu1 %11270, %v11388_v63  }
 0x2e6   :  { %v11390_v1 = vpop.eup %11389 }
 0x2e7   :  { %1914 = vperm.xlu0 %11269, %v11390_v1  }
 0x2e8   :  { %v11392_v44 = vpop.eup %11391 }
 0x2e9   :  { %1929 = vperm.xlu1 %11270, %v11392_v44  }
 0x2ea   :  { %v11394_v48 = vpop.eup %11393 }
 0x2eb   :  { %1924 = vperm.xlu0 %11269, %v11394_v48  }
 0x2ec   :  { %v11396_v25 = vpop.eup %11395  ;;  %v1630_v9 = vpop.permute.xlu1 %1629 }
 0x2ed   :  { %v1943_v5 = vmul.f32 %v1630_v9, %v12484_v26  ;;  %1939 = vperm.xlu1 %11270, %v11396_v25  }
 0x2ee   :  { %v11398_v58 = vpop.eup %11397  ;;  %v1625_v56 = vpop.permute.xlu0 %1624 }
 0x2ef   :  { %v1942_v55 = vmul.f32 %v1625_v56, %v12479_v0  ;;  %1934 = vperm.xlu0 %11269, %v11398_v58   ;;  %v2011_v40 = vmul.f32 %v12809_v17, %v1943_v5 }
 0x2f0   :  { %v1640_v2 = vpop.permute.xlu1 %1639 }
 0x2f1   :  { %v2010_v42 = vmul.f32 %v12809_v17, %v1942_v55  ;;  %v1945_v35 = vmul.f32 %v1640_v2, %v12494_v53  ;;  %v12823_v63 = vadd.f32 %v12814_v50, %v2011_v40 }
 0x2f2   :  { %v1635_v47 = vpop.permute.xlu0 %1634 }
 0x2f3   :  { %v1944_v6 = vmul.f32 %v1635_v47, %v12487_v61  ;;  %v12820_v26 = vadd.f32 %v12814_v50, %v2010_v42  ;;  %16509 = vst [vmem:[#allocation34_spill] sm:$0xff] %v12823_v63  ;;  %v2013_v0 = vmul.f32 %v12809_v17, %v1945_v35 }
 0x2f4   :  { %v1650_v1 = vpop.permute.xlu1 %1649 }
 0x2f5   :  { %16508 = vst [vmem:[#allocation33_spill] sm:$0xff] %v12820_v26  ;;  %v2012_v44 = vmul.f32 %v12809_v17, %v1944_v6  ;;  %v1947_v48 = vmul.f32 %v1650_v1, %v12507_v7  ;;  %10617 = vmatprep.mubr.f32.mxu0 %v12820_v26  ;;  %v12836_v58 = vadd.f32 %v12814_v50, %v2013_v0 }
 0x2f6   :  { %10618 = vmatmul.mubr.f32.vlgmr.msra.gmra.mxu0 %v12823_v63  ;;  %v1645_v53 = vpop.permute.xlu0 %1644 }
 0x2f7   :  { %v1946_v61 = vmul.f32 %v1645_v53, %v12497_v34  ;;  %v12832_v25 = vadd.f32 %v12814_v50, %v2012_v44  ;;  %v2015_v9 = vmul.f32 %v12809_v17, %v1947_v48  ;;  %16511 = vst [vmem:[#allocation36_spill] sm:$0xff] %v12836_v58 }
 0x2f8   :  { %v1660_v5 = vpop.permute.xlu1 %1659 }
 0x2f9   :  { %16510 = vst [vmem:[#allocation35_spill] sm:$0xff] %v12832_v25  ;;  %v2014_v56 = vmul.f32 %v12809_v17, %v1946_v61  ;;  %v1949_v7 = vmul.f32 %v1660_v5, %v12521_v12  ;;  %10620 = vmatprep.mubr.f32.mxu0 %v12832_v25  ;;  %v12848_v35 = vadd.f32 %v12814_v50, %v2015_v9 }
 0x2fa   :  { %10621 = vmatmul.mubr.f32.gmra.mxu0 %v12836_v58  ;;  %v1655_v55 = vpop.permute.xlu0 %1654 }
 0x2fb   :  { %v1948_v34 = vmul.f32 %v1655_v55, %v12510_v8  ;;  %v12844_v40 = vadd.f32 %v12814_v50, %v2014_v56  ;;  %v2017_v2 = vmul.f32 %v12809_v17, %v1949_v7  ;;  %16513 = vst [vmem:[#allocation38_spill] sm:$0xff] %v12848_v35 }
 0x2fc   :  { %v1670_v42 = vpop.permute.xlu1 %1669 }
 0x2fd   :  { %16512 = vst [vmem:[#allocation37_spill] sm:$0xff] %v12844_v40  ;;  %v2016_v47 = vmul.f32 %v12809_v17, %v1948_v34  ;;  %v1951_v12 = vmul.f32 %v1670_v42, %v12535_v16  ;;  %10623 = vmatprep.mubr.f32.mxu0 %v12844_v40  ;;  %v12860_v48 = vadd.f32 %v12814_v50, %v2017_v2 }
 0x2fe   :  { %10624 = vmatmul.mubr.f32.gmra.mxu0 %v12848_v35  ;;  %v1665_v6 = vpop.permute.xlu0 %1664 }
 0x2ff   :  { %v1950_v8 = vmul.f32 %v1665_v6, %v12524_v14  ;;  %v12856_v0 = vadd.f32 %v12814_v50, %v2016_v47  ;;  %v2019_v1 = vmul.f32 %v12809_v17, %v1951_v12  ;;  %16515 = vst [vmem:[#allocation40_spill] sm:$0xff] %v12860_v48 }
 0x300   :  { %v1680_v44 = vpop.permute.xlu1 %1679 }
 0x301   :  { %16514 = vst [vmem:[#allocation39_spill] sm:$0xff] %v12856_v0  ;;  %v2018_v53 = vmul.f32 %v12809_v17, %v1950_v8  ;;  %v1953_v16 = vmul.f32 %v1680_v44, %v12549_v20  ;;  %10626 = vmatprep.mubr.f32.mxu0 %v12856_v0  ;;  %v12872_v7 = vadd.f32 %v12814_v50, %v2019_v1 }
 0x302   :  { %10627 = vmatmul.mubr.f32.gmra.mxu0 %v12860_v48  ;;  %v1675_v61 = vpop.permute.xlu0 %1674 }
 0x303   :  { %v1952_v14 = vmul.f32 %v1675_v61, %v12538_v57  ;;  %v12868_v9 = vadd.f32 %v12814_v50, %v2018_v53  ;;  %v2021_v5 = vmul.f32 %v12809_v17, %v1953_v16  ;;  %16517 = vst [vmem:[#allocation42_spill] sm:$0xff] %v12872_v7 }
 0x304   :  { %v1690_v56 = vpop.permute.xlu1 %1689 }
 0x305   :  { %16516 = vst [vmem:[#allocation41_spill] sm:$0xff] %v12868_v9  ;;  %v2020_v55 = vmul.f32 %v12809_v17, %v1952_v14  ;;  %v1955_v20 = vmul.f32 %v1690_v56, %v12563_v24  ;;  %10629 = vmatprep.mubr.f32.mxu0 %v12868_v9  ;;  %v12884_v12 = vadd.f32 %v12814_v50, %v2021_v5 }
 0x306   :  { %10630 = vmatmul.mubr.f32.gmra.mxu0 %v12872_v7  ;;  %v1685_v34 = vpop.permute.xlu0 %1684 }
 0x307   :  { %v1954_v57 = vmul.f32 %v1685_v34, %v12552_v46  ;;  %v12880_v2 = vadd.f32 %v12814_v50, %v2020_v55  ;;  %v2023_v42 = vmul.f32 %v12809_v17, %v1955_v20  ;;  %16519 = vst [vmem:[#allocation44_spill] sm:$0xff] %v12884_v12 }
 0x308   :  { %v1700_v47 = vpop.permute.xlu1 %1699 }
 0x309   :  { %16518 = vst [vmem:[#allocation43_spill] sm:$0xff] %v12880_v2  ;;  %v2022_v6 = vmul.f32 %v12809_v17, %v1954_v57  ;;  %v1957_v24 = vmul.f32 %v1700_v47, %v12577_v28  ;;  %10632 = vmatprep.mubr.f32.mxu0 %v12880_v2  ;;  %v12896_v16 = vadd.f32 %v12814_v50, %v2023_v42 }
 0x30a   :  { %10633 = vmatmul.mubr.f32.gmra.mxu0 %v12884_v12  ;;  %v1695_v8 = vpop.permute.xlu0 %1694 }
 0x30b   :  { %v1956_v46 = vmul.f32 %v1695_v8, %v12566_v62  ;;  %v12892_v1 = vadd.f32 %v12814_v50, %v2022_v6  ;;  %v2025_v44 = vmul.f32 %v12809_v17, %v1957_v24  ;;  %16521 = vst [vmem:[#allocation46_spill] sm:$0xff] %v12896_v16 }
 0x30c   :  { %v1710_v53 = vpop.permute.xlu1 %1709 }
 0x30d   :  { %16520 = vst [vmem:[#allocation45_spill] sm:$0xff] %v12892_v1  ;;  %v2024_v61 = vmul.f32 %v12809_v17, %v1956_v46  ;;  %v1959_v28 = vmul.f32 %v1710_v53, %v12591_v32  ;;  %10635 = vmatprep.mubr.f32.mxu0 %v12892_v1  ;;  %v12908_v20 = vadd.f32 %v12814_v50, %v2025_v44 }
 0x30e   :  { %10636 = vmatmul.mubr.f32.gmra.mxu0 %v12896_v16  ;;  %v1705_v14 = vpop.permute.xlu0 %1704 }
 0x30f   :  { %v1958_v62 = vmul.f32 %v1705_v14, %v12580_v37  ;;  %v12904_v5 = vadd.f32 %v12814_v50, %v2024_v61  ;;  %v2027_v56 = vmul.f32 %v12809_v17, %v1959_v28  ;;  %16523 = vst [vmem:[#allocation48_spill] sm:$0xff] %v12908_v20 }
 0x310   :  { %v1720_v55 = vpop.permute.xlu1 %1719 }
 0x311   :  { %16522 = vst [vmem:[#allocation47_spill] sm:$0xff] %v12904_v5  ;;  %v2026_v34 = vmul.f32 %v12809_v17, %v1958_v62  ;;  %v1961_v32 = vmul.f32 %v1720_v55, %v12605_v36  ;;  %10638 = vmatprep.mubr.f32.mxu0 %v12904_v5  ;;  %v12920_v24 = vadd.f32 %v12814_v50, %v2027_v56 }
 0x312   :  { %10639 = vmatmul.mubr.f32.gmra.mxu0 %v12908_v20  ;;  %v1715_v57 = vpop.permute.xlu0 %1714 }
 0x313   :  { %v1960_v37 = vmul.f32 %v1715_v57, %v12594_v4  ;;  %v12916_v42 = vadd.f32 %v12814_v50, %v2026_v34  ;;  %v2029_v47 = vmul.f32 %v12809_v17, %v1961_v32  ;;  %16525 = vst [vmem:[#allocation50_spill] sm:$0xff] %v12920_v24 }
 0x314   :  { %v1730_v6 = vpop.permute.xlu1 %1729 }
 0x315   :  { %16524 = vst [vmem:[#allocation49_spill] sm:$0xff] %v12916_v42  ;;  %v2028_v8 = vmul.f32 %v12809_v17, %v1960_v37  ;;  %v1963_v36 = vmul.f32 %v1730_v6, %v12615_v11  ;;  %10641 = vmatprep.mubr.f32.mxu0 %v12916_v42  ;;  %v12932_v28 = vadd.f32 %v12814_v50, %v2029_v47 }
 0x316   :  { %10642 = vmatmul.mubr.f32.gmra.mxu0 %v12920_v24  ;;  %v1725_v46 = vpop.permute.xlu0 %1724 }
 0x317   :  { %v1962_v4 = vmul.f32 %v1725_v46, %v12608_v33  ;;  %v12928_v44 = vadd.f32 %v12814_v50, %v2028_v8  ;;  %v2031_v53 = vmul.f32 %v12809_v17, %v1963_v36  ;;  %16527 = vst [vmem:[#allocation52_spill] sm:$0xff] %v12932_v28 }
 0x318   :  { %v1740_v61 = vpop.permute.xlu1 %1739 }
 0x319   :  { %16526 = vst [vmem:[#allocation51_spill] sm:$0xff] %v12928_v44  ;;  %v2030_v14 = vmul.f32 %v12809_v17, %v1962_v4  ;;  %v1965_v11 = vmul.f32 %v1740_v61, %v12625_v15  ;;  %10644 = vmatprep.mubr.f32.mxu0 %v12928_v44  ;;  %v12944_v32 = vadd.f32 %v12814_v50, %v2031_v53 }
 0x31a   :  { %10645 = vmatmul.mubr.f32.gmra.mxu0 %v12932_v28  ;;  %v1735_v62 = vpop.permute.xlu0 %1734 }
 0x31b   :  { %v1964_v33 = vmul.f32 %v1735_v62, %v12618_v45  ;;  %v12940_v56 = vadd.f32 %v12814_v50, %v2030_v14  ;;  %v2033_v55 = vmul.f32 %v12809_v17, %v1965_v11  ;;  %16529 = vst [vmem:[#allocation54_spill] sm:$0xff] %v12944_v32 }
 0x31c   :  { %v1750_v34 = vpop.permute.xlu1 %1749 }
 0x31d   :  { %16528 = vst [vmem:[#allocation53_spill] sm:$0xff] %v12940_v56  ;;  %v2032_v57 = vmul.f32 %v12809_v17, %v1964_v33  ;;  %v1967_v15 = vmul.f32 %v1750_v34, %v12635_v19  ;;  %10647 = vmatprep.mubr.f32.mxu0 %v12940_v56  ;;  %v12956_v36 = vadd.f32 %v12814_v50, %v2033_v55 }
 0x31e   :  { %10648 = vmatmul.mubr.f32.gmra.mxu0 %v12944_v32  ;;  %v1745_v37 = vpop.permute.xlu0 %1744 }
 0x31f   :  { %v1966_v45 = vmul.f32 %v1745_v37, %v12628_v41  ;;  %v12952_v47 = vadd.f32 %v12814_v50, %v2032_v57  ;;  %v2035_v6 = vmul.f32 %v12809_v17, %v1967_v15  ;;  %16531 = vst [vmem:[#allocation56_spill] sm:$0xff] %v12956_v36 }
 0x320   :  { %v1760_v8 = vpop.permute.xlu1 %1759 }
 0x321   :  { %16530 = vst [vmem:[#allocation55_spill] sm:$0xff] %v12952_v47  ;;  %v2034_v46 = vmul.f32 %v12809_v17, %v1966_v45  ;;  %v1969_v19 = vmul.f32 %v1760_v8, %v12645_v23  ;;  %10650 = vmatprep.mubr.f32.mxu0 %v12952_v47  ;;  %v12968_v11 = vadd.f32 %v12814_v50, %v2035_v6 }
 0x322   :  { %10651 = vmatmul.mubr.f32.gmra.mxu0 %v12956_v36  ;;  %v1755_v4 = vpop.permute.xlu0 %1754 }
 0x323   :  { %v1968_v41 = vmul.f32 %v1755_v4, %v12638_v10  ;;  %v12964_v53 = vadd.f32 %v12814_v50, %v2034_v46  ;;  %v2037_v61 = vmul.f32 %v12809_v17, %v1969_v19  ;;  %16533 = vst [vmem:[#allocation58_spill] sm:$0xff] %v12968_v11 }
 0x324   :  { %v1770_v14 = vpop.permute.xlu1 %1769 }
 0x325   :  { %16532 = vst [vmem:[#allocation57_spill] sm:$0xff] %v12964_v53  ;;  %v2036_v62 = vmul.f32 %v12809_v17, %v1968_v41  ;;  %v1971_v23 = vmul.f32 %v1770_v14, %v12655_v27  ;;  %10653 = vmatprep.mubr.f32.mxu0 %v12964_v53  ;;  %v12980_v15 = vadd.f32 %v12814_v50, %v2037_v61 }
 0x326   :  { %10654 = vmatmul.mubr.f32.gmra.mxu0 %v12968_v11  ;;  %v1765_v33 = vpop.permute.xlu0 %1764 }
 0x327   :  { %v1970_v10 = vmul.f32 %v1765_v33, %v12648_v21  ;;  %v12976_v55 = vadd.f32 %v12814_v50, %v2036_v62  ;;  %v2039_v34 = vmul.f32 %v12809_v17, %v1971_v23  ;;  %16535 = vst [vmem:[#allocation60_spill] sm:$0xff] %v12980_v15 }
 0x328   :  { %v1780_v57 = vpop.permute.xlu1 %1779 }
 0x329   :  { %16534 = vst [vmem:[#allocation59_spill] sm:$0xff] %v12976_v55  ;;  %v2038_v37 = vmul.f32 %v12809_v17, %v1970_v10  ;;  %v1973_v27 = vmul.f32 %v1780_v57, %v12665_v31  ;;  %10656 = vmatprep.mubr.f32.mxu0 %v12976_v55  ;;  %v12992_v19 = vadd.f32 %v12814_v50, %v2039_v34 }
 0x32a   :  { %10657 = vmatmul.mubr.f32.gmra.mxu0 %v12980_v15  ;;  %v1775_v45 = vpop.permute.xlu0 %1774 }
 0x32b   :  { %v1972_v21 = vmul.f32 %v1775_v45, %v12658_v54  ;;  %v12988_v6 = vadd.f32 %v12814_v50, %v2038_v37  ;;  %v2041_v8 = vmul.f32 %v12809_v17, %v1973_v27  ;;  %16537 = vst [vmem:[#allocation62_spill] sm:$0xff] %v12992_v19 }
 0x32c   :  { %v1790_v46 = vpop.permute.xlu1 %1789 }
 0x32d   :  { %16536 = vst [vmem:[#allocation61_spill] sm:$0xff] %v12988_v6  ;;  %v2040_v4 = vmul.f32 %v12809_v17, %v1972_v21  ;;  %v1975_v31 = vmul.f32 %v1790_v46, %v12673_v29  ;;  %10659 = vmatprep.mubr.f32.mxu0 %v12988_v6  ;;  %v13004_v23 = vadd.f32 %v12814_v50, %v2041_v8 }
 0x32e   :  { %10660 = vmatmul.mubr.f32.gmra.mxu0 %v12992_v19  ;;  %v1785_v41 = vpop.permute.xlu0 %1784 }
 0x32f   :  { %v1974_v54 = vmul.f32 %v1785_v41, %v12667_v3  ;;  %v13000_v61 = vadd.f32 %v12814_v50, %v2040_v4  ;;  %v2043_v14 = vmul.f32 %v12809_v17, %v1975_v31  ;;  %16539 = vst [vmem:[#allocation64_spill] sm:$0xff] %v13004_v23 }
 0x330   :  { %v1800_v62 = vpop.permute.xlu1 %1799 }
 0x331   :  { %16538 = vst [vmem:[#allocation63_spill] sm:$0xff] %v13000_v61  ;;  %v2042_v33 = vmul.f32 %v12809_v17, %v1974_v54  ;;  %v1977_v29 = vmul.f32 %v1800_v62, %v12681_v43  ;;  %10662 = vmatprep.mubr.f32.mxu0 %v13000_v61  ;;  %v13016_v27 = vadd.f32 %v12814_v50, %v2043_v14 }
 0x332   :  { %10663 = vmatmul.mubr.f32.gmra.mxu0 %v13004_v23  ;;  %v1795_v10 = vpop.permute.xlu0 %1794 }
 0x333   :  { %v1976_v3 = vmul.f32 %v1795_v10, %v12675_v22  ;;  %v13012_v34 = vadd.f32 %v12814_v50, %v2042_v33  ;;  %v2045_v57 = vmul.f32 %v12809_v17, %v1977_v29  ;;  %16541 = vst [vmem:[#allocation66_spill] sm:$0xff] %v13016_v27 }
 0x334   :  { %v1810_v37 = vpop.permute.xlu1 %1809 }
 0x335   :  { %16540 = vst [vmem:[#allocation65_spill] sm:$0xff] %v13012_v34  ;;  %v2044_v45 = vmul.f32 %v12809_v17, %v1976_v3  ;;  %v1979_v43 = vmul.f32 %v1810_v37, %v12689_v51  ;;  %10665 = vmatprep.mubr.f32.mxu0 %v13012_v34  ;;  %v13028_v31 = vadd.f32 %v12814_v50, %v2045_v57 }
 0x336   :  { %10666 = vmatmul.mubr.f32.gmra.mxu0 %v13016_v27  ;;  %v1805_v21 = vpop.permute.xlu0 %1804 }
 0x337   :  { %v1978_v22 = vmul.f32 %v1805_v21, %v12683_v38  ;;  %v13024_v8 = vadd.f32 %v12814_v50, %v2044_v45  ;;  %v2047_v46 = vmul.f32 %v12809_v17, %v1979_v43  ;;  %16543 = vst [vmem:[#allocation68_spill] sm:$0xff] %v13028_v31 }
 0x338   :  { %v1820_v4 = vpop.permute.xlu1 %1819 }
 0x339   :  { %16542 = vst [vmem:[#allocation67_spill] sm:$0xff] %v13024_v8  ;;  %v2046_v41 = vmul.f32 %v12809_v17, %v1978_v22  ;;  %v1981_v51 = vmul.f32 %v1820_v4, %v12697_v13  ;;  %10668 = vmatprep.mubr.f32.mxu0 %v13024_v8  ;;  %v13040_v29 = vadd.f32 %v12814_v50, %v2047_v46 }
 0x33a   :  { %10669 = vmatmul.mubr.f32.gmra.mxu0 %v13028_v31  ;;  %v1815_v54 = vpop.permute.xlu0 %1814 }
 0x33b   :  { %v1980_v38 = vmul.f32 %v1815_v54, %v12691_v18  ;;  %v13036_v14 = vadd.f32 %v12814_v50, %v2046_v41  ;;  %v2049_v62 = vmul.f32 %v12809_v17, %v1981_v51  ;;  %16545 = vst [vmem:[#allocation70_spill] sm:$0xff] %v13040_v29 }
 0x33c   :  { %v1830_v33 = vpop.permute.xlu1 %1829 }
 0x33d   :  { %16544 = vst [vmem:[#allocation69_spill] sm:$0xff] %v13036_v14  ;;  %v2048_v10 = vmul.f32 %v12809_v17, %v1980_v38  ;;  %v1983_v13 = vmul.f32 %v1830_v33, %v12705_v39  ;;  %10671 = vmatprep.mubr.f32.mxu0 %v13036_v14  ;;  %v13052_v43 = vadd.f32 %v12814_v50, %v2049_v62 }
 0x33e   :  { %10672 = vmatmul.mubr.f32.gmra.mxu0 %v13040_v29  ;;  %v1825_v3 = vpop.permute.xlu0 %1824 }
 0x33f   :  { %v1982_v18 = vmul.f32 %v1825_v3, %v12699_v60  ;;  %v13048_v57 = vadd.f32 %v12814_v50, %v2048_v10  ;;  %v2051_v37 = vmul.f32 %v12809_v17, %v1983_v13  ;;  %16547 = vst [vmem:[#allocation72_spill] sm:$0xff] %v13052_v43 }
 0x340   :  { %v1840_v45 = vpop.permute.xlu1 %1839 }
 0x341   :  { %16546 = vst [vmem:[#allocation71_spill] sm:$0xff] %v13048_v57  ;;  %v2050_v21 = vmul.f32 %v12809_v17, %v1982_v18  ;;  %v1985_v39 = vmul.f32 %v1840_v45, %v12713_v30  ;;  %10674 = vmatprep.mubr.f32.mxu0 %v13048_v57  ;;  %v13064_v51 = vadd.f32 %v12814_v50, %v2051_v37  ;;  %v16552_v18 = vld [vmem:[#allocation28_spill] sm:$0xff]  ;;  %v16553_v45 = vld [vmem:[#allocation27_spill] sm:$0xff] }
 0x342   :  { %10675 = vmatmul.mubr.f32.gmra.mxu0 %v13052_v43  ;;  %v1835_v22 = vpop.permute.xlu0 %1834 }
 0x343   :  { %v1984_v60 = vmul.f32 %v1835_v22, %v12707_v49  ;;  %v13060_v46 = vadd.f32 %v12814_v50, %v2050_v21  ;;  %v2053_v4 = vmul.f32 %v12809_v17, %v1985_v39  ;;  %16549 = vst [vmem:[#allocation74_spill] sm:$0xff] %v13064_v51 }
 0x344   :  { %v1850_v41 = vpop.permute.xlu1 %1849 }
 0x345   :  { %16548 = vst [vmem:[#allocation73_spill] sm:$0xff] %v13060_v46  ;;  %v2052_v54 = vmul.f32 %v12809_v17, %v1984_v60  ;;  %v1987_v30 = vmul.f32 %v1850_v41, %v12721_v59  ;;  %10677 = vmatprep.mubr.f32.mxu0 %v13060_v46  ;;  %v13076_v13 = vadd.f32 %v12814_v50, %v2053_v4  ;;  %v16556_v41 = vld [vmem:[#allocation30_spill] sm:$0xff] }
 0x346   :  { %10678 = vmatmul.mubr.f32.gmra.mxu0 %v13064_v51  ;;  %v1845_v38 = vpop.permute.xlu0 %1844 }
 0x347   :  { %v1986_v49 = vmul.f32 %v1845_v38, %v12715_v52  ;;  %v13072_v62 = vadd.f32 %v12814_v50, %v2052_v54  ;;  %v2055_v33 = vmul.f32 %v12809_v17, %v1987_v30  ;;  %16551 = vst [vmem:[#allocation76_spill] sm:$0xff] %v13076_v13  ;;  %v16557_v38 = vld [vmem:[#allocation29_spill] sm:$0xff] }
 0x348   :  { %v1860_v10 = vpop.permute.xlu1 %1859 }
 0x349   :  { %16550 = vst [vmem:[#allocation75_spill] sm:$0xff] %v13072_v62  ;;  %v2054_v3 = vmul.f32 %v12809_v17, %v1986_v49  ;;  %v1989_v59 = vmul.f32 %v1860_v10, %v16552_v18  ;;  %10680 = vmatprep.mubr.f32.mxu0 %v13072_v62  ;;  %v13088_v60 = vadd.f32 %v12814_v50, %v2055_v33 }
 0x34a   :  { %10681 = vmatmul.mubr.f32.gmra.mxu0 %v13076_v13  ;;  %v1855_v37 = vpop.permute.xlu0 %1854 }
 0x34b   :  { %v1988_v52 = vmul.f32 %v1855_v37, %v16553_v45  ;;  %v13084_v21 = vadd.f32 %v12814_v50, %v2054_v3  ;;  %v2057_v39 = vmul.f32 %v12809_v17, %v1989_v59  ;;  %16555 = vst [vmem:[#allocation27_spill] sm:$0xff] %v13088_v60  ;;  %v16560_v37 = vld [vmem:[#allocation32_spill] sm:$0xff] }
 0x34c   :  { %v1870_v22 = vpop.permute.xlu1 %1869 }
 0x34d   :  { %16554 = vst [vmem:[#allocation28_spill] sm:$0xff] %v13084_v21  ;;  %v2056_v4 = vmul.f32 %v12809_v17, %v1988_v52  ;;  %v1991_v54 = vmul.f32 %v1870_v22, %v16556_v41  ;;  %10683 = vmatprep.mubr.f32.mxu0 %v13084_v21  ;;  %v13100_v33 = vadd.f32 %v12814_v50, %v2057_v39  ;;  %v16561_v22 = vld [vmem:[#allocation31_spill] sm:$0xff] }
 0x34e   :  { %10684 = vmatmul.mubr.f32.gmra.mxu0 %v13088_v60  ;;  %v1865_v30 = vpop.permute.xlu0 %1864 }
 0x34f   :  { %v1990_v49 = vmul.f32 %v1865_v30, %v16557_v38  ;;  %v13096_v10 = vadd.f32 %v12814_v50, %v2056_v4  ;;  %v2059_v3 = vmul.f32 %v12809_v17, %v1991_v54  ;;  %16559 = vst [vmem:[#allocation29_spill] sm:$0xff] %v13100_v33 }
 0x350   :  { %v1880_v18 = vpop.permute.xlu1 %1879 }
 0x351   :  { %16558 = vst [vmem:[#allocation30_spill] sm:$0xff] %v13096_v10  ;;  %v2058_v59 = vmul.f32 %v12809_v17, %v1990_v49  ;;  %v1993_v45 = vmul.f32 %v1880_v18, %v16560_v37  ;;  %10686 = vmatprep.mubr.f32.mxu0 %v13096_v10  ;;  %v13112_v39 = vadd.f32 %v12814_v50, %v2059_v3  ;;  %v16564_v49 = vld [vmem:[#allocation16_spill] sm:$0xff]  ;;  %v16565_v10 = vld [vmem:[#allocation15_spill] sm:$0xff] }
 0x352   :  { %10687 = vmatmul.mubr.f32.gmra.mxu0 %v13100_v33  ;;  %v1875_v52 = vpop.permute.xlu0 %1874  ;;  %v16568_v33 = vld [vmem:[#allocation18_spill] sm:$0xff] }
 0x353   :  { %v1992_v41 = vmul.f32 %v1875_v52, %v16561_v22  ;;  %v13108_v4 = vadd.f32 %v12814_v50, %v2058_v59  ;;  %v2061_v54 = vmul.f32 %v12809_v17, %v1993_v45  ;;  %16563 = vst [vmem:[#allocation31_spill] sm:$0xff] %v13112_v39 }
 0x354   :  { %v1890_v30 = vpop.permute.xlu1 %1889 }
 0x355   :  { %16562 = vst [vmem:[#allocation32_spill] sm:$0xff] %v13108_v4  ;;  %v2060_v38 = vmul.f32 %v12809_v17, %v1992_v41  ;;  %v1995_v18 = vmul.f32 %v1890_v30, %v16564_v49  ;;  %10689 = vmatprep.mubr.f32.mxu0 %v13108_v4  ;;  %v13124_v3 = vadd.f32 %v12814_v50, %v2061_v54  ;;  %v16569_v4 = vld [vmem:[#allocation17_spill] sm:$0xff] }
 0x356   :  { %10690 = vmatmul.mubr.f32.gmra.mxu0 %v13112_v39  ;;  %v1885_v37 = vpop.permute.xlu0 %1884  ;;  %v16572_v39 = vld [vmem:[#allocation20_spill] sm:$0xff] }
 0x357   :  { %v1994_v52 = vmul.f32 %v1885_v37, %v16565_v10  ;;  %v13120_v59 = vadd.f32 %v12814_v50, %v2060_v38  ;;  %v2063_v45 = vmul.f32 %v12809_v17, %v1995_v18  ;;  %16567 = vst [vmem:[#allocation15_spill] sm:$0xff] %v13124_v3 }
 0x358   :  { %v1900_v22 = vpop.permute.xlu1 %1899 }
 0x359   :  { %16566 = vst [vmem:[#allocation16_spill] sm:$0xff] %v13120_v59  ;;  %v2062_v41 = vmul.f32 %v12809_v17, %v1994_v52  ;;  %v1997_v30 = vmul.f32 %v1900_v22, %v16568_v33  ;;  %10692 = vmatprep.mubr.f32.mxu0 %v13120_v59  ;;  %v13136_v54 = vadd.f32 %v12814_v50, %v2063_v45  ;;  %v16573_v59 = vld [vmem:[#allocation19_spill] sm:$0xff] }
 0x35a   :  { %10693 = vmatmul.mubr.f32.gmra.mxu0 %v13124_v3  ;;  %v1895_v49 = vpop.permute.xlu0 %1894  ;;  %v16576_v3 = vld [vmem:[#allocation22_spill] sm:$0xff] }
 0x35b   :  { %v1996_v10 = vmul.f32 %v1895_v49, %v16569_v4  ;;  %v13132_v38 = vadd.f32 %v12814_v50, %v2062_v41  ;;  %v2065_v18 = vmul.f32 %v12809_v17, %v1997_v30  ;;  %16571 = vst [vmem:[#allocation17_spill] sm:$0xff] %v13136_v54 }
 0x35c   :  { %v1910_v37 = vpop.permute.xlu1 %1909 }
 0x35d   :  { %16570 = vst [vmem:[#allocation18_spill] sm:$0xff] %v13132_v38  ;;  %v2064_v52 = vmul.f32 %v12809_v17, %v1996_v10  ;;  %v1999_v33 = vmul.f32 %v1910_v37, %v16572_v39  ;;  %10695 = vmatprep.mubr.f32.mxu0 %v13132_v38  ;;  %v13148_v45 = vadd.f32 %v12814_v50, %v2065_v18  ;;  %v16577_v38 = vld [vmem:[#allocation21_spill] sm:$0xff] }
 0x35e   :  { %10696 = vmatmul.mubr.f32.gmra.mxu0 %v13136_v54  ;;  %v1905_v22 = vpop.permute.xlu0 %1904  ;;  %v16580_v54 = vld [vmem:[#allocation24_spill] sm:$0xff] }
 0x35f   :  { %v1998_v4 = vmul.f32 %v1905_v22, %v16573_v59  ;;  %v13144_v41 = vadd.f32 %v12814_v50, %v2064_v52  ;;  %v2067_v30 = vmul.f32 %v12809_v17, %v1999_v33  ;;  %16575 = vst [vmem:[#allocation19_spill] sm:$0xff] %v13148_v45 }
 0x360   :  { %v1920_v49 = vpop.permute.xlu1 %1919 }
 0x361   :  { %16574 = vst [vmem:[#allocation20_spill] sm:$0xff] %v13144_v41  ;;  %v2066_v10 = vmul.f32 %v12809_v17, %v1998_v4  ;;  %v2001_v39 = vmul.f32 %v1920_v49, %v16576_v3  ;;  %10698 = vmatprep.mubr.f32.mxu0 %v13144_v41  ;;  %v13160_v18 = vadd.f32 %v12814_v50, %v2067_v30  ;;  %v16581_v41 = vld [vmem:[#allocation23_spill] sm:$0xff] }
 0x362   :  { %10699 = vmatmul.mubr.f32.gmra.mxu0 %v13148_v45  ;;  %v1915_v37 = vpop.permute.xlu0 %1914  ;;  %v16584_v45 = vld [vmem:[#allocation26_spill] sm:$0xff] }
 0x363   :  { %v2000_v59 = vmul.f32 %v1915_v37, %v16577_v38  ;;  %v13156_v52 = vadd.f32 %v12814_v50, %v2066_v10  ;;  %v2069_v33 = vmul.f32 %v12809_v17, %v2001_v39  ;;  %16579 = vst [vmem:[#allocation21_spill] sm:$0xff] %v13160_v18 }
 0x364   :  { %v1930_v22 = vpop.permute.xlu1 %1929 }
 0x365   :  { %16578 = vst [vmem:[#allocation22_spill] sm:$0xff] %v13156_v52  ;;  %v2068_v4 = vmul.f32 %v12809_v17, %v2000_v59  ;;  %v2003_v3 = vmul.f32 %v1930_v22, %v16580_v54  ;;  %10701 = vmatprep.mubr.f32.mxu0 %v13156_v52  ;;  %v13172_v30 = vadd.f32 %v12814_v50, %v2069_v33  ;;  %v16585_v52 = vld [vmem:[#allocation25_spill] sm:$0xff] }
 0x366   :  { %10702 = vmatmul.mubr.f32.gmra.mxu0 %v13160_v18  ;;  %v1925_v49 = vpop.permute.xlu0 %1924 }
 0x367   :  { %v2002_v38 = vmul.f32 %v1925_v49, %v16581_v41  ;;  %v13168_v10 = vadd.f32 %v12814_v50, %v2068_v4  ;;  %v2071_v39 = vmul.f32 %v12809_v17, %v2003_v3  ;;  %16583 = vst [vmem:[#allocation23_spill] sm:$0xff] %v13172_v30 }
 0x368   :  { %v1940_v37 = vpop.permute.xlu1 %1939 }
 0x369   :  { %16582 = vst [vmem:[#allocation24_spill] sm:$0xff] %v13168_v10  ;;  %v2070_v59 = vmul.f32 %v12809_v17, %v2002_v38  ;;  %v2005_v54 = vmul.f32 %v1940_v37, %v16584_v45  ;;  %10704 = vmatprep.mubr.f32.mxu0 %v13168_v10  ;;  %v13184_v49 = vadd.f32 %v12814_v50, %v2071_v39 }
 0x36a   :  { %10705 = vmatmul.mubr.f32.gmra.mxu0 %v13172_v30  ;;  %v1935_v22 = vpop.permute.xlu0 %1934 }
 0x36b   :  { %v2004_v41 = vmul.f32 %v1935_v22, %v16585_v52  ;;  %v13180_v4 = vadd.f32 %v12814_v50, %v2070_v59  ;;  %v2073_v3 = vmul.f32 %v12809_v17, %v2005_v54  ;;  %16587 = vst [vmem:[#allocation25_spill] sm:$0xff] %v13184_v49 }
 0x36d   :  { %16586 = vst [vmem:[#allocation26_spill] sm:$0xff] %v13180_v4  ;;  %v2072_v33 = vmul.f32 %v12809_v17, %v2004_v41  ;;  %10707 = vmatprep.mubr.f32.mxu0 %v13180_v4  ;;  %v13193_v38 = vadd.f32 %v12814_v50, %v2073_v3 }
 0x36e   :  { %10708 = vmatmul.mubr.f32.gmra.mxu0 %v13184_v49 }
 0x36f   :  { %v13190_v45 = vadd.f32 %v12814_v50, %v2072_v33  ;;  %16589 = vst [vmem:[#allocation78_spill] sm:$0xff] %v13193_v38 }
 0x371   :  { %16588 = vst [vmem:[#allocation77_spill] sm:$0xff] %v13190_v45  ;;  %10710 = vmatprep.mubr.f32.mxu0 %v13190_v45 }
 0x372   :  { %10711 = vmatmul.mubr.f32.gmra.mxu0 %v13193_v38 }
 0x3b6   :  { %v10619_v52 = vpop.f32.mrf.mxu0 }
 0x3b7   :  { %v2528_v37 = vmul.f32 0.0078125, %v10619_v52 }
 0x3b8   :  { %v2208_v39 = vpop.f32.mrf.mxu0 }
 0x3b9   :  { %v2527_v59 = vmul.f32 0.0078125, %v2208_v39  ;;  %2598 = vperm.xlu1 %11270, %v2528_v37  }
 0x3ba   :  { %v10622_v17 = vpop.f32.mrf.mxu0 }
 0x3bb   :  { %v2530_v54 = vmul.f32 0.0078125, %v10622_v17  ;;  %2593 = vperm.xlu0 %11269, %v2527_v59  }
 0x3bc   :  { %v2218_v22 = vpop.f32.mrf.mxu0 }
 0x3bd   :  { %v2529_v41 = vmul.f32 0.0078125, %v2218_v22  ;;  %2608 = vperm.xlu1 %11270, %v2530_v54  }
 0x3be   :  { %v10625_v33 = vpop.f32.mrf.mxu0 }
 0x3bf   :  { %v2532_v4 = vmul.f32 0.0078125, %v10625_v33  ;;  %2603 = vperm.xlu0 %11269, %v2529_v41  }
 0x3c0   :  { %v2228_v50 = vpop.f32.mrf.mxu0 }
 0x3c1   :  { %v2531_v3 = vmul.f32 0.0078125, %v2228_v50  ;;  %2618 = vperm.xlu1 %11270, %v2532_v4  }
 0x3c2   :  { %v10628_v45 = vpop.f32.mrf.mxu0 }
 0x3c3   :  { %v2534_v49 = vmul.f32 0.0078125, %v10628_v45  ;;  %2613 = vperm.xlu0 %11269, %v2531_v3  }
 0x3c4   :  { %v2238_v38 = vpop.f32.mrf.mxu0 }
 0x3c5   :  { %v2533_v52 = vmul.f32 0.0078125, %v2238_v38  ;;  %2628 = vperm.xlu1 %11270, %v2534_v49  }
 0x3c6   :  { %v10631_v39 = vpop.f32.mrf.mxu0 }
 0x3c7   :  { %v2536_v37 = vmul.f32 0.0078125, %v10631_v39  ;;  %2623 = vperm.xlu0 %11269, %v2533_v52  }
 0x3c8   :  { %v2248_v17 = vpop.f32.mrf.mxu0 }
 0x3c9   :  { %v2535_v59 = vmul.f32 0.0078125, %v2248_v17  ;;  %2638 = vperm.xlu1 %11270, %v2536_v37  }
 0x3ca   :  { %v10634_v22 = vpop.f32.mrf.mxu0 }
 0x3cb   :  { %v2538_v54 = vmul.f32 0.0078125, %v10634_v22  ;;  %2633 = vperm.xlu0 %11269, %v2535_v59  }
 0x3cc   :  { %v2258_v33 = vpop.f32.mrf.mxu0 }
 0x3cd   :  { %v2537_v41 = vmul.f32 0.0078125, %v2258_v33  ;;  %2648 = vperm.xlu1 %11270, %v2538_v54  }
 0x3ce   :  { %v10637_v50 = vpop.f32.mrf.mxu0 }
 0x3cf   :  { %v2540_v4 = vmul.f32 0.0078125, %v10637_v50  ;;  %2643 = vperm.xlu0 %11269, %v2537_v41  }
 0x3d0   :  { %v2268_v45 = vpop.f32.mrf.mxu0 }
 0x3d1   :  { %v2539_v3 = vmul.f32 0.0078125, %v2268_v45  ;;  %2658 = vperm.xlu1 %11270, %v2540_v4  }
 0x3d2   :  { %v10640_v38 = vpop.f32.mrf.mxu0 }
 0x3d3   :  { %v2542_v49 = vmul.f32 0.0078125, %v10640_v38  ;;  %2653 = vperm.xlu0 %11269, %v2539_v3  }
 0x3d4   :  { %v2278_v39 = vpop.f32.mrf.mxu0 }
 0x3d5   :  { %v2541_v52 = vmul.f32 0.0078125, %v2278_v39  ;;  %2668 = vperm.xlu1 %11270, %v2542_v49  }
 0x3d6   :  { %v10643_v17 = vpop.f32.mrf.mxu0 }
 0x3d7   :  { %v2544_v37 = vmul.f32 0.0078125, %v10643_v17  ;;  %2663 = vperm.xlu0 %11269, %v2541_v52  }
 0x3d8   :  { %v2288_v22 = vpop.f32.mrf.mxu0 }
 0x3d9   :  { %v2543_v59 = vmul.f32 0.0078125, %v2288_v22  ;;  %2678 = vperm.xlu1 %11270, %v2544_v37  }
 0x3da   :  { %v10646_v33 = vpop.f32.mrf.mxu0 }
 0x3db   :  { %v2546_v54 = vmul.f32 0.0078125, %v10646_v33  ;;  %2673 = vperm.xlu0 %11269, %v2543_v59  }
 0x3dc   :  { %v2298_v50 = vpop.f32.mrf.mxu0 }
 0x3dd   :  { %v2545_v41 = vmul.f32 0.0078125, %v2298_v50  ;;  %2688 = vperm.xlu1 %11270, %v2546_v54  }
 0x3de   :  { %v10649_v45 = vpop.f32.mrf.mxu0 }
 0x3df   :  { %v2548_v4 = vmul.f32 0.0078125, %v10649_v45  ;;  %2683 = vperm.xlu0 %11269, %v2545_v41  }
 0x3e0   :  { %v2308_v38 = vpop.f32.mrf.mxu0 }
 0x3e1   :  { %v2547_v3 = vmul.f32 0.0078125, %v2308_v38  ;;  %2698 = vperm.xlu1 %11270, %v2548_v4  }
 0x3e2   :  { %v10652_v39 = vpop.f32.mrf.mxu0 }
 0x3e3   :  { %v2550_v49 = vmul.f32 0.0078125, %v10652_v39  ;;  %2693 = vperm.xlu0 %11269, %v2547_v3  }
 0x3e4   :  { %v2318_v17 = vpop.f32.mrf.mxu0 }
 0x3e5   :  { %v2549_v52 = vmul.f32 0.0078125, %v2318_v17  ;;  %2708 = vperm.xlu1 %11270, %v2550_v49  }
 0x3e6   :  { %v10655_v22 = vpop.f32.mrf.mxu0 }
 0x3e7   :  { %v2552_v37 = vmul.f32 0.0078125, %v10655_v22  ;;  %2703 = vperm.xlu0 %11269, %v2549_v52  }
 0x3e8   :  { %v2328_v33 = vpop.f32.mrf.mxu0 }
 0x3e9   :  { %v2551_v59 = vmul.f32 0.0078125, %v2328_v33  ;;  %2718 = vperm.xlu1 %11270, %v2552_v37  }
 0x3ea   :  { %v10658_v50 = vpop.f32.mrf.mxu0 }
 0x3eb   :  { %v2554_v54 = vmul.f32 0.0078125, %v10658_v50  ;;  %2713 = vperm.xlu0 %11269, %v2551_v59  }
 0x3ec   :  { %v2338_v45 = vpop.f32.mrf.mxu0 }
 0x3ed   :  { %v2553_v41 = vmul.f32 0.0078125, %v2338_v45  ;;  %2728 = vperm.xlu1 %11270, %v2554_v54  }
 0x3ee   :  { %v10661_v38 = vpop.f32.mrf.mxu0 }
 0x3ef   :  { %v2556_v4 = vmul.f32 0.0078125, %v10661_v38  ;;  %2723 = vperm.xlu0 %11269, %v2553_v41  }
 0x3f0   :  { %v2348_v39 = vpop.f32.mrf.mxu0 }
 0x3f1   :  { %v2555_v3 = vmul.f32 0.0078125, %v2348_v39  ;;  %2738 = vperm.xlu1 %11270, %v2556_v4  }
 0x3f2   :  { %v10664_v17 = vpop.f32.mrf.mxu0 }
 0x3f3   :  { %v2558_v49 = vmul.f32 0.0078125, %v10664_v17  ;;  %2733 = vperm.xlu0 %11269, %v2555_v3  }
 0x3f4   :  { %v2358_v22 = vpop.f32.mrf.mxu0 }
 0x3f5   :  { %v2557_v52 = vmul.f32 0.0078125, %v2358_v22  ;;  %2748 = vperm.xlu1 %11270, %v2558_v49  }
 0x3f6   :  { %v10667_v33 = vpop.f32.mrf.mxu0 }
 0x3f7   :  { %v2560_v37 = vmul.f32 0.0078125, %v10667_v33  ;;  %2743 = vperm.xlu0 %11269, %v2557_v52  }
 0x3f8   :  { %v2368_v50 = vpop.f32.mrf.mxu0 }
 0x3f9   :  { %v2559_v59 = vmul.f32 0.0078125, %v2368_v50  ;;  %2758 = vperm.xlu1 %11270, %v2560_v37  }
 0x3fa   :  { %v10670_v45 = vpop.f32.mrf.mxu0 }
 0x3fb   :  { %v2562_v54 = vmul.f32 0.0078125, %v10670_v45  ;;  %2753 = vperm.xlu0 %11269, %v2559_v59  }
 0x3fc   :  { %v2378_v38 = vpop.f32.mrf.mxu0 }
 0x3fd   :  { %v2561_v41 = vmul.f32 0.0078125, %v2378_v38  ;;  %2768 = vperm.xlu1 %11270, %v2562_v54  }
 0x3fe   :  { %v10673_v39 = vpop.f32.mrf.mxu0 }
 0x3ff   :  { %v2564_v4 = vmul.f32 0.0078125, %v10673_v39  ;;  %2763 = vperm.xlu0 %11269, %v2561_v41  }
 0x400   :  { %v2388_v17 = vpop.f32.mrf.mxu0 }
 0x401   :  { %v2563_v3 = vmul.f32 0.0078125, %v2388_v17  ;;  %2778 = vperm.xlu1 %11270, %v2564_v4  }
 0x402   :  { %v10676_v22 = vpop.f32.mrf.mxu0 }
 0x403   :  { %v2566_v49 = vmul.f32 0.0078125, %v10676_v22  ;;  %2773 = vperm.xlu0 %11269, %v2563_v3  }
 0x404   :  { %v2398_v33 = vpop.f32.mrf.mxu0 }
 0x405   :  { %v2565_v52 = vmul.f32 0.0078125, %v2398_v33  ;;  %2788 = vperm.xlu1 %11270, %v2566_v49  }
 0x406   :  { %v10679_v50 = vpop.f32.mrf.mxu0 }
 0x407   :  { %v2568_v37 = vmul.f32 0.0078125, %v10679_v50  ;;  %2783 = vperm.xlu0 %11269, %v2565_v52  }
 0x408   :  { %v2408_v45 = vpop.f32.mrf.mxu0 }
 0x409   :  { %v2567_v59 = vmul.f32 0.0078125, %v2408_v45  ;;  %2798 = vperm.xlu1 %11270, %v2568_v37  }
 0x40a   :  { %v10682_v38 = vpop.f32.mrf.mxu0 }
 0x40b   :  { %v2570_v54 = vmul.f32 0.0078125, %v10682_v38  ;;  %2793 = vperm.xlu0 %11269, %v2567_v59  }
 0x40c   :  { %v2418_v39 = vpop.f32.mrf.mxu0 }
 0x40d   :  { %v2569_v41 = vmul.f32 0.0078125, %v2418_v39  ;;  %2808 = vperm.xlu1 %11270, %v2570_v54  }
 0x40e   :  { %v10685_v17 = vpop.f32.mrf.mxu0 }
 0x40f   :  { %v2572_v4 = vmul.f32 0.0078125, %v10685_v17  ;;  %2803 = vperm.xlu0 %11269, %v2569_v41  }
 0x410   :  { %v2428_v22 = vpop.f32.mrf.mxu0 }
 0x411   :  { %v2571_v3 = vmul.f32 0.0078125, %v2428_v22  ;;  %2818 = vperm.xlu1 %11270, %v2572_v4  }
 0x412   :  { %v10688_v33 = vpop.f32.mrf.mxu0 }
 0x413   :  { %v2574_v49 = vmul.f32 0.0078125, %v10688_v33  ;;  %2813 = vperm.xlu0 %11269, %v2571_v3  }
 0x414   :  { %v2438_v50 = vpop.f32.mrf.mxu0 }
 0x415   :  { %v2573_v52 = vmul.f32 0.0078125, %v2438_v50  ;;  %2828 = vperm.xlu1 %11270, %v2574_v49  }
 0x416   :  { %v10691_v45 = vpop.f32.mrf.mxu0 }
 0x417   :  { %v2576_v37 = vmul.f32 0.0078125, %v10691_v45  ;;  %2823 = vperm.xlu0 %11269, %v2573_v52  }
 0x418   :  { %v2448_v38 = vpop.f32.mrf.mxu0 }
 0x419   :  { %v2575_v59 = vmul.f32 0.0078125, %v2448_v38  ;;  %2838 = vperm.xlu1 %11270, %v2576_v37  }
 0x41a   :  { %v10694_v39 = vpop.f32.mrf.mxu0 }
 0x41b   :  { %v2578_v54 = vmul.f32 0.0078125, %v10694_v39  ;;  %2833 = vperm.xlu0 %11269, %v2575_v59  }
 0x41c   :  { %v2458_v17 = vpop.f32.mrf.mxu0 }
 0x41d   :  { %v2577_v41 = vmul.f32 0.0078125, %v2458_v17  ;;  %2848 = vperm.xlu1 %11270, %v2578_v54  }
 0x41e   :  { %v10697_v22 = vpop.f32.mrf.mxu0 }
 0x41f   :  { %v2580_v4 = vmul.f32 0.0078125, %v10697_v22  ;;  %2843 = vperm.xlu0 %11269, %v2577_v41  }
 0x420   :  { %v2468_v33 = vpop.f32.mrf.mxu0 }
 0x421   :  { %v2579_v3 = vmul.f32 0.0078125, %v2468_v33  ;;  %2858 = vperm.xlu1 %11270, %v2580_v4  }
 0x422   :  { %v10700_v50 = vpop.f32.mrf.mxu0 }
 0x423   :  { %v2582_v49 = vmul.f32 0.0078125, %v10700_v50  ;;  %2853 = vperm.xlu0 %11269, %v2579_v3  }
 0x424   :  { %v2478_v45 = vpop.f32.mrf.mxu0 }
 0x425   :  { %v2581_v52 = vmul.f32 0.0078125, %v2478_v45  ;;  %2868 = vperm.xlu1 %11270, %v2582_v49  }
 0x426   :  { %v10703_v38 = vpop.f32.mrf.mxu0 }
 0x427   :  { %v2584_v37 = vmul.f32 0.0078125, %v10703_v38  ;;  %2863 = vperm.xlu0 %11269, %v2581_v52  }
 0x428   :  { %v2488_v39 = vpop.f32.mrf.mxu0 }
 0x429   :  { %v2583_v59 = vmul.f32 0.0078125, %v2488_v39  ;;  %2878 = vperm.xlu1 %11270, %v2584_v37  }
 0x42a   :  { %v10706_v17 = vpop.f32.mrf.mxu0 }
 0x42b   :  { %v2586_v54 = vmul.f32 0.0078125, %v10706_v17  ;;  %2873 = vperm.xlu0 %11269, %v2583_v59  }
 0x42c   :  { %v2498_v22 = vpop.f32.mrf.mxu0 }
 0x42d   :  { %v2585_v41 = vmul.f32 0.0078125, %v2498_v22  ;;  %2888 = vperm.xlu1 %11270, %v2586_v54  }
 0x42e   :  { %v10709_v33 = vpop.f32.mrf.mxu0 }
 0x42f   :  { %v2588_v4 = vmul.f32 0.0078125, %v10709_v33  ;;  %2883 = vperm.xlu0 %11269, %v2585_v41  }
 0x430   :  { %v2508_v50 = vpop.f32.mrf.mxu0 }
 0x431   :  { %v2587_v3 = vmul.f32 0.0078125, %v2508_v50  ;;  %2898 = vperm.xlu1 %11270, %v2588_v4  }
 0x432   :  { %v10712_v45 = vpop.f32.mrf.mxu0 }
 0x433   :  { %v2590_v49 = vmul.f32 0.0078125, %v10712_v45  ;;  %2893 = vperm.xlu0 %11269, %v2587_v3  }
 0x434   :  { %v2599_v38 = vpop.permute.xlu1 %2598  ;;  %v2518_v52 = vpop.f32.mrf.mxu0 }
 0x435   :  { %v2589_v10 = vmul.f32 0.0078125, %v2518_v52  ;;  %2908 = vperm.xlu1 %11270, %v2590_v49   ;;  %v13198_v37 = vsub.f32 %v12823_v63, %v2599_v38  ;;  %v16598_v63 = vld [vmem:[#allocation15_spill] sm:$0xff] }
 0x436   :  { %v2594_v39 = vpop.permute.xlu0 %2593 }
 0x437   :  { %v13201_v59 = vsub.f32 %v12820_v26, %v2594_v39  ;;  %2903 = vperm.xlu0 %11269, %v2589_v10   ;;  %v2976_v22 = vmul.f32 %v13198_v37, %v13198_v37  ;;  %v16596_v26 = vld [vmem:[#allocation32_spill] sm:$0xff] }
 0x438   :  { %v2609_v17 = vpop.permute.xlu1 %2608 }
 0x439   :  { %v2975_v54 = vmul.f32 %v13201_v59, %v13201_v59  ;;  %v13208_v41 = vsub.f32 %v12836_v58, %v2609_v17 }
 0x43a   :  { %v2604_v33 = vpop.permute.xlu0 %2603 }
 0x43b   :  { %v13211_v4 = vsub.f32 %v12832_v25, %v2604_v33  ;;  %10745 = vmatprep.mubr.f32.mxu1 %v2975_v54  ;;  %v2978_v3 = vmul.f32 %v13208_v41, %v13208_v41  ;;  %v16592_v25 = vld [vmem:[#allocation30_spill] sm:$0xff] }
 0x43c   :  { %v2619_v50 = vpop.permute.xlu1 %2618  ;;  %10746 = vmatmul.mubr.f32.vlgmr.msra.gmra.mxu1 %v2976_v22 }
 0x43d   :  { %v2977_v10 = vmul.f32 %v13211_v4, %v13211_v4  ;;  %v13218_v45 = vsub.f32 %v12848_v35, %v2619_v50 }
 0x43e   :  { %v2614_v49 = vpop.permute.xlu0 %2613 }
 0x43f   :  { %v13221_v38 = vsub.f32 %v12844_v40, %v2614_v49  ;;  %10748 = vmatprep.mubr.f32.mxu1 %v2977_v10  ;;  %v2980_v17 = vmul.f32 %v13218_v45, %v13218_v45 }
 0x440   :  { %v2629_v52 = vpop.permute.xlu1 %2628  ;;  %10749 = vmatmul.mubr.f32.gmra.mxu1 %v2978_v3 }
 0x441   :  { %v2979_v39 = vmul.f32 %v13221_v38, %v13221_v38  ;;  %v13228_v54 = vsub.f32 %v12860_v48, %v2629_v52 }
 0x442   :  { %v2624_v22 = vpop.permute.xlu0 %2623 }
 0x443   :  { %v13231_v33 = vsub.f32 %v12856_v0, %v2624_v22  ;;  %10751 = vmatprep.mubr.f32.mxu1 %v2979_v39  ;;  %v2982_v3 = vmul.f32 %v13228_v54, %v13228_v54 }
 0x444   :  { %v2639_v50 = vpop.permute.xlu1 %2638  ;;  %10752 = vmatmul.mubr.f32.gmra.mxu1 %v2980_v17 }
 0x445   :  { %v2981_v10 = vmul.f32 %v13231_v33, %v13231_v33  ;;  %v13238_v49 = vsub.f32 %v12872_v7, %v2639_v50 }
 0x446   :  { %v2634_v40 = vpop.permute.xlu0 %2633 }
 0x447   :  { %v13241_v52 = vsub.f32 %v12868_v9, %v2634_v40  ;;  %10754 = vmatprep.mubr.f32.mxu1 %v2981_v10  ;;  %v2984_v17 = vmul.f32 %v13238_v49, %v13238_v49 }
 0x448   :  { %v2649_v48 = vpop.permute.xlu1 %2648  ;;  %10755 = vmatmul.mubr.f32.gmra.mxu1 %v2982_v3 }
 0x449   :  { %v2983_v39 = vmul.f32 %v13241_v52, %v13241_v52  ;;  %v13248_v22 = vsub.f32 %v12884_v12, %v2649_v48 }
 0x44a   :  { %v2644_v0 = vpop.permute.xlu0 %2643 }
 0x44b   :  { %v13251_v50 = vsub.f32 %v12880_v2, %v2644_v0  ;;  %10757 = vmatprep.mubr.f32.mxu1 %v2983_v39  ;;  %v2986_v10 = vmul.f32 %v13248_v22, %v13248_v22 }
 0x44c   :  { %v2659_v7 = vpop.permute.xlu1 %2658  ;;  %10758 = vmatmul.mubr.f32.gmra.mxu1 %v2984_v17 }
 0x44d   :  { %v2985_v40 = vmul.f32 %v13251_v50, %v13251_v50  ;;  %v13258_v3 = vsub.f32 %v12896_v16, %v2659_v7 }
 0x44e   :  { %v2654_v9 = vpop.permute.xlu0 %2653 }
 0x44f   :  { %v13261_v48 = vsub.f32 %v12892_v1, %v2654_v9  ;;  %10760 = vmatprep.mubr.f32.mxu1 %v2985_v40  ;;  %v2988_v39 = vmul.f32 %v13258_v3, %v13258_v3 }
 0x450   :  { %v2669_v12 = vpop.permute.xlu1 %2668  ;;  %10761 = vmatmul.mubr.f32.gmra.mxu1 %v2986_v10 }
 0x451   :  { %v2987_v0 = vmul.f32 %v13261_v48, %v13261_v48  ;;  %v13268_v17 = vsub.f32 %v12908_v20, %v2669_v12 }
 0x452   :  { %v2664_v2 = vpop.permute.xlu0 %2663 }
 0x453   :  { %v13271_v7 = vsub.f32 %v12904_v5, %v2664_v2  ;;  %10763 = vmatprep.mubr.f32.mxu1 %v2987_v0  ;;  %v2990_v40 = vmul.f32 %v13268_v17, %v13268_v17 }
 0x454   :  { %v2679_v16 = vpop.permute.xlu1 %2678  ;;  %10764 = vmatmul.mubr.f32.gmra.mxu1 %v2988_v39 }
 0x455   :  { %v2989_v9 = vmul.f32 %v13271_v7, %v13271_v7  ;;  %v13278_v10 = vsub.f32 %v12920_v24, %v2679_v16 }
 0x456   :  { %v2674_v1 = vpop.permute.xlu0 %2673 }
 0x457   :  { %v13281_v12 = vsub.f32 %v12916_v42, %v2674_v1  ;;  %10766 = vmatprep.mubr.f32.mxu1 %v2989_v9  ;;  %v2992_v0 = vmul.f32 %v13278_v10, %v13278_v10 }
 0x458   :  { %v2689_v20 = vpop.permute.xlu1 %2688  ;;  %10767 = vmatmul.mubr.f32.gmra.mxu1 %v2990_v40 }
 0x459   :  { %v2991_v2 = vmul.f32 %v13281_v12, %v13281_v12  ;;  %v13288_v39 = vsub.f32 %v12932_v28, %v2689_v20 }
 0x45a   :  { %v2684_v5 = vpop.permute.xlu0 %2683 }
 0x45b   :  { %v13291_v16 = vsub.f32 %v12928_v44, %v2684_v5  ;;  %10769 = vmatprep.mubr.f32.mxu1 %v2991_v2  ;;  %v2994_v9 = vmul.f32 %v13288_v39, %v13288_v39 }
 0x45c   :  { %v2699_v24 = vpop.permute.xlu1 %2698  ;;  %10770 = vmatmul.mubr.f32.gmra.mxu1 %v2992_v0 }
 0x45d   :  { %v2993_v1 = vmul.f32 %v13291_v16, %v13291_v16  ;;  %v13298_v40 = vsub.f32 %v12944_v32, %v2699_v24 }
 0x45e   :  { %v2694_v42 = vpop.permute.xlu0 %2693 }
 0x45f   :  { %v13301_v20 = vsub.f32 %v12940_v56, %v2694_v42  ;;  %10772 = vmatprep.mubr.f32.mxu1 %v2993_v1  ;;  %v2996_v2 = vmul.f32 %v13298_v40, %v13298_v40 }
 0x460   :  { %v2709_v28 = vpop.permute.xlu1 %2708  ;;  %10773 = vmatmul.mubr.f32.gmra.mxu1 %v2994_v9 }
 0x461   :  { %v2995_v5 = vmul.f32 %v13301_v20, %v13301_v20  ;;  %v13308_v0 = vsub.f32 %v12956_v36, %v2709_v28 }
 0x462   :  { %v2704_v44 = vpop.permute.xlu0 %2703 }
 0x463   :  { %v13311_v24 = vsub.f32 %v12952_v47, %v2704_v44  ;;  %10775 = vmatprep.mubr.f32.mxu1 %v2995_v5  ;;  %v2998_v1 = vmul.f32 %v13308_v0, %v13308_v0 }
 0x464   :  { %v2719_v32 = vpop.permute.xlu1 %2718  ;;  %10776 = vmatmul.mubr.f32.gmra.mxu1 %v2996_v2 }
 0x465   :  { %v2997_v42 = vmul.f32 %v13311_v24, %v13311_v24  ;;  %v13318_v9 = vsub.f32 %v12968_v11, %v2719_v32 }
 0x466   :  { %v2714_v56 = vpop.permute.xlu0 %2713 }
 0x467   :  { %v13321_v28 = vsub.f32 %v12964_v53, %v2714_v56  ;;  %10778 = vmatprep.mubr.f32.mxu1 %v2997_v42  ;;  %v3000_v5 = vmul.f32 %v13318_v9, %v13318_v9 }
 0x468   :  { %v2729_v36 = vpop.permute.xlu1 %2728  ;;  %10779 = vmatmul.mubr.f32.gmra.mxu1 %v2998_v1 }
 0x469   :  { %v2999_v44 = vmul.f32 %v13321_v28, %v13321_v28  ;;  %v13328_v2 = vsub.f32 %v12980_v15, %v2729_v36 }
 0x46a   :  { %v2724_v47 = vpop.permute.xlu0 %2723 }
 0x46b   :  { %v13331_v32 = vsub.f32 %v12976_v55, %v2724_v47  ;;  %10781 = vmatprep.mubr.f32.mxu1 %v2999_v44  ;;  %v3002_v42 = vmul.f32 %v13328_v2, %v13328_v2 }
 0x46c   :  { %v2739_v11 = vpop.permute.xlu1 %2738  ;;  %10782 = vmatmul.mubr.f32.gmra.mxu1 %v3000_v5 }
 0x46d   :  { %v3001_v56 = vmul.f32 %v13331_v32, %v13331_v32  ;;  %v13338_v1 = vsub.f32 %v12992_v19, %v2739_v11 }
 0x46e   :  { %v2734_v53 = vpop.permute.xlu0 %2733 }
 0x46f   :  { %v13341_v36 = vsub.f32 %v12988_v6, %v2734_v53  ;;  %10784 = vmatprep.mubr.f32.mxu1 %v3001_v56  ;;  %v3004_v44 = vmul.f32 %v13338_v1, %v13338_v1 }
 0x470   :  { %v2749_v15 = vpop.permute.xlu1 %2748  ;;  %10785 = vmatmul.mubr.f32.gmra.mxu1 %v3002_v42 }
 0x471   :  { %v3003_v47 = vmul.f32 %v13341_v36, %v13341_v36  ;;  %v13348_v5 = vsub.f32 %v13004_v23, %v2749_v15 }
 0x472   :  { %v2744_v55 = vpop.permute.xlu0 %2743 }
 0x473   :  { %v13351_v11 = vsub.f32 %v13000_v61, %v2744_v55  ;;  %10787 = vmatprep.mubr.f32.mxu1 %v3003_v47  ;;  %v3006_v56 = vmul.f32 %v13348_v5, %v13348_v5 }
 0x474   :  { %v2759_v19 = vpop.permute.xlu1 %2758  ;;  %10788 = vmatmul.mubr.f32.gmra.mxu1 %v3004_v44 }
 0x475   :  { %v3005_v53 = vmul.f32 %v13351_v11, %v13351_v11  ;;  %v13358_v42 = vsub.f32 %v13016_v27, %v2759_v19 }
 0x476   :  { %v2754_v6 = vpop.permute.xlu0 %2753 }
 0x477   :  { %v13361_v15 = vsub.f32 %v13012_v34, %v2754_v6  ;;  %10790 = vmatprep.mubr.f32.mxu1 %v3005_v53  ;;  %v3008_v47 = vmul.f32 %v13358_v42, %v13358_v42 }
 0x478   :  { %v2769_v23 = vpop.permute.xlu1 %2768  ;;  %10791 = vmatmul.mubr.f32.gmra.mxu1 %v3006_v56 }
 0x479   :  { %v3007_v55 = vmul.f32 %v13361_v15, %v13361_v15  ;;  %v13368_v44 = vsub.f32 %v13028_v31, %v2769_v23 }
 0x47a   :  { %v2764_v61 = vpop.permute.xlu0 %2763 }
 0x47b   :  { %v13371_v19 = vsub.f32 %v13024_v8, %v2764_v61  ;;  %10793 = vmatprep.mubr.f32.mxu1 %v3007_v55  ;;  %v3010_v53 = vmul.f32 %v13368_v44, %v13368_v44 }
 0x47c   :  { %v2779_v27 = vpop.permute.xlu1 %2778  ;;  %10794 = vmatmul.mubr.f32.gmra.mxu1 %v3008_v47 }
 0x47d   :  { %v3009_v6 = vmul.f32 %v13371_v19, %v13371_v19  ;;  %v13378_v56 = vsub.f32 %v13040_v29, %v2779_v27 }
 0x47e   :  { %v2774_v34 = vpop.permute.xlu0 %2773 }
 0x47f   :  { %v13381_v23 = vsub.f32 %v13036_v14, %v2774_v34  ;;  %10796 = vmatprep.mubr.f32.mxu1 %v3009_v6  ;;  %v3012_v55 = vmul.f32 %v13378_v56, %v13378_v56 }
 0x480   :  { %v2789_v31 = vpop.permute.xlu1 %2788  ;;  %10797 = vmatmul.mubr.f32.gmra.mxu1 %v3010_v53 }
 0x481   :  { %v3011_v61 = vmul.f32 %v13381_v23, %v13381_v23  ;;  %v13388_v47 = vsub.f32 %v13052_v43, %v2789_v31 }
 0x482   :  { %v2784_v8 = vpop.permute.xlu0 %2783 }
 0x483   :  { %v13391_v27 = vsub.f32 %v13048_v57, %v2784_v8  ;;  %10799 = vmatprep.mubr.f32.mxu1 %v3011_v61  ;;  %v3014_v6 = vmul.f32 %v13388_v47, %v13388_v47 }
 0x484   :  { %v2799_v29 = vpop.permute.xlu1 %2798  ;;  %10800 = vmatmul.mubr.f32.gmra.mxu1 %v3012_v55 }
 0x485   :  { %v3013_v34 = vmul.f32 %v13391_v27, %v13391_v27  ;;  %v13398_v53 = vsub.f32 %v13064_v51, %v2799_v29 }
 0x486   :  { %v2794_v14 = vpop.permute.xlu0 %2793 }
 0x487   :  { %v13401_v31 = vsub.f32 %v13060_v46, %v2794_v14  ;;  %10802 = vmatprep.mubr.f32.mxu1 %v3013_v34  ;;  %v3016_v61 = vmul.f32 %v13398_v53, %v13398_v53 }
 0x488   :  { %v2809_v43 = vpop.permute.xlu1 %2808  ;;  %10803 = vmatmul.mubr.f32.gmra.mxu1 %v3014_v6 }
 0x489   :  { %v3015_v8 = vmul.f32 %v13401_v31, %v13401_v31  ;;  %v13408_v55 = vsub.f32 %v13076_v13, %v2809_v43 }
 0x48a   :  { %v2804_v57 = vpop.permute.xlu0 %2803 }
 0x48b   :  { %v13411_v29 = vsub.f32 %v13072_v62, %v2804_v57  ;;  %10805 = vmatprep.mubr.f32.mxu1 %v3015_v8  ;;  %v3018_v34 = vmul.f32 %v13408_v55, %v13408_v55 }
 0x48c   :  { %v2819_v51 = vpop.permute.xlu1 %2818  ;;  %10806 = vmatmul.mubr.f32.gmra.mxu1 %v3016_v61  ;;  %v16590_v61 = vld [vmem:[#allocation29_spill] sm:$0xff] }
 0x48d   :  { %v3017_v14 = vmul.f32 %v13411_v29, %v13411_v29  ;;  %v13418_v6 = vsub.f32 %v13088_v60, %v2819_v51 }
 0x48e   :  { %v2814_v46 = vpop.permute.xlu0 %2813 }
 0x48f   :  { %v13421_v43 = vsub.f32 %v13084_v21, %v2814_v46  ;;  %10808 = vmatprep.mubr.f32.mxu1 %v3017_v14  ;;  %v3020_v8 = vmul.f32 %v13418_v6, %v13418_v6 }
 0x490   :  { %v2829_v13 = vpop.permute.xlu1 %2828  ;;  %10809 = vmatmul.mubr.f32.gmra.mxu1 %v3018_v34  ;;  %v16594_v34 = vld [vmem:[#allocation31_spill] sm:$0xff] }
 0x491   :  { %v3019_v57 = vmul.f32 %v13421_v43, %v13421_v43  ;;  %v13428_v62 = vsub.f32 %v16590_v61, %v2829_v13  ;;  %v4167_v61 = vld [vmem:[#allocation7 + $0xf8] sm:$0xff] }
 0x492   :  { %v2824_v35 = vpop.permute.xlu0 %2823  ;;  %4180 = vmatprep.subr.mxu0 %v4167_v61 }
 0x493   :  { %16591 = vst [vmem:[#allocation79_spill] sm:$0xff] %v13428_v62  ;;  %v13431_v51 = vsub.f32 %v16592_v25, %v2824_v35  ;;  %10811 = vmatprep.mubr.f32.mxu1 %v3019_v57  ;;  %v3022_v14 = vmul.f32 %v13428_v62, %v13428_v62  ;;  %v4166_v35 = vld [vmem:[#allocation7 + $0xf0] sm:$0xff]  ;;  %v16600_v62 = vld [vmem:[#allocation16_spill] sm:$0xff] }
 0x494   :  { %v2839_v60 = vpop.permute.xlu1 %2838  ;;  %10812 = vmatmul.mubr.f32.gmra.mxu1 %v3020_v8  ;;  %4181 = vmatpush1.msra.mxu0 %v4166_v35  ;;  %v16602_v35 = vld [vmem:[#allocation17_spill] sm:$0xff] }
 0x495   :  { %16593 = vst [vmem:[#allocation80_spill] sm:$0xff] %v13431_v51  ;;  %v3021_v46 = vmul.f32 %v13431_v51, %v13431_v51  ;;  %v13438_v21 = vsub.f32 %v16594_v34, %v2839_v60 }
 0x496   :  { %v2834_v58 = vpop.permute.xlu0 %2833 }
 0x497   :  { %16595 = vst [vmem:[#allocation81_spill] sm:$0xff] %v13438_v21  ;;  %v13441_v13 = vsub.f32 %v16596_v26, %v2834_v58  ;;  %10814 = vmatprep.mubr.f32.mxu1 %v3021_v46  ;;  %v3024_v8 = vmul.f32 %v13438_v21, %v13438_v21 }
 0x498   :  { %v2849_v25 = vpop.permute.xlu1 %2848  ;;  %10815 = vmatmul.mubr.f32.gmra.mxu1 %v3022_v14 }
 0x499   :  { %16597 = vst [vmem:[#allocation82_spill] sm:$0xff] %v13441_v13  ;;  %v3023_v57 = vmul.f32 %v13441_v13, %v13441_v13  ;;  %v13448_v60 = vsub.f32 %v16598_v63, %v2849_v25  ;;  %v16604_v13 = vld [vmem:[#allocation18_spill] sm:$0xff]  ;;  %v4165_v63 = vld [vmem:[#allocation7 + $0xe8] sm:$0xff] }
 0x49a   :  { %v2844_v34 = vpop.permute.xlu0 %2843  ;;  %4182 = vmatprep.subr.mxu0 %v4165_v63 }
 0x49b   :  { %16599 = vst [vmem:[#allocation83_spill] sm:$0xff] %v13448_v60  ;;  %v13451_v58 = vsub.f32 %v16600_v62, %v2844_v34  ;;  %10817 = vmatprep.mubr.f32.mxu1 %v3023_v57  ;;  %v3026_v14 = vmul.f32 %v13448_v60, %v13448_v60  ;;  %v4164_v34 = vld [vmem:[#allocation7 + $0xe0] sm:$0xff] }
 0x49c   :  { %v2859_v46 = vpop.permute.xlu1 %2858  ;;  %10818 = vmatmul.mubr.f32.gmra.mxu1 %v3024_v8  ;;  %4183 = vmatpush1.msra.mxu0 %v4164_v34  ;;  %v16606_v60 = vld [vmem:[#allocation19_spill] sm:$0xff] }
 0x49d   :  { %16601 = vst [vmem:[#allocation84_spill] sm:$0xff] %v13451_v58  ;;  %v3025_v61 = vmul.f32 %v13451_v58, %v13451_v58  ;;  %v13458_v26 = vsub.f32 %v16602_v35, %v2859_v46  ;;  %v16608_v58 = vld [vmem:[#allocation20_spill] sm:$0xff] }
 0x49e   :  { %v2854_v21 = vpop.permute.xlu0 %2853 }
 0x49f   :  { %16603 = vst [vmem:[#allocation85_spill] sm:$0xff] %v13458_v26  ;;  %v13461_v25 = vsub.f32 %v16604_v13, %v2854_v21  ;;  %10820 = vmatprep.mubr.f32.mxu1 %v3025_v61  ;;  %v3028_v8 = vmul.f32 %v13458_v26, %v13458_v26 }
 0x4a0   :  { %v2869_v62 = vpop.permute.xlu1 %2868  ;;  %10821 = vmatmul.mubr.f32.gmra.mxu1 %v3026_v14 }
 0x4a1   :  { %16605 = vst [vmem:[#allocation86_spill] sm:$0xff] %v13461_v25  ;;  %v3027_v57 = vmul.f32 %v13461_v25, %v13461_v25  ;;  %v13468_v46 = vsub.f32 %v16606_v60, %v2869_v62  ;;  %v16611_v25 = vld [vmem:[#allocation22_spill] sm:$0xff] }
 0x4a2   :  { %v2864_v35 = vpop.permute.xlu0 %2863  ;;  %v4163_v60 = vld [vmem:[#allocation7 + $0xd8] sm:$0xff] }
 0x4a3   :  { %16607 = vst [vmem:[#allocation87_spill] sm:$0xff] %v13468_v46  ;;  %v13471_v21 = vsub.f32 %v16608_v58, %v2864_v35  ;;  %10823 = vmatprep.mubr.f32.mxu1 %v3027_v57  ;;  %v3030_v14 = vmul.f32 %v13468_v46, %v13468_v46  ;;  %v4162_v35 = vld [vmem:[#allocation7 + $0xd0] sm:$0xff]  ;;  %4184 = vmatprep.subr.mxu0 %v4163_v60 }
 0x4a4   :  { %v2879_v61 = vpop.permute.xlu1 %2878  ;;  %10824 = vmatmul.mubr.f32.gmra.mxu1 %v3028_v8  ;;  %4185 = vmatpush1.msra.mxu0 %v4162_v35  ;;  %v16616_v35 = vld [vmem:[#allocation25_spill] sm:$0xff] }
 0x4a5   :  { %16609 = vst [vmem:[#allocation88_spill] sm:$0xff] %v13471_v21  ;;  %v3029_v63 = vmul.f32 %v13471_v21, %v13471_v21  ;;  %v13478_v34 = vsub.f32 %v13160_v18, %v2879_v61  ;;  %v16614_v21 = vld [vmem:[#allocation24_spill] sm:$0xff] }
 0x4a6   :  { %v2874_v13 = vpop.permute.xlu0 %2873 }
 0x4a7   :  { %16610 = vst [vmem:[#allocation89_spill] sm:$0xff] %v13478_v34  ;;  %v13481_v62 = vsub.f32 %v16611_v25, %v2874_v13  ;;  %10826 = vmatprep.mubr.f32.mxu1 %v3029_v63  ;;  %v3032_v8 = vmul.f32 %v13478_v34, %v13478_v34  ;;  %v16618_v34 = vld [vmem:[#allocation26_spill] sm:$0xff] }
 0x4a8   :  { %v2889_v58 = vpop.permute.xlu1 %2888  ;;  %10827 = vmatmul.mubr.f32.gmra.mxu1 %v3030_v14 }
 0x4a9   :  { %16612 = vst [vmem:[#allocation90_spill] sm:$0xff] %v13481_v62  ;;  %v3031_v57 = vmul.f32 %v13481_v62, %v13481_v62  ;;  %v13488_v61 = vsub.f32 %v13172_v30, %v2889_v58  ;;  %v4161_v30 = vld [vmem:[#allocation7 + $0xc8] sm:$0xff] }
 0x4aa   :  { %v2884_v18 = vpop.permute.xlu0 %2883  ;;  %4186 = vmatprep.subr.mxu0 %v4161_v30 }
 0x4ab   :  { %16613 = vst [vmem:[#allocation91_spill] sm:$0xff] %v13488_v61  ;;  %v13491_v13 = vsub.f32 %v16614_v21, %v2884_v18  ;;  %10829 = vmatprep.mubr.f32.mxu1 %v3031_v57  ;;  %v3034_v14 = vmul.f32 %v13488_v61, %v13488_v61  ;;  %v4160_v18 = vld [vmem:[#allocation7 + $0xc0] sm:$0xff]  ;;  %v16622_v61 = vld [vmem:[#allocation77_spill] sm:$0xff] }
 0x4ac   :  { %v2899_v63 = vpop.permute.xlu1 %2898  ;;  %10830 = vmatmul.mubr.f32.gmra.mxu1 %v3032_v8  ;;  %4187 = vmatpush1.msra.mxu0 %v4160_v18  ;;  %v4158_v18 = vld [vmem:[#allocation7 + $0xb0] sm:$0xff] }
 0x4ad   :  { %16615 = vst [vmem:[#allocation92_spill] sm:$0xff] %v13491_v13  ;;  %v3033_v60 = vmul.f32 %v13491_v13, %v13491_v13  ;;  %v13498_v25 = vsub.f32 %v16616_v35, %v2899_v63  ;;  %v16620_v13 = vld [vmem:[#allocation78_spill] sm:$0xff] }
 0x4ae   :  { %v2894_v62 = vpop.permute.xlu0 %2893 }
 0x4af   :  { %16617 = vst [vmem:[#allocation93_spill] sm:$0xff] %v13498_v25  ;;  %v13501_v58 = vsub.f32 %v16618_v34, %v2894_v62  ;;  %10832 = vmatprep.mubr.f32.mxu1 %v3033_v60  ;;  %v3036_v8 = vmul.f32 %v13498_v25, %v13498_v25  ;;  %v4151_v34 = vld [vmem:[#allocation7 + $0x78] sm:$0xff] }
 0x4b0   :  { %v2909_v21 = vpop.permute.xlu1 %2908  ;;  %10833 = vmatmul.mubr.f32.gmra.mxu1 %v3034_v14  ;;  %v4159_v14 = vld [vmem:[#allocation7 + $0xb8] sm:$0xff] }
 0x4b1   :  { %16619 = vst [vmem:[#allocation94_spill] sm:$0xff] %v13501_v58  ;;  %v3035_v57 = vmul.f32 %v13501_v58, %v13501_v58  ;;  %v13508_v63 = vsub.f32 %v16620_v13, %v2909_v21  ;;  %4188 = vmatprep.subr.mxu0 %v4159_v14  ;;  %v4157_v21 = vld [vmem:[#allocation7 + $0xa8] sm:$0xff]  ;;  %v4156_v13 = vld [vmem:[#allocation7 + $0xa0] sm:$0xff]  ;;  %v4147_v14 = vld [vmem:[#allocation7 + $0x58] sm:$0xff] }
 0x4b2   :  { %v2904_v35 = vpop.permute.xlu0 %2903  ;;  %4189 = vmatpush1.msra.mxu0 %v4158_v18  ;;  %v4146_v18 = vld [vmem:[#allocation7 + $0x50] sm:$0xff]  ;;  %v4141_v58 = vld [vmem:[#allocation7 + $0x28] sm:$0xff]  ;;  %v4139_v25 = vld [vmem:[#allocation7 + $0x18] sm:$0xff] }
 0x4b3   :  { %16621 = vst [vmem:[#allocation95_spill] sm:$0xff] %v13508_v63  ;;  %v13511_v62 = vsub.f32 %v16622_v61, %v2904_v35  ;;  %10835 = vmatprep.mubr.f32.mxu1 %v3035_v57  ;;  %v3038_v30 = vmul.f32 %v13508_v63, %v13508_v63  ;;  %4190 = vmatprep.subr.mxu0 %v4157_v21  ;;  %v4155_v35 = vld [vmem:[#allocation7 + $0x98] sm:$0xff]  ;;  %v4154_v61 = vld [vmem:[#allocation7 + $0x90] sm:$0xff]  ;;  %v4153_v57 = vld [vmem:[#allocation7 + $0x88] sm:$0xff] }
 0x4b4   :  { %10836 = vmatmul.mubr.f32.gmra.mxu1 %v3036_v8  ;;  %4191 = vmatpush1.msra.mxu0 %v4156_v13  ;;  %v4152_v8 = vld [vmem:[#allocation7 + $0x80] sm:$0xff]  ;;  %v4150_v63 = vld [vmem:[#allocation7 + $0x70] sm:$0xff]  ;;  %v4145_v13 = vld [vmem:[#allocation7 + $0x48] sm:$0xff] }
 0x4b5   :  { %16623 = vst [vmem:[#allocation96_spill] sm:$0xff] %v13511_v62  ;;  %v3037_v60 = vmul.f32 %v13511_v62, %v13511_v62  ;;  %4192 = vmatprep.subr.mxu0 %v4155_v35  ;;  %v4144_v21 = vld [vmem:[#allocation7 + $0x40] sm:$0xff]  ;;  %v4142_v35 = vld [vmem:[#allocation7 + $0x30] sm:$0xff] }
 0x4b6   :  { %4193 = vmatpush1.msra.mxu0 %v4154_v61  ;;  %v4143_v61 = vld [vmem:[#allocation7 + $0x38] sm:$0xff] }
 0x4b7   :  { %10838 = vmatprep.mubr.f32.mxu1 %v3037_v60  ;;  %4194 = vmatprep.subr.mxu0 %v4153_v57  ;;  %v4149_v60 = vld [vmem:[#allocation7 + $0x68] sm:$0xff] }
 0x4b8   :  { %10839 = vmatmul.mubr.f32.gmra.mxu1 %v3038_v30  ;;  %4195 = vmatpush1.msra.mxu0 %v4152_v8  ;;  %v4148_v30 = vld [vmem:[#allocation7 + $0x60] sm:$0xff] }
 0x4b9   :  { %4196 = vmatprep.subr.mxu0 %v4151_v34 }
 0x4ba   :  { %4197 = vmatpush1.msra.mxu0 %v4150_v63 }
 0x4bb   :  { %4198 = vmatprep.subr.mxu0 %v4149_v60  ;;  %v4140_v60 = vld [vmem:[#allocation7 + $0x20] sm:$0xff] }
 0x4bc   :  { %4199 = vmatpush1.msra.mxu0 %v4148_v30 }
 0x4bd   :  { %4200 = vmatprep.subr.mxu0 %v4147_v14 }
 0x4be   :  { %4201 = vmatpush1.msra.mxu0 %v4146_v18 }
 0x4bf   :  { %4202 = vmatprep.subr.mxu0 %v4145_v13  ;;  %v4138_v13 = vld [vmem:[#allocation7 + $0x10] sm:$0xff] }
 0x4c0   :  { %4203 = vmatpush1.msra.mxu0 %v4144_v21 }
 0x4c1   :  { %4204 = vmatprep.subr.mxu0 %v4143_v61 }
 0x4c2   :  { %4205 = vmatpush1.msra.mxu0 %v4142_v35 }
 0x4c3   :  { %4206 = vmatprep.subr.mxu0 %v4141_v58 }
 0x4c4   :  { %4207 = vmatpush1.msra.mxu0 %v4140_v60 }
 0x4c5   :  { %4208 = vmatprep.subr.mxu0 %v4139_v25 }
 0x4c6   :  { %4209 = vmatpush1.msra.mxu0 %v4138_v13 }
 0x4fc   :  { %v10747_v57 = vpop.f32.mrf.mxu1 }
 0x4fd   :  { %v3425_v8 = vmul.f32 0.0078125, %v10747_v57 }
 0x4fe   :  { %v3105_v34 = vpop.f32.mrf.mxu1 }
 0x4ff   :  { %v3489_v63 = vadd.f32 1e-05, %v3425_v8  ;;  %v3424_v62 = vmul.f32 0.0078125, %v3105_v34 }
 0x500   :  { %v10750_v30 = vpop.f32.mrf.mxu1 }
 0x501   :  { %11399 = vrsqrt.f32 %v3489_v63  ;;  %v3488_v14 = vadd.f32 1e-05, %v3424_v62  ;;  %v3427_v18 = vmul.f32 0.0078125, %v10750_v30  ;;  %v4137_v30 = vld [vmem:[#allocation7 + $0x8] sm:$0xff] }
 0x502   :  { %v3115_v21 = vpop.f32.mrf.mxu1  ;;  %4210 = vmatprep.subr.mxu0 %v4137_v30  ;;  %v16424_v30 = vmov 0.0  }
 0x503   :  { %11401 = vrsqrt.f32 %v3488_v14  ;;  %v3491_v61 = vadd.f32 1e-05, %v3427_v18  ;;  %v3426_v35 = vmul.f32 0.0078125, %v3115_v21  ;;  %4244 = vmatprep.mubr.f32.mxu0 %v16424_v30 }
 0x504   :  { %v10753_v57 = vpop.f32.mrf.mxu1 }
 0x505   :  { %11403 = vrsqrt.f32 %v3491_v61  ;;  %v3490_v8 = vadd.f32 1e-05, %v3426_v35  ;;  %v3429_v34 = vmul.f32 0.0078125, %v10753_v57  ;;  %v4136_v61 = vld [vmem:[#allocation7] sm:$0xff] }
 0x506   :  { %v3125_v46 = vpop.f32.mrf.mxu1  ;;  %4211 = vmatpush1.msra.mxu0 %v4136_v61 }
 0x507   :  { %11405 = vrsqrt.f32 %v3490_v8  ;;  %v3493_v26 = vadd.f32 1e-05, %v3429_v34  ;;  %v3428_v58 = vmul.f32 0.0078125, %v3125_v46 }
 0x508   :  { %v10756_v63 = vpop.f32.mrf.mxu1 }
 0x509   :  { %11407 = vrsqrt.f32 %v3493_v26  ;;  %v3492_v62 = vadd.f32 1e-05, %v3428_v58  ;;  %v3431_v60 = vmul.f32 0.0078125, %v10756_v63  ;;  %v16624_v26 = vmov 1.0  }
 0x50a   :  { %v3135_v51 = vpop.f32.mrf.mxu1  ;;  %11097 = vmatprep.subr.mxu0 %v16624_v26 }
 0x50b   :  { %11409 = vrsqrt.f32 %v3492_v62  ;;  %v3495_v25 = vadd.f32 1e-05, %v3431_v60  ;;  %v3430_v14 = vmul.f32 0.0078125, %v3135_v51 }
 0x50c   :  { %v10759_v18 = vpop.f32.mrf.mxu1 }
 0x50d   :  { %11411 = vrsqrt.f32 %v3495_v25  ;;  %v3494_v13 = vadd.f32 1e-05, %v3430_v14  ;;  %v3433_v21 = vmul.f32 0.0078125, %v10759_v18 }
 0x50e   :  { %v11400_v35 = vpop.eup %11399  ;;  %v3145_v57 = vpop.f32.mrf.mxu1 }
 0x50f   :  { %11413 = vrsqrt.f32 %v3494_v13  ;;  %v3497_v46 = vadd.f32 1e-05, %v3433_v21  ;;  %v3432_v8 = vmul.f32 0.0078125, %v3145_v57  ;;  %3623 = vperm.xlu1 %11270, %v11400_v35  }
 0x510   :  { %v11402_v34 = vpop.eup %11401  ;;  %v10762_v58 = vpop.f32.mrf.mxu1 }
 0x511   :  { %11415 = vrsqrt.f32 %v3497_v46  ;;  %v3496_v63 = vadd.f32 1e-05, %v3432_v8  ;;  %v3435_v62 = vmul.f32 0.0078125, %v10762_v58  ;;  %3618 = vperm.xlu0 %11269, %v11402_v34  }
 0x512   :  { %v11404_v51 = vpop.eup %11403  ;;  %v3155_v60 = vpop.f32.mrf.mxu1 }
 0x513   :  { %11417 = vrsqrt.f32 %v3496_v63  ;;  %v3499_v25 = vadd.f32 1e-05, %v3435_v62  ;;  %v3434_v14 = vmul.f32 0.0078125, %v3155_v60  ;;  %3633 = vperm.xlu1 %11270, %v11404_v51  }
 0x514   :  { %v11406_v18 = vpop.eup %11405  ;;  %v10765_v13 = vpop.f32.mrf.mxu1 }
 0x515   :  { %11419 = vrsqrt.f32 %v3499_v25  ;;  %v3498_v21 = vadd.f32 1e-05, %v3434_v14  ;;  %v3437_v61 = vmul.f32 0.0078125, %v10765_v13  ;;  %3628 = vperm.xlu0 %11269, %v11406_v18  }
 0x516   :  { %v11408_v35 = vpop.eup %11407  ;;  %v3165_v57 = vpop.f32.mrf.mxu1 }
 0x517   :  { %11421 = vrsqrt.f32 %v3498_v21  ;;  %v3501_v46 = vadd.f32 1e-05, %v3437_v61  ;;  %v3436_v8 = vmul.f32 0.0078125, %v3165_v57  ;;  %3643 = vperm.xlu1 %11270, %v11408_v35  }
 0x518   :  { %v11410_v34 = vpop.eup %11409  ;;  %v10768_v58 = vpop.f32.mrf.mxu1 }
 0x519   :  { %11423 = vrsqrt.f32 %v3501_v46  ;;  %v3500_v30 = vadd.f32 1e-05, %v3436_v8  ;;  %v3439_v63 = vmul.f32 0.0078125, %v10768_v58  ;;  %3638 = vperm.xlu0 %11269, %v11410_v34  }
 0x51a   :  { %v11412_v62 = vpop.eup %11411  ;;  %v3175_v51 = vpop.f32.mrf.mxu1 }
 0x51b   :  { %11425 = vrsqrt.f32 %v3500_v30  ;;  %v3503_v60 = vadd.f32 1e-05, %v3439_v63  ;;  %v3438_v25 = vmul.f32 0.0078125, %v3175_v51  ;;  %3653 = vperm.xlu1 %11270, %v11412_v62  }
 0x51c   :  { %v11414_v14 = vpop.eup %11413  ;;  %v10771_v18 = vpop.f32.mrf.mxu1 }
 0x51d   :  { %11427 = vrsqrt.f32 %v3503_v60  ;;  %v3502_v13 = vadd.f32 1e-05, %v3438_v25  ;;  %v3441_v21 = vmul.f32 0.0078125, %v10771_v18  ;;  %3648 = vperm.xlu0 %11269, %v11414_v14  }
 0x51e   :  { %v11416_v61 = vpop.eup %11415  ;;  %v3185_v35 = vpop.f32.mrf.mxu1 }
 0x51f   :  { %11429 = vrsqrt.f32 %v3502_v13  ;;  %v3505_v57 = vadd.f32 1e-05, %v3441_v21  ;;  %v3440_v46 = vmul.f32 0.0078125, %v3185_v35  ;;  %3663 = vperm.xlu1 %11270, %v11416_v61  }
 0x520   :  { %v11418_v8 = vpop.eup %11417  ;;  %v10774_v34 = vpop.f32.mrf.mxu1 }
 0x521   :  { %11431 = vrsqrt.f32 %v3505_v57  ;;  %v3504_v58 = vadd.f32 1e-05, %v3440_v46  ;;  %v3443_v30 = vmul.f32 0.0078125, %v10774_v34  ;;  %3658 = vperm.xlu0 %11269, %v11418_v8  }
 0x522   :  { %v11420_v63 = vpop.eup %11419  ;;  %v3195_v62 = vpop.f32.mrf.mxu1 }
 0x523   :  { %11433 = vrsqrt.f32 %v3504_v58  ;;  %v3507_v51 = vadd.f32 1e-05, %v3443_v30  ;;  %v3442_v60 = vmul.f32 0.0078125, %v3195_v62  ;;  %3673 = vperm.xlu1 %11270, %v11420_v63  }
 0x524   :  { %v11422_v25 = vpop.eup %11421  ;;  %v10777_v14 = vpop.f32.mrf.mxu1 }
 0x525   :  { %11435 = vrsqrt.f32 %v3507_v51  ;;  %v3506_v18 = vadd.f32 1e-05, %v3442_v60  ;;  %v3445_v13 = vmul.f32 0.0078125, %v10777_v14  ;;  %3668 = vperm.xlu0 %11269, %v11422_v25  }
 0x526   :  { %v11424_v21 = vpop.eup %11423  ;;  %v3205_v61 = vpop.f32.mrf.mxu1 }
 0x527   :  { %11437 = vrsqrt.f32 %v3506_v18  ;;  %v3509_v35 = vadd.f32 1e-05, %v3445_v13  ;;  %v3444_v57 = vmul.f32 0.0078125, %v3205_v61  ;;  %3683 = vperm.xlu1 %11270, %v11424_v21  }
 0x528   :  { %v11426_v46 = vpop.eup %11425  ;;  %v10780_v8 = vpop.f32.mrf.mxu1 }
 0x529   :  { %11439 = vrsqrt.f32 %v3509_v35  ;;  %v3508_v34 = vadd.f32 1e-05, %v3444_v57  ;;  %v3447_v58 = vmul.f32 0.0078125, %v10780_v8  ;;  %3678 = vperm.xlu0 %11269, %v11426_v46  }
 0x52a   :  { %v11428_v30 = vpop.eup %11427  ;;  %v3215_v63 = vpop.f32.mrf.mxu1 }
 0x52b   :  { %11441 = vrsqrt.f32 %v3508_v34  ;;  %v3511_v62 = vadd.f32 1e-05, %v3447_v58  ;;  %v3446_v51 = vmul.f32 0.0078125, %v3215_v63  ;;  %3693 = vperm.xlu1 %11270, %v11428_v30  }
 0x52c   :  { %v11430_v60 = vpop.eup %11429  ;;  %v10783_v25 = vpop.f32.mrf.mxu1 }
 0x52d   :  { %11443 = vrsqrt.f32 %v3511_v62  ;;  %v3510_v14 = vadd.f32 1e-05, %v3446_v51  ;;  %v3449_v18 = vmul.f32 0.0078125, %v10783_v25  ;;  %3688 = vperm.xlu0 %11269, %v11430_v60  }
 0x52e   :  { %v11432_v13 = vpop.eup %11431  ;;  %v3225_v21 = vpop.f32.mrf.mxu1 }
 0x52f   :  { %11445 = vrsqrt.f32 %v3510_v14  ;;  %v3513_v61 = vadd.f32 1e-05, %v3449_v18  ;;  %v3448_v35 = vmul.f32 0.0078125, %v3225_v21  ;;  %3703 = vperm.xlu1 %11270, %v11432_v13  }
 0x530   :  { %v11434_v57 = vpop.eup %11433  ;;  %v10786_v46 = vpop.f32.mrf.mxu1 }
 0x531   :  { %11447 = vrsqrt.f32 %v3513_v61  ;;  %v3512_v8 = vadd.f32 1e-05, %v3448_v35  ;;  %v3451_v34 = vmul.f32 0.0078125, %v10786_v46  ;;  %3698 = vperm.xlu0 %11269, %v11434_v57  }
 0x532   :  { %v11436_v58 = vpop.eup %11435  ;;  %v3235_v30 = vpop.f32.mrf.mxu1 }
 0x533   :  { %11449 = vrsqrt.f32 %v3512_v8  ;;  %v3515_v63 = vadd.f32 1e-05, %v3451_v34  ;;  %v3450_v62 = vmul.f32 0.0078125, %v3235_v30  ;;  %3713 = vperm.xlu1 %11270, %v11436_v58  }
 0x534   :  { %v11438_v51 = vpop.eup %11437  ;;  %v10789_v60 = vpop.f32.mrf.mxu1 }
 0x535   :  { %11451 = vrsqrt.f32 %v3515_v63  ;;  %v3514_v25 = vadd.f32 1e-05, %v3450_v62  ;;  %v3453_v14 = vmul.f32 0.0078125, %v10789_v60  ;;  %3708 = vperm.xlu0 %11269, %v11438_v51  }
 0x536   :  { %v11440_v18 = vpop.eup %11439  ;;  %v3245_v13 = vpop.f32.mrf.mxu1 }
 0x537   :  { %11453 = vrsqrt.f32 %v3514_v25  ;;  %v3517_v21 = vadd.f32 1e-05, %v3453_v14  ;;  %v3452_v61 = vmul.f32 0.0078125, %v3245_v13  ;;  %3723 = vperm.xlu1 %11270, %v11440_v18  }
 0x538   :  { %v11442_v35 = vpop.eup %11441  ;;  %v10792_v57 = vpop.f32.mrf.mxu1 }
 0x539   :  { %11455 = vrsqrt.f32 %v3517_v21  ;;  %v3516_v46 = vadd.f32 1e-05, %v3452_v61  ;;  %v3455_v8 = vmul.f32 0.0078125, %v10792_v57  ;;  %3718 = vperm.xlu0 %11269, %v11442_v35  }
 0x53a   :  { %v11444_v34 = vpop.eup %11443  ;;  %v3255_v58 = vpop.f32.mrf.mxu1 }
 0x53b   :  { %11457 = vrsqrt.f32 %v3516_v46  ;;  %v3519_v30 = vadd.f32 1e-05, %v3455_v8  ;;  %v3454_v63 = vmul.f32 0.0078125, %v3255_v58  ;;  %3733 = vperm.xlu1 %11270, %v11444_v34  }
 0x53c   :  { %v11446_v62 = vpop.eup %11445  ;;  %v10795_v51 = vpop.f32.mrf.mxu1 }
 0x53d   :  { %11459 = vrsqrt.f32 %v3519_v30  ;;  %v3518_v60 = vadd.f32 1e-05, %v3454_v63  ;;  %v3457_v25 = vmul.f32 0.0078125, %v10795_v51  ;;  %3728 = vperm.xlu0 %11269, %v11446_v62  }
 0x53e   :  { %v11448_v14 = vpop.eup %11447  ;;  %v3265_v18 = vpop.f32.mrf.mxu1 }
 0x53f   :  { %11461 = vrsqrt.f32 %v3518_v60  ;;  %v3521_v13 = vadd.f32 1e-05, %v3457_v25  ;;  %v3456_v21 = vmul.f32 0.0078125, %v3265_v18  ;;  %3743 = vperm.xlu1 %11270, %v11448_v14  }
 0x540   :  { %v11450_v61 = vpop.eup %11449  ;;  %v10798_v35 = vpop.f32.mrf.mxu1 }
 0x541   :  { %11463 = vrsqrt.f32 %v3521_v13  ;;  %v3520_v57 = vadd.f32 1e-05, %v3456_v21  ;;  %v3459_v46 = vmul.f32 0.0078125, %v10798_v35  ;;  %3738 = vperm.xlu0 %11269, %v11450_v61  }
 0x542   :  { %v11452_v8 = vpop.eup %11451  ;;  %v3275_v34 = vpop.f32.mrf.mxu1 }
 0x543   :  { %11465 = vrsqrt.f32 %v3520_v57  ;;  %v3523_v58 = vadd.f32 1e-05, %v3459_v46  ;;  %v3458_v30 = vmul.f32 0.0078125, %v3275_v34  ;;  %3753 = vperm.xlu1 %11270, %v11452_v8  }
 0x544   :  { %v11454_v63 = vpop.eup %11453  ;;  %v10801_v62 = vpop.f32.mrf.mxu1 }
 0x545   :  { %11467 = vrsqrt.f32 %v3523_v58  ;;  %v3522_v51 = vadd.f32 1e-05, %v3458_v30  ;;  %v3461_v60 = vmul.f32 0.0078125, %v10801_v62  ;;  %3748 = vperm.xlu0 %11269, %v11454_v63  }
 0x546   :  { %v11456_v25 = vpop.eup %11455  ;;  %v3285_v14 = vpop.f32.mrf.mxu1 }
 0x547   :  { %11469 = vrsqrt.f32 %v3522_v51  ;;  %v3525_v18 = vadd.f32 1e-05, %v3461_v60  ;;  %v3460_v13 = vmul.f32 0.0078125, %v3285_v14  ;;  %3763 = vperm.xlu1 %11270, %v11456_v25  }
 0x548   :  { %v11458_v21 = vpop.eup %11457  ;;  %v10804_v61 = vpop.f32.mrf.mxu1 }
 0x549   :  { %11471 = vrsqrt.f32 %v3525_v18  ;;  %v3524_v35 = vadd.f32 1e-05, %v3460_v13  ;;  %v3463_v57 = vmul.f32 0.0078125, %v10804_v61  ;;  %3758 = vperm.xlu0 %11269, %v11458_v21  }
 0x54a   :  { %v11460_v46 = vpop.eup %11459  ;;  %v3295_v8 = vpop.f32.mrf.mxu1 }
 0x54b   :  { %11473 = vrsqrt.f32 %v3524_v35  ;;  %v3527_v34 = vadd.f32 1e-05, %v3463_v57  ;;  %v3462_v58 = vmul.f32 0.0078125, %v3295_v8  ;;  %3773 = vperm.xlu1 %11270, %v11460_v46  }
 0x54c   :  { %v11462_v30 = vpop.eup %11461  ;;  %v10807_v63 = vpop.f32.mrf.mxu1 }
 0x54d   :  { %11475 = vrsqrt.f32 %v3527_v34  ;;  %v3526_v62 = vadd.f32 1e-05, %v3462_v58  ;;  %v3465_v51 = vmul.f32 0.0078125, %v10807_v63  ;;  %3768 = vperm.xlu0 %11269, %v11462_v30  }
 0x54e   :  { %v11464_v60 = vpop.eup %11463  ;;  %v3305_v25 = vpop.f32.mrf.mxu1 }
 0x54f   :  { %11477 = vrsqrt.f32 %v3526_v62  ;;  %v3529_v14 = vadd.f32 1e-05, %v3465_v51  ;;  %v3464_v18 = vmul.f32 0.0078125, %v3305_v25  ;;  %3783 = vperm.xlu1 %11270, %v11464_v60  }
 0x550   :  { %v11466_v13 = vpop.eup %11465  ;;  %v10810_v21 = vpop.f32.mrf.mxu1 }
 0x551   :  { %11479 = vrsqrt.f32 %v3529_v14  ;;  %v3528_v61 = vadd.f32 1e-05, %v3464_v18  ;;  %v3467_v35 = vmul.f32 0.0078125, %v10810_v21  ;;  %3778 = vperm.xlu0 %11269, %v11466_v13  }
 0x552   :  { %v11468_v57 = vpop.eup %11467  ;;  %v3315_v46 = vpop.f32.mrf.mxu1 }
 0x553   :  { %11481 = vrsqrt.f32 %v3528_v61  ;;  %v3531_v8 = vadd.f32 1e-05, %v3467_v35  ;;  %v3466_v34 = vmul.f32 0.0078125, %v3315_v46  ;;  %3793 = vperm.xlu1 %11270, %v11468_v57  }
 0x554   :  { %v11470_v58 = vpop.eup %11469  ;;  %v10813_v30 = vpop.f32.mrf.mxu1 }
 0x555   :  { %11483 = vrsqrt.f32 %v3531_v8  ;;  %v3530_v63 = vadd.f32 1e-05, %v3466_v34  ;;  %v3469_v62 = vmul.f32 0.0078125, %v10813_v30  ;;  %3788 = vperm.xlu0 %11269, %v11470_v58  }
 0x556   :  { %v11472_v51 = vpop.eup %11471  ;;  %v3325_v60 = vpop.f32.mrf.mxu1 }
 0x557   :  { %11485 = vrsqrt.f32 %v3530_v63  ;;  %v3533_v25 = vadd.f32 1e-05, %v3469_v62  ;;  %v3468_v14 = vmul.f32 0.0078125, %v3325_v60  ;;  %3803 = vperm.xlu1 %11270, %v11472_v51  }
 0x558   :  { %v11474_v18 = vpop.eup %11473  ;;  %v10816_v13 = vpop.f32.mrf.mxu1 }
 0x559   :  { %11487 = vrsqrt.f32 %v3533_v25  ;;  %v3532_v21 = vadd.f32 1e-05, %v3468_v14  ;;  %v3471_v61 = vmul.f32 0.0078125, %v10816_v13  ;;  %3798 = vperm.xlu0 %11269, %v11474_v18  }
 0x55a   :  { %v11476_v35 = vpop.eup %11475  ;;  %v3335_v57 = vpop.f32.mrf.mxu1 }
 0x55b   :  { %11489 = vrsqrt.f32 %v3532_v21  ;;  %v3535_v46 = vadd.f32 1e-05, %v3471_v61  ;;  %v3470_v8 = vmul.f32 0.0078125, %v3335_v57  ;;  %3813 = vperm.xlu1 %11270, %v11476_v35  }
 0x55c   :  { %v11478_v34 = vpop.eup %11477  ;;  %v10819_v58 = vpop.f32.mrf.mxu1 }
 0x55d   :  { %11491 = vrsqrt.f32 %v3535_v46  ;;  %v3534_v30 = vadd.f32 1e-05, %v3470_v8  ;;  %v3473_v63 = vmul.f32 0.0078125, %v10819_v58  ;;  %3808 = vperm.xlu0 %11269, %v11478_v34  }
 0x55e   :  { %v11480_v62 = vpop.eup %11479  ;;  %v3345_v51 = vpop.f32.mrf.mxu1 }
 0x55f   :  { %11493 = vrsqrt.f32 %v3534_v30  ;;  %v3537_v60 = vadd.f32 1e-05, %v3473_v63  ;;  %v3472_v25 = vmul.f32 0.0078125, %v3345_v51  ;;  %3823 = vperm.xlu1 %11270, %v11480_v62  }
 0x560   :  { %v11482_v14 = vpop.eup %11481  ;;  %v10822_v18 = vpop.f32.mrf.mxu1 }
 0x561   :  { %11495 = vrsqrt.f32 %v3537_v60  ;;  %v3536_v13 = vadd.f32 1e-05, %v3472_v25  ;;  %v3475_v21 = vmul.f32 0.0078125, %v10822_v18  ;;  %3818 = vperm.xlu0 %11269, %v11482_v14  }
 0x562   :  { %v11484_v61 = vpop.eup %11483  ;;  %v3355_v35 = vpop.f32.mrf.mxu1 }
 0x563   :  { %11497 = vrsqrt.f32 %v3536_v13  ;;  %v3539_v57 = vadd.f32 1e-05, %v3475_v21  ;;  %v3474_v46 = vmul.f32 0.0078125, %v3355_v35  ;;  %3833 = vperm.xlu1 %11270, %v11484_v61  }
 0x564   :  { %v11486_v8 = vpop.eup %11485  ;;  %v10825_v34 = vpop.f32.mrf.mxu1 }
 0x565   :  { %11499 = vrsqrt.f32 %v3539_v57  ;;  %v3538_v58 = vadd.f32 1e-05, %v3474_v46  ;;  %v3477_v30 = vmul.f32 0.0078125, %v10825_v34  ;;  %3828 = vperm.xlu0 %11269, %v11486_v8  }
 0x566   :  { %v11488_v63 = vpop.eup %11487  ;;  %v3365_v62 = vpop.f32.mrf.mxu1 }
 0x567   :  { %11501 = vrsqrt.f32 %v3538_v58  ;;  %v3541_v51 = vadd.f32 1e-05, %v3477_v30  ;;  %v3476_v60 = vmul.f32 0.0078125, %v3365_v62  ;;  %3843 = vperm.xlu1 %11270, %v11488_v63  }
 0x568   :  { %v11490_v25 = vpop.eup %11489  ;;  %v10828_v14 = vpop.f32.mrf.mxu1 }
 0x569   :  { %11503 = vrsqrt.f32 %v3541_v51  ;;  %v3540_v18 = vadd.f32 1e-05, %v3476_v60  ;;  %v3479_v13 = vmul.f32 0.0078125, %v10828_v14  ;;  %3838 = vperm.xlu0 %11269, %v11490_v25  }
 0x56a   :  { %v11492_v21 = vpop.eup %11491  ;;  %v3375_v61 = vpop.f32.mrf.mxu1 }
 0x56b   :  { %11505 = vrsqrt.f32 %v3540_v18  ;;  %v3543_v35 = vadd.f32 1e-05, %v3479_v13  ;;  %v3478_v57 = vmul.f32 0.0078125, %v3375_v61  ;;  %3853 = vperm.xlu1 %11270, %v11492_v21  }
 0x56c   :  { %v11494_v46 = vpop.eup %11493  ;;  %v10831_v8 = vpop.f32.mrf.mxu1 }
 0x56d   :  { %11507 = vrsqrt.f32 %v3543_v35  ;;  %v3542_v34 = vadd.f32 1e-05, %v3478_v57  ;;  %v3481_v58 = vmul.f32 0.0078125, %v10831_v8  ;;  %3848 = vperm.xlu0 %11269, %v11494_v46  }
 0x56e   :  { %v11496_v30 = vpop.eup %11495  ;;  %v3385_v63 = vpop.f32.mrf.mxu1 }
 0x56f   :  { %11509 = vrsqrt.f32 %v3542_v34  ;;  %v3545_v62 = vadd.f32 1e-05, %v3481_v58  ;;  %v3480_v51 = vmul.f32 0.0078125, %v3385_v63  ;;  %3863 = vperm.xlu1 %11270, %v11496_v30  }
 0x570   :  { %v11498_v60 = vpop.eup %11497  ;;  %v10834_v25 = vpop.f32.mrf.mxu1 }
 0x571   :  { %11511 = vrsqrt.f32 %v3545_v62  ;;  %v3544_v14 = vadd.f32 1e-05, %v3480_v51  ;;  %v3483_v18 = vmul.f32 0.0078125, %v10834_v25  ;;  %3858 = vperm.xlu0 %11269, %v11498_v60  }
 0x572   :  { %v11500_v13 = vpop.eup %11499  ;;  %v3395_v21 = vpop.f32.mrf.mxu1 }
 0x573   :  { %11513 = vrsqrt.f32 %v3544_v14  ;;  %v3547_v61 = vadd.f32 1e-05, %v3483_v18  ;;  %v3482_v35 = vmul.f32 0.0078125, %v3395_v21  ;;  %3873 = vperm.xlu1 %11270, %v11500_v13  }
 0x574   :  { %v11502_v57 = vpop.eup %11501  ;;  %v10837_v46 = vpop.f32.mrf.mxu1 }
 0x575   :  { %11515 = vrsqrt.f32 %v3547_v61  ;;  %v3546_v8 = vadd.f32 1e-05, %v3482_v35  ;;  %v3485_v34 = vmul.f32 0.0078125, %v10837_v46  ;;  %3868 = vperm.xlu0 %11269, %v11502_v57  }
 0x576   :  { %v11504_v58 = vpop.eup %11503  ;;  %v3405_v30 = vpop.f32.mrf.mxu1 }
 0x577   :  { %11517 = vrsqrt.f32 %v3546_v8  ;;  %v3549_v63 = vadd.f32 1e-05, %v3485_v34  ;;  %v3484_v62 = vmul.f32 0.0078125, %v3405_v30  ;;  %3883 = vperm.xlu1 %11270, %v11504_v58  }
 0x578   :  { %v11506_v51 = vpop.eup %11505  ;;  %v10840_v60 = vpop.f32.mrf.mxu1 }
 0x579   :  { %11519 = vrsqrt.f32 %v3549_v63  ;;  %v3548_v25 = vadd.f32 1e-05, %v3484_v62  ;;  %v3487_v14 = vmul.f32 0.0078125, %v10840_v60  ;;  %3878 = vperm.xlu0 %11269, %v11506_v51  }
 0x57a   :  { %v11508_v18 = vpop.eup %11507  ;;  %v3415_v13 = vpop.f32.mrf.mxu1 }
 0x57b   :  { %11521 = vrsqrt.f32 %v3548_v25  ;;  %v3551_v21 = vadd.f32 1e-05, %v3487_v14  ;;  %v3486_v61 = vmul.f32 0.0078125, %v3415_v13  ;;  %3893 = vperm.xlu1 %11270, %v11508_v18   ;;  %v13521_v13 = vld [vmem:[#allocation5 + $0x2] ss:$0 sm:$0xff] }
 0x57c   :  { %v11510_v35 = vpop.eup %11509 }
 0x57d   :  { %11523 = vrsqrt.f32 %v3551_v21  ;;  %v3550_v57 = vadd.f32 1e-05, %v3486_v61  ;;  %3888 = vperm.xlu0 %11269, %v11510_v35   ;;  %v13524_v61 = vld [vmem:[#allocation5 + $0x3] ss:$0 sm:$0xff] }
 0x57e   :  { %v11512_v46 = vpop.eup %11511 }
 0x57f   :  { %11525 = vrsqrt.f32 %v3550_v57  ;;  %3903 = vperm.xlu1 %11270, %v11512_v46  }
 0x580   :  { %v11514_v8 = vpop.eup %11513 }
 0x581   :  { %3898 = vperm.xlu0 %11269, %v11514_v8  }
 0x582   :  { %v11516_v34 = vpop.eup %11515 }
 0x583   :  { %3913 = vperm.xlu1 %11270, %v11516_v34  }
 0x584   :  { %v11518_v58 = vpop.eup %11517 }
 0x585   :  { %3908 = vperm.xlu0 %11269, %v11518_v58   ;;  %v16625_v58 = vmov 0.0  }
 0x586   :  { %v11520_v30 = vpop.eup %11519 }
 0x587   :  { %3923 = vperm.xlu1 %11270, %v11520_v30  }
 0x588   :  { %v11522_v63 = vpop.eup %11521 }
 0x589   :  { %3918 = vperm.xlu0 %11269, %v11522_v63  }
 0x58a   :  { %v11524_v62 = vpop.eup %11523  ;;  %v3624_v51 = vpop.permute.xlu1 %3623 }
 0x58b   :  { %3933 = vperm.xlu1 %11270, %v11524_v62   ;;  %v3937_v14 = vmul.f32 %v3624_v51, %v13198_v37 }
 0x58c   :  { %v11526_v60 = vpop.eup %11525  ;;  %v3619_v25 = vpop.permute.xlu0 %3618 }
 0x58d   :  { %v3936_v18 = vmul.f32 %v3619_v25, %v13201_v59  ;;  %3928 = vperm.xlu0 %11269, %v11526_v60   ;;  %v4005_v57 = vmul.f32 %v13521_v13, %v3937_v14 }
 0x58e   :  { %v3634_v34 = vpop.permute.xlu1 %3633 }
 0x58f   :  { %v4004_v21 = vmul.f32 %v13521_v13, %v3936_v18  ;;  %v3939_v37 = vmul.f32 %v3634_v34, %v13208_v41  ;;  %v4073_v30 = vadd.f32 %v13524_v61, %v4005_v57 }
 0x590   :  { %v3629_v35 = vpop.permute.xlu0 %3628 }
 0x591   :  { %v4072_v46 = vadd.f32 %v13524_v61, %v4004_v21  ;;  %v3938_v8 = vmul.f32 %v3629_v35, %v13211_v4  ;;  %v4007_v4 = vmul.f32 %v13521_v13, %v3939_v37 }
 0x592   :  { %v3644_v51 = vpop.permute.xlu1 %3643 }
 0x593   :  { %4245 = vmatmul.mubr.f32.vlgmr.msra.gmra.mxu0 %v4072_v46  ;;  %v4006_v59 = vmul.f32 %v13521_v13, %v3938_v8  ;;  %v3941_v60 = vmul.f32 %v3644_v51, %v13218_v45 }
 0x594   :  { %4250 = vmatprep.mubr.f32.mxu0 %v16625_v58  ;;  %11098 = vmatpush3.msra.mxu0 %v16624_v26  ;;  %v3639_v63 = vpop.permute.xlu0 %3638 }
 0x595   :  { %11099 = vmatprep.subr.mxu0 %v16624_v26  ;;  %v3940_v41 = vmul.f32 %v3639_v63, %v13221_v38  ;;  %v4074_v62 = vadd.f32 %v13524_v61, %v4006_v59  ;;  %v4075_v38 = vadd.f32 %v13524_v61, %v4007_v4  ;;  %v4009_v18 = vmul.f32 %v13521_v13, %v3941_v60 }
 0x596   :  { %11100 = vmatpush3.msra.mxu0 %v16624_v26  ;;  %v3654_v35 = vpop.permute.xlu1 %3653 }
 0x597   :  { %4251 = vmatmul.mubr.f32.gmra.mxu0 %v4073_v30  ;;  %11101 = vmatprep.subr.mxu0 %v16624_v26  ;;  %v4008_v25 = vmul.f32 %v13521_v13, %v3940_v41  ;;  %v3943_v57 = vmul.f32 %v3654_v35, %v13228_v54 }
 0x598   :  { %4256 = vmatprep.mubr.f32.mxu0 %v16625_v58  ;;  %11102 = vmatpush3.msra.mxu0 %v16624_v26  ;;  %v3649_v14 = vpop.permute.xlu0 %3648 }
 0x599   :  { %11103 = vmatprep.subr.mxu0 %v16624_v26  ;;  %v3942_v45 = vmul.f32 %v3649_v14, %v13231_v33  ;;  %v4076_v21 = vadd.f32 %v13524_v61, %v4008_v25  ;;  %v4077_v33 = vadd.f32 %v13524_v61, %v4009_v18  ;;  %v4011_v34 = vmul.f32 %v13521_v13, %v3943_v57 }
 0x59a   :  { %11104 = vmatpush3.msra.mxu0 %v16624_v26  ;;  %v3664_v59 = vpop.permute.xlu1 %3663 }
 0x59b   :  { %4257 = vmatmul.mubr.f32.gmra.mxu0 %v4074_v62  ;;  %11105 = vmatprep.subr.mxu0 %v16624_v26  ;;  %v4010_v46 = vmul.f32 %v13521_v13, %v3942_v45  ;;  %v3945_v30 = vmul.f32 %v3664_v59, %v13238_v49 }
 0x59c   :  { %4262 = vmatprep.mubr.f32.mxu0 %v16625_v58  ;;  %11106 = vmatpush3.msra.mxu0 %v16624_v26  ;;  %v3659_v8 = vpop.permute.xlu0 %3658 }
 0x59d   :  { %11107 = vmatprep.subr.mxu0 %v16624_v26  ;;  %v3944_v54 = vmul.f32 %v3659_v8, %v13241_v52  ;;  %v4078_v37 = vadd.f32 %v13524_v61, %v4010_v46  ;;  %v4079_v52 = vadd.f32 %v13524_v61, %v4011_v34  ;;  %v4013_v41 = vmul.f32 %v13521_v13, %v3945_v30 }
 0x59e   :  { %11108 = vmatpush3.msra.mxu0 %v16624_v26  ;;  %v3674_v51 = vpop.permute.xlu1 %3673 }
 0x59f   :  { %4263 = vmatmul.mubr.f32.gmra.mxu0 %v4075_v38  ;;  %11109 = vmatprep.subr.mxu0 %v16624_v26  ;;  %v4012_v63 = vmul.f32 %v13521_v13, %v3944_v54  ;;  %v4081_v60 = vadd.f32 %v13524_v61, %v4013_v41  ;;  %v3947_v25 = vmul.f32 %v3674_v51, %v13248_v22 }
 0x5a0   :  { %4268 = vmatprep.mubr.f32.mxu0 %v16625_v58  ;;  %11110 = vmatpush3.msra.mxu0 %v16624_v26  ;;  %v3669_v4 = vpop.permute.xlu0 %3668 }
 0x5a1   :  { %11111 = vmatprep.subr.mxu0 %v16624_v26  ;;  %v4080_v49 = vadd.f32 %v13524_v61, %v4012_v63  ;;  %v3946_v62 = vmul.f32 %v3669_v4, %v13251_v50  ;;  %v4015_v50 = vmul.f32 %v13521_v13, %v3947_v25 }
 0x5a2   :  { %11112 = vmatpush3.msra.mxu0 %v16624_v26 }
 0x5a3   :  { %4269 = vmatmul.mubr.f32.gmra.mxu0 %v4076_v21  ;;  %11113 = vmatprep.subr.mxu0 %v16624_v26  ;;  %v4014_v38 = vmul.f32 %v13521_v13, %v3946_v62  ;;  %v3684_v21 = vpop.permute.xlu1 %3683  ;;  %v4083_v35 = vadd.f32 %v13524_v61, %v4015_v50 }
 0x5a4   :  { %4274 = vmatprep.mubr.f32.mxu0 %v16625_v58  ;;  %11114 = vmatpush3.msra.mxu0 %v16624_v26  ;;  %v3679_v14 = vpop.permute.xlu0 %3678  ;;  %v3949_v22 = vmul.f32 %v3684_v21, %v13258_v3 }
 0x5a5   :  { %11115 = vmatprep.subr.mxu0 %v16624_v26  ;;  %v4082_v18 = vadd.f32 %v13524_v61, %v4014_v38  ;;  %v3948_v45 = vmul.f32 %v3679_v14, %v13261_v48 }
 0x5a6   :  { %11116 = vmatpush3.msra.mxu0 %v16624_v26 }
 0x5a7   :  { %4275 = vmatmul.mubr.f32.gmra.mxu0 %v4077_v33  ;;  %11117 = vmatprep.subr.mxu0 %v16624_v26  ;;  %v4016_v57 = vmul.f32 %v13521_v13, %v3948_v45  ;;  %v4017_v33 = vmul.f32 %v13521_v13, %v3949_v22  ;;  %v3694_v34 = vpop.permute.xlu1 %3693 }
 0x5a8   :  { %4280 = vmatprep.mubr.f32.mxu0 %v16625_v58  ;;  %11118 = vmatpush3.msra.mxu0 %v16624_v26  ;;  %v3689_v46 = vpop.permute.xlu0 %3688  ;;  %v3951_v3 = vmul.f32 %v3694_v34, %v13268_v17 }
 0x5a9   :  { %11119 = vmatprep.subr.mxu0 %v16624_v26  ;;  %v4084_v8 = vadd.f32 %v13524_v61, %v4016_v57  ;;  %v3950_v48 = vmul.f32 %v3689_v46, %v13271_v7  ;;  %v4085_v54 = vadd.f32 %v13524_v61, %v4017_v33 }
 0x5aa   :  { %11120 = vmatpush3.msra.mxu0 %v16624_v26  ;;  %v4019_v30 = vmul.f32 %v13521_v13, %v3951_v3 }
 0x5ab   :  { %4281 = vmatmul.mubr.f32.gmra.mxu0 %v4078_v37  ;;  %11121 = vmatprep.subr.mxu0 %v16624_v26  ;;  %v4018_v37 = vmul.f32 %v13521_v13, %v3950_v48 }
 0x5ac   :  { %4286 = vmatprep.mubr.f32.mxu0 %v16625_v58  ;;  %11122 = vmatpush3.msra.mxu0 %v16624_v26  ;;  %v3699_v59 = vpop.permute.xlu0 %3698  ;;  %v4087_v4 = vadd.f32 %v13524_v61, %v4019_v30 }
 0x5ad   :  { %11123 = vmatprep.subr.mxu0 %v16624_v26  ;;  %v4086_v63 = vadd.f32 %v13524_v61, %v4018_v37  ;;  %v3952_v7 = vmul.f32 %v3699_v59, %v13281_v12 }
 0x5ae   :  { %11124 = vmatpush3.msra.mxu0 %v16624_v26 }
 0x5af   :  { %4287 = vmatmul.mubr.f32.gmra.mxu0 %v4079_v52  ;;  %11125 = vmatprep.subr.mxu0 %v16624_v26  ;;  %v3704_v52 = vpop.permute.xlu1 %3703  ;;  %v4020_v41 = vmul.f32 %v13521_v13, %v3952_v7 }
 0x5b0   :  { %4292 = vmatprep.mubr.f32.mxu0 %v16625_v58  ;;  %11126 = vmatpush3.msra.mxu0 %v16624_v26  ;;  %v3953_v17 = vmul.f32 %v3704_v52, %v13278_v10 }
 0x5b1   :  { %11127 = vmatprep.subr.mxu0 %v16624_v26  ;;  %v4088_v51 = vadd.f32 %v13524_v61, %v4020_v41 }
 0x5b2   :  { %11128 = vmatpush3.msra.mxu0 %v16624_v26  ;;  %v4021_v62 = vmul.f32 %v13521_v13, %v3953_v17 }
 0x5b3   :  { %4293 = vmatmul.mubr.f32.gmra.mxu0 %v4080_v49  ;;  %v3709_v49 = vpop.permute.xlu0 %3708 }
 0x5b4   :  { %4298 = vmatprep.mubr.f32.mxu0 %v16625_v58  ;;  %v3954_v12 = vmul.f32 %v3709_v49, %v13291_v16  ;;  %v4089_v25 = vadd.f32 %v13524_v61, %v4021_v62 }
 0x5b6   :  { %v4022_v38 = vmul.f32 %v13521_v13, %v3954_v12 }
 0x5b7   :  { %4299 = vmatmul.mubr.f32.gmra.mxu0 %v4081_v60  ;;  %v3714_v60 = vpop.permute.xlu1 %3713  ;;  %v3719_v14 = vpop.permute.xlu0 %3718 }
 0x5b8   :  { %4304 = vmatprep.mubr.f32.mxu0 %v16625_v58  ;;  %v3955_v10 = vmul.f32 %v3714_v60, %v13288_v39  ;;  %v3956_v16 = vmul.f32 %v3719_v14, %v13301_v20 }
 0x5ba   :  { %v4023_v50 = vmul.f32 %v13521_v13, %v3955_v10 }
 0x5bb   :  { %4305 = vmatmul.mubr.f32.gmra.mxu0 %v4082_v18  ;;  %v4090_v18 = vadd.f32 %v13524_v61, %v4022_v38  ;;  %v3724_v45 = vpop.permute.xlu1 %3723  ;;  %v3729_v22 = vpop.permute.xlu0 %3728 }
 0x5bc   :  { %4310 = vmatprep.mubr.f32.mxu0 %v16625_v58  ;;  %v4091_v21 = vadd.f32 %v13524_v61, %v4023_v50  ;;  %v3957_v39 = vmul.f32 %v3724_v45, %v13298_v40  ;;  %v3958_v20 = vmul.f32 %v3729_v22, %v13311_v24 }
 0x5be   :  { %v4025_v57 = vmul.f32 %v13521_v13, %v3957_v39  ;;  %v4026_v48 = vmul.f32 %v13521_v13, %v3958_v20 }
 0x5bf   :  { %4311 = vmatmul.mubr.f32.gmra.mxu0 %v4083_v35  ;;  %v4024_v35 = vmul.f32 %v13521_v13, %v3956_v16  ;;  %v3734_v33 = vpop.permute.xlu1 %3733  ;;  %v3739_v34 = vpop.permute.xlu0 %3738 }
 0x5c0   :  { %4316 = vmatprep.mubr.f32.mxu0 %v16625_v58  ;;  %v3959_v40 = vmul.f32 %v3734_v33, %v13308_v0  ;;  %v4094_v3 = vadd.f32 %v13524_v61, %v4026_v48  ;;  %v3960_v24 = vmul.f32 %v3739_v34, %v13321_v28 }
 0x5c1   :  { %v4092_v46 = vadd.f32 %v13524_v61, %v4024_v35 }
 0x5c2   :  { %v4028_v30 = vmul.f32 %v13521_v13, %v3960_v24 }
 0x5c3   :  { %4317 = vmatmul.mubr.f32.gmra.mxu0 %v4084_v8  ;;  %v4093_v8 = vadd.f32 %v13524_v61, %v4025_v57  ;;  %v3744_v37 = vpop.permute.xlu1 %3743 }
 0x5c4   :  { %4322 = vmatprep.mubr.f32.mxu0 %v16625_v58  ;;  %v3961_v0 = vmul.f32 %v3744_v37, %v13318_v9  ;;  %v4096_v52 = vadd.f32 %v13524_v61, %v4028_v30 }
 0x5c6   :  { %v4029_v7 = vmul.f32 %v13521_v13, %v3961_v0 }
 0x5c7   :  { %4323 = vmatmul.mubr.f32.gmra.mxu0 %v4085_v54  ;;  %v4027_v54 = vmul.f32 %v13521_v13, %v3959_v40 }
 0x5c8   :  { %4328 = vmatprep.mubr.f32.mxu0 %v16625_v58  ;;  %v4097_v17 = vadd.f32 %v13524_v61, %v4029_v7 }
 0x5c9   :  { %v4095_v59 = vadd.f32 %v13524_v61, %v4027_v54 }
 0x5cb   :  { %4329 = vmatmul.mubr.f32.gmra.mxu0 %v4086_v63  ;;  %v3749_v63 = vpop.permute.xlu0 %3748 }
 0x5cc   :  { %4334 = vmatprep.mubr.f32.mxu0 %v16625_v58  ;;  %v3962_v28 = vmul.f32 %v3749_v63, %v13331_v32 }
 0x5ce   :  { %v4030_v41 = vmul.f32 %v13521_v13, %v3962_v28 }
 0x5cf   :  { %4335 = vmatmul.mubr.f32.gmra.mxu0 %v4087_v4  ;;  %v3754_v4 = vpop.permute.xlu1 %3753  ;;  %v3759_v49 = vpop.permute.xlu0 %3758 }
 0x5d0   :  { %4340 = vmatprep.mubr.f32.mxu0 %v16625_v58  ;;  %v3963_v9 = vmul.f32 %v3754_v4, %v13328_v2  ;;  %v3964_v32 = vmul.f32 %v3759_v49, %v13341_v36 }
 0x5d2   :  { %v4031_v62 = vmul.f32 %v13521_v13, %v3963_v9 }
 0x5d3   :  { %4341 = vmatmul.mubr.f32.gmra.mxu0 %v4088_v51  ;;  %v4098_v51 = vadd.f32 %v13524_v61, %v4030_v41  ;;  %v3764_v12 = vpop.permute.xlu1 %3763  ;;  %v3769_v10 = vpop.permute.xlu0 %3768 }
 0x5d4   :  { %4346 = vmatprep.mubr.f32.mxu0 %v16625_v58  ;;  %v4099_v60 = vadd.f32 %v13524_v61, %v4031_v62  ;;  %v3965_v2 = vmul.f32 %v3764_v12, %v13338_v1  ;;  %v3966_v36 = vmul.f32 %v3769_v10, %v13351_v11 }
 0x5d6   :  { %v4033_v38 = vmul.f32 %v13521_v13, %v3965_v2  ;;  %v4034_v16 = vmul.f32 %v13521_v13, %v3966_v36 }
 0x5d7   :  { %4347 = vmatmul.mubr.f32.gmra.mxu0 %v4089_v25  ;;  %v4032_v25 = vmul.f32 %v13521_v13, %v3964_v32  ;;  %v3774_v50 = vpop.permute.xlu1 %3773  ;;  %v3779_v45 = vpop.permute.xlu0 %3778 }
 0x5d8   :  { %4352 = vmatprep.mubr.f32.mxu0 %v16625_v58  ;;  %v3967_v1 = vmul.f32 %v3774_v50, %v13348_v5  ;;  %v4102_v39 = vadd.f32 %v13524_v61, %v4034_v16  ;;  %v3968_v11 = vmul.f32 %v3779_v45, %v13361_v15 }
 0x5d9   :  { %v4100_v14 = vadd.f32 %v13524_v61, %v4032_v25 }
 0x5da   :  { %v4036_v57 = vmul.f32 %v13521_v13, %v3968_v11 }
 0x5db   :  { %4353 = vmatmul.mubr.f32.gmra.mxu0 %v4090_v18  ;;  %v4101_v18 = vadd.f32 %v13524_v61, %v4033_v38  ;;  %v3784_v35 = vpop.permute.xlu1 %3783 }
 0x5dc   :  { %4358 = vmatprep.mubr.f32.mxu0 %v16625_v58  ;;  %v3969_v5 = vmul.f32 %v3784_v35, %v13358_v42  ;;  %v4104_v33 = vadd.f32 %v13524_v61, %v4036_v57 }
 0x5de   :  { %v4037_v20 = vmul.f32 %v13521_v13, %v3969_v5 }
 0x5df   :  { %4359 = vmatmul.mubr.f32.gmra.mxu0 %v4091_v21  ;;  %v4035_v21 = vmul.f32 %v13521_v13, %v3967_v1 }
 0x5e0   :  { %4364 = vmatprep.mubr.f32.mxu0 %v16625_v58  ;;  %v4105_v40 = vadd.f32 %v13524_v61, %v4037_v20 }
 0x5e1   :  { %v4103_v22 = vadd.f32 %v13524_v61, %v4035_v21 }
 0x5e3   :  { %4365 = vmatmul.mubr.f32.gmra.mxu0 %v4092_v46  ;;  %v3789_v46 = vpop.permute.xlu0 %3788 }
 0x5e4   :  { %4370 = vmatprep.mubr.f32.mxu0 %v16625_v58  ;;  %v3970_v15 = vmul.f32 %v3789_v46, %v13371_v19  ;;  %v4170_v46 = vlaneseq }
 0x5e6   :  { %v4038_v48 = vmul.f32 %v13521_v13, %v3970_v15  ;;  %v16628_v15 = vld [vmem:[#allocation82_spill] sm:$0xff] }
 0x5e7   :  { %4371 = vmatmul.mubr.f32.gmra.mxu0 %v4093_v8  ;;  %v3794_v8 = vpop.permute.xlu1 %3793  ;;  %v3799_v34 = vpop.permute.xlu0 %3798 }
 0x5e8   :  { %4376 = vmatprep.mubr.f32.mxu0 %v16625_v58  ;;  %v3971_v42 = vmul.f32 %v3794_v8, %v13368_v44  ;;  %v3972_v19 = vmul.f32 %v3799_v34, %v13381_v23 }
 0x5ea   :  { %v4039_v54 = vmul.f32 %v13521_v13, %v3971_v42  ;;  %v13744_v42 = vshrl.u32 %v4170_v46, 7 }
 0x5eb   :  { %4377 = vmatmul.mubr.f32.gmra.mxu0 %v4094_v3  ;;  %v4106_v3 = vadd.f32 %v13524_v61, %v4038_v48  ;;  %v3804_v24 = vpop.permute.xlu1 %3803  ;;  %v3809_v0 = vpop.permute.xlu0 %3808 }
 0x5ec   :  { %4382 = vmatprep.mubr.f32.mxu0 %v16625_v58  ;;  %v4107_v37 = vadd.f32 %v13524_v61, %v4039_v54  ;;  %v3973_v44 = vmul.f32 %v3804_v24, %v13378_v56  ;;  %v3974_v23 = vmul.f32 %v3809_v0, %v13391_v27  ;;  %v16629_v54 = vld [vmem:[#allocation81_spill] sm:$0xff]  ;;  %v4172_v24 = vsub.s32 0, %v13744_v42 }
 0x5ed   :  { %vm5974_vm0 = vcmp.lt.s32.totalorder %v13744_v42, 1  ;;  %vm6359_vm1 = vcmp.lt.s32.totalorder %v13744_v42, 7 }
 0x5ee   :  { %v4041_v30 = vmul.f32 %v13521_v13, %v3973_v44  ;;  %v4042_v28 = vmul.f32 %v13521_v13, %v3974_v23 }
 0x5ef   :  { %4383 = vmatmul.mubr.f32.gmra.mxu0 %v4095_v59  ;;  %v4040_v59 = vmul.f32 %v13521_v13, %v3972_v19  ;;  %v3814_v7 = vpop.permute.xlu1 %3813  ;;  %v3819_v4 = vpop.permute.xlu0 %3818 }
 0x5f0   :  { %4388 = vmatprep.mubr.f32.mxu0 %v16625_v58  ;;  %v3975_v56 = vmul.f32 %v3814_v7, %v13388_v47  ;;  %v4110_v9 = vadd.f32 %v13524_v61, %v4042_v28  ;;  %v3976_v27 = vmul.f32 %v3819_v4, %v13401_v31  ;;  %v16632_v4 = vld [vmem:[#allocation85_spill] sm:$0xff] }
 0x5f1   :  { %v4108_v63 = vadd.f32 %v13524_v61, %v4040_v59 }
 0x5f2   :  { %v4044_v62 = vmul.f32 %v13521_v13, %v3976_v27 }
 0x5f3   :  { %4389 = vmatmul.mubr.f32.gmra.mxu0 %v4096_v52  ;;  %v4109_v52 = vadd.f32 %v13524_v61, %v4041_v30  ;;  %v3824_v41 = vpop.permute.xlu1 %3823  ;;  %v16630_v30 = vld [vmem:[#allocation84_spill] sm:$0xff] }
 0x5f4   :  { %4394 = vmatprep.mubr.f32.mxu0 %v16625_v58  ;;  %v3977_v47 = vmul.f32 %v3824_v41, %v13398_v53  ;;  %v4112_v12 = vadd.f32 %v13524_v61, %v4044_v62 }
 0x5f6   :  { %v4045_v32 = vmul.f32 %v13521_v13, %v3977_v47  ;;  %v4176_v47 = vsub.s32 1, %v13744_v42 }
 0x5f7   :  { %4395 = vmatmul.mubr.f32.gmra.mxu0 %v4097_v17  ;;  %v4043_v17 = vmul.f32 %v13521_v13, %v3975_v56 }
 0x5f8   :  { %4400 = vmatprep.mubr.f32.mxu0 %v16625_v58  ;;  %v4113_v2 = vadd.f32 %v13524_v61, %v4045_v32 }
 0x5f9   :  { %v4111_v49 = vadd.f32 %v13524_v61, %v4043_v17 }
 0x5fb   :  { %4401 = vmatmul.mubr.f32.gmra.mxu0 %v4098_v51  ;;  %v3829_v51 = vpop.permute.xlu0 %3828 }
 0x5fc   :  { %4406 = vmatprep.mubr.f32.mxu0 %v16625_v58  ;;  %v3978_v31 = vmul.f32 %v3829_v51, %v13411_v29 }
 0x5fe   :  { %v4046_v25 = vmul.f32 %v13521_v13, %v3978_v31 }
 0x5ff   :  { %4407 = vmatmul.mubr.f32.gmra.mxu0 %v4099_v60  ;;  %v3834_v60 = vpop.permute.xlu1 %3833  ;;  %v3839_v10 = vpop.permute.xlu0 %3838 }
 0x600   :  { %4412 = vmatprep.mubr.f32.mxu0 %v16625_v58  ;;  %v3979_v53 = vmul.f32 %v3834_v60, %v13408_v55  ;;  %v4114_v36 = vadd.f32 %v13524_v61, %v4046_v25  ;;  %v3980_v29 = vmul.f32 %v3839_v10, %v13421_v43  ;;  %v16635_v10 = vld [vmem:[#allocation87_spill] sm:$0xff] }
 0x603   :  { %4413 = vmatmul.mubr.f32.gmra.mxu0 %v4100_v14  ;;  %v3844_v38 = vpop.permute.xlu1 %3843  ;;  %v4047_v14 = vmul.f32 %v13521_v13, %v3979_v53  ;;  %v3849_v16 = vpop.permute.xlu0 %3848 }
 0x604   :  { %4418 = vmatprep.mubr.f32.mxu0 %v16625_v58  ;;  %v3981_v55 = vmul.f32 %v3844_v38, %v13418_v6  ;;  %v16627_v6 = vld [vmem:[#allocation79_spill] sm:$0xff] }
 0x605   :  { %v4115_v50 = vadd.f32 %v13524_v61, %v4047_v14 }
 0x606   :  { %v4049_v45 = vmul.f32 %v13521_v13, %v3981_v55 }
 0x607   :  { %4419 = vmatmul.mubr.f32.gmra.mxu0 %v4101_v18  ;;  %v4048_v18 = vmul.f32 %v13521_v13, %v3980_v29  ;;  %v3854_v1 = vpop.permute.xlu1 %3853  ;;  %v3859_v57 = vpop.permute.xlu0 %3858 }
 0x608   :  { %4424 = vmatprep.mubr.f32.mxu0 %v16625_v58  ;;  %v4117_v35 = vadd.f32 %v13524_v61, %v4049_v45  ;;  %v3984_v8 = vmul.f32 %v3859_v57, %v16628_v15 }
 0x609   :  { %v4116_v21 = vadd.f32 %v13524_v61, %v4048_v18  ;;  %v13789_v18 = vld [vmem:[%s16290_s4] ss:$0 sm:$0xff] }
 0x60a   :  { %v4052_v19 = vmul.f32 %v13521_v13, %v3984_v8 }
 0x60b   :  { %4425 = vmatmul.mubr.f32.gmra.mxu0 %v4102_v39  ;;  %v16626_v39 = vld [vmem:[#allocation80_spill] sm:$0xff]  ;;  %v3864_v11 = vpop.permute.xlu1 %3863  ;;  %v3869_v48 = vpop.permute.xlu0 %3868 }
 0x60c   :  { %4430 = vmatprep.mubr.f32.mxu0 %v16625_v58  ;;  %v3982_v43 = vmul.f32 %v3849_v16, %v16626_v39  ;;  %v4120_v0 = vadd.f32 %v13524_v61, %v4052_v19 }
 0x60e   :  { %v4050_v5 = vmul.f32 %v13521_v13, %v3982_v43 }
 0x60f   :  { %4431 = vmatmul.mubr.f32.gmra.mxu0 %v4103_v22  ;;  %v3983_v22 = vmul.f32 %v3854_v1, %v16627_v6  ;;  %v3879_v23 = vpop.permute.xlu0 %3878 }
 0x610   :  { %4436 = vmatprep.mubr.f32.mxu0 %v16625_v58 }
 0x611   :  { %v4051_v20 = vmul.f32 %v13521_v13, %v3983_v22 }
 0x613   :  { %4437 = vmatmul.mubr.f32.gmra.mxu0 %v4104_v33  ;;  %v4118_v33 = vadd.f32 %v13524_v61, %v4050_v5  ;;  %v4119_v34 = vadd.f32 %v13524_v61, %v4051_v20  ;;  %v3889_v14 = vpop.permute.xlu0 %3888 }
 0x614   :  { %4442 = vmatprep.mubr.f32.mxu0 %v16625_v58 }
 0x617   :  { %4443 = vmatmul.mubr.f32.gmra.mxu0 %v4105_v40  ;;  %v3874_v40 = vpop.permute.xlu1 %3873  ;;  %v3899_v19 = vpop.permute.xlu0 %3898 }
 0x618   :  { %4448 = vmatprep.mubr.f32.mxu0 %v16625_v58 }
 0x61b   :  { %4449 = vmatmul.mubr.f32.gmra.mxu0 %v4106_v3  ;;  %v3985_v3 = vmul.f32 %v3864_v11, %v16629_v54  ;;  %v3884_v44 = vpop.permute.xlu1 %3883  ;;  %v13801_v11 = vld [vmem:[%s16290_s4 + $0x1] ss:$0 sm:$0xff]  ;;  %v16637_v54 = vld [vmem:[#allocation89_spill] sm:$0xff] }
 0x61c   :  { %4454 = vmatprep.mubr.f32.mxu0 %v16625_v58  ;;  %v3989_v17 = vmul.f32 %v3884_v44, %v16632_v4 }
 0x61d   :  { %v4053_v59 = vmul.f32 %v13521_v13, %v3985_v3 }
 0x61e   :  { %v4057_v60 = vmul.f32 %v13521_v13, %v3989_v17  ;;  %v16638_v17 = vld [vmem:[#allocation90_spill] sm:$0xff] }
 0x61f   :  { %4455 = vmatmul.mubr.f32.gmra.mxu0 %v4107_v37  ;;  %v4168_v37 = vld [vmem:[%s16289_s3] sm:$0x3]  ;;  %v4121_v41 = vadd.f32 %v13524_v61, %v4053_v59  ;;  %v3894_v51 = vpop.permute.xlu1 %3893 }
 0x620   :  { %4460 = vmatprep.mubr.f32.mxu0 %v16625_v58  ;;  %v13758_v7 = vrot.slane %v4168_v37, %v4172_v24  ;;  %v3991_v38 = vmul.f32 %v3894_v51, %v16635_v10 }
 0x622   :  { %v4059_v22 = vmul.f32 %v13521_v13, %v3991_v38 }
 0x623   :  { %4461 = vmatmul.mubr.f32.gmra.mxu0 %v4108_v63  ;;  %v3986_v63 = vmul.f32 %v3869_v48, %v16630_v30  ;;  %v3904_v43 = vpop.permute.xlu1 %3903  ;;  %v16636_v48 = vld [vmem:[#allocation88_spill] sm:$0xff] }
 0x624   :  { %4466 = vmatprep.mubr.f32.mxu0 %v16625_v58  ;;  %v3993_v3 = vmul.f32 %v3904_v43, %v16637_v54 }
 0x627   :  { %4467 = vmatmul.mubr.f32.gmra.mxu0 %v4109_v52  ;;  %v16631_v52 = vld [vmem:[#allocation83_spill] sm:$0xff]  ;;  %v3914_v38 = vpop.permute.xlu1 %3913 }
 0x628   :  { %4472 = vmatprep.mubr.f32.mxu0 %v16625_v58  ;;  %v3987_v56 = vmul.f32 %v3874_v40, %v16631_v52 }
 0x62b   :  { %4473 = vmatmul.mubr.f32.gmra.mxu0 %v4110_v9  ;;  %v16633_v9 = vld [vmem:[#allocation86_spill] sm:$0xff] }
 0x62c   :  { %4478 = vmatprep.mubr.f32.mxu0 %v16625_v58  ;;  %v3988_v27 = vmul.f32 %v3879_v23, %v16633_v9  ;;  %v13831_v23 = vadd.f32 %v13524_v61, %v4059_v22  ;;  %v3992_v9 = vmul.f32 %v3899_v19, %v16638_v17  ;;  %v3909_v22 = vpop.permute.xlu0 %3908 }
 0x62f   :  { %4479 = vmatmul.mubr.f32.gmra.mxu0 %v4111_v49  ;;  %v4054_v49 = vmul.f32 %v13521_v13, %v3986_v63 }
 0x630   :  { %4484 = vmatprep.mubr.f32.mxu0 %v16625_v58 }
 0x631   :  { %v4122_v25 = vadd.f32 %v13524_v61, %v4054_v49 }
 0x633   :  { %4485 = vmatmul.mubr.f32.gmra.mxu0 %v4112_v12  ;;  %v4055_v12 = vmul.f32 %v13521_v13, %v3987_v56 }
 0x634   :  { %4490 = vmatprep.mubr.f32.mxu0 %v16625_v58 }
 0x635   :  { %v4123_v1 = vadd.f32 %v13524_v61, %v4055_v12 }
 0x637   :  { %4491 = vmatmul.mubr.f32.gmra.mxu0 %v4113_v2  ;;  %v4056_v2 = vmul.f32 %v13521_v13, %v3988_v27 }
 0x638   :  { %4496 = vmatprep.mubr.f32.mxu0 %v16625_v58 }
 0x639   :  { %v4124_v39 = vadd.f32 %v13524_v61, %v4056_v2 }
 0x63b   :  { %4497 = vmatmul.mubr.f32.gmra.mxu0 %v4114_v36  ;;  %v13781_v36 = vrot.slane %v4168_v37, %v4176_v47 }
 0x63c   :  { %4502 = vmatprep.mubr.f32.mxu0 %v16625_v58 }
 0x63f   :  { %4503 = vmatmul.mubr.f32.gmra.mxu0 %v4115_v50 }
 0x640   :  { %4508 = vmatprep.mubr.f32.mxu0 %v16625_v58 }
 0x643   :  { %4509 = vmatmul.mubr.f32.gmra.mxu0 %v4116_v21  ;;  %v13795_v21 = vadd.f32 %v13524_v61, %v4057_v60  ;;  %v4061_v60 = vmul.f32 %v13521_v13, %v3993_v3 }
 0x644   :  { %4514 = vmatprep.mubr.f32.mxu0 %v16625_v58 }
 0x647   :  { %4515 = vmatmul.mubr.f32.gmra.mxu0 %v4117_v35 }
 0x648   :  { %4520 = vmatprep.mubr.f32.mxu0 %v16625_v58 }
 0x64b   :  { %4521 = vmatmul.mubr.f32.gmra.mxu0 %v4118_v33 }
 0x64c   :  { %4526 = vmatprep.mubr.f32.mxu0 %v16625_v58 }
 0x64f   :  { %4527 = vmatmul.mubr.f32.gmra.mxu0 %v4119_v34  ;;  %v3990_v34 = vmul.f32 %v3889_v14, %v16636_v48 }
 0x650   :  { %4532 = vmatprep.mubr.f32.mxu0 %v16625_v58 }
 0x651   :  { %v4058_v49 = vmul.f32 %v13521_v13, %v3990_v34 }
 0x653   :  { %v4246_v28 = vpop.f32.mrf.mxu0  ;;  %4533 = vmatmul.mubr.f32.gmra.mxu0 %v4120_v0  ;;  %v13826_v0 = vld [vmem:[%s16290_s4 + $0x2] ss:$0 sm:$0xff] }
 0x654   :  { %4538 = vmatprep.mubr.f32.mxu0 %v16625_v58  ;;  %v13770_v32 = vadd.f32 %v4246_v28, %v13758_v7 }
 0x655   :  { %v13767_v62 = vpop.f32.mrf.mxu0 }
 0x656   :  { %16634 = vst [vmem:[#allocation80_spill] sm:$0xff] %v13770_v32  ;;  %v16426_v50 = vrot.slane %v13770_v32, 7 }
 0x657   :  { %v4252_v31 = vpop.f32.mrf.mxu0  ;;  %4539 = vmatmul.mubr.f32.gmra.mxu0 %v4121_v41 }
 0x658   :  { %v13776_v53 = vadd.f32 %v4252_v31, %v13758_v7  ;;  %4544 = vmatprep.mubr.f32.mxu0 %v16625_v58 }
 0x659   :  { %v4254_v29 = vpop.f32.mrf.mxu0 }
 0x65a   :  { %v5911_v55 = vrot.slane %v13776_v53, 7  ;;  %v4255_v16 = vadd.f32 %v4254_v29, %v13781_v36  ;;  %v6691_v57 = vmul.f32 %v13801_v11, %v13776_v53  ;;  %v16427_v33 = vrot.slane %v13776_v53, 1 }
 0x65b   :  { %v4258_v45 = vpop.f32.mrf.mxu0  ;;  %4545 = vmatmul.mubr.f32.gmra.mxu0 %v4122_v25 }
 0x65c   :  { %v6037_v35 = vsel %vm5974_vm0, %v16426_v50, %v5911_v55  ;;  %v4259_v6 = vadd.f32 %v4258_v45, %v13758_v7  ;;  %4550 = vmatprep.mubr.f32.mxu0 %v16625_v58  ;;  %v9699_v46 = vmul.f32 -1.442695, %v4255_v16  ;;  %v4060_v45 = vmul.f32 %v13521_v13, %v3992_v9 }
 0x65d   :  { %v6622_v5 = vmul.f32 %v13789_v18, %v6037_v35  ;;  %v4260_v20 = vpop.f32.mrf.mxu0 }
 0x65e   :  { %v5912_v15 = vrot.slane %v4259_v6, 7  ;;  %v6297_v8 = vrot.slane %v4259_v6, 1  ;;  %v4261_v40 = vadd.f32 %v4260_v20, %v13781_v36  ;;  %11527 = vpow2.f32 %v9699_v46  ;;  %v16639_v20 = vld [vmem:[#allocation91_spill] sm:$0xff] }
 0x65f   :  { %v6755_v24 = vadd.f32 %v6691_v57, %v6622_v5  ;;  %v4264_v37 = vpop.f32.mrf.mxu0  ;;  %4551 = vmatmul.mubr.f32.gmra.mxu0 %v4123_v1  ;;  %v6692_v56 = vmul.f32 %v13801_v11, %v4259_v6  ;;  %v4126_v6 = vadd.f32 %v13524_v61, %v4058_v49 }
 0x660   :  { %v6036_v44 = vsel %vm5974_vm0, %v5911_v55, %v5912_v15  ;;  %v6421_v59 = vsel %vm6359_vm1, %v16427_v33, %v6297_v8  ;;  %v9700_v30 = vmul.f32 -1.442695, %v4261_v40  ;;  %v4265_v63 = vadd.f32 %v4264_v37, %v13758_v7  ;;  %4556 = vmatprep.mubr.f32.mxu0 %v16625_v58 }
 0x661   :  { %v6623_v52 = vmul.f32 %v13789_v18, %v6036_v44  ;;  %v6824_v28 = vmul.f32 %v13826_v0, %v6421_v59  ;;  %v4266_v4 = vpop.f32.mrf.mxu0  ;;  %v4128_v37 = vadd.f32 %v13524_v61, %v4060_v45  ;;  %v16640_v44 = vld [vmem:[#allocation92_spill] sm:$0xff] }
 0x662   :  { %11529 = vpow2.f32 %v9700_v30  ;;  %v5913_v27 = vrot.slane %v4265_v63, 7  ;;  %v6298_v41 = vrot.slane %v4265_v63, 1  ;;  %v4267_v12 = vadd.f32 %v4266_v4, %v13781_v36 }
 0x663   :  { %v6756_v47 = vadd.f32 %v6692_v56, %v6623_v52  ;;  %v13838_v51 = vadd.f32 %v6824_v28, %v6755_v24  ;;  %v4270_v31 = vpop.f32.mrf.mxu0  ;;  %4557 = vmatmul.mubr.f32.gmra.mxu0 %v4124_v39  ;;  %v6693_v29 = vmul.f32 %v13801_v11, %v4265_v63  ;;  %v13868_v24 = vadd.f32 %v13524_v61, %v4061_v60 }
 0x664   :  { %v6035_v2 = vsel %vm5974_vm0, %v5912_v15, %v5913_v27  ;;  %v6420_v25 = vsel %vm6359_vm1, %v6297_v8, %v6298_v41  ;;  %v4271_v10 = vadd.f32 %v4270_v31, %v13758_v7  ;;  %4562 = vmatprep.mubr.f32.mxu0 %v16625_v58  ;;  %v9701_v55 = vmul.f32 -1.442695, %v4267_v12 }
 0x665   :  { %v6624_v14 = vmul.f32 %v13789_v18, %v6035_v2  ;;  %v4272_v1 = vpop.f32.mrf.mxu0  ;;  %v6825_v16 = vmul.f32 %v13826_v0, %v6420_v25  ;;  %v3995_v15 = vmul.f32 %v3914_v38, %v16639_v20  ;;  %v3994_v59 = vmul.f32 %v3909_v22, %v16640_v44 }
 0x666   :  { %v5914_v39 = vrot.slane %v4271_v10, 7  ;;  %v6299_v43 = vrot.slane %v4271_v10, 1  ;;  %v4273_v35 = vadd.f32 %v4272_v1, %v13781_v36  ;;  %11531 = vpow2.f32 %v9701_v55 }
 0x667   :  { %v6757_v5 = vadd.f32 %v6693_v29, %v6624_v14  ;;  %v4276_v57 = vpop.f32.mrf.mxu0  ;;  %4563 = vmatmul.mubr.f32.gmra.mxu0 %v13795_v21  ;;  %v13855_v46 = vadd.f32 %v6825_v16, %v6756_v47  ;;  %v6694_v54 = vmul.f32 %v13801_v11, %v4271_v10  ;;  %v4063_v17 = vmul.f32 %v13521_v13, %v3995_v15  ;;  %v3924_v14 = vpop.permute.xlu1 %3923 }
 0x668   :  { %v6034_v8 = vsel %vm5974_vm0, %v5913_v27, %v5914_v39  ;;  %v6419_v40 = vsel %vm6359_vm1, %v6298_v41, %v6299_v43  ;;  %v9702_v48 = vmul.f32 -1.442695, %v4273_v35  ;;  %4568 = vmatprep.mubr.f32.mxu0 %v16625_v58  ;;  %v4277_v21 = vadd.f32 %v4276_v57, %v13758_v7  ;;  %v16641_v57 = vld [vmem:[#allocation93_spill] sm:$0xff] }
 0x669   :  { %v6625_v34 = vmul.f32 %v13789_v18, %v6034_v8  ;;  %v6826_v3 = vmul.f32 %v13826_v0, %v6419_v40  ;;  %v4278_v19 = vpop.f32.mrf.mxu0  ;;  %v4062_v38 = vmul.f32 %v13521_v13, %v3994_v59  ;;  %v7099_v59 = vld [vmem:[#allocation8 + $0x78] sm:$0xff] }
 0x66a   :  { %v4279_v30 = vadd.f32 %v4278_v19, %v13781_v36  ;;  %11533 = vpow2.f32 %v9702_v48  ;;  %v5915_v52 = vrot.slane %v4277_v21, 7  ;;  %v6300_v56 = vrot.slane %v4277_v21, 1  ;;  %10841 = vmatprep.subr.mxu1 %v7099_v59 }
 0x66b   :  { %v6758_v63 = vadd.f32 %v6694_v54, %v6625_v34  ;;  %v4282_v28 = vpop.f32.mrf.mxu0  ;;  %4569 = vmatmul.mubr.f32.gmra.mxu0 %v4126_v6  ;;  %v11528_v4 = vpop.eup %11527  ;;  %v13876_v41 = vadd.f32 %v6826_v3, %v6757_v5  ;;  %v6695_v12 = vmul.f32 %v13801_v11, %v4277_v21  ;;  %10842 = vmatpush3.msra.mxu1 %v7099_v59 }
 0x66c   :  { %v9703_v9 = vmul.f32 -1.442695, %v4279_v30  ;;  %v4283_v27 = vadd.f32 %v4282_v28, %v13758_v7  ;;  %4574 = vmatprep.mubr.f32.mxu0 %v16625_v58  ;;  %v4822_v61 = vadd.f32 1.0, %v11528_v4  ;;  %v6033_v49 = vsel %vm5974_vm0, %v5914_v39, %v5915_v52  ;;  %v3919_v3 = vpop.permute.xlu0 %3918 }
 0x66d   :  { %v6418_v47 = vsel %vm6359_vm1, %v6299_v43, %v6300_v56  ;;  %v4284_v31 = vpop.f32.mrf.mxu0  ;;  %v6626_v60 = vmul.f32 %v13789_v18, %v6033_v49 }
 0x66e   :  { %11535 = vpow2.f32 %v9703_v9  ;;  %v5916_v2 = vrot.slane %v4283_v27, 7  ;;  %v6301_v25 = vrot.slane %v4283_v27, 1  ;;  %v6696_v29 = vmul.f32 %v13801_v11, %v4283_v27 }
 0x66f   :  { %v11530_v10 = vpop.eup %11529  ;;  %11537 = vrcp.f32 %v4822_v61  ;;  %v4285_v55 = vadd.f32 %v4284_v31, %v13781_v36  ;;  %v4288_v1 = vpop.f32.mrf.mxu0  ;;  %4575 = vmatmul.mubr.f32.gmra.mxu0 %v13831_v23  ;;  %v6759_v45 = vadd.f32 %v6695_v12, %v6626_v60  ;;  %v3997_v23 = vmul.f32 %v3924_v14, %v16641_v57  ;;  %v7098_v57 = vld [vmem:[#allocation8 + $0x70] sm:$0xff] }
 0x670   :  { %v4823_v16 = vadd.f32 1.0, %v11530_v10  ;;  %v6032_v39 = vsel %vm5974_vm0, %v5915_v52, %v5916_v2  ;;  %v6417_v43 = vsel %vm6359_vm1, %v6300_v56, %v6301_v25  ;;  %4580 = vmatprep.mubr.f32.mxu0 %v16625_v58  ;;  %v4289_v22 = vadd.f32 %v4288_v1, %v13758_v7  ;;  %10843 = vmatprep.subr.mxu1 %v7098_v57 }
 0x671   :  { %v6627_v13 = vmul.f32 %v13789_v18, %v6032_v39  ;;  %v6828_v35 = vmul.f32 %v13826_v0, %v6417_v43  ;;  %v9704_v6 = vmul.f32 -1.442695, %v4285_v55  ;;  %v4290_v5 = vpop.f32.mrf.mxu0  ;;  %v6827_v15 = vmul.f32 %v13826_v0, %v6418_v47  ;;  %v16642_v47 = vld [vmem:[#allocation94_spill] sm:$0xff]  ;;  %10844 = vmatpush3.msra.mxu1 %v7098_v57 }
 0x672   :  { %11539 = vrcp.f32 %v4823_v16  ;;  %v4291_v20 = vadd.f32 %v4290_v5, %v13781_v36  ;;  %v5917_v40 = vrot.slane %v4289_v22, 7  ;;  %v6302_v48 = vrot.slane %v4289_v22, 1 }
 0x673   :  { %v13899_v8 = vadd.f32 %v6696_v29, %v6627_v13  ;;  %11541 = vpow2.f32 %v9704_v6  ;;  %v4294_v34 = vpop.f32.mrf.mxu0  ;;  %4581 = vmatmul.mubr.f32.gmra.mxu0 %v4128_v37  ;;  %v11532_v54 = vpop.eup %11531  ;;  %v6697_v21 = vmul.f32 %v13801_v11, %v4289_v22  ;;  %v13904_v30 = vadd.f32 %v6827_v15, %v6758_v63  ;;  %v13915_v63 = vld [vmem:[#allocation5 + $0x3] ss:$0 sm:$0xff] }
 0x674   :  { %v9705_v19 = vmul.f32 -1.442695, %v4291_v20  ;;  %v4295_v44 = vadd.f32 %v4294_v34, %v13758_v7  ;;  %4586 = vmatprep.mubr.f32.mxu0 %v16625_v58  ;;  %v4824_v52 = vadd.f32 1.0, %v11532_v54  ;;  %v6031_v56 = vsel %vm5974_vm0, %v5916_v2, %v5917_v40  ;;  %v13923_v2 = vld [vmem:[%s16290_s4 + $0x3] ss:$0 sm:$0xff] }
 0x675   :  { %v6416_v28 = vsel %vm6359_vm1, %v6301_v25, %v6302_v48  ;;  %v13910_v37 = vpop.f32.mrf.mxu0  ;;  %v13912_v4 = vadd.f32 %v6828_v35, %v6759_v45  ;;  %v6628_v9 = vmul.f32 %v13789_v18, %v6031_v56  ;;  %v4131_v49 = vadd.f32 %v13915_v63, %v4063_v17  ;;  %v13936_v45 = vld [vmem:[#allocation5 + $0x2] ss:$0 sm:$0xff] }
 0x676   :  { %11543 = vpow2.f32 %v9705_v19  ;;  %v5918_v27 = vrot.slane %v4295_v44, 7  ;;  %v6303_v61 = vrot.slane %v4295_v44, 1  ;;  %v3996_v12 = vmul.f32 %v3919_v3, %v16642_v47 }
 0x677   :  { %11545 = vrcp.f32 %v4824_v52  ;;  %v4300_v31 = vpop.f32.mrf.mxu0  ;;  %4587 = vmatmul.mubr.f32.gmra.mxu0 %v13868_v24  ;;  %v11534_v60 = vpop.eup %11533  ;;  %v6761_v25 = vadd.f32 %v6697_v21, %v6628_v9  ;;  %v4130_v29 = vadd.f32 %v13915_v63, %v4062_v38  ;;  %v6698_v1 = vmul.f32 %v13801_v11, %v4295_v44 }
 0x678   :  { %v6030_v10 = vsel %vm5974_vm0, %v5917_v40, %v5918_v27  ;;  %v6415_v14 = vsel %vm6359_vm1, %v6302_v48, %v6303_v61  ;;  %v4301_v17 = vadd.f32 %v4300_v31, %v13758_v7  ;;  %4592 = vmatprep.mubr.f32.mxu0 %v16625_v58  ;;  %v4825_v24 = vadd.f32 1.0, %v11534_v60  ;;  %v3934_v9 = vpop.permute.xlu1 %3933 }
 0x679   :  { %v6629_v55 = vmul.f32 %v13789_v18, %v6030_v10  ;;  %v13934_v16 = vpop.f32.mrf.mxu0  ;;  %v4065_v39 = vmul.f32 %v13936_v45, %v3997_v23  ;;  %v6830_v43 = vmul.f32 %v13826_v0, %v6415_v14  ;;  %v6957_v22 = vadd.f32 %v13923_v2, %v13838_v51  ;;  %v3929_v23 = vpop.permute.xlu0 %3928 }
 0x67a   :  { %v5919_v13 = vrot.slane %v4301_v17, 7  ;;  %v6304_v35 = vrot.slane %v4301_v17, 1  ;;  %11547 = vrcp.f32 %v4825_v24  ;;  %v6829_v20 = vmul.f32 %v13826_v0, %v6416_v28 }
 0x67b   :  { %v11536_v6 = vpop.eup %11535  ;;  %v13942_v38 = vadd.f32 %v6698_v1, %v6629_v55  ;;  %v4306_v5 = vpop.f32.mrf.mxu0  ;;  %4593 = vmatmul.mubr.f32.gmra.mxu0 %v4130_v29  ;;  %v4064_v40 = vmul.f32 %v13936_v45, %v3996_v12  ;;  %v6699_v21 = vmul.f32 %v13801_v11, %v4301_v17  ;;  %v6958_v59 = vadd.f32 %v13923_v2, %v13855_v46 }
 0x67c   :  { %v11538_v15 = vpop.eup %11537  ;;  %v4826_v48 = vadd.f32 1.0, %v11536_v6  ;;  %v6029_v34 = vsel %vm5974_vm0, %v5918_v27, %v5919_v13  ;;  %v13950_v54 = vsel %vm6359_vm1, %v6303_v61, %v6304_v35  ;;  %4598 = vmatprep.mubr.f32.mxu0 %v16625_v58  ;;  %v4307_v19 = vadd.f32 %v4306_v5, %v13758_v7  ;;  %v16644_v27 = vld [vmem:[#allocation96_spill] sm:$0xff] }
 0x67d   :  { %v13953_v51 = vmul.f32 %v11538_v15, %v6957_v22  ;;  %v6630_v3 = vmul.f32 %v13789_v18, %v6029_v34  ;;  %v13958_v44 = vpop.f32.mrf.mxu0  ;;  %v13963_v52 = vadd.f32 %v6829_v20, %v13899_v8  ;;  %v13965_v56 = vadd.f32 %v6830_v43, %v6761_v25 }
 0x67e   :  { %11549 = vrcp.f32 %v4826_v48  ;;  %v3998_v61 = vmul.f32 %v3929_v23, %v16644_v27  ;;  %v5920_v12 = vrot.slane %v4307_v19, 7  ;;  %v6305_v31 = vrot.slane %v4307_v19, 1 }
 0x67f   :  { %16643 = vst [vmem:[#allocation79_spill] sm:$0xff] %v13953_v51  ;;  %v11540_v28 = vpop.eup %11539  ;;  %v13968_v47 = vadd.f32 %v6699_v21, %v6630_v3  ;;  %v4312_v60 = vpop.f32.mrf.mxu0  ;;  %4599 = vmatmul.mubr.f32.gmra.mxu0 %v4131_v49  ;;  %v4133_v14 = vadd.f32 %v13915_v63, %v4065_v39  ;;  %v4132_v25 = vadd.f32 %v13915_v63, %v4064_v40  ;;  %v16646_v49 = vld [vmem:[#allocation95_spill] sm:$0xff]  ;;  %v7089_v51 = vld [vmem:[#allocation8 + $0x28] sm:$0xff] }
 0x680   :  { %v11542_v10 = vpop.eup %11541  ;;  %v4313_v46 = vadd.f32 %v4312_v60, %v13758_v7  ;;  %4604 = vmatprep.mubr.f32.mxu0 %v16625_v58  ;;  %v13973_v8 = vmul.f32 %v11540_v28, %v6958_v59  ;;  %v6028_v29 = vsel %vm5974_vm0, %v5919_v13, %v5920_v12  ;;  %v6413_v24 = vsel %vm6359_vm1, %v6304_v35, %v6305_v31  ;;  %v7097_v13 = vld [vmem:[#allocation8 + $0x68] sm:$0xff] }
 0x681   :  { %v4827_v17 = vadd.f32 1.0, %v11542_v10  ;;  %v13980_v55 = vpop.f32.mrf.mxu0  ;;  %v3999_v1 = vmul.f32 %v3934_v9, %v16646_v49  ;;  %v6631_v39 = vmul.f32 %v13789_v18, %v6028_v29  ;;  %v6700_v43 = vmul.f32 %v13801_v11, %v4307_v19  ;;  %10845 = vmatprep.subr.mxu1 %v7097_v13 }
 0x682   :  { %16645 = vst [vmem:[#allocation82_spill] sm:$0xff] %v13973_v8  ;;  %v5921_v6 = vrot.slane %v4313_v46, 7  ;;  %v4066_v5 = vmul.f32 %v13936_v45, %v3998_v61  ;;  %v6306_v57 = vrot.slane %v4313_v46, 1  ;;  %v6959_v35 = vadd.f32 %v13923_v2, %v13876_v41  ;;  %10846 = vmatpush3.msra.mxu1 %v7097_v13 }
 0x683   :  { %v11544_v22 = vpop.eup %11543  ;;  %11551 = vrcp.f32 %v4827_v17  ;;  %v4318_v20 = vpop.f32.mrf.mxu0  ;;  %4605 = vmatmul.mubr.f32.gmra.mxu0 %v4132_v25  ;;  %v13988_v23 = vadd.f32 %v6700_v43, %v6631_v39  ;;  %v6701_v41 = vmul.f32 %v13801_v11, %v4313_v46  ;;  %v4067_v27 = vmul.f32 %v13936_v45, %v3999_v1  ;;  %v7096_v43 = vld [vmem:[#allocation8 + $0x60] sm:$0xff] }
 0x684   :  { %v11546_v15 = vpop.eup %11545  ;;  %v4828_v40 = vadd.f32 1.0, %v11544_v22  ;;  %v6027_v48 = vsel %vm5974_vm0, %v5920_v12, %v5921_v6  ;;  %v4319_v34 = vadd.f32 %v4318_v20, %v13758_v7  ;;  %4610 = vmatprep.mubr.f32.mxu0 %v16625_v58  ;;  %v13996_v3 = vsel %vm6359_vm1, %v6305_v31, %v6306_v57  ;;  %10847 = vmatprep.subr.mxu1 %v7096_v43 }
 0x685   :  { %v6632_v21 = vmul.f32 %v13789_v18, %v6027_v48  ;;  %v14000_v19 = vpop.f32.mrf.mxu0  ;;  %v14002_v59 = vmul.f32 %v11546_v15, %v6959_v35  ;;  %v6960_v31 = vadd.f32 %v13923_v2, %v13904_v30  ;;  %v6831_v45 = vmul.f32 %v13826_v0, %v13950_v54  ;;  %10848 = vmatpush3.msra.mxu1 %v7096_v43 }
 0x686   :  { %11553 = vrcp.f32 %v4828_v40  ;;  %v5922_v28 = vrot.slane %v4319_v34, 7  ;;  %v6307_v9 = vrot.slane %v4319_v34, 1  ;;  %v6702_v30 = vmul.f32 %v13801_v11, %v4319_v34 }
 0x687   :  { %16647 = vst [vmem:[#allocation81_spill] sm:$0xff] %v14002_v59  ;;  %v14005_v61 = vadd.f32 %v6701_v41, %v6632_v21  ;;  %v4324_v12 = vpop.f32.mrf.mxu0  ;;  %4611 = vmatmul.mubr.f32.gmra.mxu0 %v4133_v14  ;;  %v11548_v60 = vpop.eup %11547  ;;  %v4134_v14 = vadd.f32 %v13915_v63, %v4066_v5  ;;  %v14032_v20 = vadd.f32 %v6831_v45, %v13942_v38 }
 0x688   :  { %v6026_v10 = vsel %vm5974_vm0, %v5921_v6, %v5922_v28  ;;  %v14013_v46 = vsel %vm6359_vm1, %v6306_v57, %v6307_v9  ;;  %v4325_v25 = vadd.f32 %v4324_v12, %v13758_v7  ;;  %4616 = vmatprep.mubr.f32.mxu0 %v16625_v58  ;;  %v14024_v49 = vmul.f32 %v11548_v60, %v6960_v31 }
 0x689   :  { %v6633_v17 = vmul.f32 %v13789_v18, %v6026_v10  ;;  %v14022_v29 = vpop.f32.mrf.mxu0  ;;  %v6961_v6 = vadd.f32 %v13923_v2, %v13912_v4  ;;  %v6832_v57 = vmul.f32 %v13826_v0, %v6413_v24  ;;  %v4135_v24 = vadd.f32 %v13915_v63, %v4067_v27 }
 0x68a   :  { %16648 = vst [vmem:[#allocation84_spill] sm:$0xff] %v14024_v49  ;;  %v5923_v1 = vrot.slane %v4325_v25, 7  ;;  %v6308_v39 = vrot.slane %v4325_v25, 1  ;;  %v6703_v40 = vmul.f32 %v13801_v11, %v4325_v25  ;;  %v6962_v12 = vadd.f32 %v13923_v2, %v13963_v52 }
 0x68b   :  { %v11550_v22 = vpop.eup %11549  ;;  %v14029_v54 = vadd.f32 %v6702_v30, %v6633_v17  ;;  %v4330_v5 = vpop.f32.mrf.mxu0  ;;  %4617 = vmatmul.mubr.f32.gmra.mxu0 %v4134_v14  ;;  %v6963_v14 = vadd.f32 %v13923_v2, %v13965_v56  ;;  %v6833_v56 = vmul.f32 %v13826_v0, %v13996_v3 }
 0x68c   :  { %v6025_v13 = vsel %vm5974_vm0, %v5922_v28, %v5923_v1  ;;  %v14038_v35 = vsel %vm6359_vm1, %v6307_v9, %v6308_v39  ;;  %v4331_v4 = vadd.f32 %v4330_v5, %v13758_v7  ;;  %4622 = vmatprep.mubr.f32.mxu0 %v16625_v58  ;;  %v14047_v48 = vmul.f32 %v11550_v22, %v6961_v6 }
 0x68d   :  { %v6634_v15 = vmul.f32 %v13789_v18, %v6025_v13  ;;  %v14045_v38 = vpop.f32.mrf.mxu0  ;;  %v14052_v9 = vadd.f32 %v6832_v57, %v13968_v47  ;;  %v7095_v47 = vld [vmem:[#allocation8 + $0x58] sm:$0xff] }
 0x68e   :  { %16649 = vst [vmem:[#allocation83_spill] sm:$0xff] %v14047_v48  ;;  %v5924_v34 = vrot.slane %v4331_v4, 7  ;;  %v6309_v21 = vrot.slane %v4331_v4, 1  ;;  %v6704_v60 = vmul.f32 %v13801_v11, %v4331_v4  ;;  %10849 = vmatprep.subr.mxu1 %v7095_v47 }
 0x68f   :  { %v14049_v41 = vadd.f32 %v6703_v40, %v6634_v15  ;;  %v4336_v28 = vpop.f32.mrf.mxu0  ;;  %4623 = vmatmul.mubr.f32.gmra.mxu0 %v4135_v24  ;;  %10850 = vmatpush3.msra.mxu1 %v7095_v47  ;;  %v14089_v40 = vadd.f32 %v6833_v56, %v13988_v23 }
 0x690   :  { %v11552_v58 = vpop.eup %11551  ;;  %v6024_v63 = vsel %vm5974_vm0, %v5923_v1, %v5924_v34  ;;  %v14058_v27 = vsel %vm6359_vm1, %v6308_v39, %v6309_v21  ;;  %v4337_v10 = vadd.f32 %v4336_v28, %v13758_v7 }
 0x691   :  { %v6635_v31 = vmul.f32 %v13789_v18, %v6024_v63  ;;  %v14065_v25 = vpop.f32.mrf.mxu0  ;;  %v14067_v45 = vmul.f32 %v11552_v58, %v6962_v12  ;;  %v6834_v58 = vmul.f32 %v13826_v0, %v14013_v46 }
 0x692   :  { %v5925_v1 = vrot.slane %v4337_v10, 7  ;;  %v6310_v39 = vrot.slane %v4337_v10, 1  ;;  %v6705_v13 = vmul.f32 %v13801_v11, %v4337_v10 }
 0x693   :  { %16650 = vst [vmem:[#allocation85_spill] sm:$0xff] %v14067_v45  ;;  %v11554_v17 = vpop.eup %11553  ;;  %v14071_v30 = vadd.f32 %v6704_v60, %v6635_v31  ;;  %v4342_v52 = vpop.f32.mrf.mxu0 }
 0x694   :  { %v4343_v43 = vadd.f32 %v4342_v52, %v13758_v7  ;;  %v14074_v6 = vmul.f32 %v11554_v17, %v6963_v14  ;;  %v6023_v22 = vsel %vm5974_vm0, %v5924_v34, %v5925_v1  ;;  %v14080_v57 = vsel %vm6359_vm1, %v6309_v21, %v6310_v39  ;;  %v7094_v14 = vld [vmem:[#allocation8 + $0x50] sm:$0xff] }
 0x695   :  { %v14082_v2 = vpop.f32.mrf.mxu0  ;;  %v6636_v5 = vmul.f32 %v13789_v18, %v6023_v22  ;;  %10851 = vmatprep.subr.mxu1 %v7094_v14  ;;  %v14118_v22 = vadd.f32 %v6834_v58, %v14005_v61 }
 0x696   :  { %16651 = vst [vmem:[#allocation86_spill] sm:$0xff] %v14074_v6  ;;  %v5926_v4 = vrot.slane %v4343_v43, 7  ;;  %v6311_v24 = vrot.slane %v4343_v43, 1  ;;  %v6706_v12 = vmul.f32 %v13801_v11, %v4343_v43  ;;  %10852 = vmatpush3.msra.mxu1 %v7094_v14  ;;  %v7093_v14 = vld [vmem:[#allocation8 + $0x48] sm:$0xff] }
 0x697   :  { %v4348_v15 = vpop.f32.mrf.mxu0  ;;  %v14091_v34 = vadd.f32 %v6705_v13, %v6636_v5  ;;  %16652 = vst [vmem:[#allocation87_spill] sm:$0xff] %v14118_v22  ;;  %10853 = vmatprep.subr.mxu1 %v7093_v14 }
 0x698   :  { %v6022_v21 = vsel %vm5974_vm0, %v5925_v1, %v5926_v4  ;;  %v6407_v28 = vsel %vm6359_vm1, %v6310_v39, %v6311_v24  ;;  %v4349_v3 = vadd.f32 %v4348_v15, %v13758_v7  ;;  %10854 = vmatpush3.msra.mxu1 %v7093_v14 }
 0x699   :  { %v6637_v63 = vmul.f32 %v13789_v18, %v6022_v21  ;;  %v14102_v31 = vpop.f32.mrf.mxu0 }
 0x69a   :  { %v5927_v23 = vrot.slane %v4349_v3, 7  ;;  %v6312_v60 = vrot.slane %v4349_v3, 1  ;;  %v6707_v39 = vmul.f32 %v13801_v11, %v4349_v3 }
 0x69b   :  { %v14104_v10 = vadd.f32 %v6706_v12, %v6637_v63  ;;  %v4354_v47 = vpop.f32.mrf.mxu0 }
 0x69c   :  { %v6021_v17 = vsel %vm5974_vm0, %v5926_v4, %v5927_v23  ;;  %v14110_v1 = vsel %vm6359_vm1, %v6311_v24, %v6312_v60  ;;  %v4355_v52 = vadd.f32 %v4354_v47, %v13758_v7 }
 0x69d   :  { %v6638_v46 = vmul.f32 %v13789_v18, %v6021_v17  ;;  %v14115_v43 = vpop.f32.mrf.mxu0  ;;  %v6835_v17 = vmul.f32 %v13826_v0, %v14038_v35 }
 0x69e   :  { %v5928_v5 = vrot.slane %v4355_v52, 7  ;;  %v6313_v13 = vrot.slane %v4355_v52, 1  ;;  %v6708_v61 = vmul.f32 %v13801_v11, %v4355_v52 }
 0x69f   :  { %v14120_v56 = vadd.f32 %v6707_v39, %v6638_v46  ;;  %v4360_v4 = vpop.f32.mrf.mxu0 }
 0x6a0   :  { %v4361_v24 = vadd.f32 %v4360_v4, %v13758_v7  ;;  %v6020_v15 = vsel %vm5974_vm0, %v5927_v23, %v5928_v5  ;;  %v14127_v21 = vsel %vm6359_vm1, %v6312_v60, %v6313_v13  ;;  %v6836_v23 = vmul.f32 %v13826_v0, %v14058_v27 }
 0x6a1   :  { %v14129_v3 = vpop.f32.mrf.mxu0  ;;  %v6639_v63 = vmul.f32 %v13789_v18, %v6020_v15 }
 0x6a2   :  { %v5929_v58 = vrot.slane %v4361_v24, 7  ;;  %v6314_v12 = vrot.slane %v4361_v24, 1  ;;  %v6709_v15 = vmul.f32 %v13801_v11, %v4361_v24 }
 0x6a3   :  { %v4366_v47 = vpop.f32.mrf.mxu0  ;;  %v14137_v46 = vadd.f32 %v6708_v61, %v6639_v63 }
 0x6a4   :  { %v6019_v60 = vsel %vm5974_vm0, %v5928_v5, %v5929_v58  ;;  %v4367_v39 = vadd.f32 %v4366_v47, %v13758_v7  ;;  %v14144_v52 = vsel %vm6359_vm1, %v6313_v13, %v6314_v12  ;;  %v14153_v5 = vadd.f32 %v6835_v17, %v14029_v54 }
 0x6a5   :  { %v6640_v4 = vmul.f32 %v13789_v18, %v6019_v60  ;;  %v14148_v35 = vpop.f32.mrf.mxu0  ;;  %v14163_v60 = vadd.f32 %v6836_v23, %v14049_v41  ;;  %v6838_v54 = vmul.f32 %v13826_v0, %v6407_v28  ;;  %v7092_v41 = vld [vmem:[#allocation8 + $0x40] sm:$0xff] }
 0x6a6   :  { %v5930_v27 = vrot.slane %v4367_v39, 7  ;;  %v6315_v63 = vrot.slane %v4367_v39, 1  ;;  %16653 = vst [vmem:[#allocation88_spill] sm:$0xff] %v14153_v5  ;;  %10855 = vmatprep.subr.mxu1 %v7092_v41 }
 0x6a7   :  { %v14150_v61 = vadd.f32 %v6709_v15, %v6640_v4  ;;  %v4372_v50 = vpop.f32.mrf.mxu0  ;;  %16654 = vst [vmem:[#allocation89_spill] sm:$0xff] %v14163_v60  ;;  %v6710_v4 = vmul.f32 %v13801_v11, %v4367_v39  ;;  %10856 = vmatpush3.msra.mxu1 %v7092_v41 }
 0x6a8   :  { %v6018_v47 = vsel %vm5974_vm0, %v5929_v58, %v5930_v27  ;;  %v14159_v13 = vsel %vm6359_vm1, %v6314_v12, %v6315_v63  ;;  %v4373_v24 = vadd.f32 %v4372_v50, %v13758_v7 }
 0x6a9   :  { %v6641_v14 = vmul.f32 %v13789_v18, %v6018_v47  ;;  %v14167_v15 = vpop.f32.mrf.mxu0 }
 0x6aa   :  { %v5931_v17 = vrot.slane %v4373_v24, 7  ;;  %v6316_v33 = vrot.slane %v4373_v24, 1  ;;  %v6711_v39 = vmul.f32 %v13801_v11, %v4373_v24 }
 0x6ab   :  { %v14170_v58 = vadd.f32 %v6710_v4, %v6641_v14  ;;  %v4378_v5 = vpop.f32.mrf.mxu0  ;;  %v6837_v14 = vmul.f32 %v13826_v0, %v14080_v57 }
 0x6ac   :  { %v6017_v12 = vsel %vm5974_vm0, %v5930_v27, %v5931_v17  ;;  %v14176_v50 = vsel %vm6359_vm1, %v6315_v63, %v6316_v33  ;;  %v4379_v47 = vadd.f32 %v4378_v5, %v13758_v7  ;;  %v14186_v27 = vadd.f32 %v6838_v54, %v14091_v34 }
 0x6ad   :  { %v6642_v23 = vmul.f32 %v13789_v18, %v6017_v12  ;;  %v14181_v28 = vpop.f32.mrf.mxu0  ;;  %v14200_v57 = vadd.f32 %v6837_v14, %v14071_v30 }
 0x6ae   :  { %16655 = vst [vmem:[#allocation90_spill] sm:$0xff] %v14186_v27  ;;  %v5932_v63 = vrot.slane %v4379_v47, 7  ;;  %v6317_v60 = vrot.slane %v4379_v47, 1  ;;  %v6712_v54 = vmul.f32 %v13801_v11, %v4379_v47 }
 0x6af   :  { %v14188_v4 = vadd.f32 %v6711_v39, %v6642_v23  ;;  %v4384_v22 = vpop.f32.mrf.mxu0  ;;  %16656 = vst [vmem:[#allocation91_spill] sm:$0xff] %v14200_v57  ;;  %v7091_v39 = vld [vmem:[#allocation8 + $0x38] sm:$0xff] }
 0x6b0   :  { %v4385_v12 = vadd.f32 %v4384_v22, %v13758_v7  ;;  %v6016_v5 = vsel %vm5974_vm0, %v5931_v17, %v5932_v63  ;;  %v14195_v24 = vsel %vm6359_vm1, %v6316_v33, %v6317_v60  ;;  %10857 = vmatprep.subr.mxu1 %v7091_v39 }
 0x6b1   :  { %v14197_v41 = vpop.f32.mrf.mxu0  ;;  %v6643_v34 = vmul.f32 %v13789_v18, %v6016_v5  ;;  %10858 = vmatpush3.msra.mxu1 %v7091_v39 }
 0x6b2   :  { %v5933_v23 = vrot.slane %v4385_v12, 7  ;;  %v6318_v27 = vrot.slane %v4385_v12, 1  ;;  %v6713_v47 = vmul.f32 %v13801_v11, %v4385_v12 }
 0x6b3   :  { %v4390_v22 = vpop.f32.mrf.mxu0  ;;  %v14204_v6 = vadd.f32 %v6712_v54, %v6643_v34 }
 0x6b4   :  { %v6015_v33 = vsel %vm5974_vm0, %v5932_v63, %v5933_v23  ;;  %v4391_v17 = vadd.f32 %v4390_v22, %v13758_v7  ;;  %v14211_v30 = vsel %vm6359_vm1, %v6317_v60, %v6318_v27  ;;  %v6840_v60 = vmul.f32 %v13826_v0, %v14127_v21 }
 0x6b5   :  { %v6644_v14 = vmul.f32 %v13789_v18, %v6015_v33  ;;  %v14215_v5 = vpop.f32.mrf.mxu0 }
 0x6b6   :  { %v5934_v57 = vrot.slane %v4391_v17, 7  ;;  %v6319_v45 = vrot.slane %v4391_v17, 1  ;;  %v6714_v12 = vmul.f32 %v13801_v11, %v4391_v17 }
 0x6b7   :  { %v14217_v34 = vadd.f32 %v6713_v47, %v6644_v14  ;;  %v4396_v54 = vpop.f32.mrf.mxu0  ;;  %v7090_v14 = vld [vmem:[#allocation8 + $0x30] sm:$0xff]  ;;  %v6839_v47 = vmul.f32 %v13826_v0, %v14110_v1 }
 0x6b8   :  { %v6014_v63 = vsel %vm5974_vm0, %v5933_v23, %v5934_v57  ;;  %v14223_v39 = vsel %vm6359_vm1, %v6318_v27, %v6319_v45  ;;  %v4397_v33 = vadd.f32 %v4396_v54, %v13758_v7  ;;  %10859 = vmatprep.subr.mxu1 %v7090_v14 }
 0x6b9   :  { %v6645_v22 = vmul.f32 %v13789_v18, %v6014_v63  ;;  %v14230_v48 = vpop.f32.mrf.mxu0  ;;  %10860 = vmatpush3.msra.mxu1 %v7090_v14  ;;  %v14238_v63 = vadd.f32 %v6839_v47, %v14104_v10 }
 0x6ba   :  { %16657 = vst [vmem:[#allocation92_spill] sm:$0xff] %v14230_v48  ;;  %v5935_v49 = vrot.slane %v4397_v33, 7  ;;  %v6320_v27 = vrot.slane %v4397_v33, 1  ;;  %10861 = vmatprep.subr.mxu1 %v7089_v51 }
 0x6bb   :  { %v14234_v23 = vadd.f32 %v6714_v12, %v6645_v22  ;;  %v4402_v59 = vpop.f32.mrf.mxu0  ;;  %16658 = vst [vmem:[#allocation93_spill] sm:$0xff] %v14238_v63  ;;  %v14249_v22 = vadd.f32 %v6840_v60, %v14120_v56  ;;  %10862 = vmatpush3.msra.mxu1 %v7089_v51 }
 0x6bc   :  { %v4403_v21 = vadd.f32 %v4402_v59, %v13758_v7  ;;  %v6013_v17 = vsel %vm5974_vm0, %v5934_v57, %v5935_v49  ;;  %v14244_v54 = vsel %vm6359_vm1, %v6319_v45, %v6320_v27  ;;  %v6715_v59 = vmul.f32 %v13801_v11, %v4397_v33 }
 0x6bd   :  { %v14246_v1 = vpop.f32.mrf.mxu0  ;;  %16660 = vst [vmem:[#allocation96_spill] sm:$0xff] %v14249_v22  ;;  %v6646_v12 = vmul.f32 %v13789_v18, %v6013_v17  ;;  %v6842_v33 = vmul.f32 %v13826_v0, %v14159_v13 }
 0x6be   :  { %16659 = vst [vmem:[#allocation94_spill] sm:$0xff] %v14246_v1  ;;  %v5936_v14 = vrot.slane %v4403_v21, 7  ;;  %v6321_v8 = vrot.slane %v4403_v21, 1  ;;  %v6716_v60 = vmul.f32 %v13801_v11, %v4403_v21 }
 0x6bf   :  { %v4408_v10 = vpop.f32.mrf.mxu0  ;;  %v14253_v47 = vadd.f32 %v6715_v59, %v6646_v12 }
 0x6c0   :  { %v6012_v57 = vsel %vm5974_vm0, %v5935_v49, %v5936_v14  ;;  %v14259_v45 = vsel %vm6359_vm1, %v6320_v27, %v6321_v8  ;;  %v4409_v63 = vadd.f32 %v4408_v10, %v13758_v7 }
 0x6c1   :  { %v6647_v56 = vmul.f32 %v13789_v18, %v6012_v57  ;;  %v14264_v17 = vpop.f32.mrf.mxu0 }
 0x6c2   :  { %16661 = vst [vmem:[#allocation95_spill] sm:$0xff] %v14264_v17  ;;  %v5937_v12 = vrot.slane %v4409_v63, 7  ;;  %v6322_v59 = vrot.slane %v4409_v63, 1  ;;  %v6717_v57 = vmul.f32 %v13801_v11, %v4409_v63  ;;  %v4249_v63 = vadd.f32 %v13767_v62, %v13781_v36 }
 0x6c3   :  { %v14268_v22 = vadd.f32 %v6716_v60, %v6647_v56  ;;  %v4414_v49 = vpop.f32.mrf.mxu0  ;;  %v6841_v56 = vmul.f32 %v13826_v0, %v14144_v52  ;;  %v14284_v60 = vadd.f32 %v6842_v33, %v14150_v61  ;;  %v4297_v62 = vadd.f32 %v13910_v37, %v13781_v36 }
 0x6c4   :  { %v6011_v27 = vsel %vm5974_vm0, %v5936_v14, %v5937_v12  ;;  %v14274_v10 = vsel %vm6359_vm1, %v6321_v8, %v6322_v59  ;;  %v4415_v13 = vadd.f32 %v4414_v49, %v13758_v7 }
 0x6c5   :  { %v6648_v21 = vmul.f32 %v13789_v18, %v6011_v27  ;;  %v14279_v17 = vpop.f32.mrf.mxu0  ;;  %16663 = vst [vmem:[#allocation98_spill] sm:$0xff] %v14284_v60  ;;  %v14300_v61 = vadd.f32 %v6841_v56, %v14137_v46 }
 0x6c6   :  { %16662 = vst [vmem:[#allocation97_spill] sm:$0xff] %v14279_v17  ;;  %v5938_v8 = vrot.slane %v4415_v13, 7  ;;  %v6323_v1 = vrot.slane %v4415_v13, 1 }
 0x6c7   :  { %v14286_v14 = vadd.f32 %v6717_v57, %v6648_v21  ;;  %v4420_v48 = vpop.f32.mrf.mxu0  ;;  %16665 = vst [vmem:[#allocation100_spill] sm:$0xff] %v14300_v61  ;;  %v6718_v21 = vmul.f32 %v13801_v11, %v4415_v13 }
 0x6c8   :  { %v4421_v27 = vadd.f32 %v4420_v48, %v13758_v7  ;;  %v6010_v49 = vsel %vm5974_vm0, %v5937_v12, %v5938_v8  ;;  %v14295_v51 = vsel %vm6359_vm1, %v6322_v59, %v6323_v1  ;;  %v4303_v12 = vadd.f32 %v13934_v16, %v13781_v36  ;;  %v7088_v59 = vld [vmem:[#allocation8 + $0x20] sm:$0xff] }
 0x6c9   :  { %v14297_v52 = vpop.f32.mrf.mxu0  ;;  %v6649_v33 = vmul.f32 %v13789_v18, %v6010_v49  ;;  %10863 = vmatprep.subr.mxu1 %v7088_v59  ;;  %v9698_v49 = vmul.f32 -1.442695, %v4249_v63  ;;  %v5046_v63 = vadd.s32 256, %v13744_v42 }
 0x6ca   :  { %16664 = vst [vmem:[#allocation99_spill] sm:$0xff] %v14297_v52  ;;  %v5939_v48 = vrot.slane %v4421_v27, 7  ;;  %v6324_v57 = vrot.slane %v4421_v27, 1  ;;  %v6719_v16 = vmul.f32 %v13801_v11, %v4421_v27  ;;  %10864 = vmatpush3.msra.mxu1 %v7088_v59  ;;  %v9706_v52 = vmul.f32 -1.442695, %v4297_v62 }
 0x6cb   :  { %v4426_v60 = vpop.f32.mrf.mxu0  ;;  %v14308_v17 = vadd.f32 %v6718_v21, %v6649_v33  ;;  %11555 = vpow2.f32 %v9698_v49  ;;  %v4315_v62 = vadd.f32 %v13980_v55, %v13781_v36  ;;  %v6843_v49 = vmul.f32 %v13826_v0, %v14176_v50  ;;  %v14360_v0 = vld [vmem:[%s16290_s4 + $0x1] ss:$0 sm:$0xff] }
 0x6cc   :  { %v6009_v46 = vsel %vm5974_vm0, %v5938_v8, %v5939_v48  ;;  %v4427_v56 = vadd.f32 %v4426_v60, %v13758_v7  ;;  %v14315_v13 = vsel %vm6359_vm1, %v6323_v1, %v6324_v57  ;;  %v4309_v1 = vadd.f32 %v13958_v44, %v13781_v36 }
 0x6cd   :  { %16666 = vst [vmem:[#allocation101_spill] sm:$0xff] %v14308_v17  ;;  %v6650_v37 = vmul.f32 %v13789_v18, %v6009_v46  ;;  %v14319_v61 = vpop.f32.mrf.mxu0  ;;  %v9707_v17 = vmul.f32 -1.442695, %v4303_v12  ;;  %v14338_v12 = vld [vmem:[%s16290_s4] ss:$0 sm:$0xff]  ;;  %11557 = vpow2.f32 %v9706_v52 }
 0x6ce   :  { %16667 = vst [vmem:[#allocation102_spill] sm:$0xff] %v14319_v61  ;;  %v5940_v33 = vrot.slane %v4427_v56, 7  ;;  %v6325_v21 = vrot.slane %v4427_v56, 1  ;;  %v6720_v46 = vmul.f32 %v13801_v11, %v4427_v56  ;;  %v5306_v61 = vand.u32 255, %v5046_v63 }
 0x6cf   :  { %v14321_v8 = vadd.f32 %v6719_v16, %v6650_v37  ;;  %v4432_v60 = vpop.f32.mrf.mxu0  ;;  %11559 = vpow2.f32 %v9707_v17  ;;  %v14369_v63 = vadd.f32 %v6843_v49, %v14170_v58 }
 0x6d0   :  { %v6008_v18 = vsel %vm5974_vm0, %v5939_v48, %v5940_v33  ;;  %v14330_v27 = vsel %vm6359_vm1, %v6324_v57, %v6325_v21  ;;  %v4433_v59 = vadd.f32 %v4432_v60, %v13758_v7  ;;  %v4321_v57 = vadd.f32 %v14000_v19, %v13781_v36  ;;  %v7087_v19 = vld [vmem:[#allocation8 + $0x18] sm:$0xff] }
 0x6d1   :  { %16668 = vst [vmem:[#allocation103_spill] sm:$0xff] %v14321_v8  ;;  %v6651_v44 = vmul.f32 %v14338_v12, %v6008_v18  ;;  %v14342_v48 = vpop.f32.mrf.mxu0  ;;  %v9708_v8 = vmul.f32 -1.442695, %v4309_v1  ;;  %v9709_v18 = vmul.f32 -1.442695, %v4315_v62  ;;  %10865 = vmatprep.subr.mxu1 %v7087_v19  ;;  %16671 = vst [vmem:[#allocation106_spill] sm:$0xff] %v14369_v63 }
 0x6d2   :  { %16669 = vst [vmem:[#allocation104_spill] sm:$0xff] %v14342_v48  ;;  %v5941_v37 = vrot.slane %v4433_v59, 7  ;;  %v6326_v16 = vrot.slane %v4433_v59, 1  ;;  %v6721_v50 = vmul.f32 %v14360_v0, %v4433_v59  ;;  %10866 = vmatpush3.msra.mxu1 %v7087_v19  ;;  %vm14373_vm2 = vcmp.eq.s32.totalorder %v5306_v61, 0 }
 0x6d3   :  { %v14348_v55 = vadd.f32 %v6720_v46, %v6651_v44  ;;  %v4438_v60 = vpop.f32.mrf.mxu0  ;;  %11561 = vpow2.f32 %v9708_v8  ;;  %v4333_v8 = vadd.f32 %v14045_v38, %v13781_v36 }
 0x6d4   :  { %v6007_v11 = vsel %vm5974_vm0, %v5940_v33, %v5941_v37  ;;  %v14354_v56 = vsel %vm6359_vm1, %v6325_v21, %v6326_v16  ;;  %v4439_v17 = vadd.f32 %v4438_v60, %v13758_v7  ;;  %v9710_v33 = vmul.f32 -1.442695, %v4321_v57 }
 0x6d5   :  { %v6652_v48 = vmul.f32 %v14338_v12, %v6007_v11  ;;  %v14364_v52 = vpop.f32.mrf.mxu0  ;;  %v4327_v21 = vadd.f32 %v14022_v29, %v13781_v36  ;;  %11563 = vpow2.f32 %v9709_v18  ;;  %v7086_v11 = vld [vmem:[#allocation8 + $0x10] sm:$0xff] }
 0x6d6   :  { %16670 = vst [vmem:[#allocation105_spill] sm:$0xff] %v14364_v52  ;;  %v5942_v59 = vrot.slane %v4439_v17, 7  ;;  %v6327_v44 = vrot.slane %v4439_v17, 1  ;;  %11565 = vpow2.f32 %v9710_v33  ;;  %10867 = vmatprep.subr.mxu1 %v7086_v11 }
 0x6d7   :  { %v14371_v1 = vadd.f32 %v6721_v50, %v6652_v48  ;;  %v4444_v46 = vpop.f32.mrf.mxu0  ;;  %v9711_v61 = vmul.f32 -1.442695, %v4327_v21  ;;  %10868 = vmatpush3.msra.mxu1 %v7086_v11  ;;  %v14410_v11 = vld [vmem:[%s16290_s4 + $0x2] ss:$0 sm:$0xff] }
 0x6d8   :  { %v4445_v60 = vadd.f32 %v4444_v46, %v13758_v7  ;;  %v6006_v29 = vsel %vm5974_vm0, %v5941_v37, %v5942_v59  ;;  %v14382_v58 = vsel %vm6359_vm1, %v6326_v16, %v6327_v44  ;;  %v6722_v37 = vmul.f32 %v14360_v0, %v4439_v17 }
 0x6d9   :  { %v14384_v48 = vpop.f32.mrf.mxu0  ;;  %v6199_v57 = vsel %vm14373_vm2, 0.0, %v6006_v29  ;;  %v4339_v16 = vadd.f32 %v14065_v25, %v13781_v36  ;;  %11567 = vpow2.f32 %v9711_v61 }
 0x6da   :  { %16674 = vst [vmem:[#allocation107_spill] sm:$0xff] %v14384_v48  ;;  %v5943_v49 = vrot.slane %v4445_v60, 7  ;;  %v6653_v19 = vmul.f32 %v14338_v12, %v6199_v57  ;;  %v6328_v18 = vrot.slane %v4445_v60, 1  ;;  %v6723_v46 = vmul.f32 %v14360_v0, %v4445_v60  ;;  %v11556_v57 = vpop.eup %11555  ;;  %v7085_v48 = vld [vmem:[#allocation8 + $0x8] sm:$0xff] }
 0x6db   :  { %v4450_v50 = vpop.f32.mrf.mxu0  ;;  %10869 = vmatprep.subr.mxu1 %v7085_v48  ;;  %v11558_v60 = vpop.eup %11557 }
 0x6dc   :  { %v6005_v33 = vsel %vm5974_vm0, %v5942_v59, %v5943_v49  ;;  %v4451_v21 = vadd.f32 %v4450_v50, %v13758_v7  ;;  %v14397_v62 = vadd.f32 %v6722_v37, %v6653_v19  ;;  %v14401_v38 = vsel %vm6359_vm1, %v6327_v44, %v6328_v18  ;;  %10870 = vmatpush3.msra.mxu1 %v7085_v48  ;;  %v11560_v52 = vpop.eup %11559 }
 0x6dd   :  { %v6654_v17 = vmul.f32 %v14338_v12, %v6005_v33  ;;  %v14405_v29 = vpop.f32.mrf.mxu0  ;;  %v9712_v59 = vmul.f32 -1.442695, %v4333_v8  ;;  %v6844_v44 = vmul.f32 %v14410_v11, %v14195_v24  ;;  %v9713_v50 = vmul.f32 -1.442695, %v4339_v16 }
 0x6de   :  { %16675 = vst [vmem:[#allocation108_spill] sm:$0xff] %v14397_v62  ;;  %16676 = vst [vmem:[#allocation109_spill] sm:$0xff] %v14405_v29  ;;  %v5944_v25 = vrot.slane %v4451_v21, 7  ;;  %v6329_v63 = vrot.slane %v4451_v21, 1  ;;  %v7084_v29 = vld [vmem:[#allocation8] sm:$0xff]  ;;  %v4821_v16 = vadd.f32 1.0, %v11556_v57  ;;  %v4345_v48 = vadd.f32 %v14082_v2, %v13781_v36 }
 0x6df   :  { %v14414_v19 = vadd.f32 %v6723_v46, %v6654_v17  ;;  %v4456_v37 = vpop.f32.mrf.mxu0  ;;  %v6724_v17 = vmul.f32 %v14360_v0, %v4451_v21  ;;  %10871 = vmatprep.subr.mxu1 %v7084_v29  ;;  %11569 = vpow2.f32 %v9712_v59  ;;  %v4829_v21 = vadd.f32 1.0, %v11558_v60 }
 0x6e0   :  { %v6004_v33 = vsel %vm5974_vm0, %v5943_v49, %v5944_v25  ;;  %v14420_v61 = vsel %vm6359_vm1, %v6328_v18, %v6329_v63  ;;  %v4457_v8 = vadd.f32 %v4456_v37, %v13758_v7  ;;  %v6846_v49 = vmul.f32 %v14410_v11, %v14223_v39  ;;  %10872 = vmatpush3.msra.mxu1 %v7084_v29  ;;  %v11562_v57 = vpop.eup %11561 }
 0x6e1   :  { %16677 = vst [vmem:[#allocation110_spill] sm:$0xff] %v14414_v19  ;;  %v6655_v24 = vmul.f32 %v14338_v12, %v6004_v33  ;;  %v14425_v46 = vpop.f32.mrf.mxu0  ;;  %v14434_v33 = vadd.f32 %v6844_v44, %v14188_v4  ;;  %10969 = vmatprep.subr.mxu1 %v16624_v26  ;;  %11571 = vpow2.f32 %v9713_v50  ;;  %v4830_v59 = vadd.f32 1.0, %v11560_v52 }
 0x6e2   :  { %16678 = vst [vmem:[#allocation111_spill] sm:$0xff] %v14425_v46  ;;  %v5945_v62 = vrot.slane %v4457_v8, 7  ;;  %v6330_v19 = vrot.slane %v4457_v8, 1  ;;  %11573 = vrcp.f32 %v4821_v16  ;;  %v6845_v60 = vmul.f32 %v14410_v11, %v14211_v30 }
 0x6e3   :  { %v14431_v18 = vadd.f32 %v6724_v17, %v6655_v24  ;;  %v4462_v37 = vpop.f32.mrf.mxu0  ;;  %16679 = vst [vmem:[#allocation112_spill] sm:$0xff] %v14434_v33  ;;  %v6725_v24 = vmul.f32 %v14360_v0, %v4457_v8  ;;  %v11564_v17 = vpop.eup %11563  ;;  %v9714_v50 = vmul.f32 -1.442695, %v4345_v48  ;;  %11575 = vrcp.f32 %v4829_v21 }
 0x6e4   :  { %v6003_v39 = vsel %vm5974_vm0, %v5944_v25, %v5945_v62  ;;  %v14441_v29 = vsel %vm6359_vm1, %v6329_v63, %v6330_v19  ;;  %v4463_v4 = vadd.f32 %v4462_v37, %v13758_v7  ;;  %v14451_v25 = vadd.f32 %v6846_v49, %v14217_v34  ;;  %v11566_v63 = vpop.eup %11565 }
 0x6e5   :  { %v6656_v2 = vmul.f32 %v14338_v12, %v6003_v39  ;;  %v14446_v44 = vpop.f32.mrf.mxu0  ;;  %v4351_v37 = vadd.f32 %v14102_v31, %v13781_v36  ;;  %11577 = vrcp.f32 %v4830_v59  ;;  %v14468_v48 = vadd.f32 %v6845_v60, %v14204_v6 }
 0x6e6   :  { %16680 = vst [vmem:[#allocation113_spill] sm:$0xff] %v14446_v44  ;;  %16681 = vst [vmem:[#allocation114_spill] sm:$0xff] %v14451_v25  ;;  %v5946_v52 = vrot.slane %v4463_v4, 7  ;;  %v6331_v39 = vrot.slane %v4463_v4, 1  ;;  %v6726_v31 = vmul.f32 %v14360_v0, %v4463_v4  ;;  %v4833_v59 = vadd.f32 1.0, %v11566_v63  ;;  %v11568_v25 = vpop.eup %11567 }
 0x6e7   :  { %v14453_v33 = vadd.f32 %v6725_v24, %v6656_v2  ;;  %v4468_v46 = vpop.f32.mrf.mxu0  ;;  %16683 = vst [vmem:[#allocation116_spill] sm:$0xff] %v14468_v48  ;;  %v4831_v2 = vadd.f32 1.0, %v11562_v57  ;;  %11579 = vpow2.f32 %v9714_v50  ;;  %v9715_v44 = vmul.f32 -1.442695, %v4351_v37 }
 0x6e8   :  { %v4469_v16 = vadd.f32 %v4468_v46, %v13758_v7  ;;  %v6002_v30 = vsel %vm5974_vm0, %v5945_v62, %v5946_v52  ;;  %v14463_v34 = vsel %vm6359_vm1, %v6330_v19, %v6331_v39  ;;  %v4832_v46 = vadd.f32 1.0, %v11564_v17 }
 0x6e9   :  { %v14465_v49 = vpop.f32.mrf.mxu0  ;;  %v6657_v21 = vmul.f32 %v14338_v12, %v6002_v30  ;;  %v4357_v57 = vadd.f32 %v14115_v43, %v13781_v36  ;;  %v14489_v50 = vmul.f32 %v14360_v0, %v13770_v32  ;;  %11581 = vrcp.f32 %v4831_v2 }
 0x6ea   :  { %16682 = vst [vmem:[#allocation115_spill] sm:$0xff] %v14465_v49  ;;  %v5947_v24 = vrot.slane %v4469_v16, 7  ;;  %v6332_v8 = vrot.slane %v4469_v16, 1  ;;  %v6727_v60 = vmul.f32 %v14360_v0, %v4469_v16  ;;  %11583 = vrcp.f32 %v4832_v46 }
 0x6eb   :  { %v4474_v62 = vpop.f32.mrf.mxu0  ;;  %v14472_v19 = vadd.f32 %v6726_v31, %v6657_v21  ;;  %16685 = vst [vmem:[#allocation118_spill] sm:$0xff] %v14489_v50  ;;  %v4834_v30 = vadd.f32 1.0, %v11568_v25  ;;  %v14492_v43 = vadd.s32 248, %v13744_v42  ;;  %11585 = vrcp.f32 %v4833_v59 }
 0x6ec   :  { %v6001_v49 = vsel %vm5974_vm0, %v5946_v52, %v5947_v24  ;;  %v4475_v6 = vadd.f32 %v4474_v62, %v13758_v7  ;;  %v14481_v4 = vsel %vm6359_vm1, %v6331_v39, %v6332_v8  ;;  %11587 = vpow2.f32 %v9715_v44 }
 0x6ed   :  { %v6658_v17 = vmul.f32 %v14338_v12, %v6001_v49  ;;  %v14485_v63 = vpop.f32.mrf.mxu0  ;;  %v11570_v49 = vpop.eup %11569  ;;  %v9716_v25 = vmul.f32 -1.442695, %v4357_v57  ;;  %v4363_v59 = vadd.f32 %v14129_v3, %v13781_v36  ;;  %v16689_v44 = vrot.slane %v13770_v32, 1 }
 0x6ee   :  { %16684 = vst [vmem:[#allocation117_spill] sm:$0xff] %v14485_v63  ;;  %v5948_v52 = vrot.slane %v4475_v6, 7  ;;  %v6333_v37 = vrot.slane %v4475_v6, 1  ;;  %v11572_v62 = vpop.eup %11571  ;;  %11589 = vrcp.f32 %v4834_v30  ;;  %v6847_v3 = vmul.f32 %v14410_v11, %v14244_v54 }
 0x6ef   :  { %v14494_v39 = vadd.f32 %v6727_v60, %v6658_v17  ;;  %v4480_v21 = vpop.f32.mrf.mxu0  ;;  %v6728_v17 = vmul.f32 %v14360_v0, %v4475_v6  ;;  %v14511_v63 = vpop.eup %11573  ;;  %11591 = vpow2.f32 %v9716_v25 }
 0x6f0   :  { %v6000_v16 = vsel %vm5974_vm0, %v5947_v24, %v5948_v52  ;;  %v14500_v31 = vsel %vm6359_vm1, %v6332_v8, %v6333_v37  ;;  %v4481_v2 = vadd.f32 %v4480_v21, %v13758_v7  ;;  %v6848_v24 = vmul.f32 %v14410_v11, %v14259_v45  ;;  %16687 = vst [vmem:[#allocation120_spill] sm:$0xff] %v14511_v63  ;;  %v14529_v63 = vpop.eup %11575 }
 0x6f1   :  { %v6659_v46 = vmul.f32 %v14338_v12, %v6000_v16  ;;  %v14505_v60 = vpop.f32.mrf.mxu0  ;;  %v16688_v21 = vrot.slane %v13776_v53, 1  ;;  %v4836_v45 = vadd.f32 1.0, %v11572_v62  ;;  %v14537_v54 = vadd.f32 %v6847_v3, %v14234_v23 }
 0x6f2   :  { %16686 = vst [vmem:[#allocation119_spill] sm:$0xff] %v14505_v60  ;;  %v5949_v48 = vrot.slane %v4481_v2, 7  ;;  %v6334_v8 = vrot.slane %v4481_v2, 1  ;;  %v4835_v60 = vadd.f32 1.0, %v11570_v49  ;;  %v6729_v30 = vmul.f32 %v14360_v0, %v4481_v2  ;;  %v14539_v49 = vpop.eup %11577 }
 0x6f3   :  { %v6422_v57 = vsel %vm6359_vm1, %v16689_v44, %v16688_v21  ;;  %v14519_v6 = vadd.f32 %v6728_v17, %v6659_v46  ;;  %v4486_v16 = vpop.f32.mrf.mxu0  ;;  %16690 = vst [vmem:[#allocation121_spill] sm:$0xff] %v14537_v54  ;;  %v14543_v62 = vadd.f32 %v6848_v24, %v14253_v47  ;;  %v14556_v47 = vld [vmem:[%s16290_s4 + $0x3] ss:$0 sm:$0xff] }
 0x6f4   :  { %v5999_v26 = vsel %vm5974_vm0, %v5948_v52, %v5949_v48  ;;  %v14527_v53 = vsel %vm6359_vm1, %v6333_v37, %v6334_v8  ;;  %v4487_v46 = vadd.f32 %v4486_v16, %v13758_v7  ;;  %v9717_v52 = vmul.f32 -1.442695, %v4363_v59  ;;  %v11580_v32 = vpop.eup %11579 }
 0x6f5   :  { %v6660_v21 = vmul.f32 %v14338_v12, %v5999_v26  ;;  %v14534_v17 = vpop.f32.mrf.mxu0  ;;  %16691 = vst [vmem:[#allocation122_spill] sm:$0xff] %v14543_v62  ;;  %v4369_v26 = vadd.f32 %v14148_v35, %v13781_v36  ;;  %11593 = vrcp.f32 %v4835_v60  ;;  %v14551_v25 = vmul.f32 %v14410_v11, %v6422_v57 }
 0x6f6   :  { %v5950_v44 = vrot.slane %v4487_v46, 7  ;;  %v6335_v16 = vrot.slane %v4487_v46, 1  ;;  %v6964_v35 = vadd.f32 %v14556_v47, %v14032_v20  ;;  %11595 = vrcp.f32 %v4836_v45 }
 0x6f7   :  { %v14547_v2 = vadd.f32 %v6729_v30, %v6660_v21  ;;  %v4492_v50 = vpop.f32.mrf.mxu0  ;;  %16692 = vst [vmem:[#allocation123_spill] sm:$0xff] %v14551_v25  ;;  %v4375_v59 = vadd.f32 %v14167_v15, %v13781_v36  ;;  %11597 = vpow2.f32 %v9717_v52  ;;  %v6730_v3 = vmul.f32 %v14360_v0, %v4487_v46  ;;  %v14570_v30 = vpop.eup %11581 }
 0x6f8   :  { %v4493_v23 = vadd.f32 %v4492_v50, %v13758_v7  ;;  %v5998_v60 = vsel %vm5974_vm0, %v5949_v48, %v5950_v44  ;;  %v14566_v50 = vsel %vm6359_vm1, %v6334_v8, %v6335_v16  ;;  %16693 = vst [vmem:[#allocation124_spill] sm:$0xff] %v14570_v30  ;;  %v4837_v20 = vadd.f32 1.0, %v11580_v32  ;;  %v14574_v62 = vpop.eup %11583 }
 0x6f9   :  { %v4494_v24 = vpop.f32.mrf.mxu0  ;;  %v6661_v57 = vmul.f32 %v14338_v12, %v5998_v60  ;;  %v9718_v45 = vmul.f32 -1.442695, %v4369_v26  ;;  %v6849_v48 = vmul.f32 %v14410_v11, %v14274_v10  ;;  %16694 = vst [vmem:[#allocation125_spill] sm:$0xff] %v14574_v62  ;;  %v4381_v8 = vadd.f32 %v14181_v28, %v13781_v36  ;;  %v14583_v54 = vpop.eup %11585 }
 0x6fa   :  { %v5951_v21 = vrot.slane %v4493_v23, 7  ;;  %v6336_v37 = vrot.slane %v4493_v23, 1  ;;  %16695 = vst [vmem:[#allocation126_spill] sm:$0xff] %v14583_v54  ;;  %v9719_v32 = vmul.f32 -1.442695, %v4375_v59  ;;  %v6731_v62 = vmul.f32 %v14360_v0, %v4493_v23  ;;  %v14591_v28 = vpop.eup %11587 }
 0x6fb   :  { %v4498_v15 = vpop.f32.mrf.mxu0  ;;  %v14578_v52 = vadd.f32 %v6730_v3, %v6661_v57  ;;  %v4387_v57 = vadd.f32 %v14197_v41, %v13781_v36  ;;  %11599 = vpow2.f32 %v9718_v45  ;;  %v14602_v23 = vadd.f32 %v6849_v48, %v14268_v22  ;;  %v14604_v54 = vpop.eup %11589 }
 0x6fc   :  { %v5997_v46 = vsel %vm5974_vm0, %v5950_v44, %v5951_v21  ;;  %v4499_v60 = vadd.f32 %v4498_v15, %v13758_v7  ;;  %v14587_v26 = vsel %vm6359_vm1, %v6335_v16, %v6336_v37  ;;  %v6850_v44 = vmul.f32 %v14410_v11, %v14295_v51  ;;  %16697 = vst [vmem:[#allocation128_spill] sm:$0xff] %v14604_v54 }
 0x6fd   :  { %v6662_v10 = vmul.f32 %v14338_v12, %v5997_v46  ;;  %v4500_v30 = vpop.f32.mrf.mxu0  ;;  %v6965_v46 = vadd.f32 %v14556_v47, %v14052_v9  ;;  %16696 = vst [vmem:[#allocation127_spill] sm:$0xff] %v14602_v23  ;;  %v9720_v25 = vmul.f32 -1.442695, %v4381_v8  ;;  %v4393_v41 = vadd.f32 %v14215_v5, %v13781_v36 }
 0x6fe   :  { %v5952_v3 = vrot.slane %v4499_v60, 7  ;;  %v6337_v15 = vrot.slane %v4499_v60, 1  ;;  %11601 = vrcp.f32 %v4837_v20  ;;  %v6732_v9 = vmul.f32 %v14360_v0, %v4499_v60 }
 0x6ff   :  { %v14597_v59 = vadd.f32 %v6731_v62, %v6662_v10  ;;  %v4504_v16 = vpop.f32.mrf.mxu0  ;;  %11603 = vpow2.f32 %v9719_v32  ;;  %v9721_v8 = vmul.f32 -1.442695, %v4387_v57  ;;  %v14618_v10 = vmul.f32 %v14529_v63, %v6964_v35 }
 0x700   :  { %v5996_v51 = vsel %vm5974_vm0, %v5951_v21, %v5952_v3  ;;  %v14612_v62 = vsel %vm6359_vm1, %v6336_v37, %v6337_v15  ;;  %v4505_v22 = vadd.f32 %v4504_v16, %v13758_v7  ;;  %v14621_v5 = vadd.f32 %v6850_v44, %v14286_v14  ;;  %v14623_v21 = vpop.eup %11591 }
 0x701   :  { %v6663_v45 = vmul.f32 %v14338_v12, %v5996_v51  ;;  %v4506_v48 = vpop.f32.mrf.mxu0  ;;  %16698 = vst [vmem:[#allocation129_spill] sm:$0xff] %v14618_v10  ;;  %16700 = vst [vmem:[#allocation131_spill] sm:$0xff] %v14623_v21  ;;  %v4489_v37 = vadd.f32 %v14534_v17, %v13781_v36  ;;  %11605 = vpow2.f32 %v9720_v25  ;;  %v9722_v16 = vmul.f32 -1.442695, %v4393_v41 }
 0x702   :  { %16699 = vst [vmem:[#allocation130_spill] sm:$0xff] %v14621_v5  ;;  %v5953_v51 = vrot.slane %v4505_v22, 7  ;;  %v6338_v60 = vrot.slane %v4505_v22, 1  ;;  %v4495_v32 = vadd.f32 %v4494_v24, %v13781_v36  ;;  %v14631_v35 = vpop.eup %11593  ;;  %v6852_v14 = vmul.f32 %v14410_v11, %v14330_v27 }
 0x703   :  { %v14627_v20 = vadd.f32 %v6732_v9, %v6663_v45  ;;  %v4510_v23 = vpop.f32.mrf.mxu0  ;;  %16701 = vst [vmem:[#allocation132_spill] sm:$0xff] %v14631_v35  ;;  %v4501_v57 = vadd.f32 %v4500_v30, %v13781_v36  ;;  %v14642_v41 = vpop.eup %11595  ;;  %11607 = vpow2.f32 %v9721_v8  ;;  %v9738_v27 = vmul.f32 -1.442695, %v4489_v37 }
 0x704   :  { %v4511_v63 = vadd.f32 %v4510_v23, %v13758_v7  ;;  %v5995_v17 = vsel %vm5974_vm0, %v5952_v3, %v5953_v51  ;;  %v14640_v44 = vsel %vm6359_vm1, %v6337_v15, %v6338_v60  ;;  %16702 = vst [vmem:[#allocation133_spill] sm:$0xff] %v14642_v41  ;;  %v6733_v23 = vmul.f32 %v14360_v0, %v4505_v22  ;;  %v14646_v5 = vpop.eup %11597 }
 0x705   :  { %v4512_v25 = vpop.f32.mrf.mxu0  ;;  %v6664_v24 = vmul.f32 %v14338_v12, %v5995_v17  ;;  %16703 = vst [vmem:[#allocation134_spill] sm:$0xff] %v14646_v5  ;;  %v14649_v3 = vmul.f32 %v14539_v49, %v6965_v46  ;;  %v14653_v15 = vadd.f32 %v14556_v47, %v14089_v40  ;;  %v9739_v35 = vmul.f32 -1.442695, %v4495_v32 }
 0x706   :  { %v5954_v45 = vrot.slane %v4511_v63, 7  ;;  %v6339_v9 = vrot.slane %v4511_v63, 1  ;;  %v16706_v8 = vand.u32 255, %v14492_v43  ;;  %v4507_v49 = vadd.f32 %v4506_v48, %v13781_v36 }
 0x707   :  { %v4516_v30 = vpop.f32.mrf.mxu0  ;;  %16704 = vst [vmem:[#allocation135_spill] sm:$0xff] %v14649_v3  ;;  %16705 = vst [vmem:[#allocation136_spill] sm:$0xff] %v14653_v15  ;;  %v14655_v41 = vadd.f32 %v6733_v23, %v6664_v24  ;;  %v6734_v46 = vmul.f32 %v14360_v0, %v4511_v63  ;;  %11609 = vpow2.f32 %v9722_v16  ;;  %v16709_v23 = vld [vmem:[#allocation103_spill] sm:$0xff]  ;;  %v4513_v54 = vadd.f32 %v4512_v25, %v13781_v36  ;;  %v16712_v63 = vld [vmem:[#allocation92_spill] sm:$0xff] }
 0x708   :  { %v5994_v22 = vsel %vm5974_vm0, %v5953_v51, %v5954_v45  ;;  %v14661_v17 = vsel %vm6359_vm1, %v6338_v60, %v6339_v9  ;;  %vm14665_vm3 = vcmp.eq.s32.totalorder %v16706_v8, 255  ;;  %v4517_v32 = vadd.f32 %v4516_v30, %v13758_v7  ;;  %v14681_v15 = vpop.eup %11599 }
 0x709   :  { %v6665_v40 = vmul.f32 %v14338_v12, %v5994_v22  ;;  %v4518_v24 = vpop.f32.mrf.mxu0  ;;  %v9740_v51 = vmul.f32 -1.442695, %v4501_v57  ;;  %v6851_v60 = vmul.f32 %v14410_v11, %v14315_v13  ;;  %v14676_v43 = vadd.f32 %v6852_v14, %v16709_v23  ;;  %16711 = vst [vmem:[#allocation137_spill] sm:$0xff] %v14681_v15  ;;  %v16713_v57 = vld [vmem:[#allocation101_spill] sm:$0xff] }
 0x70a   :  { %v5955_v48 = vrot.slane %v4517_v32, 7  ;;  %v6340_v3 = vrot.slane %v4517_v32, 1  ;;  %v4399_v30 = vadd.f32 %v16712_v63, %v13781_v36  ;;  %11611 = vpow2.f32 %v9738_v27 }
 0x70b   :  { %16710 = vst [vmem:[#allocation103_spill] sm:$0xff] %v14676_v43  ;;  %v14678_v8 = vadd.f32 %v6734_v46, %v6665_v40  ;;  %v4522_v22 = vpop.f32.mrf.mxu0  ;;  %v14687_v13 = vadd.f32 %v6851_v60, %v16713_v57  ;;  %11613 = vpow2.f32 %v9739_v35  ;;  %v9741_v14 = vmul.f32 -1.442695, %v4507_v49  ;;  %v14695_v23 = vpop.eup %11601 }
 0x70c   :  { %v4523_v16 = vadd.f32 %v4522_v22, %v13758_v7  ;;  %v5993_v40 = vsel %vm5974_vm0, %v5954_v45, %v5955_v48  ;;  %v14693_v25 = vsel %vm6359_vm1, %v6339_v9, %v6340_v3  ;;  %16715 = vst [vmem:[#allocation101_spill] sm:$0xff] %v14695_v23  ;;  %v6735_v27 = vmul.f32 %v14360_v0, %v4517_v32  ;;  %v14700_v57 = vpop.eup %11603 }
 0x70d   :  { %16714 = vst [vmem:[#allocation92_spill] sm:$0xff] %v14687_v13  ;;  %v4524_v46 = vpop.f32.mrf.mxu0  ;;  %v6666_v63 = vmul.f32 %v14338_v12, %v5993_v40  ;;  %v4519_v22 = vadd.f32 %v4518_v24, %v13781_v36  ;;  %16716 = vst [vmem:[#allocation138_spill] sm:$0xff] %v14700_v57  ;;  %v14703_v35 = vadd.f32 1.0, %v14591_v28  ;;  %11615 = vpow2.f32 %v9740_v51 }
 0x70e   :  { %v5956_v60 = vrot.slane %v4523_v16, 7  ;;  %v9742_v45 = vmul.f32 -1.442695, %v4513_v54  ;;  %v6341_v49 = vrot.slane %v4523_v16, 1  ;;  %v6736_v40 = vmul.f32 %v14360_v0, %v4523_v16  ;;  %v14712_v24 = vpop.eup %11605 }
 0x70f   :  { %16717 = vst [vmem:[#allocation139_spill] sm:$0xff] %v14703_v35  ;;  %v4528_v9 = vpop.f32.mrf.mxu0  ;;  %v14705_v43 = vadd.f32 %v6735_v27, %v6666_v63  ;;  %v6853_v32 = vmul.f32 %v14410_v11, %v14354_v56  ;;  %16718 = vst [vmem:[#allocation140_spill] sm:$0xff] %v14712_v24  ;;  %v4525_v51 = vadd.f32 %v4524_v46, %v13781_v36  ;;  %v14721_v23 = vmul.f32 -1.442695, %v4399_v30  ;;  %v16723_v46 = vld [vmem:[#allocation95_spill] sm:$0xff] }
 0x710   :  { %v5992_v13 = vsel %vm5974_vm0, %v5955_v48, %v5956_v60  ;;  %v14716_v28 = vsel %vm6359_vm1, %v6340_v3, %v6341_v49  ;;  %v4529_v63 = vadd.f32 %v4528_v9, %v13758_v7  ;;  %v16720_v48 = vld [vmem:[#allocation94_spill] sm:$0xff]  ;;  %11617 = vpow2.f32 %v9741_v14  ;;  %v14730_v35 = vpop.eup %11607 }
 0x711   :  { %v6667_v54 = vmul.f32 %v14338_v12, %v5992_v13  ;;  %v4530_v27 = vpop.f32.mrf.mxu0  ;;  %16719 = vst [vmem:[#allocation141_spill] sm:$0xff] %v14721_v23  ;;  %v14725_v16 = vadd.f32 %v16720_v48, %v13781_v36  ;;  %v9743_v56 = vmul.f32 -1.442695, %v4519_v22  ;;  %16722 = vst [vmem:[#allocation142_spill] sm:$0xff] %v14730_v35  ;;  %v14734_v9 = vadd.f32 %v16723_v46, %v13781_v36 }
 0x712   :  { %v5957_v57 = vrot.slane %v4529_v63, 7  ;;  %v6342_v3 = vrot.slane %v4529_v63, 1  ;;  %v4531_v15 = vadd.f32 %v4530_v27, %v13781_v36  ;;  %v6583_v30 = vsel %vm14665_vm3, 0.0, %v14382_v58 }
 0x713   :  { %16721 = vst [vmem:[#allocation94_spill] sm:$0xff] %v14725_v16  ;;  %v14727_v24 = vadd.f32 %v6736_v40, %v6667_v54  ;;  %v4534_v13 = vpop.f32.mrf.mxu0  ;;  %16724 = vst [vmem:[#allocation95_spill] sm:$0xff] %v14734_v9  ;;  %11619 = vpow2.f32 %v9742_v45  ;;  %v9744_v22 = vmul.f32 -1.442695, %v4525_v51  ;;  %v14747_v48 = vadd.f32 %v6853_v32, %v14348_v55  ;;  %v16727_v51 = vld [vmem:[#allocation97_spill] sm:$0xff] }
 0x714   :  { %v4535_v14 = vadd.f32 %v4534_v13, %v13758_v7  ;;  %v5991_v40 = vsel %vm5974_vm0, %v5956_v60, %v5957_v57  ;;  %v14744_v54 = vsel %vm6359_vm1, %v6341_v49, %v6342_v3  ;;  %v6737_v37 = vmul.f32 %v14360_v0, %v4529_v63  ;;  %v14751_v35 = vpop.eup %11609 }
 0x715   :  { %v4536_v27 = vpop.f32.mrf.mxu0  ;;  %16725 = vst [vmem:[#allocation143_spill] sm:$0xff] %v14747_v48  ;;  %v6668_v46 = vmul.f32 %v14338_v12, %v5991_v40  ;;  %16726 = vst [vmem:[#allocation144_spill] sm:$0xff] %v14751_v35  ;;  %v14755_v13 = vadd.f32 %v16727_v51, %v13781_v36  ;;  %v6854_v60 = vmul.f32 %v14410_v11, %v6583_v30  ;;  %11621 = vpow2.f32 %v9743_v56  ;;  %v16729_v35 = vld [vmem:[#allocation99_spill] sm:$0xff] }
 0x716   :  { %v5958_v58 = vrot.slane %v4535_v14, 7  ;;  %v6343_v45 = vrot.slane %v4535_v14, 1  ;;  %v9745_v49 = vmul.f32 -1.442695, %v4531_v15  ;;  %v6856_v51 = vmul.f32 %v14410_v11, %v14420_v61 }
 0x717   :  { %16728 = vst [vmem:[#allocation97_spill] sm:$0xff] %v14755_v13  ;;  %v4540_v10 = vpop.f32.mrf.mxu0  ;;  %v14758_v5 = vadd.f32 %v6737_v37, %v6668_v46  ;;  %v11612_v40 = vpop.eup %11611  ;;  %11623 = vpow2.f32 %v9744_v22  ;;  %v6738_v15 = vmul.f32 %v14360_v0, %v4535_v14  ;;  %v4537_v37 = vadd.f32 %v4536_v27, %v13781_v36 }
 0x718   :  { %v5990_v55 = vsel %vm5974_vm0, %v5957_v57, %v5958_v58  ;;  %v14764_v32 = vsel %vm6359_vm1, %v6342_v3, %v6343_v45  ;;  %v4541_v63 = vadd.f32 %v4540_v10, %v13758_v7  ;;  %v11614_v46 = vpop.eup %11613  ;;  %v14775_v10 = vadd.f32 %v16729_v35, %v13781_v36 }
 0x719   :  { %v6669_v56 = vmul.f32 %v14338_v12, %v5990_v55  ;;  %v4542_v30 = vpop.f32.mrf.mxu0  ;;  %v14780_v22 = vadd.s32 504, %v13744_v42  ;;  %v14783_v14 = vadd.f32 %v6854_v60, %v14371_v1  ;;  %v4861_v13 = vadd.f32 1.0, %v11612_v40  ;;  %v16733_v40 = vld [vmem:[#allocation110_spill] sm:$0xff] }
 0x71a   :  { %v5959_v57 = vrot.slane %v4541_v63, 7  ;;  %v6344_v48 = vrot.slane %v4541_v63, 1  ;;  %v4543_v3 = vadd.f32 %v4542_v30, %v13781_v36  ;;  %16730 = vst [vmem:[#allocation99_spill] sm:$0xff] %v14775_v10  ;;  %v11616_v55 = vpop.eup %11615  ;;  %11625 = vpow2.f32 %v9745_v49 }
 0x71b   :  { %v14777_v21 = vadd.f32 %v6738_v15, %v6669_v56  ;;  %v4546_v61 = vpop.f32.mrf.mxu0  ;;  %16732 = vst [vmem:[#allocation146_spill] sm:$0xff] %v14783_v14  ;;  %v6739_v56 = vmul.f32 %v14360_v0, %v4541_v63  ;;  %v9746_v60 = vmul.f32 -1.442695, %v4537_v37  ;;  %v6855_v49 = vmul.f32 %v14410_v11, %v14401_v38 }
 0x71c   :  { %v5989_v27 = vsel %vm5974_vm0, %v5958_v58, %v5959_v57  ;;  %v14789_v30 = vsel %vm6359_vm1, %v6343_v45, %v6344_v48  ;;  %v4547_v15 = vadd.f32 %v4546_v61, %v13758_v7  ;;  %v9747_v14 = vmul.f32 -1.442695, %v4543_v3 }
 0x71d   :  { %16731 = vst [vmem:[#allocation145_spill] sm:$0xff] %v14777_v21  ;;  %v6670_v35 = vmul.f32 %v14338_v12, %v5989_v27  ;;  %v4548_v10 = vpop.f32.mrf.mxu0  ;;  %v14798_v58 = vadd.f32 %v6856_v51, %v16733_v40  ;;  %v11618_v9 = vpop.eup %11617  ;;  %11627 = vrcp.f32 %v4861_v13  ;;  %v4862_v61 = vadd.f32 1.0, %v11614_v46 }
 0x71e   :  { %v5960_v23 = vrot.slane %v4547_v15, 7  ;;  %v6345_v27 = vrot.slane %v4547_v15, 1  ;;  %v4549_v63 = vadd.f32 %v4548_v10, %v13781_v36  ;;  %v4863_v21 = vadd.f32 1.0, %v11616_v55 }
 0x71f   :  { %16734 = vst [vmem:[#allocation110_spill] sm:$0xff] %v14798_v58  ;;  %v14800_v45 = vadd.f32 %v6739_v56, %v6670_v35  ;;  %v4552_v16 = vpop.f32.mrf.mxu0  ;;  %v16736_v56 = vld [vmem:[#allocation108_spill] sm:$0xff]  ;;  %11629 = vpow2.f32 %v9746_v60  ;;  %v4864_v10 = vadd.f32 1.0, %v11618_v9 }
 0x720   :  { %v4553_v1 = vadd.f32 %v4552_v16, %v13758_v7  ;;  %v11620_v3 = vpop.eup %11619  ;;  %v5988_v38 = vsel %vm5974_vm0, %v5959_v57, %v5960_v23  ;;  %v14809_v51 = vsel %vm6359_vm1, %v6344_v48, %v6345_v27  ;;  %v14812_v40 = vadd.f32 %v6855_v49, %v16736_v56 }
 0x721   :  { %16735 = vst [vmem:[#allocation147_spill] sm:$0xff] %v14800_v45  ;;  %v4554_v35 = vpop.f32.mrf.mxu0  ;;  %v6671_v13 = vmul.f32 %v14338_v12, %v5988_v38  ;;  %v6740_v16 = vmul.f32 %v14360_v0, %v4547_v15  ;;  %11631 = vpow2.f32 %v9747_v14  ;;  %v9748_v55 = vmul.f32 -1.442695, %v4549_v63 }
 0x722   :  { %16737 = vst [vmem:[#allocation108_spill] sm:$0xff] %v14812_v40  ;;  %v5961_v46 = vrot.slane %v4553_v1, 7  ;;  %v6346_v37 = vrot.slane %v4553_v1, 1  ;;  %v11622_v57 = vpop.eup %11621  ;;  %v4555_v49 = vadd.f32 %v4554_v35, %v13781_v36  ;;  %11633 = vrcp.f32 %v4862_v61 }
 0x723   :  { %v4558_v58 = vpop.f32.mrf.mxu0  ;;  %v14816_v45 = vadd.f32 %v6740_v16, %v6671_v13  ;;  %v6741_v14 = vmul.f32 %v14360_v0, %v4553_v1  ;;  %11635 = vrcp.f32 %v4863_v21  ;;  %v4865_v56 = vadd.f32 1.0, %v11620_v3 }
 0x724   :  { %v5987_v48 = vsel %vm5974_vm0, %v5960_v23, %v5961_v46  ;;  %v4559_v60 = vadd.f32 %v4558_v58, %v13758_v7  ;;  %v14824_v15 = vsel %vm6359_vm1, %v6345_v27, %v6346_v37  ;;  %v11624_v38 = vpop.eup %11623  ;;  %v6858_v23 = vmul.f32 %v14410_v11, %v14463_v34 }
 0x725   :  { %16738 = vst [vmem:[#allocation148_spill] sm:$0xff] %v14816_v45  ;;  %v6672_v9 = vmul.f32 %v14338_v12, %v5987_v48  ;;  %v4560_v63 = vpop.f32.mrf.mxu0  ;;  %v14832_v58 = vmul.f32 %v14410_v11, %v14500_v31  ;;  %11637 = vpow2.f32 %v9748_v55  ;;  %v9749_v35 = vmul.f32 -1.442695, %v4555_v49 }
 0x726   :  { %v5962_v13 = vrot.slane %v4559_v60, 7  ;;  %v6347_v16 = vrot.slane %v4559_v60, 1  ;;  %11639 = vrcp.f32 %v4864_v10  ;;  %v6742_v48 = vmul.f32 %v14360_v0, %v4559_v60 }
 0x727   :  { %v14834_v27 = vadd.f32 %v6741_v14, %v6672_v9  ;;  %v4564_v61 = vpop.f32.mrf.mxu0  ;;  %v11626_v3 = vpop.eup %11625  ;;  %v4561_v31 = vadd.f32 %v4560_v63, %v13781_v36  ;;  %11641 = vrcp.f32 %v4865_v56  ;;  %v4866_v10 = vadd.f32 1.0, %v11622_v57 }
 0x728   :  { %v5986_v1 = vsel %vm5974_vm0, %v5961_v46, %v5962_v13  ;;  %v14840_v21 = vsel %vm6359_vm1, %v6346_v37, %v6347_v16  ;;  %v4565_v55 = vadd.f32 %v4564_v61, %v13758_v7  ;;  %v4867_v49 = vadd.f32 1.0, %v11624_v38 }
 0x729   :  { %16739 = vst [vmem:[#allocation149_spill] sm:$0xff] %v14834_v27  ;;  %v6673_v34 = vmul.f32 %v14338_v12, %v5986_v1  ;;  %v4566_v9 = vpop.f32.mrf.mxu0  ;;  %v6857_v46 = vmul.f32 %v14410_v11, %v14441_v29  ;;  %v4868_v45 = vadd.f32 1.0, %v11626_v3  ;;  %11643 = vpow2.f32 %v9749_v35 }
 0x72a   :  { %v5963_v37 = vrot.slane %v4565_v55, 7  ;;  %v6348_v40 = vrot.slane %v4565_v55, 1  ;;  %v4567_v27 = vadd.f32 %v4566_v9, %v13781_v36  ;;  %v14855_v56 = vpop.eup %11627  ;;  %v9750_v57 = vmul.f32 -1.442695, %v4561_v31 }
 0x72b   :  { %v14848_v14 = vadd.f32 %v6742_v48, %v6673_v34  ;;  %v4570_v1 = vpop.f32.mrf.mxu0  ;;  %v14853_v63 = vadd.f32 %v6857_v46, %v14431_v18  ;;  %v14864_v34 = vadd.f32 %v6858_v23, %v14453_v33  ;;  %v6743_v3 = vmul.f32 %v14360_v0, %v4565_v55 }
 0x72c   :  { %v4571_v60 = vadd.f32 %v4570_v1, %v13758_v7  ;;  %v5985_v29 = vsel %vm5974_vm0, %v5962_v13, %v5963_v37  ;;  %v14861_v38 = vsel %vm6359_vm1, %v6347_v16, %v6348_v40  ;;  %v11630_v9 = vpop.eup %11629  ;;  %v14870_v31 = vmul.f32 %v14410_v11, %v14566_v50 }
 0x72d   :  { %16740 = vst [vmem:[#allocation150_spill] sm:$0xff] %v14848_v14  ;;  %16741 = vst [vmem:[#allocation151_spill] sm:$0xff] %v14853_v63  ;;  %v4572_v61 = vpop.f32.mrf.mxu0  ;;  %v6674_v35 = vmul.f32 %v14338_v12, %v5985_v29  ;;  %11645 = vrcp.f32 %v4866_v10  ;;  %v9751_v13 = vmul.f32 -1.442695, %v4567_v27 }
 0x72e   :  { %16742 = vst [vmem:[#allocation152_spill] sm:$0xff] %v14861_v38  ;;  %16743 = vst [vmem:[#allocation153_spill] sm:$0xff] %v14864_v34  ;;  %v5964_v18 = vrot.slane %v4571_v60, 7  ;;  %v6349_v48 = vrot.slane %v4571_v60, 1  ;;  %v4573_v16 = vadd.f32 %v4572_v61, %v13781_v36  ;;  %v11632_v1 = vpop.eup %11631  ;;  %11647 = vrcp.f32 %v4867_v49 }
 0x72f   :  { %v4576_v46 = vpop.f32.mrf.mxu0  ;;  %v14873_v33 = vadd.f32 %v6743_v3, %v6674_v35  ;;  %11649 = vrcp.f32 %v4868_v45  ;;  %v6744_v10 = vmul.f32 %v14360_v0, %v4571_v60  ;;  %v14884_v61 = vpop.eup %11633  ;;  %v14888_v49 = vmul.f32 %v14410_v11, %v14612_v62 }
 0x730   :  { %v5984_v23 = vsel %vm5974_vm0, %v5963_v37, %v5964_v18  ;;  %v14879_v55 = vsel %vm6359_vm1, %v6348_v40, %v6349_v48  ;;  %v4577_v27 = vadd.f32 %v4576_v46, %v13758_v7  ;;  %11651 = vpow2.f32 %v9750_v57  ;;  %v14891_v40 = vpop.eup %11635 }
 0x731   :  { %16744 = vst [vmem:[#allocation154_spill] sm:$0xff] %v14873_v33  ;;  %v6675_v50 = vmul.f32 %v14338_v12, %v5984_v23  ;;  %v4578_v29 = vpop.f32.mrf.mxu0  ;;  %v9752_v37 = vmul.f32 -1.442695, %v4573_v16  ;;  %11653 = vpow2.f32 %v9751_v13  ;;  %v4869_v34 = vadd.f32 1.0, %v11630_v9 }
 0x732   :  { %v4579_v35 = vadd.f32 %v4578_v29, %v13781_v36  ;;  %v5965_v3 = vrot.slane %v4577_v27, 7  ;;  %v6350_v60 = vrot.slane %v4577_v27, 1  ;;  %v11638_v46 = vpop.eup %11637  ;;  %v4870_v63 = vadd.f32 1.0, %v11632_v1 }
 0x733   :  { %v14893_v45 = vadd.f32 %v6744_v10, %v6675_v50  ;;  %v4582_v23 = vpop.f32.mrf.mxu0  ;;  %v14896_v62 = vpop.eup %11639  ;;  %v6859_v50 = vmul.f32 %v14410_v11, %v14481_v4  ;;  %v14908_v9 = vadd.f32 %v14832_v58, %v14494_v39  ;;  %11655 = vpow2.f32 %v9752_v37  ;;  %v14930_v37 = vld [vmem:[%s16290_s4] ss:$0 sm:$0xff] }
 0x734   :  { %v9753_v14 = vmul.f32 -1.442695, %v4579_v35  ;;  %v4583_v33 = vadd.f32 %v4582_v23, %v13758_v7  ;;  %v5983_v57 = vsel %vm5974_vm0, %v5964_v18, %v5965_v3  ;;  %v14902_v16 = vsel %vm6359_vm1, %v6349_v48, %v6350_v60  ;;  %v14912_v35 = vpop.eup %11641 }
 0x735   :  { %16745 = vst [vmem:[#allocation155_spill] sm:$0xff] %v14893_v45  ;;  %16746 = vst [vmem:[#allocation156_spill] sm:$0xff] %v14902_v16  ;;  %v4584_v13 = vpop.f32.mrf.mxu0  ;;  %v6676_v1 = vmul.f32 %v14338_v12, %v5983_v57  ;;  %v6745_v10 = vmul.f32 %v14360_v0, %v4577_v27  ;;  %v4871_v18 = vadd.f32 1.0, %v11638_v46  ;;  %v14916_v16 = vadd.f32 %v6859_v50, %v14472_v19 }
 0x736   :  { %16747 = vst [vmem:[#allocation157_spill] sm:$0xff] %v14908_v9  ;;  %v5966_v29 = vrot.slane %v4583_v33, 7  ;;  %v6351_v23 = vrot.slane %v4583_v33, 1  ;;  %v4585_v48 = vadd.f32 %v4584_v13, %v13781_v36  ;;  %11657 = vpow2.f32 %v9753_v14  ;;  %v11644_v58 = vpop.eup %11643 }
 0x737   :  { %v4588_v45 = vpop.f32.mrf.mxu0  ;;  %16748 = vst [vmem:[#allocation158_spill] sm:$0xff] %v14916_v16  ;;  %v14918_v4 = vadd.f32 %v6745_v10, %v6676_v1  ;;  %v6746_v12 = vmul.f32 %v14360_v0, %v4583_v33  ;;  %v14940_v0 = vmul.f32 %v14410_v11, %v14716_v28  ;;  %11659 = vrcp.f32 %v4869_v34 }
 0x738   :  { %v5982_v39 = vsel %vm5974_vm0, %v5965_v3, %v5966_v29  ;;  %v14925_v27 = vsel %vm6359_vm1, %v6350_v60, %v6351_v23  ;;  %v9754_v46 = vmul.f32 -1.442695, %v4585_v48  ;;  %v4589_v14 = vadd.f32 %v4588_v45, %v13758_v7 }
 0x739   :  { %16749 = vst [vmem:[#allocation159_spill] sm:$0xff] %v14918_v4  ;;  %v6677_v19 = vmul.f32 %v14930_v37, %v5982_v39  ;;  %v4590_v57 = vpop.f32.mrf.mxu0  ;;  %v14936_v3 = vmul.f32 %v14410_v11, %v14661_v17  ;;  %11661 = vrcp.f32 %v4870_v63  ;;  %v14949_v45 = vmul.f32 %v14410_v11, %v14764_v32 }
 0x73a   :  { %v4591_v33 = vadd.f32 %v4590_v57, %v13781_v36  ;;  %v5967_v13 = vrot.slane %v4589_v14, 7  ;;  %v6352_v50 = vrot.slane %v4589_v14, 1  ;;  %v14945_v10 = vpop.eup %11645  ;;  %11663 = vrcp.f32 %v4871_v18  ;;  %v14966_v18 = vld [vmem:[%s16290_s4 + $0x1] ss:$0 sm:$0xff] }
 0x73b   :  { %v14943_v60 = vadd.f32 %v6746_v12, %v6677_v19  ;;  %v4594_v1 = vpop.f32.mrf.mxu0  ;;  %v14952_v48 = vpop.eup %11647  ;;  %v4872_v34 = vadd.f32 1.0, %v11644_v58  ;;  %11665 = vpow2.f32 %v9754_v46  ;;  %v6747_v58 = vmul.f32 %v14966_v18, %v4589_v14 }
 0x73c   :  { %v9755_v17 = vmul.f32 -1.442695, %v4591_v33  ;;  %v4595_v28 = vadd.f32 %v4594_v1, %v13758_v7  ;;  %v5981_v63 = vsel %vm5974_vm0, %v5966_v29, %v5967_v13  ;;  %v14958_v39 = vsel %vm6359_vm1, %v6351_v23, %v6352_v50  ;;  %v14960_v19 = vpop.eup %11649 }
 0x73d   :  { %16750 = vst [vmem:[#allocation160_spill] sm:$0xff] %v14943_v60  ;;  %16751 = vst [vmem:[#allocation161_spill] sm:$0xff] %v14958_v39  ;;  %v4596_v12 = vpop.f32.mrf.mxu0  ;;  %v6678_v32 = vmul.f32 %v14930_v37, %v5981_v63  ;;  %v11652_v33 = vpop.eup %11651  ;;  %v14971_v29 = vmul.f32 %v14410_v11, %v14809_v51  ;;  %v14975_v23 = vmul.f32 %v14410_v11, %v14840_v21 }
 0x73e   :  { %16752 = vst [vmem:[#allocation162_spill] sm:$0xff] %v14960_v19  ;;  %v5968_v46 = vrot.slane %v4595_v28, 7  ;;  %v6353_v57 = vrot.slane %v4595_v28, 1  ;;  %11667 = vpow2.f32 %v9755_v17  ;;  %v4597_v1 = vadd.f32 %v4596_v12, %v13781_v36  ;;  %v11654_v9 = vpop.eup %11653 }
 0x73f   :  { %16753 = vst [vmem:[#allocation163_spill] sm:$0xff] %v14975_v23  ;;  %v4600_v63 = vpop.f32.mrf.mxu0  ;;  %v14978_v16 = vadd.f32 %v6747_v58, %v6678_v32  ;;  %11669 = vrcp.f32 %v4872_v34  ;;  %v6748_v21 = vmul.f32 %v14966_v18, %v4595_v28  ;;  %v4873_v12 = vadd.f32 1.0, %v11652_v33 }
 0x740   :  { %v5980_v14 = vsel %vm5974_vm0, %v5967_v13, %v5968_v46  ;;  %v6365_v60 = vsel %vm6359_vm1, %v6352_v50, %v6353_v57  ;;  %v4601_v51 = vadd.f32 %v4600_v63, %v13758_v7  ;;  %v9756_v17 = vmul.f32 -1.442695, %v4597_v1  ;;  %v11656_v58 = vpop.eup %11655 }
 0x741   :  { %16754 = vst [vmem:[#allocation164_spill] sm:$0xff] %v14978_v16  ;;  %v6679_v39 = vmul.f32 %v14930_v37, %v5980_v14  ;;  %v4602_v4 = vpop.f32.mrf.mxu0  ;;  %v4874_v16 = vadd.f32 1.0, %v11654_v9  ;;  %v6861_v50 = vmul.f32 %v14410_v11, %v14527_v53  ;;  %v14994_v34 = vadd.f32 %v14870_v31, %v14547_v2  ;;  %v15011_v31 = vld [vmem:[%s16290_s4 + $0x2] ss:$0 sm:$0xff] }
 0x742   :  { %v5969_v38 = vrot.slane %v4601_v51, 7  ;;  %v6354_v23 = vrot.slane %v4601_v51, 1  ;;  %v4603_v32 = vadd.f32 %v4602_v4, %v13781_v36  ;;  %11671 = vpow2.f32 %v9756_v17 }
 0x743   :  { %v14988_v13 = vadd.f32 %v6748_v21, %v6679_v39  ;;  %v4606_v19 = vpop.f32.mrf.mxu0  ;;  %16756 = vst [vmem:[#allocation166_spill] sm:$0xff] %v14994_v34  ;;  %v6749_v9 = vmul.f32 %v14966_v18, %v4601_v51  ;;  %v11658_v4 = vpop.eup %11657  ;;  %v15006_v2 = vadd.f32 %v6861_v50, %v14519_v6  ;;  %11673 = vrcp.f32 %v4873_v12 }
 0x744   :  { %v5979_v28 = vsel %vm5974_vm0, %v5968_v46, %v5969_v38  ;;  %v15000_v33 = vsel %vm6359_vm1, %v6353_v57, %v6354_v23  ;;  %v9757_v1 = vmul.f32 -1.442695, %v4603_v32  ;;  %v4607_v11 = vadd.f32 %v4606_v19, %v13758_v7  ;;  %v15018_v14 = vpop.eup %11659 }
 0x745   :  { %16755 = vst [vmem:[#allocation165_spill] sm:$0xff] %v14988_v13  ;;  %16757 = vst [vmem:[#allocation167_spill] sm:$0xff] %v15000_v33  ;;  %v6680_v39 = vmul.f32 %v14930_v37, %v5979_v28  ;;  %v4608_v53 = vpop.f32.mrf.mxu0  ;;  %v15015_v46 = vmul.f32 %v15011_v31, %v14879_v55  ;;  %v4875_v57 = vadd.f32 1.0, %v11656_v58  ;;  %v4876_v12 = vadd.f32 1.0, %v11658_v4 }
 0x746   :  { %16758 = vst [vmem:[#allocation168_spill] sm:$0xff] %v15006_v2  ;;  %v4609_v63 = vadd.f32 %v4608_v53, %v13781_v36  ;;  %11675 = vpow2.f32 %v9757_v1  ;;  %v5970_v6 = vrot.slane %v4607_v11, 7  ;;  %v6355_v51 = vrot.slane %v4607_v11, 1  ;;  %v15022_v17 = vpop.eup %11661 }
 0x747   :  { %v15020_v19 = vadd.f32 %v6749_v9, %v6680_v39  ;;  %v4612_v21 = vpop.f32.mrf.mxu0  ;;  %v15026_v32 = vmul.f32 %v15011_v31, %v14925_v27  ;;  %v15029_v50 = vpop.eup %11663  ;;  %11677 = vrcp.f32 %v4874_v16  ;;  %v15032_v28 = vmul.f32 %v15011_v31, %v6365_v60 }
 0x748   :  { %v9758_v55 = vmul.f32 -1.442695, %v4609_v63  ;;  %v4613_v58 = vadd.f32 %v4612_v21, %v13758_v7  ;;  %v5978_v9 = vsel %vm5974_vm0, %v5969_v38, %v5970_v6  ;;  %v6363_v39 = vsel %vm6359_vm1, %v6354_v23, %v6355_v51  ;;  %v11666_v1 = vpop.eup %11665 }
 0x749   :  { %16759 = vst [vmem:[#allocation169_spill] sm:$0xff] %v15020_v19  ;;  %v4614_v4 = vpop.f32.mrf.mxu0  ;;  %v6681_v27 = vmul.f32 %v14930_v37, %v5978_v9  ;;  %v6750_v53 = vmul.f32 %v14966_v18, %v4607_v11  ;;  %v16760_v34 = vand.u32 255, %v13744_v42  ;;  %v6863_v23 = vmul.f32 %v15011_v31, %v14587_v26 }
 0x74a   :  { %11679 = vpow2.f32 %v9758_v55  ;;  %v5971_v63 = vrot.slane %v4613_v58, 7  ;;  %v6356_v21 = vrot.slane %v4613_v58, 1  ;;  %v4615_v16 = vadd.f32 %v4614_v4, %v13781_v36 }
 0x74b   :  { %11681 = vrcp.f32 %v4875_v57  ;;  %v4618_v60 = vpop.f32.mrf.mxu0  ;;  %vm15043_vm4 = vcmp.eq.s32.totalorder %v16760_v34, 0  ;;  %v11668_v2 = vpop.eup %11667  ;;  %v15049_v9 = vadd.f32 %v6750_v53, %v6681_v27  ;;  %v16764_v55 = vand.u32 255, %v14780_v22 }
 0x74c   :  { %11683 = vrcp.f32 %v4876_v12  ;;  %v5977_v11 = vsel %vm5974_vm0, %v5970_v6, %v5971_v63  ;;  %v4619_v57 = vadd.f32 %v4618_v60, %v13758_v7  ;;  %v15062_v34 = vsel %vm6359_vm1, %v6355_v51, %v6356_v21 }
 0x74d   :  { %16763 = vst [vmem:[#allocation170_spill] sm:$0xff] %v15049_v9  ;;  %vm15056_vm5 = vcmp.eq.s32.totalorder %v16764_v55, 255  ;;  %16767 = vst [vmem:[#allocation171_spill] sm:$0xff] %v15062_v34  ;;  %v6682_v26 = vmul.f32 %v14930_v37, %v5977_v11  ;;  %v6751_v12 = vmul.f32 %v14966_v18, %v4613_v58  ;;  %v9759_v27 = vmul.f32 -1.442695, %v4615_v16  ;;  %v4620_v53 = vpop.f32.mrf.mxu0  ;;  %v15066_v9 = vpop.eup %11669 }
 0x74e   :  { %v4877_v6 = vadd.f32 1.0, %v11666_v1  ;;  %v5972_v60 = vrot.slane %v4619_v57, 7  ;;  %v6357_v13 = vrot.slane %v4619_v57, 1  ;;  %v4621_v22 = vadd.f32 %v4620_v53, %v13781_v36 }
 0x74f   :  { %v4878_v55 = vadd.f32 1.0, %v11668_v2  ;;  %v15069_v19 = vadd.f32 %v6751_v12, %v6682_v26  ;;  %v4624_v33 = vpop.f32.mrf.mxu0  ;;  %v6927_v51 = vadd.f32 %v6863_v23, %v14578_v52  ;;  %v6928_v11 = vadd.f32 %v14888_v49, %v14597_v59  ;;  %v11672_v34 = vpop.eup %11671 }
 0x750   :  { %11685 = vpow2.f32 %v9759_v27  ;;  %v5976_v58 = vsel %vm5974_vm0, %v5971_v63, %v5972_v60  ;;  %v15078_v1 = vsel %vm6359_vm1, %v6356_v21, %v6357_v13  ;;  %v9760_v16 = vmul.f32 -1.442695, %v4621_v22  ;;  %v15088_v12 = vpop.eup %11673 }
 0x751   :  { %v15081_v2 = vmul.f32 %v15011_v31, %v6363_v39  ;;  %v6683_v26 = vmul.f32 %v14930_v37, %v5976_v58  ;;  %v6752_v52 = vmul.f32 %v14966_v18, %v4619_v57  ;;  %v4625_v23 = vadd.f32 %v4624_v33, %v13758_v7 }
 0x752   :  { %v4879_v59 = vadd.f32 1.0, %v11672_v34  ;;  %11687 = vpow2.f32 %v9760_v16  ;;  %v6996_v49 = vadd.f32 %v14556_v47, %v6927_v51  ;;  %v6997_v63 = vadd.f32 %v14556_v47, %v6928_v11  ;;  %v16768_v51 = vld [vmem:[#allocation80_spill] sm:$0xff] }
 0x753   :  { %11689 = vrcp.f32 %v4877_v6  ;;  %v15090_v21 = vadd.f32 %v6752_v52, %v6683_v26  ;;  %v5973_v27 = vrot.slane %v4625_v23, 7  ;;  %v6358_v39 = vrot.slane %v4625_v23, 1  ;;  %v11676_v53 = vpop.eup %11675 }
 0x754   :  { %11691 = vrcp.f32 %v4878_v55  ;;  %v6753_v22 = vmul.f32 %v14966_v18, %v4625_v23  ;;  %v15094_v57 = vmul.f32 %v14855_v56, %v6996_v49  ;;  %v15097_v7 = vmul.f32 %v14884_v61, %v6997_v63  ;;  %v15109_v18 = vpop.eup %11677 }
 0x755   :  { %v4880_v33 = vadd.f32 1.0, %v11676_v53  ;;  %v5975_v34 = vsel %vm5974_vm0, %v5972_v60, %v5973_v27  ;;  %v16769_v6 = vrot.slane %v16768_v51, 7  ;;  %v15107_v55 = vsel %vm6359_vm1, %v6357_v13, %v6358_v39 }
 0x756   :  { %11693 = vrcp.f32 %v4879_v59  ;;  %v16770_v61 = vrot.slane %v16768_v51, 1  ;;  %v6684_v58 = vmul.f32 %v14930_v37, %v5975_v34  ;;  %v6865_v52 = vmul.f32 %v15011_v31, %v14640_v44 }
 0x757   :  { %v6038_v11 = vsel %vm5974_vm0, %v5973_v27, %v16769_v6  ;;  %v11680_v16 = vpop.eup %11679  ;;  %11695 = vrcp.f32 %v4880_v33  ;;  %v6930_v42 = vadd.f32 %v14936_v3, %v14655_v41  ;;  %v16771_v27 = vld [vmem:[#allocation118_spill] sm:$0xff]  ;;  %v6932_v44 = vadd.f32 %v14940_v0, %v14705_v43  ;;  %v16772_v3 = vld [vmem:[#allocation123_spill] sm:$0xff] }
 0x758   :  { %v6167_v56 = vsel %vm15043_vm4, 0.0, %v6038_v11  ;;  %v6423_v60 = vsel %vm6359_vm1, %v6358_v39, %v16770_v61  ;;  %v15123_v23 = vpop.eup %11681  ;;  %v4881_v38 = vadd.f32 1.0, %v11680_v16  ;;  %v6817_v59 = vadd.f32 %v6753_v22, %v6684_v58 }
 0x759   :  { %v6615_v26 = vsel %vm15056_vm5, 0.0, %v6423_v60  ;;  %v6621_v13 = vmul.f32 %v14930_v37, %v6167_v56  ;;  %v15128_v63 = vpop.eup %11683  ;;  %v6929_v4 = vadd.f32 %v6865_v52, %v14627_v20  ;;  %v6867_v37 = vmul.f32 %v15011_v31, %v14693_v25 }
 0x75a   :  { %v6886_v49 = vmul.f32 %v15011_v31, %v6615_v26  ;;  %11697 = vrcp.f32 %v4881_v38  ;;  %v6999_v22 = vadd.f32 %v14556_v47, %v6930_v42  ;;  %v6869_v41 = vmul.f32 %v15011_v31, %v14744_v54 }
 0x75b   :  { %v6754_v39 = vadd.f32 %v16771_v27, %v6621_v13  ;;  %v6998_v34 = vadd.f32 %v14556_v47, %v6929_v4  ;;  %v6931_v20 = vadd.f32 %v6867_v37, %v14678_v8  ;;  %v7001_v51 = vadd.f32 %v14556_v47, %v6932_v44  ;;  %v16777_v27 = vld [vmem:[#allocation148_spill] sm:$0xff]  ;;  %v16778_v4 = vld [vmem:[#allocation149_spill] sm:$0xff]  ;;  %v16780_v44 = vld [vmem:[#allocation79_spill] sm:$0xff] }
 0x75c   :  { %v15136_v53 = vadd.f32 %v6886_v49, %v6817_v59  ;;  %v15146_v25 = vmul.f32 %v14896_v62, %v6999_v22  ;;  %v6933_v43 = vadd.f32 %v6869_v41, %v14727_v24  ;;  %v6934_v0 = vadd.f32 %v14949_v45, %v14758_v5  ;;  %v16773_v5 = vld [vmem:[#allocation145_spill] sm:$0xff]  ;;  %v16776_v59 = vld [vmem:[#allocation162_spill] sm:$0xff]  ;;  %v16781_v22 = vld [vmem:[#allocation152_spill] sm:$0xff] }
 0x75d   :  { %v6887_v33 = vadd.f32 %v16772_v3, %v6754_v39  ;;  %v6871_v6 = vmul.f32 %v15011_v31, %v14789_v30  ;;  %v11686_v54 = vpop.eup %11685  ;;  %v15155_v56 = vmul.f32 %v14891_v40, %v6998_v34  ;;  %v7000_v8 = vadd.f32 %v14556_v47, %v6931_v20  ;;  %v16774_v30 = vld [vmem:[#allocation120_spill] sm:$0xff]  ;;  %v16775_v40 = vld [vmem:[#allocation147_spill] sm:$0xff]  ;;  %v16782_v3 = vld [vmem:[#allocation154_spill] sm:$0xff] }
 0x75e   :  { %v15159_v61 = vmul.f32 %v14945_v10, %v7001_v51  ;;  %v4882_v62 = vadd.f32 1.0, %v11686_v54  ;;  %v7002_v24 = vadd.f32 %v14556_v47, %v6933_v43  ;;  %v7003_v60 = vadd.f32 %v14556_v47, %v6934_v0  ;;  %v16783_v34 = vld [vmem:[#allocation156_spill] sm:$0xff]  ;;  %v16784_v43 = vld [vmem:[#allocation94_spill] sm:$0xff] }
 0x75f   :  { %v6956_v11 = vadd.f32 %v14556_v47, %v6887_v33  ;;  %v6935_v45 = vadd.f32 %v6871_v6, %v16773_v5  ;;  %v11688_v58 = vpop.eup %11687  ;;  %v15166_v26 = vmul.f32 %v14912_v35, %v7000_v8  ;;  %v6936_v13 = vadd.f32 %v14971_v29, %v16775_v40  ;;  %v15185_v35 = vld [vmem:[%s16290_s4 + $0x3] ss:$0 sm:$0xff]  ;;  %s12124_s4 = smov [#allocation10]  }
 0x760   :  { %v6873_v10 = vmul.f32 %v15011_v31, %v14824_v15  ;;  %v15172_v52 = vpop.eup %11689  ;;  %11699 = vrcp.f32 %v4882_v62  ;;  %v4883_v38 = vadd.f32 1.0, %v11688_v58  ;;  %v15175_v47 = vmul.f32 %v14952_v48, %v7002_v24  ;;  %v16779_v48 = vld [vmem:[#allocation163_spill] sm:$0xff]  ;;  %v16785_v6 = vld [vmem:[#allocation82_spill] sm:$0xff]  ;;  %s9680_s18 = sshll.u32 %s12124_s4, 4  ;;  %s9681_s18 = int_to_ptr.vmem [resolvable:$true] %s9680_s18 }
 0x761   :  { %v7020_v16 = vmul.f32 %v16774_v30, %v6956_v11  ;;  %v15178_v49 = vmul.f32 %v16776_v59, %v7003_v60  ;;  %v15180_v42 = vpop.eup %11691  ;;  %v7004_v15 = vadd.f32 %v15185_v35, %v6935_v45  ;;  %v7005_v29 = vadd.f32 %v15185_v35, %v6936_v13  ;;  %v16787_v5 = vld [vmem:[#allocation150_spill] sm:$0xff]  ;;  %v16790_v13 = vld [vmem:[#allocation161_spill] sm:$0xff]  ;;  %s12085_s2 = scalar_lea.vmem %s9681_s18, 8192  ;;  %p12090_p7 = scmp.lt.s32.totalorder %s9681_s18, %s9681_s18 }
 0x762   :  { %v6937_v39 = vadd.f32 %v6873_v10, %v16777_v27  ;;  %v6938_v37 = vadd.f32 %v16779_v48, %v16778_v4  ;;  %11701 = vrcp.f32 %v4883_v38  ;;  %v6875_v41 = vmul.f32 %v15011_v31, %v16781_v22  ;;  %v16791_v10 = vld [vmem:[#allocation141_spill] sm:$0xff]  ;;  %v16794_v4 = vld [vmem:[#allocation160_spill] sm:$0xff]  ;;  %p12086_p6 = scmp.ne.s32.totalorder %s9681_s18, %s12085_s2  ;;  %p12091_p8 = scmp.lt.s32.totalorder %s12085_s2, %s12085_s2 }
 0x763   :  { %10873 = vmatprep.mubr.f32.mxu1 %v7020_v16  ;;  %v6940_v33 = vadd.f32 %v15015_v46, %v16782_v3  ;;  %v6877_v20 = vmul.f32 %v15011_v31, %v16783_v34  ;;  %v15199_v51 = vpop.eup %11693  ;;  %v9724_v0 = vmul.f32 -1.442695, %v16784_v43  ;;  %v16786_v54 = vmov 1.0   ;;  %v16789_v16 = vld [vmem:[#allocation159_spill] sm:$0xff]  ;;  %v16792_v38 = vld [vmem:[#allocation81_spill] sm:$0xff] }
 0x764   :  { %10874 = vmatmul.mubr.f32.vlgmr.msra.gmra.mxu1 %v16780_v44  ;;  %v15205_v11 = vmul.f32 %v15018_v14, %v7004_v15  ;;  %v15208_v8 = vmul.f32 %v15022_v17, %v7005_v29  ;;  %v7006_v62 = vadd.f32 %v15185_v35, %v6937_v39  ;;  %v11696_v46 = vpop.eup %11695  ;;  %v6884_v24 = vmul.f32 %v15011_v31, %v15078_v1  ;;  %v16788_v17 = vld [vmem:[#allocation155_spill] sm:$0xff]  ;;  %p12092_p9 = por %p12091_p8, %p12090_p7 }
 0x765   :  { %10876 = vmatprep.mubr.f32.mxu1 %v16785_v6  ;;  %10970 = vmatpush3.msra.mxu1 %v16786_v54  ;;  %v7007_v60 = vadd.f32 %v15185_v35, %v6938_v37  ;;  %v6939_v45 = vadd.f32 %v6875_v41, %v16787_v5  ;;  %v7009_v58 = vadd.f32 %v15185_v35, %v6940_v33  ;;  %11703 = vpow2.f32 %v16791_v10  ;;  %v16795_v37 = vld [vmem:[#allocation164_spill] sm:$0xff]  ;;  %v16796_v44 = vld [vmem:[#allocation167_spill] sm:$0xff]  ;;  %v16797_v41 = vld [vmem:[#allocation169_spill] sm:$0xff] }
 0x766   :  { %10971 = vmatprep.subr.mxu1 %v16786_v54  ;;  %v15219_v14 = vmul.f32 %v15029_v50, %v7006_v62  ;;  %v6941_v30 = vadd.f32 %v6877_v20, %v16788_v17  ;;  %v6942_v40 = vadd.f32 %v15026_v32, %v16789_v16  ;;  %v6879_v1 = vmul.f32 %v15011_v31, %v16790_v13  ;;  %v16793_v32 = vld [vmem:[#allocation84_spill] sm:$0xff]  ;;  %v16798_v20 = vld [vmem:[#allocation171_spill] sm:$0xff]  ;;  %v16801_v62 = vld [vmem:[#allocation165_spill] sm:$0xff]  ;;  %p12093_p10 = pnand %p12092_p9, %p12086_p6 }
 0x767   :  { %10972 = vmatpush3.msra.mxu1 %v16786_v54  ;;  %v15230_v59 = vmul.f32 %v15066_v9, %v7007_v60  ;;  %v7008_v50 = vadd.f32 %v15185_v35, %v6939_v45  ;;  %v15234_v15 = vmul.f32 %v15109_v18, %v7009_v58  ;;  %v11698_v29 = vpop.eup %11697  ;;  %11705 = vpow2.f32 %v9724_v0  ;;  %v16800_v6 = vld [vmem:[#allocation83_spill] sm:$0xff]  ;;  %v16802_v5 = vld [vmem:[#allocation97_spill] sm:$0xff]  ;;  %v16804_v17 = vld [vmem:[#allocation170_spill] sm:$0xff] }
 0x768   :  { %10877 = vmatmul.mubr.f32.gmra.mxu1 %v16792_v38  ;;  %10973 = vmatprep.subr.mxu1 %v16786_v54  ;;  %v7010_v27 = vadd.f32 %v15185_v35, %v6941_v30  ;;  %v7011_v39 = vadd.f32 %v15185_v35, %v6942_v40  ;;  %v6943_v48 = vadd.f32 %v6879_v1, %v16794_v4  ;;  %v16803_v45 = vld [vmem:[#allocation85_spill] sm:$0xff] }
 0x769   :  { %10879 = vmatprep.mubr.f32.mxu1 %v16793_v32  ;;  %10974 = vmatpush3.msra.mxu1 %v16786_v54  ;;  %v15243_v9 = vmul.f32 %v15088_v12, %v7008_v50  ;;  %v6944_v18 = vadd.f32 %v15032_v28, %v16795_v37  ;;  %v6881_v22 = vmul.f32 %v15011_v31, %v16796_v44  ;;  %v16799_v28 = vld [vmem:[#allocation95_spill] sm:$0xff]  ;;  %v16806_v32 = vld [vmem:[#allocation102_spill] sm:$0xff] }
 0x76a   :  { %10975 = vmatprep.subr.mxu1 %v16786_v54  ;;  %v6946_v3 = vadd.f32 %v15081_v2, %v16797_v41  ;;  %v15253_v33 = vmul.f32 %v15123_v23, %v7010_v27  ;;  %v15256_v34 = vmul.f32 %v15128_v63, %v7011_v39  ;;  %v7012_v12 = vadd.f32 %v15185_v35, %v6943_v48  ;;  %v16805_v50 = vld [vmem:[#allocation131_spill] sm:$0xff] }
 0x76b   :  { %10976 = vmatpush3.msra.mxu1 %v16786_v54  ;;  %v6883_v43 = vmul.f32 %v15011_v31, %v16798_v20  ;;  %v9725_v0 = vmul.f32 -1.442695, %v16799_v28  ;;  %v7013_v2 = vadd.f32 %v15185_v35, %v6944_v18  ;;  %v6945_v60 = vadd.f32 %v6881_v22, %v16801_v62  ;;  %v16809_v48 = vld [vmem:[#allocation99_spill] sm:$0xff]  ;;  %v16810_v18 = vld [vmem:[#allocation129_spill] sm:$0xff]  ;;  %v16817_v62 = vld [vmem:[#allocation138_spill] sm:$0xff] }
 0x76c   :  { %10880 = vmatmul.mubr.f32.gmra.mxu1 %v16800_v6  ;;  %10977 = vmatprep.subr.mxu1 %v16786_v54  ;;  %v7015_v23 = vadd.f32 %v15185_v35, %v6946_v3  ;;  %v9726_v63 = vmul.f32 -1.442695, %v16802_v5  ;;  %v15271_v58 = vmul.f32 %v15172_v52, %v7012_v12  ;;  %v6948_v16 = vadd.f32 %v6884_v24, %v15069_v19  ;;  %v16807_v24 = vld [vmem:[#allocation134_spill] sm:$0xff]  ;;  %v16811_v41 = vld [vmem:[#allocation139_spill] sm:$0xff]  ;;  %v16816_v6 = vld [vmem:[#allocation124_spill] sm:$0xff] }
 0x76d   :  { %10882 = vmatprep.mubr.f32.mxu1 %v16803_v45  ;;  %10978 = vmatpush3.msra.mxu1 %v16786_v54  ;;  %v6947_v30 = vadd.f32 %v6883_v43, %v16804_v17  ;;  %v15276_v40 = vmul.f32 %v15180_v42, %v7013_v2  ;;  %v7014_v13 = vadd.f32 %v15185_v35, %v6945_v60  ;;  %v11700_v38 = vpop.eup %11699  ;;  %v4839_v52 = vadd.f32 1.0, %v16805_v50  ;;  %v16819_v5 = vld [vmem:[#allocation87_spill] sm:$0xff] }
 0x76e   :  { %10979 = vmatprep.subr.mxu1 %v16786_v54  ;;  %v15280_v1 = vmul.f32 %v11696_v46, %v7015_v23  ;;  %v6885_v10 = vmul.f32 %v15011_v31, %v15107_v55  ;;  %v4429_v27 = vadd.f32 %v16806_v32, %v13781_v36  ;;  %v7017_v42 = vadd.f32 %v15185_v35, %v6948_v16  ;;  %v16808_v46 = vld [vmem:[#allocation86_spill] sm:$0xff]  ;;  %v16818_v23 = vld [vmem:[#allocation135_spill] sm:$0xff] }
 0x76f   :  { %10980 = vmatpush3.msra.mxu1 %v16786_v54  ;;  %v7016_v19 = vadd.f32 %v15185_v35, %v6947_v30  ;;  %v4840_v39 = vadd.f32 1.0, %v16807_v24  ;;  %11707 = vpow2.f32 %v9725_v0  ;;  %v15293_v4 = vmul.f32 %v15199_v51, %v7014_v13  ;;  %v11702_v55 = vpop.eup %11701  ;;  %v16812_v51 = vld [vmem:[#allocation137_spill] sm:$0xff]  ;;  %v16815_v0 = vld [vmem:[#allocation136_spill] sm:$0xff] }
 0x770   :  { %10883 = vmatmul.mubr.f32.gmra.mxu1 %v16808_v46  ;;  %v6949_v31 = vadd.f32 %v6885_v10, %v15090_v21  ;;  %10981 = vmatprep.subr.mxu1 %v16786_v54  ;;  %11709 = vpow2.f32 %v9726_v63  ;;  %v9727_v37 = vmul.f32 -1.442695, %v16809_v48  ;;  %v15301_v22 = vmul.f32 %v11700_v38, %v7017_v42  ;;  %v16813_v21 = vld [vmem:[#allocation104_spill] sm:$0xff]  ;;  %v16824_v24 = vld [vmem:[#allocation109_spill] sm:$0xff]  ;;  %v16825_v46 = vld [vmem:[#allocation126_spill] sm:$0xff] }
 0x771   :  { %10885 = vmatprep.mubr.f32.mxu1 %v16810_v18  ;;  %v15299_v44 = vmul.f32 %v11698_v29, %v7016_v19  ;;  %10982 = vmatpush3.msra.mxu1 %v16786_v54  ;;  %11711 = vrcp.f32 %v16811_v41  ;;  %v4841_v3 = vadd.f32 1.0, %v16812_v51  ;;  %v4435_v12 = vadd.f32 %v16813_v21, %v13781_v36  ;;  %v16814_v29 = vld [vmem:[#allocation105_spill] sm:$0xff]  ;;  %v16820_v30 = vld [vmem:[#allocation140_spill] sm:$0xff] }
 0x772   :  { %v7018_v20 = vadd.f32 %v15185_v35, %v6949_v31  ;;  %10983 = vmatprep.subr.mxu1 %v16786_v54  ;;  %11713 = vrcp.f32 %v4839_v52  ;;  %v9728_v43 = vmul.f32 -1.442695, %v4429_v27  ;;  %v4441_v28 = vadd.f32 %v16814_v29, %v13781_v36  ;;  %v11704_v17 = vpop.eup %11703  ;;  %v16821_v13 = vld [vmem:[#allocation88_spill] sm:$0xff]  ;;  %v16822_v52 = vld [vmem:[#allocation107_spill] sm:$0xff]  ;;  %v16823_v27 = vld [vmem:[#allocation125_spill] sm:$0xff] }
 0x773   :  { %v7030_v2 = vmul.f32 %v16816_v6, %v16815_v0  ;;  %10984 = vmatpush3.msra.mxu1 %v16786_v54  ;;  %11715 = vrcp.f32 %v4840_v39  ;;  %v4842_v60 = vadd.f32 1.0, %v16817_v62  ;;  %v6967_v63 = vadd.f32 %v15185_v35, %v16819_v5  ;;  %v16828_v41 = vld [vmem:[#allocation144_spill] sm:$0xff]  ;;  %v16832_v6 = vld [vmem:[#allocation113_spill] sm:$0xff]  ;;  %v16834_v5 = vld [vmem:[#allocation90_spill] sm:$0xff] }
 0x774   :  { %10886 = vmatmul.mubr.f32.gmra.mxu1 %v16818_v23  ;;  %v15319_v45 = vmul.f32 %v11702_v55, %v7018_v20  ;;  %10985 = vmatprep.subr.mxu1 %v16786_v54  ;;  %v4843_v16 = vadd.f32 1.0, %v16820_v30  ;;  %11717 = vpow2.f32 %v9727_v37  ;;  %v6968_v10 = vadd.f32 %v15185_v35, %v16821_v13  ;;  %v11706_v38 = vpop.eup %11705  ;;  %v16826_v55 = vld [vmem:[#allocation142_spill] sm:$0xff]  ;;  %v16827_v37 = vld [vmem:[#allocation89_spill] sm:$0xff]  ;;  %v16830_v20 = vld [vmem:[#allocation111_spill] sm:$0xff] }
 0x775   :  { %10888 = vmatprep.mubr.f32.mxu1 %v7030_v2  ;;  %10986 = vmatpush3.msra.mxu1 %v16786_v54  ;;  %11719 = vrcp.f32 %v4841_v3  ;;  %v9729_v50 = vmul.f32 -1.442695, %v4435_v12  ;;  %v4447_v32 = vadd.f32 %v16822_v52, %v13781_v36  ;;  %v7031_v19 = vmul.f32 %v16823_v27, %v6967_v63  ;;  %v16829_v3 = vld [vmem:[#allocation91_spill] sm:$0xff]  ;;  %v16831_v29 = vld [vmem:[#allocation128_spill] sm:$0xff]  ;;  %v16835_v13 = vld [vmem:[#allocation93_spill] sm:$0xff] }
 0x776   :  { %10987 = vmatprep.subr.mxu1 %v16786_v54  ;;  %11721 = vpow2.f32 %v9728_v43  ;;  %v9730_v42 = vmul.f32 -1.442695, %v4441_v28  ;;  %v4453_v39 = vadd.f32 %v16824_v24, %v13781_v36  ;;  %v7032_v31 = vmul.f32 %v16825_v46, %v6968_v10  ;;  %v16833_v62 = vld [vmem:[#allocation132_spill] sm:$0xff]  ;;  %v16837_v27 = vld [vmem:[#allocation133_spill] sm:$0xff] }
 0x777   :  { %10988 = vmatpush3.msra.mxu1 %v16786_v54  ;;  %11723 = vrcp.f32 %v4842_v60  ;;  %v4844_v48 = vadd.f32 1.0, %v16826_v55  ;;  %v6969_v18 = vadd.f32 %v15185_v35, %v16827_v37  ;;  %v4845_v51 = vadd.f32 1.0, %v16828_v41  ;;  %v16839_v46 = vld [vmem:[#allocation101_spill] sm:$0xff]  ;;  %v16840_v37 = vld [vmem:[#allocation96_spill] sm:$0xff] }
 0x778   :  { %10889 = vmatmul.mubr.f32.gmra.mxu1 %v7031_v19  ;;  %10989 = vmatprep.subr.mxu1 %v16786_v54  ;;  %11725 = vrcp.f32 %v4843_v16  ;;  %v6970_v21 = vadd.f32 %v15185_v35, %v16829_v3  ;;  %v9731_v12 = vmul.f32 -1.442695, %v4447_v32  ;;  %v4459_v43 = vadd.f32 %v16830_v20, %v13781_v36  ;;  %v16841_v3 = vld [vmem:[#allocation100_spill] sm:$0xff] }
 0x779   :  { %10891 = vmatprep.mubr.f32.mxu1 %v7032_v31  ;;  %10990 = vmatpush3.msra.mxu1 %v16786_v54  ;;  %11727 = vpow2.f32 %v9729_v50  ;;  %v7033_v28 = vmul.f32 %v16831_v29, %v6969_v18  ;;  %v9732_v0 = vmul.f32 -1.442695, %v4453_v39  ;;  %v4465_v2 = vadd.f32 %v16832_v6, %v13781_v36 }
 0x77a   :  { %10991 = vmatprep.subr.mxu1 %v16786_v54  ;;  %11729 = vpow2.f32 %v9730_v42  ;;  %v7034_v60 = vmul.f32 %v16833_v62, %v6970_v21  ;;  %v4846_v23 = vadd.f32 1.0, %v11704_v17  ;;  %v6971_v63 = vadd.f32 %v15185_v35, %v16834_v5  ;;  %v16836_v17 = vld [vmem:[#allocation115_spill] sm:$0xff] }
 0x77b   :  { %10992 = vmatpush3.msra.mxu1 %v16786_v54  ;;  %11731 = vrcp.f32 %v4844_v48  ;;  %v4847_v16 = vadd.f32 1.0, %v11706_v38  ;;  %v6972_v10 = vadd.f32 %v15185_v35, %v16835_v13  ;;  %v9733_v52 = vmul.f32 -1.442695, %v4459_v43  ;;  %v16838_v38 = vld [vmem:[#allocation117_spill] sm:$0xff]  ;;  %v16842_v43 = vld [vmem:[#allocation119_spill] sm:$0xff] }
 0x77c   :  { %10892 = vmatmul.mubr.f32.gmra.mxu1 %v7033_v28  ;;  %10993 = vmatprep.subr.mxu1 %v16786_v54  ;;  %v11708_v30 = vpop.eup %11707  ;;  %11733 = vrcp.f32 %v4845_v51  ;;  %v4471_v32 = vadd.f32 %v16836_v17, %v13781_v36  ;;  %v7035_v19 = vmul.f32 %v16837_v27, %v6971_v63  ;;  %v9734_v24 = vmul.f32 -1.442695, %v4465_v2  ;;  %v16845_v27 = vld [vmem:[#allocation112_spill] sm:$0xff] }
 0x77d   :  { %10894 = vmatprep.mubr.f32.mxu1 %v7034_v60  ;;  %10994 = vmatpush3.msra.mxu1 %v16786_v54  ;;  %v11710_v50 = vpop.eup %11709  ;;  %11735 = vpow2.f32 %v9731_v12  ;;  %v4477_v39 = vadd.f32 %v16838_v38, %v13781_v36  ;;  %v7036_v31 = vmul.f32 %v16839_v46, %v6972_v10  ;;  %v4848_v48 = vadd.f32 1.0, %v11708_v30  ;;  %v16843_v60 = vld [vmem:[#allocation98_spill] sm:$0xff] }
 0x77e   :  { %10995 = vmatprep.subr.mxu1 %v16786_v54  ;;  %v11712_v42 = vpop.eup %11711  ;;  %11737 = vpow2.f32 %v9732_v0  ;;  %v6973_v18 = vadd.f32 %v15185_v35, %v16840_v37  ;;  %v4849_v51 = vadd.f32 1.0, %v11710_v50  ;;  %v6974_v21 = vadd.f32 %v15185_v35, %v16841_v3  ;;  %v16844_v30 = vld [vmem:[#allocation106_spill] sm:$0xff] }
 0x77f   :  { %10996 = vmatpush3.msra.mxu1 %v16786_v54  ;;  %v11714_v55 = vpop.eup %11713  ;;  %11739 = vrcp.f32 %v4846_v23  ;;  %v9735_v20 = vmul.f32 -1.442695, %v4471_v32  ;;  %v4483_v29 = vadd.f32 %v16842_v43, %v13781_v36  ;;  %v9736_v6 = vmul.f32 -1.442695, %v4477_v39 }
 0x780   :  { %10895 = vmatmul.mubr.f32.gmra.mxu1 %v7035_v19  ;;  %10997 = vmatprep.subr.mxu1 %v16786_v54  ;;  %v11716_v41 = vpop.eup %11715  ;;  %11741 = vrcp.f32 %v4847_v16  ;;  %v7037_v28 = vmul.f32 %v11712_v42, %v6973_v18  ;;  %v7038_v2 = vmul.f32 %v11714_v55, %v6974_v21  ;;  %v6975_v23 = vadd.f32 %v15185_v35, %v16843_v60  ;;  %v16848_v21 = vld [vmem:[#allocation121_spill] sm:$0xff] }
 0x781   :  { %10897 = vmatprep.mubr.f32.mxu1 %v7036_v31  ;;  %10998 = vmatpush3.msra.mxu1 %v16786_v54  ;;  %v11718_v12 = vpop.eup %11717  ;;  %11743 = vpow2.f32 %v9733_v52  ;;  %v6976_v16 = vadd.f32 %v15185_v35, %v16844_v30  ;;  %v9737_v10 = vmul.f32 -1.442695, %v4483_v29  ;;  %v6977_v19 = vadd.f32 %v15185_v35, %v16845_v27  ;;  %v16852_v27 = vld [vmem:[#allocation92_spill] sm:$0xff] }
 0x782   :  { %10999 = vmatprep.subr.mxu1 %v16786_v54  ;;  %v11720_v0 = vpop.eup %11719  ;;  %11745 = vpow2.f32 %v9734_v24  ;;  %v4850_v63 = vadd.f32 1.0, %v11718_v12  ;;  %v7039_v50 = vmul.f32 %v11716_v41, %v6975_v23  ;;  %v16846_v24 = vld [vmem:[#allocation116_spill] sm:$0xff]  ;;  %v16847_v41 = vld [vmem:[#allocation114_spill] sm:$0xff]  ;;  %v6980_v12 = vadd.f32 %v15185_v35, %v16848_v21 }
 0x783   :  { %11000 = vmatpush3.msra.mxu1 %v16786_v54  ;;  %v11722_v62 = vpop.eup %11721  ;;  %11747 = vrcp.f32 %v4848_v48  ;;  %v7040_v54 = vmul.f32 %v11720_v0, %v6976_v16  ;;  %v6978_v38 = vadd.f32 %v15185_v35, %v16846_v24 }
 0x784   :  { %10898 = vmatmul.mubr.f32.gmra.mxu1 %v7037_v28  ;;  %v11724_v5 = vpop.eup %11723  ;;  %11749 = vrcp.f32 %v4849_v51  ;;  %v4851_v17 = vadd.f32 1.0, %v11722_v62  ;;  %v6979_v51 = vadd.f32 %v15185_v35, %v16847_v41  ;;  %v16849_v62 = vld [vmem:[#allocation122_spill] sm:$0xff] }
 0x785   :  { %10900 = vmatprep.mubr.f32.mxu1 %v7038_v2  ;;  %v11726_v13 = vpop.eup %11725  ;;  %11751 = vpow2.f32 %v9735_v20  ;;  %v7041_v31 = vmul.f32 %v11724_v5, %v6977_v19  ;;  %v6981_v60 = vadd.f32 %v15185_v35, %v16849_v62  ;;  %v16850_v5 = vld [vmem:[#allocation127_spill] sm:$0xff]  ;;  %v6984_v19 = vadd.f32 %v15185_v35, %v16852_v27 }
 0x786   :  { %v11728_v52 = vpop.eup %11727  ;;  %11753 = vpow2.f32 %v9736_v6  ;;  %v7042_v37 = vmul.f32 %v11726_v13, %v6978_v38 }
 0x787   :  { %v11730_v32 = vpop.eup %11729  ;;  %11755 = vrcp.f32 %v4850_v63  ;;  %v4852_v46 = vadd.f32 1.0, %v11728_v52  ;;  %v6982_v63 = vadd.f32 %v15185_v35, %v16850_v5 }
 0x788   :  { %10901 = vmatmul.mubr.f32.gmra.mxu1 %v7039_v50  ;;  %v11732_v42 = vpop.eup %11731  ;;  %11757 = vpow2.f32 %v9737_v10  ;;  %v4853_v48 = vadd.f32 1.0, %v11730_v32 }
 0x789   :  { %10903 = vmatprep.mubr.f32.mxu1 %v7040_v54  ;;  %v11734_v39 = vpop.eup %11733  ;;  %11759 = vrcp.f32 %v4851_v17  ;;  %v7043_v29 = vmul.f32 %v11732_v42, %v6979_v51  ;;  %v16851_v54 = vld [vmem:[#allocation130_spill] sm:$0xff] }
 0x78a   :  { %v11736_v55 = vpop.eup %11735  ;;  %11761 = vrcp.f32 %v4852_v46  ;;  %v7044_v6 = vmul.f32 %v11734_v39, %v6980_v12  ;;  %v6983_v32 = vadd.f32 %v15185_v35, %v16851_v54  ;;  %v16860_v54 = vld [vmem:[#allocation158_spill] sm:$0xff] }
 0x78b   :  { %v11738_v18 = vpop.eup %11737  ;;  %v4854_v43 = vadd.f32 1.0, %v11736_v55  ;;  %11763 = vrcp.f32 %v4853_v48  ;;  %v16853_v48 = vld [vmem:[#allocation103_spill] sm:$0xff] }
 0x78c   :  { %10904 = vmatmul.mubr.f32.gmra.mxu1 %v7041_v31  ;;  %v11740_v3 = vpop.eup %11739  ;;  %v4855_v0 = vadd.f32 1.0, %v11738_v18  ;;  %v16854_v18 = vld [vmem:[#allocation143_spill] sm:$0xff] }
 0x78d   :  { %10906 = vmatprep.mubr.f32.mxu1 %v7042_v37  ;;  %v11742_v20 = vpop.eup %11741  ;;  %11765 = vrcp.f32 %v4854_v43  ;;  %v7045_v13 = vmul.f32 %v11740_v3, %v6981_v60  ;;  %v6985_v37 = vadd.f32 %v15185_v35, %v16853_v48  ;;  %v6986_v41 = vadd.f32 %v15185_v35, %v16854_v18  ;;  %v16855_v43 = vld [vmem:[#allocation146_spill] sm:$0xff] }
 0x78e   :  { %v11744_v28 = vpop.eup %11743  ;;  %11767 = vrcp.f32 %v4855_v0  ;;  %v7046_v52 = vmul.f32 %v11742_v20, %v6982_v63  ;;  %v16858_v63 = vld [vmem:[#allocation151_spill] sm:$0xff]  ;;  %v16863_v18 = vld [vmem:[#allocation166_spill] sm:$0xff] }
 0x78f   :  { %v11746_v2 = vpop.eup %11745  ;;  %v4856_v16 = vadd.f32 1.0, %v11744_v28  ;;  %v16856_v28 = vld [vmem:[#allocation108_spill] sm:$0xff] }
 0x790   :  { %10907 = vmatmul.mubr.f32.gmra.mxu1 %v7043_v29  ;;  %v11748_v23 = vpop.eup %11747  ;;  %v4857_v50 = vadd.f32 1.0, %v11746_v2  ;;  %v6987_v29 = vadd.f32 %v15185_v35, %v16855_v43  ;;  %v6988_v0 = vadd.f32 %v15185_v35, %v16856_v28 }
 0x791   :  { %10909 = vmatprep.mubr.f32.mxu1 %v7044_v6  ;;  %v11750_v30 = vpop.eup %11749  ;;  %11769 = vrcp.f32 %v4856_v16  ;;  %v7047_v38 = vmul.f32 %v11748_v23, %v6983_v32  ;;  %v16857_v23 = vld [vmem:[#allocation110_spill] sm:$0xff]  ;;  %v6992_v32 = vadd.f32 %v15185_v35, %v16860_v54 }
 0x792   :  { %v11752_v10 = vpop.eup %11751  ;;  %11771 = vrcp.f32 %v4857_v50  ;;  %v7048_v31 = vmul.f32 %v11750_v30, %v6984_v19  ;;  %v6989_v5 = vadd.f32 %v15185_v35, %v16857_v23  ;;  %v6990_v30 = vadd.f32 %v15185_v35, %v16858_v63  ;;  %v16869_v63 = vld [vmem:[#allocation37_spill] sm:$0xff] }
 0x793   :  { %v11754_v17 = vpop.eup %11753  ;;  %v4858_v24 = vadd.f32 1.0, %v11752_v10 }
 0x794   :  { %10910 = vmatmul.mubr.f32.gmra.mxu1 %v7045_v13  ;;  %v11756_v42 = vpop.eup %11755  ;;  %v4859_v46 = vadd.f32 1.0, %v11754_v17 }
 0x795   :  { %10912 = vmatprep.mubr.f32.mxu1 %v7046_v52  ;;  %v11758_v39 = vpop.eup %11757  ;;  %11773 = vrcp.f32 %v4858_v24  ;;  %v7049_v3 = vmul.f32 %v11756_v42, %v6985_v37  ;;  %v16859_v52 = vld [vmem:[#allocation153_spill] sm:$0xff] }
 0x796   :  { %v11760_v55 = vpop.eup %11759  ;;  %v4860_v51 = vadd.f32 1.0, %v11758_v39  ;;  %11775 = vrcp.f32 %v4859_v46  ;;  %v6991_v17 = vadd.f32 %v15185_v35, %v16859_v52  ;;  %v16862_v46 = vld [vmem:[#allocation168_spill] sm:$0xff] }
 0x797   :  { %v11762_v21 = vpop.eup %11761  ;;  %v7050_v12 = vmul.f32 %v11760_v55, %v6986_v41  ;;  %v6995_v41 = vadd.f32 %v15185_v35, %v16863_v18  ;;  %v16872_v18 = vld [vmem:[#allocation42_spill] sm:$0xff] }
 0x798   :  { %10913 = vmatmul.mubr.f32.gmra.mxu1 %v7047_v38  ;;  %v11764_v20 = vpop.eup %11763  ;;  %11777 = vrcp.f32 %v4860_v51  ;;  %v7051_v6 = vmul.f32 %v11762_v21, %v6987_v29  ;;  %v16861_v38 = vld [vmem:[#allocation157_spill] sm:$0xff] }
 0x799   :  { %10915 = vmatprep.mubr.f32.mxu1 %v7048_v31  ;;  %v7052_v62 = vmul.f32 %v11764_v20, %v6988_v0  ;;  %v6993_v39 = vadd.f32 %v15185_v35, %v16861_v38  ;;  %v6994_v31 = vadd.f32 %v15185_v35, %v16862_v46  ;;  %v11943_v0 = vld [vmem:[#allocation2 + $0x10] sm:$0xff] }
 0x79a   :  { %v11766_v2 = vpop.eup %11765 }
 0x79b   :  { %v11768_v60 = vpop.eup %11767  ;;  %v7053_v16 = vmul.f32 %v11766_v2, %v6989_v5  ;;  %v11944_v2 = vld [vmem:[#allocation2 + $0x18] sm:$0xff] }
 0x79c   :  { %10916 = vmatmul.mubr.f32.gmra.mxu1 %v7049_v3  ;;  %v7054_v10 = vmul.f32 %v11768_v60, %v6990_v30  ;;  %v4626_v3 = vpop.f32.mrf.mxu0  ;;  %v16868_v60 = vld [vmem:[#allocation38_spill] sm:$0xff] }
 0x79d   :  { %10918 = vmatprep.mubr.f32.mxu1 %v7050_v12  ;;  %v4627_v21 = vadd.f32 %v4626_v3, %v13781_v36  ;;  %v16873_v3 = vld [vmem:[#allocation41_spill] sm:$0xff] }
 0x79e   :  { %v11770_v13 = vpop.eup %11769 }
 0x79f   :  { %v11772_v50 = vpop.eup %11771  ;;  %v7055_v27 = vmul.f32 %v11770_v13, %v6991_v17  ;;  %v9761_v12 = vmul.f32 -1.442695, %v4627_v21  ;;  %v11946_v17 = vld [vmem:[#allocation2 + $0x28] sm:$0xff] }
 0x7a0   :  { %10919 = vmatmul.mubr.f32.gmra.mxu1 %v7051_v6  ;;  %v7056_v42 = vmul.f32 %v11772_v50, %v6992_v32  ;;  %v11945_v50 = vld [vmem:[#allocation2 + $0x20] sm:$0xff]  ;;  %v16870_v32 = vld [vmem:[#allocation40_spill] sm:$0xff] }
 0x7a1   :  { %10921 = vmatprep.mubr.f32.mxu1 %v7052_v62  ;;  %11779 = vpow2.f32 %v9761_v12 }
 0x7a2   :  { %v11774_v19 = vpop.eup %11773 }
 0x7a3   :  { %v11776_v24 = vpop.eup %11775  ;;  %v7057_v55 = vmul.f32 %v11774_v19, %v6993_v39 }
 0x7a4   :  { %10922 = vmatmul.mubr.f32.gmra.mxu1 %v7053_v16  ;;  %v7058_v37 = vmul.f32 %v11776_v24, %v6994_v31  ;;  %v11947_v31 = vld [vmem:[#allocation2 + $0x30] sm:$0xff] }
 0x7a5   :  { %10924 = vmatprep.mubr.f32.mxu1 %v7054_v10  ;;  %v11778_v48 = vpop.eup %11777 }
 0x7a6   :  { %v7059_v51 = vmul.f32 %v11778_v48, %v6995_v41  ;;  %v11948_v48 = vld [vmem:[#allocation2 + $0x38] sm:$0xff] }
 0x7a8   :  { %10925 = vmatmul.mubr.f32.gmra.mxu1 %v7055_v27 }
 0x7a9   :  { %10927 = vmatprep.mubr.f32.mxu1 %v7056_v42  ;;  %v16871_v42 = vld [vmem:[#allocation39_spill] sm:$0xff] }
 0x7ac   :  { %10928 = vmatmul.mubr.f32.gmra.mxu1 %v7057_v55 }
 0x7ad   :  { %10930 = vmatprep.mubr.f32.mxu1 %v7058_v37 }
 0x7ae   :  { %v11780_v36 = vpop.eup %11779 }
 0x7b0   :  { %10931 = vmatmul.mubr.f32.gmra.mxu1 %v7059_v51 }
 0x7b1   :  { %10933 = vmatprep.mubr.f32.mxu1 %v15094_v57  ;;  %v4884_v57 = vadd.f32 1.0, %v11780_v36 }
 0x7b3   :  { %11781 = vrcp.f32 %v4884_v57 }
 0x7b4   :  { %10934 = vmatmul.mubr.f32.gmra.mxu1 %v15097_v7 }
 0x7b5   :  { %10936 = vmatprep.mubr.f32.mxu1 %v15155_v56 }
 0x7b8   :  { %10937 = vmatmul.mubr.f32.gmra.mxu1 %v15146_v25  ;;  %v7019_v25 = vadd.f32 %v15185_v35, %v15136_v53 }
 0x7b9   :  { %10939 = vmatprep.mubr.f32.mxu1 %v15166_v26 }
 0x7bc   :  { %10940 = vmatmul.mubr.f32.gmra.mxu1 %v15159_v61  ;;  %v15442_v61 = vld [vmem:[#allocation5 + $0x6] ss:$0 sm:$0xff] }
 0x7bd   :  { %10942 = vmatprep.mubr.f32.mxu1 %v15175_v47 }
 0x7c0   :  { %10943 = vmatmul.mubr.f32.gmra.mxu1 %v15178_v49  ;;  %v11782_v7 = vpop.eup %11781 }
 0x7c1   :  { %10945 = vmatprep.mubr.f32.mxu1 %v15205_v11  ;;  %v7083_v56 = vmul.f32 %v11782_v7, %v7019_v25  ;;  %v11949_v7 = vld [vmem:[#allocation2 + $0x40] sm:$0xff] }
 0x7c4   :  { %10946 = vmatmul.mubr.f32.gmra.mxu1 %v15208_v8  ;;  %v16864_v8 = vld [vmem:[#allocation34_spill] sm:$0xff] }
 0x7c5   :  { %10948 = vmatprep.mubr.f32.mxu1 %v15219_v14 }
 0x7c8   :  { %10949 = vmatmul.mubr.f32.gmra.mxu1 %v15230_v59 }
 0x7c9   :  { %10951 = vmatprep.mubr.f32.mxu1 %v15243_v9 }
 0x7cc   :  { %10952 = vmatmul.mubr.f32.gmra.mxu1 %v15234_v15  ;;  %v16865_v15 = vld [vmem:[#allocation33_spill] sm:$0xff] }
 0x7cd   :  { %10954 = vmatprep.mubr.f32.mxu1 %v15253_v33 }
 0x7d0   :  { %10955 = vmatmul.mubr.f32.gmra.mxu1 %v15256_v34  ;;  %v11941_v34 = vld [vmem:[#allocation2] sm:$0xff] }
 0x7d1   :  { %10957 = vmatprep.mubr.f32.mxu1 %v15271_v58 }
 0x7d4   :  { %10958 = vmatmul.mubr.f32.gmra.mxu1 %v15276_v40  ;;  %v11942_v40 = vld [vmem:[#allocation2 + $0x8] sm:$0xff] }
 0x7d5   :  { %10960 = vmatprep.mubr.f32.mxu1 %v15293_v4  ;;  %v16866_v4 = vld [vmem:[#allocation36_spill] sm:$0xff] }
 0x7d8   :  { %10961 = vmatmul.mubr.f32.gmra.mxu1 %v15280_v1 }
 0x7d9   :  { %10963 = vmatprep.mubr.f32.mxu1 %v15299_v44 }
 0x7dc   :  { %10964 = vmatmul.mubr.f32.gmra.mxu1 %v15301_v22 }
 0x7dd   :  { %10966 = vmatprep.mubr.f32.mxu1 %v15319_v45  ;;  %v16867_v45 = vld [vmem:[#allocation35_spill] sm:$0xff] }
 0x7e0   :  { %10967 = vmatmul.mubr.f32.gmra.mxu1 %v7083_v56  ;;  %v11950_v56 = vld [vmem:[#allocation2 + $0x48] sm:$0xff] }
 0x824   :  { %v10875_v26 = vpop.f32.mrf.mxu1 }
 0x825   :  { %v7176_v47 = vadd.f32 %v10875_v26, %v15442_v61 }
 0x826   :  { %v7170_v49 = vpop.f32.mrf.mxu1 }
 0x827   :  { %v7171_v11 = vadd.f32 %v15442_v61, %v7170_v49  ;;  %v7490_v14 = vadd.f32 %v7176_v47, %v16864_v8  ;;  %v16874_v47 = vld [vmem:[#allocation44_spill] sm:$0xff]  ;;  %v16875_v8 = vld [vmem:[#allocation43_spill] sm:$0xff] }
 0x828   :  { %v10878_v59 = vpop.f32.mrf.mxu1 }
 0x829   :  { %v7489_v9 = vadd.f32 %v7171_v11, %v16865_v15  ;;  %v7186_v33 = vadd.f32 %v10878_v59, %v15442_v61  ;;  %v15452_v1 = vadd.f32 %v11942_v40, %v7490_v14  ;;  %v16876_v40 = vld [vmem:[#allocation46_spill] sm:$0xff] }
 0x82a   :  { %v7180_v53 = vpop.f32.mrf.mxu1 }
 0x82b   :  { %v7181_v35 = vadd.f32 %v15442_v61, %v7180_v53  ;;  %v15450_v58 = vadd.f32 %v11941_v34, %v7489_v9  ;;  %v7492_v44 = vadd.f32 %v7186_v33, %v16866_v4  ;;  %v11951_v33 = vld [vmem:[#allocation2 + $0x50] sm:$0xff] }
 0x82c   :  { %v10881_v22 = vpop.f32.mrf.mxu1 }
 0x82d   :  { %v7491_v20 = vadd.f32 %v7181_v35, %v16867_v45  ;;  %v7196_v43 = vadd.f32 %v10881_v22, %v15442_v61  ;;  %11001 = vmatprep.mubr.f32.mxu1 %v15450_v58  ;;  %v15462_v62 = vadd.f32 %v11944_v2, %v7492_v44  ;;  %v11952_v35 = vld [vmem:[#allocation2 + $0x58] sm:$0xff]  ;;  %v11954_v2 = vld [vmem:[#allocation2 + $0x68] sm:$0xff] }
 0x82e   :  { %v7190_v29 = vpop.f32.mrf.mxu1  ;;  %11002 = vmatmul.mubr.f32.vlgmr.msra.gmra.mxu1 %v15452_v1  ;;  %v16877_v22 = vld [vmem:[#allocation45_spill] sm:$0xff] }
 0x82f   :  { %v7191_v28 = vadd.f32 %v15442_v61, %v7190_v29  ;;  %v15460_v6 = vadd.f32 %v11943_v0, %v7491_v20  ;;  %v7494_v23 = vadd.f32 %v7196_v43, %v16868_v60 }
 0x830   :  { %v10884_v5 = vpop.f32.mrf.mxu1 }
 0x831   :  { %v7493_v30 = vadd.f32 %v7191_v28, %v16869_v63  ;;  %v7206_v16 = vadd.f32 %v10884_v5, %v15442_v61  ;;  %11004 = vmatprep.mubr.f32.mxu1 %v15460_v6  ;;  %v15472_v54 = vadd.f32 %v11946_v17, %v7494_v23  ;;  %v11953_v28 = vld [vmem:[#allocation2 + $0x60] sm:$0xff]  ;;  %v16878_v23 = vld [vmem:[#allocation48_spill] sm:$0xff] }
 0x832   :  { %v7200_v13 = vpop.f32.mrf.mxu1  ;;  %11005 = vmatmul.mubr.f32.gmra.mxu1 %v15462_v62  ;;  %v11955_v17 = vld [vmem:[#allocation2 + $0x70] sm:$0xff] }
 0x833   :  { %v7201_v10 = vadd.f32 %v15442_v61, %v7200_v13  ;;  %v15470_v52 = vadd.f32 %v11945_v50, %v7493_v30  ;;  %v7496_v27 = vadd.f32 %v7206_v16, %v16870_v32  ;;  %v16879_v30 = vld [vmem:[#allocation47_spill] sm:$0xff] }
 0x834   :  { %v10887_v19 = vpop.f32.mrf.mxu1 }
 0x835   :  { %v7495_v24 = vadd.f32 %v7201_v10, %v16871_v42  ;;  %v7216_v38 = vadd.f32 %v10887_v19, %v15442_v61  ;;  %11007 = vmatprep.mubr.f32.mxu1 %v15470_v52  ;;  %v15482_v37 = vadd.f32 %v11948_v48, %v7496_v27  ;;  %v11956_v27 = vld [vmem:[#allocation2 + $0x78] sm:$0xff]  ;;  %v16880_v42 = vld [vmem:[#allocation50_spill] sm:$0xff] }
 0x836   :  { %v7210_v39 = vpop.f32.mrf.mxu1  ;;  %11008 = vmatmul.mubr.f32.gmra.mxu1 %v15472_v54 }
 0x837   :  { %v7211_v46 = vadd.f32 %v15442_v61, %v7210_v39  ;;  %v15480_v55 = vadd.f32 %v11947_v31, %v7495_v24  ;;  %v7498_v41 = vadd.f32 %v7216_v38, %v16872_v18  ;;  %v16881_v39 = vld [vmem:[#allocation49_spill] sm:$0xff] }
 0x838   :  { %v10890_v51 = vpop.f32.mrf.mxu1 }
 0x839   :  { %v7497_v21 = vadd.f32 %v7211_v46, %v16873_v3  ;;  %v7226_v12 = vadd.f32 %v10890_v51, %v15442_v61  ;;  %11010 = vmatprep.mubr.f32.mxu1 %v15480_v55  ;;  %v15492_v26 = vadd.f32 %v11950_v56, %v7498_v41  ;;  %v11957_v41 = vld [vmem:[#allocation2 + $0x80] sm:$0xff]  ;;  %v11958_v3 = vld [vmem:[#allocation2 + $0x88] sm:$0xff] }
 0x83a   :  { %v7220_v36 = vpop.f32.mrf.mxu1  ;;  %11011 = vmatmul.mubr.f32.gmra.mxu1 %v15482_v37 }
 0x83b   :  { %v7221_v57 = vadd.f32 %v15442_v61, %v7220_v36  ;;  %v15490_v25 = vadd.f32 %v11949_v7, %v7497_v21  ;;  %v7500_v49 = vadd.f32 %v7226_v12, %v16874_v47  ;;  %v16882_v12 = vld [vmem:[#allocation52_spill] sm:$0xff]  ;;  %v16883_v7 = vld [vmem:[#allocation51_spill] sm:$0xff] }
 0x83c   :  { %v10893_v11 = vpop.f32.mrf.mxu1 }
 0x83d   :  { %v7499_v14 = vadd.f32 %v7221_v57, %v16875_v8  ;;  %v7236_v59 = vadd.f32 %v10893_v11, %v15442_v61  ;;  %11013 = vmatprep.mubr.f32.mxu1 %v15490_v25  ;;  %v15502_v34 = vadd.f32 %v11952_v35, %v7500_v49  ;;  %v11959_v8 = vld [vmem:[#allocation2 + $0x90] sm:$0xff] }
 0x83e   :  { %v7230_v15 = vpop.f32.mrf.mxu1  ;;  %11014 = vmatmul.mubr.f32.gmra.mxu1 %v15492_v26 }
 0x83f   :  { %v7231_v9 = vadd.f32 %v15442_v61, %v7230_v15  ;;  %v15500_v53 = vadd.f32 %v11951_v33, %v7499_v14  ;;  %v7502_v4 = vadd.f32 %v7236_v59, %v16876_v40  ;;  %v11960_v59 = vld [vmem:[#allocation2 + $0x98] sm:$0xff] }
 0x840   :  { %v10896_v44 = vpop.f32.mrf.mxu1  ;;  %v16885_v40 = vld [vmem:[#allocation53_spill] sm:$0xff] }
 0x841   :  { %v7501_v45 = vadd.f32 %v7231_v9, %v16877_v22  ;;  %v7246_v20 = vadd.f32 %v10896_v44, %v15442_v61  ;;  %11016 = vmatprep.mubr.f32.mxu1 %v15500_v53  ;;  %v15512_v60 = vadd.f32 %v11954_v2, %v7502_v4  ;;  %v16884_v9 = vld [vmem:[#allocation54_spill] sm:$0xff]  ;;  %v16886_v2 = vld [vmem:[#allocation56_spill] sm:$0xff] }
 0x842   :  { %v7240_v43 = vpop.f32.mrf.mxu1  ;;  %11017 = vmatmul.mubr.f32.gmra.mxu1 %v15502_v34 }
 0x843   :  { %v7241_v29 = vadd.f32 %v15442_v61, %v7240_v43  ;;  %v15510_v0 = vadd.f32 %v11953_v28, %v7501_v45  ;;  %v7504_v5 = vadd.f32 %v7246_v20, %v16878_v23  ;;  %v11961_v20 = vld [vmem:[#allocation2 + $0xa0] sm:$0xff] }
 0x844   :  { %v10899_v63 = vpop.f32.mrf.mxu1 }
 0x845   :  { %v7503_v16 = vadd.f32 %v7241_v29, %v16879_v30  ;;  %v7256_v13 = vadd.f32 %v10899_v63, %v15442_v61  ;;  %11019 = vmatprep.mubr.f32.mxu1 %v15510_v0  ;;  %v15522_v19 = vadd.f32 %v11956_v27, %v7504_v5  ;;  %v11962_v29 = vld [vmem:[#allocation2 + $0xa8] sm:$0xff]  ;;  %v11964_v27 = vld [vmem:[#allocation2 + $0xb8] sm:$0xff] }
 0x846   :  { %v7250_v10 = vpop.f32.mrf.mxu1  ;;  %11020 = vmatmul.mubr.f32.gmra.mxu1 %v15512_v60  ;;  %v16887_v63 = vld [vmem:[#allocation55_spill] sm:$0xff] }
 0x847   :  { %v7251_v50 = vadd.f32 %v15442_v61, %v7250_v10  ;;  %v15520_v32 = vadd.f32 %v11955_v17, %v7503_v16  ;;  %v7506_v24 = vadd.f32 %v7256_v13, %v16880_v42 }
 0x848   :  { %v10902_v38 = vpop.f32.mrf.mxu1 }
 0x849   :  { %v7505_v46 = vadd.f32 %v7251_v50, %v16881_v39  ;;  %v7266_v31 = vadd.f32 %v10902_v38, %v15442_v61  ;;  %11022 = vmatprep.mubr.f32.mxu1 %v15520_v32  ;;  %v15532_v21 = vadd.f32 %v11958_v3, %v7506_v24  ;;  %v11963_v50 = vld [vmem:[#allocation2 + $0xb0] sm:$0xff]  ;;  %v16888_v24 = vld [vmem:[#allocation58_spill] sm:$0xff] }
 0x84a   :  { %v7260_v48 = vpop.f32.mrf.mxu1  ;;  %11023 = vmatmul.mubr.f32.gmra.mxu1 %v15522_v19  ;;  %v11965_v3 = vld [vmem:[#allocation2 + $0xc0] sm:$0xff] }
 0x84b   :  { %v7261_v18 = vadd.f32 %v15442_v61, %v7260_v48  ;;  %v15530_v51 = vadd.f32 %v11957_v41, %v7505_v46  ;;  %v7508_v36 = vadd.f32 %v7266_v31, %v16882_v12  ;;  %v16889_v46 = vld [vmem:[#allocation57_spill] sm:$0xff] }
 0x84c   :  { %v10905_v57 = vpop.f32.mrf.mxu1 }
 0x84d   :  { %v7507_v56 = vadd.f32 %v7261_v18, %v16883_v7  ;;  %v7276_v47 = vadd.f32 %v10905_v57, %v15442_v61  ;;  %11025 = vmatprep.mubr.f32.mxu1 %v15530_v51  ;;  %v15542_v15 = vadd.f32 %v11960_v59, %v7508_v36  ;;  %v11966_v36 = vld [vmem:[#allocation2 + $0xc8] sm:$0xff]  ;;  %v16890_v7 = vld [vmem:[#allocation60_spill] sm:$0xff] }
 0x84e   :  { %v7270_v49 = vpop.f32.mrf.mxu1  ;;  %11026 = vmatmul.mubr.f32.gmra.mxu1 %v15532_v21 }
 0x84f   :  { %v7271_v11 = vadd.f32 %v15442_v61, %v7270_v49  ;;  %v15540_v14 = vadd.f32 %v11959_v8, %v7507_v56  ;;  %v7510_v33 = vadd.f32 %v7276_v47, %v16884_v9  ;;  %v16891_v49 = vld [vmem:[#allocation59_spill] sm:$0xff] }
 0x850   :  { %v10908_v35 = vpop.f32.mrf.mxu1 }
 0x851   :  { %v7509_v4 = vadd.f32 %v7271_v11, %v16885_v40  ;;  %v7286_v44 = vadd.f32 %v10908_v35, %v15442_v61  ;;  %11028 = vmatprep.mubr.f32.mxu1 %v15540_v14  ;;  %v15552_v28 = vadd.f32 %v11962_v29, %v7510_v33  ;;  %v11967_v33 = vld [vmem:[#allocation2 + $0xd0] sm:$0xff]  ;;  %v11968_v40 = vld [vmem:[#allocation2 + $0xd8] sm:$0xff] }
 0x852   :  { %v7280_v22 = vpop.f32.mrf.mxu1  ;;  %11029 = vmatmul.mubr.f32.gmra.mxu1 %v15542_v15 }
 0x853   :  { %v7281_v45 = vadd.f32 %v15442_v61, %v7280_v22  ;;  %v15550_v43 = vadd.f32 %v11961_v20, %v7509_v4  ;;  %v7512_v23 = vadd.f32 %v7286_v44, %v16886_v2  ;;  %v16892_v44 = vld [vmem:[#allocation62_spill] sm:$0xff]  ;;  %v16893_v20 = vld [vmem:[#allocation61_spill] sm:$0xff] }
 0x854   :  { %v10911_v5 = vpop.f32.mrf.mxu1 }
 0x855   :  { %v7511_v30 = vadd.f32 %v7281_v45, %v16887_v63  ;;  %v7296_v16 = vadd.f32 %v10911_v5, %v15442_v61  ;;  %11031 = vmatprep.mubr.f32.mxu1 %v15550_v43  ;;  %v15562_v42 = vadd.f32 %v11964_v27, %v7512_v23  ;;  %v11969_v63 = vld [vmem:[#allocation2 + $0xe0] sm:$0xff] }
 0x856   :  { %v7290_v13 = vpop.f32.mrf.mxu1  ;;  %11032 = vmatmul.mubr.f32.gmra.mxu1 %v15552_v28 }
 0x857   :  { %v7291_v10 = vadd.f32 %v15442_v61, %v7290_v13  ;;  %v15560_v17 = vadd.f32 %v11963_v50, %v7511_v30  ;;  %v7514_v38 = vadd.f32 %v7296_v16, %v16888_v24  ;;  %v11970_v16 = vld [vmem:[#allocation2 + $0xe8] sm:$0xff] }
 0x858   :  { %v10914_v39 = vpop.f32.mrf.mxu1  ;;  %v16895_v24 = vld [vmem:[#allocation63_spill] sm:$0xff] }
 0x859   :  { %v7513_v31 = vadd.f32 %v7291_v10, %v16889_v46  ;;  %v7306_v48 = vadd.f32 %v10914_v39, %v15442_v61  ;;  %11034 = vmatprep.mubr.f32.mxu1 %v15560_v17  ;;  %v15572_v57 = vadd.f32 %v11966_v36, %v7514_v38  ;;  %v16894_v10 = vld [vmem:[#allocation64_spill] sm:$0xff]  ;;  %v16896_v36 = vld [vmem:[#allocation66_spill] sm:$0xff] }
 0x85a   :  { %v7300_v18 = vpop.f32.mrf.mxu1  ;;  %11035 = vmatmul.mubr.f32.gmra.mxu1 %v15562_v42 }
 0x85b   :  { %v7301_v41 = vadd.f32 %v15442_v61, %v7300_v18  ;;  %v15570_v12 = vadd.f32 %v11965_v3, %v7513_v31  ;;  %v7516_v56 = vadd.f32 %v7306_v48, %v16890_v7  ;;  %v11971_v48 = vld [vmem:[#allocation2 + $0xf0] sm:$0xff] }
 0x85c   :  { %v10917_v47 = vpop.f32.mrf.mxu1 }
 0x85d   :  { %v7515_v11 = vadd.f32 %v7301_v41, %v16891_v49  ;;  %v7316_v8 = vadd.f32 %v10917_v47, %v15442_v61  ;;  %11037 = vmatprep.mubr.f32.mxu1 %v15570_v12  ;;  %v15582_v4 = vadd.f32 %v11968_v40, %v7516_v56  ;;  %v11972_v41 = vld [vmem:[#allocation2 + $0xf8] sm:$0xff]  ;;  %v11974_v40 = vld [vmem:[#allocation2 + $0x108] sm:$0xff] }
 0x85e   :  { %v7310_v59 = vpop.f32.mrf.mxu1  ;;  %11038 = vmatmul.mubr.f32.gmra.mxu1 %v15572_v57  ;;  %v16897_v47 = vld [vmem:[#allocation65_spill] sm:$0xff] }
 0x85f   :  { %v7311_v9 = vadd.f32 %v15442_v61, %v7310_v59  ;;  %v15580_v35 = vadd.f32 %v11967_v33, %v7515_v11  ;;  %v7518_v22 = vadd.f32 %v7316_v8, %v16892_v44 }
 0x860   :  { %v10920_v45 = vpop.f32.mrf.mxu1 }
 0x861   :  { %v7517_v29 = vadd.f32 %v7311_v9, %v16893_v20  ;;  %v7326_v2 = vadd.f32 %v10920_v45, %v15442_v61  ;;  %11040 = vmatprep.mubr.f32.mxu1 %v15580_v35  ;;  %v15592_v13 = vadd.f32 %v11970_v16, %v7518_v22  ;;  %v11973_v9 = vld [vmem:[#allocation2 + $0x100] sm:$0xff]  ;;  %v16898_v22 = vld [vmem:[#allocation68_spill] sm:$0xff] }
 0x862   :  { %v7320_v23 = vpop.f32.mrf.mxu1  ;;  %11041 = vmatmul.mubr.f32.gmra.mxu1 %v15582_v4  ;;  %v11975_v16 = vld [vmem:[#allocation2 + $0x110] sm:$0xff] }
 0x863   :  { %v7321_v5 = vadd.f32 %v15442_v61, %v7320_v23  ;;  %v15590_v30 = vadd.f32 %v11969_v63, %v7517_v29  ;;  %v7520_v50 = vadd.f32 %v7326_v2, %v16894_v10  ;;  %v16899_v29 = vld [vmem:[#allocation67_spill] sm:$0xff] }
 0x864   :  { %v10923_v27 = vpop.f32.mrf.mxu1 }
 0x865   :  { %v7519_v38 = vadd.f32 %v7321_v5, %v16895_v24  ;;  %v7336_v39 = vadd.f32 %v10923_v27, %v15442_v61  ;;  %11043 = vmatprep.mubr.f32.mxu1 %v15590_v30  ;;  %v15602_v3 = vadd.f32 %v11972_v41, %v7520_v50  ;;  %v11976_v50 = vld [vmem:[#allocation2 + $0x118] sm:$0xff]  ;;  %v16900_v24 = vld [vmem:[#allocation70_spill] sm:$0xff] }
 0x866   :  { %v7330_v46 = vpop.f32.mrf.mxu1  ;;  %11044 = vmatmul.mubr.f32.gmra.mxu1 %v15592_v13 }
 0x867   :  { %v7331_v31 = vadd.f32 %v15442_v61, %v7330_v46  ;;  %v15600_v18 = vadd.f32 %v11971_v48, %v7519_v38  ;;  %v7522_v7 = vadd.f32 %v7336_v39, %v16896_v36  ;;  %v16901_v46 = vld [vmem:[#allocation69_spill] sm:$0xff] }
 0x868   :  { %v10926_v56 = vpop.f32.mrf.mxu1 }
 0x869   :  { %v7521_v49 = vadd.f32 %v7331_v31, %v16897_v47  ;;  %v7346_v11 = vadd.f32 %v10926_v56, %v15442_v61  ;;  %11046 = vmatprep.mubr.f32.mxu1 %v15600_v18  ;;  %v15612_v44 = vadd.f32 %v11974_v40, %v7522_v7  ;;  %v11977_v7 = vld [vmem:[#allocation2 + $0x120] sm:$0xff]  ;;  %v11978_v47 = vld [vmem:[#allocation2 + $0x128] sm:$0xff] }
 0x86a   :  { %v7340_v8 = vpop.f32.mrf.mxu1  ;;  %11047 = vmatmul.mubr.f32.gmra.mxu1 %v15602_v3 }
 0x86b   :  { %v7341_v59 = vadd.f32 %v15442_v61, %v7340_v8  ;;  %v15610_v33 = vadd.f32 %v11973_v9, %v7521_v49  ;;  %v7524_v45 = vadd.f32 %v7346_v11, %v16898_v22  ;;  %v16902_v11 = vld [vmem:[#allocation72_spill] sm:$0xff]  ;;  %v16903_v9 = vld [vmem:[#allocation71_spill] sm:$0xff] }
 0x86c   :  { %v10929_v20 = vpop.f32.mrf.mxu1 }
 0x86d   :  { %v7523_v2 = vadd.f32 %v7341_v59, %v16899_v29  ;;  %v7356_v23 = vadd.f32 %v10929_v20, %v15442_v61  ;;  %11049 = vmatprep.mubr.f32.mxu1 %v15610_v33  ;;  %v15622_v27 = vadd.f32 %v11976_v50, %v7524_v45  ;;  %v11979_v29 = vld [vmem:[#allocation2 + $0x130] sm:$0xff] }
 0x86e   :  { %v7350_v5 = vpop.f32.mrf.mxu1  ;;  %11050 = vmatmul.mubr.f32.gmra.mxu1 %v15612_v44 }
 0x86f   :  { %v7351_v63 = vadd.f32 %v15442_v61, %v7350_v5  ;;  %v15620_v10 = vadd.f32 %v11975_v16, %v7523_v2  ;;  %v7526_v38 = vadd.f32 %v7356_v23, %v16900_v24  ;;  %v11980_v23 = vld [vmem:[#allocation2 + $0x138] sm:$0xff] }
 0x870   :  { %v10932_v39 = vpop.f32.mrf.mxu1  ;;  %v16905_v24 = vld [vmem:[#allocation73_spill] sm:$0xff] }
 0x871   :  { %v7525_v31 = vadd.f32 %v7351_v63, %v16901_v46  ;;  %v7366_v48 = vadd.f32 %v10932_v39, %v15442_v61  ;;  %11052 = vmatprep.mubr.f32.mxu1 %v15620_v10  ;;  %v15632_v49 = vadd.f32 %v11978_v47, %v7526_v38  ;;  %v16904_v63 = vld [vmem:[#allocation74_spill] sm:$0xff]  ;;  %v16906_v47 = vld [vmem:[#allocation76_spill] sm:$0xff] }
 0x872   :  { %v7360_v41 = vpop.f32.mrf.mxu1  ;;  %11053 = vmatmul.mubr.f32.gmra.mxu1 %v15622_v27 }
 0x873   :  { %v7361_v36 = vadd.f32 %v15442_v61, %v7360_v41  ;;  %v15630_v56 = vadd.f32 %v11977_v7, %v7525_v31  ;;  %v7528_v8 = vadd.f32 %v7366_v48, %v16902_v11  ;;  %v11981_v48 = vld [vmem:[#allocation2 + $0x140] sm:$0xff] }
 0x874   :  { %v10935_v59 = vpop.f32.mrf.mxu1 }
 0x875   :  { %v7527_v40 = vadd.f32 %v7361_v36, %v16903_v9  ;;  %v7376_v22 = vadd.f32 %v10935_v59, %v15442_v61  ;;  %11055 = vmatprep.mubr.f32.mxu1 %v15630_v56  ;;  %v15642_v5 = vadd.f32 %v11980_v23, %v7528_v8  ;;  %v11982_v36 = vld [vmem:[#allocation2 + $0x148] sm:$0xff]  ;;  %v11984_v23 = vld [vmem:[#allocation2 + $0x158] sm:$0xff] }
 0x876   :  { %v7370_v45 = vpop.f32.mrf.mxu1  ;;  %11056 = vmatmul.mubr.f32.gmra.mxu1 %v15632_v49  ;;  %v16907_v59 = vld [vmem:[#allocation75_spill] sm:$0xff] }
 0x877   :  { %v7371_v20 = vadd.f32 %v15442_v61, %v7370_v45  ;;  %v15640_v2 = vadd.f32 %v11979_v29, %v7527_v40  ;;  %v7530_v16 = vadd.f32 %v7376_v22, %v16904_v63 }
 0x878   :  { %v10938_v50 = vpop.f32.mrf.mxu1 }
 0x879   :  { %v7529_v38 = vadd.f32 %v7371_v20, %v16905_v24  ;;  %v7386_v39 = vadd.f32 %v10938_v50, %v15442_v61  ;;  %11058 = vmatprep.mubr.f32.mxu1 %v15640_v2  ;;  %v15652_v7 = vadd.f32 %v11982_v36, %v7530_v16  ;;  %v11983_v20 = vld [vmem:[#allocation2 + $0x150] sm:$0xff]  ;;  %v16908_v16 = vld [vmem:[#allocation27_spill] sm:$0xff]  ;;  %v11985_v36 = vld [vmem:[#allocation2 + $0x160] sm:$0xff] }
 0x87a   :  { %v7380_v46 = vpop.f32.mrf.mxu1  ;;  %11059 = vmatmul.mubr.f32.gmra.mxu1 %v15642_v5 }
 0x87b   :  { %v7381_v31 = vadd.f32 %v15442_v61, %v7380_v46  ;;  %v15650_v41 = vadd.f32 %v11981_v48, %v7529_v38  ;;  %v7532_v11 = vadd.f32 %v7386_v39, %v16906_v47  ;;  %v16909_v38 = vld [vmem:[#allocation28_spill] sm:$0xff] }
 0x87c   :  { %v10941_v8 = vpop.f32.mrf.mxu1 }
 0x87d   :  { %v7531_v9 = vadd.f32 %v7381_v31, %v16907_v59  ;;  %v7396_v40 = vadd.f32 %v10941_v8, %v15442_v61  ;;  %11061 = vmatprep.mubr.f32.mxu1 %v15650_v41  ;;  %v15662_v63 = vadd.f32 %v11984_v23, %v7532_v11  ;;  %v11986_v8 = vld [vmem:[#allocation2 + $0x168] sm:$0xff]  ;;  %v16911_v59 = vld [vmem:[#allocation29_spill] sm:$0xff] }
 0x87e   :  { %v7390_v22 = vpop.f32.mrf.mxu1  ;;  %11062 = vmatmul.mubr.f32.gmra.mxu1 %v15652_v7 }
 0x87f   :  { %v7391_v45 = vadd.f32 %v15442_v61, %v7390_v22  ;;  %v15660_v29 = vadd.f32 %v11983_v20, %v7531_v9  ;;  %v7534_v50 = vadd.f32 %v7396_v40, %v16908_v16  ;;  %v16912_v22 = vld [vmem:[#allocation30_spill] sm:$0xff] }
 0x880   :  { %v10944_v24 = vpop.f32.mrf.mxu1 }
 0x881   :  { %v7533_v39 = vadd.f32 %v7391_v45, %v16909_v38  ;;  %v7406_v46 = vadd.f32 %v10944_v24, %v15442_v61  ;;  %11064 = vmatprep.mubr.f32.mxu1 %v15660_v29  ;;  %v15672_v11 = vadd.f32 %v11986_v8, %v7534_v50  ;;  %v11987_v24 = vld [vmem:[#allocation2 + $0x170] sm:$0xff] }
 0x882   :  { %v7400_v31 = vpop.f32.mrf.mxu1  ;;  %11065 = vmatmul.mubr.f32.gmra.mxu1 %v15662_v63  ;;  %v16916_v8 = vld [vmem:[#allocation32_spill] sm:$0xff] }
 0x883   :  { %v7401_v48 = vadd.f32 %v15442_v61, %v7400_v31  ;;  %v15670_v47 = vadd.f32 %v11985_v36, %v7533_v39  ;;  %v7536_v9 = vadd.f32 %v7406_v46, %v16911_v59  ;;  %v11988_v39 = vld [vmem:[#allocation2 + $0x178] sm:$0xff]  ;;  %v16915_v31 = vld [vmem:[#allocation31_spill] sm:$0xff] }
 0x884   :  { %v10947_v40 = vpop.f32.mrf.mxu1 }
 0x885   :  { %16910 = vst [vmem:[#allocation80_spill] sm:$0xff] %v15670_v47  ;;  %v7535_v45 = vadd.f32 %v7401_v48, %v16912_v22  ;;  %v7416_v20 = vadd.f32 %v10947_v40, %v15442_v61  ;;  %11067 = vmatprep.mubr.f32.mxu1 %v15670_v47  ;;  %v15682_v50 = vadd.f32 %v11988_v39, %v7536_v9  ;;  %v16919_v39 = vld [vmem:[#allocation15_spill] sm:$0xff]  ;;  %v16920_v47 = vld [vmem:[#allocation16_spill] sm:$0xff] }
 0x886   :  { %v7410_v23 = vpop.f32.mrf.mxu1  ;;  %11068 = vmatmul.mubr.f32.gmra.mxu1 %v15672_v11 }
 0x887   :  { %v7411_v16 = vadd.f32 %v15442_v61, %v7410_v23  ;;  %v15680_v38 = vadd.f32 %v11987_v24, %v7535_v45  ;;  %16914 = vst [vmem:[#allocation123_spill] sm:$0xff] %v15682_v50  ;;  %v7538_v46 = vadd.f32 %v7416_v20, %v16915_v31  ;;  %v11989_v23 = vld [vmem:[#allocation2 + $0x180] sm:$0xff]  ;;  %v11990_v24 = vld [vmem:[#allocation2 + $0x188] sm:$0xff] }
 0x888   :  { %v10950_v36 = vpop.f32.mrf.mxu1 }
 0x889   :  { %16913 = vst [vmem:[#allocation118_spill] sm:$0xff] %v15680_v38  ;;  %v7537_v48 = vadd.f32 %v7411_v16, %v16916_v8  ;;  %v7426_v59 = vadd.f32 %v10950_v36, %v15442_v61  ;;  %11070 = vmatprep.mubr.f32.mxu1 %v15680_v38  ;;  %v15692_v9 = vadd.f32 %v11990_v24, %v7538_v46  ;;  %v11991_v38 = vld [vmem:[#allocation2 + $0x190] sm:$0xff]  ;;  %v16923_v24 = vld [vmem:[#allocation17_spill] sm:$0xff] }
 0x88a   :  { %v7420_v40 = vpop.f32.mrf.mxu1  ;;  %11071 = vmatmul.mubr.f32.gmra.mxu1 %v15682_v50  ;;  %v16924_v50 = vld [vmem:[#allocation18_spill] sm:$0xff] }
 0x88b   :  { %v7421_v22 = vadd.f32 %v15442_v61, %v7420_v40  ;;  %v15690_v45 = vadd.f32 %v11989_v23, %v7537_v48  ;;  %16918 = vst [vmem:[#allocation120_spill] sm:$0xff] %v15692_v9  ;;  %v7540_v20 = vadd.f32 %v7426_v59, %v16919_v39  ;;  %v11992_v23 = vld [vmem:[#allocation2 + $0x198] sm:$0xff] }
 0x88c   :  { %v10953_v31 = vpop.f32.mrf.mxu1 }
 0x88d   :  { %16917 = vst [vmem:[#allocation145_spill] sm:$0xff] %v15690_v45  ;;  %v7539_v16 = vadd.f32 %v7421_v22, %v16920_v47  ;;  %v7436_v36 = vadd.f32 %v10953_v31, %v15442_v61  ;;  %11073 = vmatprep.mubr.f32.mxu1 %v15690_v45  ;;  %v15702_v46 = vadd.f32 %v11992_v23, %v7540_v20  ;;  %v11993_v45 = vld [vmem:[#allocation2 + $0x1a0] sm:$0xff]  ;;  %v16927_v23 = vld [vmem:[#allocation19_spill] sm:$0xff] }
 0x88e   :  { %v7430_v8 = vpop.f32.mrf.mxu1  ;;  %11074 = vmatmul.mubr.f32.gmra.mxu1 %v15692_v9  ;;  %v16928_v9 = vld [vmem:[#allocation20_spill] sm:$0xff] }
 0x88f   :  { %v7431_v40 = vadd.f32 %v15442_v61, %v7430_v8  ;;  %v15700_v48 = vadd.f32 %v11991_v38, %v7539_v16  ;;  %16922 = vst [vmem:[#allocation162_spill] sm:$0xff] %v15702_v46  ;;  %v7542_v59 = vadd.f32 %v7436_v36, %v16923_v24  ;;  %v11994_v16 = vld [vmem:[#allocation2 + $0x1a8] sm:$0xff] }
 0x890   :  { %v10956_v39 = vpop.f32.mrf.mxu1 }
 0x891   :  { %16921 = vst [vmem:[#allocation147_spill] sm:$0xff] %v15700_v48  ;;  %v7541_v47 = vadd.f32 %v7431_v40, %v16924_v50  ;;  %v7446_v22 = vadd.f32 %v10956_v39, %v15442_v61  ;;  %11076 = vmatprep.mubr.f32.mxu1 %v15700_v48  ;;  %v15712_v20 = vadd.f32 %v11994_v16, %v7542_v59  ;;  %v11995_v48 = vld [vmem:[#allocation2 + $0x1b0] sm:$0xff]  ;;  %v16931_v16 = vld [vmem:[#allocation21_spill] sm:$0xff] }
 0x892   :  { %v7440_v31 = vpop.f32.mrf.mxu1  ;;  %11077 = vmatmul.mubr.f32.gmra.mxu1 %v15702_v46  ;;  %v16932_v46 = vld [vmem:[#allocation22_spill] sm:$0xff] }
 0x893   :  { %v7441_v8 = vadd.f32 %v15442_v61, %v7440_v31  ;;  %v15710_v38 = vadd.f32 %v11993_v45, %v7541_v47  ;;  %16926 = vst [vmem:[#allocation149_spill] sm:$0xff] %v15712_v20  ;;  %v7544_v36 = vadd.f32 %v7446_v22, %v16927_v23  ;;  %v11996_v47 = vld [vmem:[#allocation2 + $0x1b8] sm:$0xff] }
 0x894   :  { %v10959_v24 = vpop.f32.mrf.mxu1 }
 0x895   :  { %16925 = vst [vmem:[#allocation148_spill] sm:$0xff] %v15710_v38  ;;  %v7543_v50 = vadd.f32 %v7441_v8, %v16928_v9  ;;  %v7456_v40 = vadd.f32 %v10959_v24, %v15442_v61  ;;  %11079 = vmatprep.mubr.f32.mxu1 %v15710_v38  ;;  %v15722_v59 = vadd.f32 %v11996_v47, %v7544_v36  ;;  %v11997_v38 = vld [vmem:[#allocation2 + $0x1c0] sm:$0xff]  ;;  %v16935_v47 = vld [vmem:[#allocation23_spill] sm:$0xff] }
 0x896   :  { %v7450_v39 = vpop.f32.mrf.mxu1  ;;  %11080 = vmatmul.mubr.f32.gmra.mxu1 %v15712_v20  ;;  %v16936_v20 = vld [vmem:[#allocation24_spill] sm:$0xff] }
 0x897   :  { %v7451_v31 = vadd.f32 %v15442_v61, %v7450_v39  ;;  %v15720_v45 = vadd.f32 %v11995_v48, %v7543_v50  ;;  %16930 = vst [vmem:[#allocation79_spill] sm:$0xff] %v15722_v59  ;;  %v7546_v22 = vadd.f32 %v7456_v40, %v16931_v16  ;;  %v11998_v50 = vld [vmem:[#allocation2 + $0x1c8] sm:$0xff] }
 0x898   :  { %v10962_v23 = vpop.f32.mrf.mxu1 }
 0x899   :  { %16929 = vst [vmem:[#allocation163_spill] sm:$0xff] %v15720_v45  ;;  %v7545_v9 = vadd.f32 %v7451_v31, %v16932_v46  ;;  %v7466_v8 = vadd.f32 %v10962_v23, %v15442_v61  ;;  %11082 = vmatprep.mubr.f32.mxu1 %v15720_v45  ;;  %v15732_v36 = vadd.f32 %v11998_v50, %v7546_v22  ;;  %v11999_v45 = vld [vmem:[#allocation2 + $0x1d0] sm:$0xff]  ;;  %v16938_v50 = vld [vmem:[#allocation25_spill] sm:$0xff] }
 0x89a   :  { %v7460_v24 = vpop.f32.mrf.mxu1  ;;  %11083 = vmatmul.mubr.f32.gmra.mxu1 %v15722_v59  ;;  %v16939_v59 = vld [vmem:[#allocation26_spill] sm:$0xff] }
 0x89b   :  { %v7461_v39 = vadd.f32 %v15442_v61, %v7460_v24  ;;  %v15730_v48 = vadd.f32 %v11997_v38, %v7545_v9  ;;  %16934 = vst [vmem:[#allocation154_spill] sm:$0xff] %v15732_v36  ;;  %v7548_v40 = vadd.f32 %v7466_v8, %v16935_v47  ;;  %v12000_v9 = vld [vmem:[#allocation2 + $0x1d8] sm:$0xff] }
 0x89c   :  { %v10965_v16 = vpop.f32.mrf.mxu1 }
 0x89d   :  { %16933 = vst [vmem:[#allocation152_spill] sm:$0xff] %v15730_v48  ;;  %v7547_v46 = vadd.f32 %v7461_v39, %v16936_v20  ;;  %v7476_v31 = vadd.f32 %v10965_v16, %v15442_v61  ;;  %11085 = vmatprep.mubr.f32.mxu1 %v15730_v48  ;;  %v15742_v22 = vadd.f32 %v12000_v9, %v7548_v40  ;;  %v12001_v48 = vld [vmem:[#allocation2 + $0x1e0] sm:$0xff] }
 0x89e   :  { %v7470_v23 = vpop.f32.mrf.mxu1  ;;  %11086 = vmatmul.mubr.f32.gmra.mxu1 %v15732_v36  ;;  %v16940_v9 = vld [vmem:[#allocation78_spill] sm:$0xff] }
 0x89f   :  { %v7471_v24 = vadd.f32 %v15442_v61, %v7470_v23  ;;  %v15740_v38 = vadd.f32 %v11999_v45, %v7547_v46  ;;  %v7550_v8 = vadd.f32 %v7476_v31, %v16938_v50  ;;  %v12002_v46 = vld [vmem:[#allocation2 + $0x1e8] sm:$0xff]  ;;  %v16941_v50 = vld [vmem:[#allocation77_spill] sm:$0xff] }
 0x8a0   :  { %v10968_v47 = vpop.f32.mrf.mxu1 }
 0x8a1   :  { %16937 = vst [vmem:[#allocation156_spill] sm:$0xff] %v15740_v38  ;;  %v7549_v20 = vadd.f32 %v7471_v24, %v16939_v59  ;;  %v7486_v39 = vadd.f32 %v10968_v47, %v15442_v61  ;;  %11088 = vmatprep.mubr.f32.mxu1 %v15740_v38  ;;  %v15752_v40 = vadd.f32 %v12002_v46, %v7550_v8  ;;  %v12003_v59 = vld [vmem:[#allocation2 + $0x1f0] sm:$0xff]  ;;  %v12004_v47 = vld [vmem:[#allocation2 + $0x1f8] sm:$0xff] }
 0x8a2   :  { %v7480_v16 = vpop.f32.mrf.mxu1  ;;  %11089 = vmatmul.mubr.f32.gmra.mxu1 %v15742_v22 }
 0x8a3   :  { %v7481_v23 = vadd.f32 %v15442_v61, %v7480_v16  ;;  %v15750_v45 = vadd.f32 %v12001_v48, %v7549_v20  ;;  %v7552_v31 = vadd.f32 %v7486_v39, %v16940_v9 }
 0x8a5   :  { %v7551_v36 = vadd.f32 %v7481_v23, %v16941_v50  ;;  %11091 = vmatprep.mubr.f32.mxu1 %v15750_v45  ;;  %v15760_v38 = vadd.f32 %v12004_v47, %v7552_v31 }
 0x8a6   :  { %11092 = vmatmul.mubr.f32.gmra.mxu1 %v15752_v40 }
 0x8a7   :  { %v15758_v24 = vadd.f32 %v12003_v59, %v7551_v36  ;;  %16943 = vst [vmem:[#allocation82_spill] sm:$0xff] %v15760_v38 }
 0x8a9   :  { %16942 = vst [vmem:[#allocation94_spill] sm:$0xff] %v15758_v24  ;;  %11094 = vmatprep.mubr.f32.mxu1 %v15758_v24 }
 0x8aa   :  { %11095 = vmatmul.mubr.f32.gmra.mxu1 %v15760_v38 }
 0x8ee   :  { %v11003_v61 = vpop.f32.mrf.mxu1 }
 0x8ef   :  { %v8003_v48 = vmul.f32 0.0078125, %v11003_v61 }
 0x8f0   :  { %v7683_v8 = vpop.f32.mrf.mxu1 }
 0x8f1   :  { %v8002_v20 = vmul.f32 0.0078125, %v7683_v8  ;;  %8073 = vperm.xlu1 %11270, %v8003_v48  }
 0x8f2   :  { %v11006_v39 = vpop.f32.mrf.mxu1 }
 0x8f3   :  { %v8005_v16 = vmul.f32 0.0078125, %v11006_v39  ;;  %8068 = vperm.xlu0 %11269, %v8002_v20  }
 0x8f4   :  { %v7693_v23 = vpop.f32.mrf.mxu1 }
 0x8f5   :  { %v8004_v46 = vmul.f32 0.0078125, %v7693_v23  ;;  %8083 = vperm.xlu1 %11270, %v8005_v16  }
 0x8f6   :  { %v11009_v36 = vpop.f32.mrf.mxu1 }
 0x8f7   :  { %v8007_v9 = vmul.f32 0.0078125, %v11009_v36  ;;  %8078 = vperm.xlu0 %11269, %v8004_v46  }
 0x8f8   :  { %v7703_v31 = vpop.f32.mrf.mxu1 }
 0x8f9   :  { %v8006_v50 = vmul.f32 0.0078125, %v7703_v31  ;;  %8093 = vperm.xlu1 %11270, %v8007_v9  }
 0x8fa   :  { %v11012_v59 = vpop.f32.mrf.mxu1 }
 0x8fb   :  { %v8009_v47 = vmul.f32 0.0078125, %v11012_v59  ;;  %8088 = vperm.xlu0 %11269, %v8006_v50  }
 0x8fc   :  { %v7713_v24 = vpop.f32.mrf.mxu1 }
 0x8fd   :  { %v8008_v61 = vmul.f32 0.0078125, %v7713_v24  ;;  %8103 = vperm.xlu1 %11270, %v8009_v47  }
 0x8fe   :  { %v11015_v8 = vpop.f32.mrf.mxu1 }
 0x8ff   :  { %v8011_v48 = vmul.f32 0.0078125, %v11015_v8  ;;  %8098 = vperm.xlu0 %11269, %v8008_v61  }
 0x900   :  { %v7723_v39 = vpop.f32.mrf.mxu1 }
 0x901   :  { %v8010_v20 = vmul.f32 0.0078125, %v7723_v39  ;;  %8113 = vperm.xlu1 %11270, %v8011_v48  }
 0x902   :  { %v11018_v23 = vpop.f32.mrf.mxu1 }
 0x903   :  { %v8013_v16 = vmul.f32 0.0078125, %v11018_v23  ;;  %8108 = vperm.xlu0 %11269, %v8010_v20  }
 0x904   :  { %v7733_v36 = vpop.f32.mrf.mxu1 }
 0x905   :  { %v8012_v46 = vmul.f32 0.0078125, %v7733_v36  ;;  %8123 = vperm.xlu1 %11270, %v8013_v16  }
 0x906   :  { %v11021_v31 = vpop.f32.mrf.mxu1 }
 0x907   :  { %v8015_v9 = vmul.f32 0.0078125, %v11021_v31  ;;  %8118 = vperm.xlu0 %11269, %v8012_v46  }
 0x908   :  { %v7743_v59 = vpop.f32.mrf.mxu1 }
 0x909   :  { %v8014_v50 = vmul.f32 0.0078125, %v7743_v59  ;;  %8133 = vperm.xlu1 %11270, %v8015_v9  }
 0x90a   :  { %v11024_v24 = vpop.f32.mrf.mxu1 }
 0x90b   :  { %v8017_v47 = vmul.f32 0.0078125, %v11024_v24  ;;  %8128 = vperm.xlu0 %11269, %v8014_v50  }
 0x90c   :  { %v7753_v8 = vpop.f32.mrf.mxu1 }
 0x90d   :  { %v8016_v61 = vmul.f32 0.0078125, %v7753_v8  ;;  %8143 = vperm.xlu1 %11270, %v8017_v47  }
 0x90e   :  { %v11027_v39 = vpop.f32.mrf.mxu1 }
 0x90f   :  { %v8019_v48 = vmul.f32 0.0078125, %v11027_v39  ;;  %8138 = vperm.xlu0 %11269, %v8016_v61  }
 0x910   :  { %v7763_v23 = vpop.f32.mrf.mxu1 }
 0x911   :  { %v8018_v20 = vmul.f32 0.0078125, %v7763_v23  ;;  %8153 = vperm.xlu1 %11270, %v8019_v48  }
 0x912   :  { %v11030_v36 = vpop.f32.mrf.mxu1 }
 0x913   :  { %v8021_v16 = vmul.f32 0.0078125, %v11030_v36  ;;  %8148 = vperm.xlu0 %11269, %v8018_v20  }
 0x914   :  { %v7773_v31 = vpop.f32.mrf.mxu1 }
 0x915   :  { %v8020_v46 = vmul.f32 0.0078125, %v7773_v31  ;;  %8163 = vperm.xlu1 %11270, %v8021_v16  }
 0x916   :  { %v11033_v59 = vpop.f32.mrf.mxu1 }
 0x917   :  { %v8023_v9 = vmul.f32 0.0078125, %v11033_v59  ;;  %8158 = vperm.xlu0 %11269, %v8020_v46  }
 0x918   :  { %v7783_v24 = vpop.f32.mrf.mxu1 }
 0x919   :  { %v8022_v50 = vmul.f32 0.0078125, %v7783_v24  ;;  %8173 = vperm.xlu1 %11270, %v8023_v9  }
 0x91a   :  { %v11036_v8 = vpop.f32.mrf.mxu1 }
 0x91b   :  { %v8025_v47 = vmul.f32 0.0078125, %v11036_v8  ;;  %8168 = vperm.xlu0 %11269, %v8022_v50  }
 0x91c   :  { %v7793_v39 = vpop.f32.mrf.mxu1 }
 0x91d   :  { %v8024_v61 = vmul.f32 0.0078125, %v7793_v39  ;;  %8183 = vperm.xlu1 %11270, %v8025_v47  }
 0x91e   :  { %v11039_v23 = vpop.f32.mrf.mxu1 }
 0x91f   :  { %v8027_v48 = vmul.f32 0.0078125, %v11039_v23  ;;  %8178 = vperm.xlu0 %11269, %v8024_v61  }
 0x920   :  { %v7803_v36 = vpop.f32.mrf.mxu1 }
 0x921   :  { %v8026_v20 = vmul.f32 0.0078125, %v7803_v36  ;;  %8193 = vperm.xlu1 %11270, %v8027_v48  }
 0x922   :  { %v11042_v31 = vpop.f32.mrf.mxu1 }
 0x923   :  { %v8029_v16 = vmul.f32 0.0078125, %v11042_v31  ;;  %8188 = vperm.xlu0 %11269, %v8026_v20  }
 0x924   :  { %v7813_v59 = vpop.f32.mrf.mxu1 }
 0x925   :  { %v8028_v46 = vmul.f32 0.0078125, %v7813_v59  ;;  %8203 = vperm.xlu1 %11270, %v8029_v16  }
 0x926   :  { %v11045_v24 = vpop.f32.mrf.mxu1 }
 0x927   :  { %v8031_v9 = vmul.f32 0.0078125, %v11045_v24  ;;  %8198 = vperm.xlu0 %11269, %v8028_v46  }
 0x928   :  { %v7823_v8 = vpop.f32.mrf.mxu1 }
 0x929   :  { %v8030_v50 = vmul.f32 0.0078125, %v7823_v8  ;;  %8213 = vperm.xlu1 %11270, %v8031_v9  }
 0x92a   :  { %v11048_v39 = vpop.f32.mrf.mxu1 }
 0x92b   :  { %v8033_v47 = vmul.f32 0.0078125, %v11048_v39  ;;  %8208 = vperm.xlu0 %11269, %v8030_v50  }
 0x92c   :  { %v7833_v23 = vpop.f32.mrf.mxu1 }
 0x92d   :  { %v8032_v61 = vmul.f32 0.0078125, %v7833_v23  ;;  %8223 = vperm.xlu1 %11270, %v8033_v47  }
 0x92e   :  { %v11051_v36 = vpop.f32.mrf.mxu1 }
 0x92f   :  { %v8035_v48 = vmul.f32 0.0078125, %v11051_v36  ;;  %8218 = vperm.xlu0 %11269, %v8032_v61  }
 0x930   :  { %v7843_v31 = vpop.f32.mrf.mxu1 }
 0x931   :  { %v8034_v20 = vmul.f32 0.0078125, %v7843_v31  ;;  %8233 = vperm.xlu1 %11270, %v8035_v48  }
 0x932   :  { %v11054_v59 = vpop.f32.mrf.mxu1 }
 0x933   :  { %v8037_v16 = vmul.f32 0.0078125, %v11054_v59  ;;  %8228 = vperm.xlu0 %11269, %v8034_v20  }
 0x934   :  { %v7853_v24 = vpop.f32.mrf.mxu1 }
 0x935   :  { %v8036_v46 = vmul.f32 0.0078125, %v7853_v24  ;;  %8243 = vperm.xlu1 %11270, %v8037_v16  }
 0x936   :  { %v11057_v8 = vpop.f32.mrf.mxu1 }
 0x937   :  { %v8039_v9 = vmul.f32 0.0078125, %v11057_v8  ;;  %8238 = vperm.xlu0 %11269, %v8036_v46  }
 0x938   :  { %v7863_v39 = vpop.f32.mrf.mxu1 }
 0x939   :  { %v8038_v50 = vmul.f32 0.0078125, %v7863_v39  ;;  %8253 = vperm.xlu1 %11270, %v8039_v9  }
 0x93a   :  { %v11060_v23 = vpop.f32.mrf.mxu1 }
 0x93b   :  { %v8041_v47 = vmul.f32 0.0078125, %v11060_v23  ;;  %8248 = vperm.xlu0 %11269, %v8038_v50  }
 0x93c   :  { %v7873_v36 = vpop.f32.mrf.mxu1 }
 0x93d   :  { %v8040_v61 = vmul.f32 0.0078125, %v7873_v36  ;;  %8263 = vperm.xlu1 %11270, %v8041_v47  }
 0x93e   :  { %v11063_v31 = vpop.f32.mrf.mxu1 }
 0x93f   :  { %v8043_v48 = vmul.f32 0.0078125, %v11063_v31  ;;  %8258 = vperm.xlu0 %11269, %v8040_v61  }
 0x940   :  { %v7883_v59 = vpop.f32.mrf.mxu1 }
 0x941   :  { %v8042_v20 = vmul.f32 0.0078125, %v7883_v59  ;;  %8273 = vperm.xlu1 %11270, %v8043_v48  }
 0x942   :  { %v11066_v24 = vpop.f32.mrf.mxu1 }
 0x943   :  { %v8045_v16 = vmul.f32 0.0078125, %v11066_v24  ;;  %8268 = vperm.xlu0 %11269, %v8042_v20  }
 0x944   :  { %v7893_v8 = vpop.f32.mrf.mxu1 }
 0x945   :  { %v8044_v46 = vmul.f32 0.0078125, %v7893_v8  ;;  %8283 = vperm.xlu1 %11270, %v8045_v16  }
 0x946   :  { %v11069_v39 = vpop.f32.mrf.mxu1 }
 0x947   :  { %v8047_v9 = vmul.f32 0.0078125, %v11069_v39  ;;  %8278 = vperm.xlu0 %11269, %v8044_v46  }
 0x948   :  { %v7903_v23 = vpop.f32.mrf.mxu1 }
 0x949   :  { %v8046_v50 = vmul.f32 0.0078125, %v7903_v23  ;;  %8293 = vperm.xlu1 %11270, %v8047_v9  }
 0x94a   :  { %v11072_v36 = vpop.f32.mrf.mxu1 }
 0x94b   :  { %v8049_v47 = vmul.f32 0.0078125, %v11072_v36  ;;  %8288 = vperm.xlu0 %11269, %v8046_v50  }
 0x94c   :  { %v7913_v31 = vpop.f32.mrf.mxu1 }
 0x94d   :  { %v8048_v61 = vmul.f32 0.0078125, %v7913_v31  ;;  %8303 = vperm.xlu1 %11270, %v8049_v47  }
 0x94e   :  { %v11075_v59 = vpop.f32.mrf.mxu1 }
 0x94f   :  { %v8051_v48 = vmul.f32 0.0078125, %v11075_v59  ;;  %8298 = vperm.xlu0 %11269, %v8048_v61  }
 0x950   :  { %v7923_v24 = vpop.f32.mrf.mxu1 }
 0x951   :  { %v8050_v20 = vmul.f32 0.0078125, %v7923_v24  ;;  %8313 = vperm.xlu1 %11270, %v8051_v48  }
 0x952   :  { %v11078_v8 = vpop.f32.mrf.mxu1 }
 0x953   :  { %v8053_v16 = vmul.f32 0.0078125, %v11078_v8  ;;  %8308 = vperm.xlu0 %11269, %v8050_v20  }
 0x954   :  { %v7933_v39 = vpop.f32.mrf.mxu1 }
 0x955   :  { %v8052_v46 = vmul.f32 0.0078125, %v7933_v39  ;;  %8323 = vperm.xlu1 %11270, %v8053_v16  }
 0x956   :  { %v11081_v23 = vpop.f32.mrf.mxu1 }
 0x957   :  { %v8055_v9 = vmul.f32 0.0078125, %v11081_v23  ;;  %8318 = vperm.xlu0 %11269, %v8052_v46  }
 0x958   :  { %v7943_v36 = vpop.f32.mrf.mxu1 }
 0x959   :  { %v8054_v50 = vmul.f32 0.0078125, %v7943_v36  ;;  %8333 = vperm.xlu1 %11270, %v8055_v9  }
 0x95a   :  { %v11084_v31 = vpop.f32.mrf.mxu1 }
 0x95b   :  { %v8057_v47 = vmul.f32 0.0078125, %v11084_v31  ;;  %8328 = vperm.xlu0 %11269, %v8054_v50  }
 0x95c   :  { %v7953_v59 = vpop.f32.mrf.mxu1 }
 0x95d   :  { %v8056_v61 = vmul.f32 0.0078125, %v7953_v59  ;;  %8343 = vperm.xlu1 %11270, %v8057_v47  }
 0x95e   :  { %v11087_v24 = vpop.f32.mrf.mxu1 }
 0x95f   :  { %v8059_v48 = vmul.f32 0.0078125, %v11087_v24  ;;  %8338 = vperm.xlu0 %11269, %v8056_v61  }
 0x960   :  { %v7963_v8 = vpop.f32.mrf.mxu1 }
 0x961   :  { %v8058_v20 = vmul.f32 0.0078125, %v7963_v8  ;;  %8353 = vperm.xlu1 %11270, %v8059_v48  }
 0x962   :  { %v11090_v39 = vpop.f32.mrf.mxu1 }
 0x963   :  { %v8061_v16 = vmul.f32 0.0078125, %v11090_v39  ;;  %8348 = vperm.xlu0 %11269, %v8058_v20  }
 0x964   :  { %v7973_v23 = vpop.f32.mrf.mxu1 }
 0x965   :  { %v8060_v46 = vmul.f32 0.0078125, %v7973_v23  ;;  %8363 = vperm.xlu1 %11270, %v8061_v16  }
 0x966   :  { %v11093_v36 = vpop.f32.mrf.mxu1 }
 0x967   :  { %v8063_v9 = vmul.f32 0.0078125, %v11093_v36  ;;  %8358 = vperm.xlu0 %11269, %v8060_v46  }
 0x968   :  { %v7983_v31 = vpop.f32.mrf.mxu1 }
 0x969   :  { %v8062_v50 = vmul.f32 0.0078125, %v7983_v31  ;;  %8373 = vperm.xlu1 %11270, %v8063_v9  }
 0x96a   :  { %v11096_v59 = vpop.f32.mrf.mxu1 }
 0x96b   :  { %v8065_v47 = vmul.f32 0.0078125, %v11096_v59  ;;  %8368 = vperm.xlu0 %11269, %v8062_v50  }
 0x96c   :  { %v8074_v24 = vpop.permute.xlu1 %8073  ;;  %v7993_v61 = vpop.f32.mrf.mxu1 }
 0x96d   :  { %v8064_v38 = vmul.f32 0.0078125, %v7993_v61  ;;  %8383 = vperm.xlu1 %11270, %v8065_v47   ;;  %v15765_v48 = vsub.f32 %v15452_v1, %v8074_v24 }
 0x96e   :  { %v8069_v8 = vpop.permute.xlu0 %8068 }
 0x96f   :  { %v15768_v20 = vsub.f32 %v15450_v58, %v8069_v8  ;;  %8378 = vperm.xlu0 %11269, %v8064_v38   ;;  %v8451_v23 = vmul.f32 %v15765_v48, %v15765_v48 }
 0x970   :  { %v8084_v39 = vpop.permute.xlu1 %8083 }
 0x971   :  { %v8450_v16 = vmul.f32 %v15768_v20, %v15768_v20  ;;  %v15775_v46 = vsub.f32 %v15462_v62, %v8084_v39 }
 0x972   :  { %v8079_v36 = vpop.permute.xlu0 %8078 }
 0x973   :  { %v15778_v9 = vsub.f32 %v15460_v6, %v8079_v36  ;;  %11129 = vmatprep.mubr.f32.mxu0 %v8450_v16  ;;  %v8453_v38 = vmul.f32 %v15775_v46, %v15775_v46 }
 0x974   :  { %11130 = vmatmul.mubr.f32.vlgmr.msra.gmra.mxu0 %v8451_v23  ;;  %v8094_v1 = vpop.permute.xlu1 %8093 }
 0x975   :  { %v8452_v58 = vmul.f32 %v15778_v9, %v15778_v9  ;;  %v15785_v31 = vsub.f32 %v15472_v54, %v8094_v1 }
 0x976   :  { %v8089_v50 = vpop.permute.xlu0 %8088 }
 0x977   :  { %v15788_v62 = vsub.f32 %v15470_v52, %v8089_v50  ;;  %11132 = vmatprep.mubr.f32.mxu0 %v8452_v58  ;;  %v8455_v47 = vmul.f32 %v15785_v31, %v15785_v31 }
 0x978   :  { %11133 = vmatmul.mubr.f32.gmra.mxu0 %v8453_v38  ;;  %v8104_v6 = vpop.permute.xlu1 %8103 }
 0x979   :  { %v8454_v59 = vmul.f32 %v15788_v62, %v15788_v62  ;;  %v15795_v24 = vsub.f32 %v15482_v37, %v8104_v6 }
 0x97a   :  { %v8099_v61 = vpop.permute.xlu0 %8098 }
 0x97b   :  { %v15798_v54 = vsub.f32 %v15480_v55, %v8099_v61  ;;  %11135 = vmatprep.mubr.f32.mxu0 %v8454_v59  ;;  %v8457_v39 = vmul.f32 %v15795_v24, %v15795_v24 }
 0x97c   :  { %11136 = vmatmul.mubr.f32.gmra.mxu0 %v8455_v47  ;;  %v8114_v52 = vpop.permute.xlu1 %8113 }
 0x97d   :  { %v8456_v8 = vmul.f32 %v15798_v54, %v15798_v54  ;;  %v15805_v16 = vsub.f32 %v15492_v26, %v8114_v52 }
 0x97e   :  { %v8109_v23 = vpop.permute.xlu0 %8108 }
 0x97f   :  { %v15808_v37 = vsub.f32 %v15490_v25, %v8109_v23  ;;  %11138 = vmatprep.mubr.f32.mxu0 %v8456_v8  ;;  %v8459_v1 = vmul.f32 %v15805_v16, %v15805_v16 }
 0x980   :  { %11139 = vmatmul.mubr.f32.gmra.mxu0 %v8457_v39  ;;  %v8124_v55 = vpop.permute.xlu1 %8123 }
 0x981   :  { %v8458_v36 = vmul.f32 %v15808_v37, %v15808_v37  ;;  %v15815_v58 = vsub.f32 %v15502_v34, %v8124_v55 }
 0x982   :  { %v8119_v38 = vpop.permute.xlu0 %8118 }
 0x983   :  { %v15818_v26 = vsub.f32 %v15500_v53, %v8119_v38  ;;  %11141 = vmatprep.mubr.f32.mxu0 %v8458_v36  ;;  %v8461_v6 = vmul.f32 %v15815_v58, %v15815_v58 }
 0x984   :  { %11142 = vmatmul.mubr.f32.gmra.mxu0 %v8459_v1  ;;  %v8134_v25 = vpop.permute.xlu1 %8133 }
 0x985   :  { %v8460_v50 = vmul.f32 %v15818_v26, %v15818_v26  ;;  %v15825_v59 = vsub.f32 %v15512_v60, %v8134_v25 }
 0x986   :  { %v8129_v47 = vpop.permute.xlu0 %8128 }
 0x987   :  { %v15828_v34 = vsub.f32 %v15510_v0, %v8129_v47  ;;  %11144 = vmatprep.mubr.f32.mxu0 %v8460_v50  ;;  %v8463_v52 = vmul.f32 %v15825_v59, %v15825_v59 }
 0x988   :  { %11145 = vmatmul.mubr.f32.gmra.mxu0 %v8461_v6  ;;  %v8144_v53 = vpop.permute.xlu1 %8143 }
 0x989   :  { %v8462_v61 = vmul.f32 %v15828_v34, %v15828_v34  ;;  %v15835_v8 = vsub.f32 %v15522_v19, %v8144_v53 }
 0x98a   :  { %v8139_v39 = vpop.permute.xlu0 %8138 }
 0x98b   :  { %v15838_v60 = vsub.f32 %v15520_v32, %v8139_v39  ;;  %11147 = vmatprep.mubr.f32.mxu0 %v8462_v61  ;;  %v8465_v55 = vmul.f32 %v15835_v8, %v15835_v8 }
 0x98c   :  { %11148 = vmatmul.mubr.f32.gmra.mxu0 %v8463_v52  ;;  %v8154_v0 = vpop.permute.xlu1 %8153 }
 0x98d   :  { %v8464_v23 = vmul.f32 %v15838_v60, %v15838_v60  ;;  %v15845_v36 = vsub.f32 %v15532_v21, %v8154_v0 }
 0x98e   :  { %v8149_v1 = vpop.permute.xlu0 %8148 }
 0x98f   :  { %v15848_v19 = vsub.f32 %v15530_v51, %v8149_v1  ;;  %11150 = vmatprep.mubr.f32.mxu0 %v8464_v23  ;;  %v8467_v25 = vmul.f32 %v15845_v36, %v15845_v36 }
 0x990   :  { %11151 = vmatmul.mubr.f32.gmra.mxu0 %v8465_v55  ;;  %v8164_v32 = vpop.permute.xlu1 %8163 }
 0x991   :  { %v8466_v38 = vmul.f32 %v15848_v19, %v15848_v19  ;;  %v15855_v50 = vsub.f32 %v15542_v15, %v8164_v32 }
 0x992   :  { %v8159_v6 = vpop.permute.xlu0 %8158 }
 0x993   :  { %v15858_v21 = vsub.f32 %v15540_v14, %v8159_v6  ;;  %11153 = vmatprep.mubr.f32.mxu0 %v8466_v38  ;;  %v8469_v53 = vmul.f32 %v15855_v50, %v15855_v50 }
 0x994   :  { %11154 = vmatmul.mubr.f32.gmra.mxu0 %v8467_v25  ;;  %v8174_v51 = vpop.permute.xlu1 %8173 }
 0x995   :  { %v8468_v47 = vmul.f32 %v15858_v21, %v15858_v21  ;;  %v15865_v61 = vsub.f32 %v15552_v28, %v8174_v51 }
 0x996   :  { %v8169_v52 = vpop.permute.xlu0 %8168 }
 0x997   :  { %v15868_v15 = vsub.f32 %v15550_v43, %v8169_v52  ;;  %11156 = vmatprep.mubr.f32.mxu0 %v8468_v47  ;;  %v8471_v0 = vmul.f32 %v15865_v61, %v15865_v61 }
 0x998   :  { %11157 = vmatmul.mubr.f32.gmra.mxu0 %v8469_v53  ;;  %v8184_v14 = vpop.permute.xlu1 %8183 }
 0x999   :  { %v8470_v39 = vmul.f32 %v15868_v15, %v15868_v15  ;;  %v15875_v23 = vsub.f32 %v15562_v42, %v8184_v14 }
 0x99a   :  { %v8179_v55 = vpop.permute.xlu0 %8178 }
 0x99b   :  { %v15878_v28 = vsub.f32 %v15560_v17, %v8179_v55  ;;  %11159 = vmatprep.mubr.f32.mxu0 %v8470_v39  ;;  %v8473_v32 = vmul.f32 %v15875_v23, %v15875_v23 }
 0x99c   :  { %11160 = vmatmul.mubr.f32.gmra.mxu0 %v8471_v0  ;;  %v8194_v43 = vpop.permute.xlu1 %8193 }
 0x99d   :  { %v8472_v1 = vmul.f32 %v15878_v28, %v15878_v28  ;;  %v15885_v38 = vsub.f32 %v15572_v57, %v8194_v43 }
 0x99e   :  { %v8189_v25 = vpop.permute.xlu0 %8188 }
 0x99f   :  { %v15888_v42 = vsub.f32 %v15570_v12, %v8189_v25  ;;  %11162 = vmatprep.mubr.f32.mxu0 %v8472_v1  ;;  %v8475_v51 = vmul.f32 %v15885_v38, %v15885_v38 }
 0x9a0   :  { %11163 = vmatmul.mubr.f32.gmra.mxu0 %v8473_v32  ;;  %v8204_v17 = vpop.permute.xlu1 %8203 }
 0x9a1   :  { %v8474_v6 = vmul.f32 %v15888_v42, %v15888_v42  ;;  %v15895_v47 = vsub.f32 %v15582_v4, %v8204_v17 }
 0x9a2   :  { %v8199_v53 = vpop.permute.xlu0 %8198 }
 0x9a3   :  { %v15898_v57 = vsub.f32 %v15580_v35, %v8199_v53  ;;  %11165 = vmatprep.mubr.f32.mxu0 %v8474_v6  ;;  %v8477_v14 = vmul.f32 %v15895_v47, %v15895_v47 }
 0x9a4   :  { %11166 = vmatmul.mubr.f32.gmra.mxu0 %v8475_v51  ;;  %v8214_v12 = vpop.permute.xlu1 %8213 }
 0x9a5   :  { %v8476_v52 = vmul.f32 %v15898_v57, %v15898_v57  ;;  %v15905_v39 = vsub.f32 %v15592_v13, %v8214_v12 }
 0x9a6   :  { %v8209_v0 = vpop.permute.xlu0 %8208 }
 0x9a7   :  { %v15908_v4 = vsub.f32 %v15590_v30, %v8209_v0  ;;  %11168 = vmatprep.mubr.f32.mxu0 %v8476_v52  ;;  %v8479_v43 = vmul.f32 %v15905_v39, %v15905_v39 }
 0x9a8   :  { %11169 = vmatmul.mubr.f32.gmra.mxu0 %v8477_v14  ;;  %v8224_v35 = vpop.permute.xlu1 %8223 }
 0x9a9   :  { %v8478_v55 = vmul.f32 %v15908_v4, %v15908_v4  ;;  %v15915_v1 = vsub.f32 %v15602_v3, %v8224_v35 }
 0x9aa   :  { %v8219_v32 = vpop.permute.xlu0 %8218 }
 0x9ab   :  { %v15918_v13 = vsub.f32 %v15600_v18, %v8219_v32  ;;  %11171 = vmatprep.mubr.f32.mxu0 %v8478_v55  ;;  %v8481_v17 = vmul.f32 %v15915_v1, %v15915_v1 }
 0x9ac   :  { %11172 = vmatmul.mubr.f32.gmra.mxu0 %v8479_v43  ;;  %v8234_v30 = vpop.permute.xlu1 %8233 }
 0x9ad   :  { %v8480_v25 = vmul.f32 %v15918_v13, %v15918_v13  ;;  %v15925_v6 = vsub.f32 %v15612_v44, %v8234_v30 }
 0x9ae   :  { %v8229_v51 = vpop.permute.xlu0 %8228 }
 0x9af   :  { %v15928_v3 = vsub.f32 %v15610_v33, %v8229_v51  ;;  %11174 = vmatprep.mubr.f32.mxu0 %v8480_v25  ;;  %v8483_v12 = vmul.f32 %v15925_v6, %v15925_v6 }
 0x9b0   :  { %11175 = vmatmul.mubr.f32.gmra.mxu0 %v8481_v17  ;;  %v8244_v18 = vpop.permute.xlu1 %8243 }
 0x9b1   :  { %v8482_v53 = vmul.f32 %v15928_v3, %v15928_v3  ;;  %v15935_v52 = vsub.f32 %v15622_v27, %v8244_v18 }
 0x9b2   :  { %v8239_v14 = vpop.permute.xlu0 %8238 }
 0x9b3   :  { %v15938_v44 = vsub.f32 %v15620_v10, %v8239_v14  ;;  %11177 = vmatprep.mubr.f32.mxu0 %v8482_v53  ;;  %v8485_v35 = vmul.f32 %v15935_v52, %v15935_v52 }
 0x9b4   :  { %11178 = vmatmul.mubr.f32.gmra.mxu0 %v8483_v12  ;;  %v8254_v33 = vpop.permute.xlu1 %8253 }
 0x9b5   :  { %v8484_v0 = vmul.f32 %v15938_v44, %v15938_v44  ;;  %v15945_v55 = vsub.f32 %v15632_v49, %v8254_v33 }
 0x9b6   :  { %v8249_v43 = vpop.permute.xlu0 %8248 }
 0x9b7   :  { %v15948_v27 = vsub.f32 %v15630_v56, %v8249_v43  ;;  %11180 = vmatprep.mubr.f32.mxu0 %v8484_v0  ;;  %v8487_v30 = vmul.f32 %v15945_v55, %v15945_v55 }
 0x9b8   :  { %11181 = vmatmul.mubr.f32.gmra.mxu0 %v8485_v35  ;;  %v8264_v10 = vpop.permute.xlu1 %8263 }
 0x9b9   :  { %v8486_v32 = vmul.f32 %v15948_v27, %v15948_v27  ;;  %v15955_v25 = vsub.f32 %v15642_v5, %v8264_v10 }
 0x9ba   :  { %v8259_v17 = vpop.permute.xlu0 %8258 }
 0x9bb   :  { %v15958_v49 = vsub.f32 %v15640_v2, %v8259_v17  ;;  %11183 = vmatprep.mubr.f32.mxu0 %v8486_v32  ;;  %v8489_v18 = vmul.f32 %v15955_v25, %v15955_v25  ;;  %v16944_v17 = vld [vmem:[#allocation80_spill] sm:$0xff] }
 0x9bc   :  { %11184 = vmatmul.mubr.f32.gmra.mxu0 %v8487_v30  ;;  %v8274_v56 = vpop.permute.xlu1 %8273 }
 0x9bd   :  { %v8488_v51 = vmul.f32 %v15958_v49, %v15958_v49  ;;  %v15965_v53 = vsub.f32 %v15652_v7, %v8274_v56 }
 0x9be   :  { %v8269_v12 = vpop.permute.xlu0 %8268 }
 0x9bf   :  { %v15968_v5 = vsub.f32 %v15650_v41, %v8269_v12  ;;  %11186 = vmatprep.mubr.f32.mxu0 %v8488_v51  ;;  %v8491_v33 = vmul.f32 %v15965_v53, %v15965_v53 }
 0x9c0   :  { %11187 = vmatmul.mubr.f32.gmra.mxu0 %v8489_v18  ;;  %v8284_v2 = vpop.permute.xlu1 %8283  ;;  %v16945_v18 = vld [vmem:[#allocation123_spill] sm:$0xff] }
 0x9c1   :  { %v8490_v14 = vmul.f32 %v15968_v5, %v15968_v5  ;;  %v15975_v0 = vsub.f32 %v15662_v63, %v8284_v2 }
 0x9c2   :  { %v8279_v35 = vpop.permute.xlu0 %8278 }
 0x9c3   :  { %v15978_v7 = vsub.f32 %v15660_v29, %v8279_v35  ;;  %11189 = vmatprep.mubr.f32.mxu0 %v8490_v14  ;;  %v8493_v10 = vmul.f32 %v15975_v0, %v15975_v0  ;;  %v16947_v14 = vld [vmem:[#allocation118_spill] sm:$0xff] }
 0x9c4   :  { %11190 = vmatmul.mubr.f32.gmra.mxu0 %v8491_v33  ;;  %v8294_v41 = vpop.permute.xlu1 %8293 }
 0x9c5   :  { %v8492_v43 = vmul.f32 %v15978_v7, %v15978_v7  ;;  %v15985_v32 = vsub.f32 %v15672_v11, %v8294_v41 }
 0x9c6   :  { %v8289_v30 = vpop.permute.xlu0 %8288 }
 0x9c7   :  { %v15988_v63 = vsub.f32 %v16944_v17, %v8289_v30  ;;  %11192 = vmatprep.mubr.f32.mxu0 %v8492_v43  ;;  %v8495_v51 = vmul.f32 %v15985_v32, %v15985_v32  ;;  %v16949_v43 = vld [vmem:[#allocation120_spill] sm:$0xff]  ;;  %v16951_v17 = vld [vmem:[#allocation145_spill] sm:$0xff] }
 0x9c8   :  { %11193 = vmatmul.mubr.f32.gmra.mxu0 %v8493_v10  ;;  %v8304_v29 = vpop.permute.xlu1 %8303 }
 0x9c9   :  { %v8494_v56 = vmul.f32 %v15988_v63, %v15988_v63  ;;  %v15995_v12 = vsub.f32 %v16945_v18, %v8304_v29 }
 0x9ca   :  { %v8299_v2 = vpop.permute.xlu0 %8298 }
 0x9cb   :  { %16946 = vst [vmem:[#allocation150_spill] sm:$0xff] %v15995_v12  ;;  %v15998_v11 = vsub.f32 %v16947_v14, %v8299_v2  ;;  %11195 = vmatprep.mubr.f32.mxu0 %v8494_v56  ;;  %v8497_v41 = vmul.f32 %v15995_v12, %v15995_v12  ;;  %v16953_v2 = vld [vmem:[#allocation162_spill] sm:$0xff]  ;;  %v16955_v12 = vld [vmem:[#allocation147_spill] sm:$0xff] }
 0x9cc   :  { %11196 = vmatmul.mubr.f32.gmra.mxu0 %v8495_v51  ;;  %v8314_v33 = vpop.permute.xlu1 %8313 }
 0x9cd   :  { %16948 = vst [vmem:[#allocation155_spill] sm:$0xff] %v15998_v11  ;;  %v8496_v35 = vmul.f32 %v15998_v11, %v15998_v11  ;;  %v16005_v10 = vsub.f32 %v16949_v43, %v8314_v33 }
 0x9ce   :  { %v8309_v30 = vpop.permute.xlu0 %8308 }
 0x9cf   :  { %16950 = vst [vmem:[#allocation159_spill] sm:$0xff] %v16005_v10  ;;  %v16008_v29 = vsub.f32 %v16951_v17, %v8309_v30  ;;  %11198 = vmatprep.mubr.f32.mxu0 %v8496_v35  ;;  %v8499_v51 = vmul.f32 %v16005_v10, %v16005_v10  ;;  %v16957_v30 = vld [vmem:[#allocation149_spill] sm:$0xff]  ;;  %v16959_v10 = vld [vmem:[#allocation148_spill] sm:$0xff] }
 0x9d0   :  { %11199 = vmatmul.mubr.f32.gmra.mxu0 %v8497_v41  ;;  %v8324_v18 = vpop.permute.xlu1 %8323 }
 0x9d1   :  { %16952 = vst [vmem:[#allocation161_spill] sm:$0xff] %v16008_v29  ;;  %v8498_v56 = vmul.f32 %v16008_v29, %v16008_v29  ;;  %v16015_v14 = vsub.f32 %v16953_v2, %v8324_v18 }
 0x9d2   :  { %v8319_v11 = vpop.permute.xlu0 %8318 }
 0x9d3   :  { %16954 = vst [vmem:[#allocation141_spill] sm:$0xff] %v16015_v14  ;;  %v16018_v33 = vsub.f32 %v16955_v12, %v8319_v11  ;;  %11201 = vmatprep.mubr.f32.mxu0 %v8498_v56  ;;  %v8501_v41 = vmul.f32 %v16015_v14, %v16015_v14  ;;  %v16963_v14 = vld [vmem:[#allocation163_spill] sm:$0xff] }
 0x9d4   :  { %11202 = vmatmul.mubr.f32.gmra.mxu0 %v8499_v51  ;;  %v8334_v43 = vpop.permute.xlu1 %8333  ;;  %v16961_v51 = vld [vmem:[#allocation79_spill] sm:$0xff] }
 0x9d5   :  { %16956 = vst [vmem:[#allocation81_spill] sm:$0xff] %v16018_v33  ;;  %v8500_v35 = vmul.f32 %v16018_v33, %v16018_v33  ;;  %v16025_v17 = vsub.f32 %v16957_v30, %v8334_v43 }
 0x9d6   :  { %v8329_v29 = vpop.permute.xlu0 %8328 }
 0x9d7   :  { %16958 = vst [vmem:[#allocation84_spill] sm:$0xff] %v16025_v17  ;;  %v16028_v18 = vsub.f32 %v16959_v10, %v8329_v29  ;;  %11204 = vmatprep.mubr.f32.mxu0 %v8500_v35  ;;  %v8503_v56 = vmul.f32 %v16025_v17, %v16025_v17  ;;  %v16967_v17 = vld [vmem:[#allocation152_spill] sm:$0xff] }
 0x9d8   :  { %11205 = vmatmul.mubr.f32.gmra.mxu0 %v8501_v41  ;;  %v8344_v12 = vpop.permute.xlu1 %8343  ;;  %v16965_v41 = vld [vmem:[#allocation154_spill] sm:$0xff] }
 0x9d9   :  { %16960 = vst [vmem:[#allocation160_spill] sm:$0xff] %v16028_v18  ;;  %v8502_v11 = vmul.f32 %v16028_v18, %v16028_v18  ;;  %v16035_v2 = vsub.f32 %v16961_v51, %v8344_v12 }
 0x9da   :  { %v8339_v33 = vpop.permute.xlu0 %8338 }
 0x9db   :  { %16962 = vst [vmem:[#allocation164_spill] sm:$0xff] %v16035_v2  ;;  %v16038_v43 = vsub.f32 %v16963_v14, %v8339_v33  ;;  %11207 = vmatprep.mubr.f32.mxu0 %v8502_v11  ;;  %v8505_v35 = vmul.f32 %v16035_v2, %v16035_v2 }
 0x9dc   :  { %11208 = vmatmul.mubr.f32.gmra.mxu0 %v8503_v56  ;;  %v8354_v10 = vpop.permute.xlu1 %8353 }
 0x9dd   :  { %16964 = vst [vmem:[#allocation167_spill] sm:$0xff] %v16038_v43  ;;  %v8504_v29 = vmul.f32 %v16038_v43, %v16038_v43  ;;  %v16045_v30 = vsub.f32 %v16965_v41, %v8354_v10  ;;  %v16970_v43 = vld [vmem:[#allocation156_spill] sm:$0xff] }
 0x9de   :  { %v8349_v18 = vpop.permute.xlu0 %8348 }
 0x9df   :  { %16966 = vst [vmem:[#allocation169_spill] sm:$0xff] %v16045_v30  ;;  %v16048_v12 = vsub.f32 %v16967_v17, %v8349_v18  ;;  %11210 = vmatprep.mubr.f32.mxu0 %v8504_v29  ;;  %v8507_v11 = vmul.f32 %v16045_v30, %v16045_v30 }
 0x9e0   :  { %11211 = vmatmul.mubr.f32.gmra.mxu0 %v8505_v35  ;;  %v8364_v14 = vpop.permute.xlu1 %8363 }
 0x9e1   :  { %16968 = vst [vmem:[#allocation171_spill] sm:$0xff] %v16048_v12  ;;  %v8506_v33 = vmul.f32 %v16048_v12, %v16048_v12  ;;  %v16055_v56 = vsub.f32 %v15742_v22, %v8364_v14 }
 0x9e2   :  { %v8359_v51 = vpop.permute.xlu0 %8358 }
 0x9e3   :  { %16969 = vst [vmem:[#allocation95_spill] sm:$0xff] %v16055_v56  ;;  %v16058_v10 = vsub.f32 %v16970_v43, %v8359_v51  ;;  %11213 = vmatprep.mubr.f32.mxu0 %v8506_v33  ;;  %v8509_v29 = vmul.f32 %v16055_v56, %v16055_v56  ;;  %v16976_v56 = vld [vmem:[#allocation94_spill] sm:$0xff] }
 0x9e4   :  { %11214 = vmatmul.mubr.f32.gmra.mxu0 %v8507_v11  ;;  %v8374_v17 = vpop.permute.xlu1 %8373  ;;  %v16974_v11 = vld [vmem:[#allocation82_spill] sm:$0xff] }
 0x9e5   :  { %16971 = vst [vmem:[#allocation83_spill] sm:$0xff] %v16058_v10  ;;  %v8508_v18 = vmul.f32 %v16058_v10, %v16058_v10  ;;  %v16065_v35 = vsub.f32 %v15752_v40, %v8374_v17 }
 0x9e6   :  { %v8369_v41 = vpop.permute.xlu0 %8368 }
 0x9e7   :  { %16972 = vst [vmem:[#allocation165_spill] sm:$0xff] %v16065_v35  ;;  %v16068_v22 = vsub.f32 %v15750_v45, %v8369_v41  ;;  %11216 = vmatprep.mubr.f32.mxu0 %v8508_v18  ;;  %v8511_v33 = vmul.f32 %v16065_v35, %v16065_v35 }
 0x9e8   :  { %11217 = vmatmul.mubr.f32.gmra.mxu0 %v8509_v29  ;;  %v8384_v43 = vpop.permute.xlu1 %8383 }
 0x9e9   :  { %16973 = vst [vmem:[#allocation97_spill] sm:$0xff] %v16068_v22  ;;  %v8510_v14 = vmul.f32 %v16068_v22, %v16068_v22  ;;  %v16075_v51 = vsub.f32 %v16974_v11, %v8384_v43 }
 0x9ea   :  { %v8379_v10 = vpop.permute.xlu0 %8378 }
 0x9eb   :  { %16975 = vst [vmem:[#allocation85_spill] sm:$0xff] %v16075_v51  ;;  %v16078_v40 = vsub.f32 %v16976_v56, %v8379_v10  ;;  %11219 = vmatprep.mubr.f32.mxu0 %v8510_v14  ;;  %v8513_v17 = vmul.f32 %v16075_v51, %v16075_v51 }
 0x9ec   :  { %11220 = vmatmul.mubr.f32.gmra.mxu0 %v8511_v33 }
 0x9ed   :  { %16977 = vst [vmem:[#allocation170_spill] sm:$0xff] %v16078_v40  ;;  %v8512_v45 = vmul.f32 %v16078_v40, %v16078_v40 }
 0x9ef   :  { %11222 = vmatprep.mubr.f32.mxu0 %v8512_v45 }
 0x9f0   :  { %11223 = vmatmul.mubr.f32.gmra.mxu0 %v8513_v17 }
 0xa34   :  { %v11131_v18 = vpop.f32.mrf.mxu0 }
 0xa35   :  { %v8900_v29 = vmul.f32 0.0078125, %v11131_v18 }
 0xa36   :  { %v8580_v41 = vpop.f32.mrf.mxu0 }
 0xa37   :  { %v8964_v22 = vadd.f32 1e-05, %v8900_v29  ;;  %v8899_v43 = vmul.f32 0.0078125, %v8580_v41 }
 0xa38   :  { %v11134_v11 = vpop.f32.mrf.mxu0 }
 0xa39   :  { %11783 = vrsqrt.f32 %v8964_v22  ;;  %v8963_v35 = vadd.f32 1e-05, %v8899_v43  ;;  %v8902_v56 = vmul.f32 0.0078125, %v11134_v11 }
 0xa3a   :  { %v8590_v10 = vpop.f32.mrf.mxu0 }
 0xa3b   :  { %11785 = vrsqrt.f32 %v8963_v35  ;;  %v8966_v14 = vadd.f32 1e-05, %v8902_v56  ;;  %v8901_v33 = vmul.f32 0.0078125, %v8590_v10 }
 0xa3c   :  { %v11137_v12 = vpop.f32.mrf.mxu0 }
 0xa3d   :  { %11787 = vrsqrt.f32 %v8966_v14  ;;  %v8965_v40 = vadd.f32 1e-05, %v8901_v33  ;;  %v8904_v30 = vmul.f32 0.0078125, %v11137_v12 }
 0xa3e   :  { %v8600_v51 = vpop.f32.mrf.mxu0 }
 0xa3f   :  { %11789 = vrsqrt.f32 %v8965_v40  ;;  %v8968_v45 = vadd.f32 1e-05, %v8904_v30  ;;  %v8903_v17 = vmul.f32 0.0078125, %v8600_v51 }
 0xa40   :  { %v11140_v18 = vpop.f32.mrf.mxu0 }
 0xa41   :  { %11791 = vrsqrt.f32 %v8968_v45  ;;  %v8967_v29 = vadd.f32 1e-05, %v8903_v17  ;;  %v8906_v41 = vmul.f32 0.0078125, %v11140_v18 }
 0xa42   :  { %v8610_v2 = vpop.f32.mrf.mxu0 }
 0xa43   :  { %11793 = vrsqrt.f32 %v8967_v29  ;;  %v8970_v22 = vadd.f32 1e-05, %v8906_v41  ;;  %v8905_v43 = vmul.f32 0.0078125, %v8610_v2 }
 0xa44   :  { %v11143_v11 = vpop.f32.mrf.mxu0 }
 0xa45   :  { %11795 = vrsqrt.f32 %v8970_v22  ;;  %v8969_v35 = vadd.f32 1e-05, %v8905_v43  ;;  %v8908_v56 = vmul.f32 0.0078125, %v11143_v11 }
 0xa46   :  { %v11784_v10 = vpop.eup %11783  ;;  %v8620_v14 = vpop.f32.mrf.mxu0 }
 0xa47   :  { %11797 = vrsqrt.f32 %v8969_v35  ;;  %v8972_v12 = vadd.f32 1e-05, %v8908_v56  ;;  %v8907_v33 = vmul.f32 0.0078125, %v8620_v14  ;;  %9098 = vperm.xlu1 %11270, %v11784_v10  }
 0xa48   :  { %v11786_v30 = vpop.eup %11785  ;;  %v11146_v51 = vpop.f32.mrf.mxu0 }
 0xa49   :  { %11799 = vrsqrt.f32 %v8972_v12  ;;  %v8971_v40 = vadd.f32 1e-05, %v8907_v33  ;;  %v8910_v45 = vmul.f32 0.0078125, %v11146_v51  ;;  %9093 = vperm.xlu0 %11269, %v11786_v30  }
 0xa4a   :  { %v11788_v17 = vpop.eup %11787  ;;  %v8630_v18 = vpop.f32.mrf.mxu0 }
 0xa4b   :  { %11801 = vrsqrt.f32 %v8971_v40  ;;  %v8974_v2 = vadd.f32 1e-05, %v8910_v45  ;;  %v8909_v29 = vmul.f32 0.0078125, %v8630_v18  ;;  %9108 = vperm.xlu1 %11270, %v11788_v17  }
 0xa4c   :  { %v11790_v41 = vpop.eup %11789  ;;  %v11149_v22 = vpop.f32.mrf.mxu0 }
 0xa4d   :  { %11803 = vrsqrt.f32 %v8974_v2  ;;  %v8973_v43 = vadd.f32 1e-05, %v8909_v29  ;;  %v8912_v11 = vmul.f32 0.0078125, %v11149_v22  ;;  %9103 = vperm.xlu0 %11269, %v11790_v41  }
 0xa4e   :  { %v11792_v35 = vpop.eup %11791  ;;  %v8640_v56 = vpop.f32.mrf.mxu0 }
 0xa4f   :  { %11805 = vrsqrt.f32 %v8973_v43  ;;  %v8976_v10 = vadd.f32 1e-05, %v8912_v11  ;;  %v8911_v14 = vmul.f32 0.0078125, %v8640_v56  ;;  %9118 = vperm.xlu1 %11270, %v11792_v35  }
 0xa50   :  { %v11794_v12 = vpop.eup %11793  ;;  %v11152_v33 = vpop.f32.mrf.mxu0 }
 0xa51   :  { %11807 = vrsqrt.f32 %v8976_v10  ;;  %v8975_v30 = vadd.f32 1e-05, %v8911_v14  ;;  %v8914_v51 = vmul.f32 0.0078125, %v11152_v33  ;;  %9113 = vperm.xlu0 %11269, %v11794_v12  }
 0xa52   :  { %v11796_v40 = vpop.eup %11795  ;;  %v8650_v45 = vpop.f32.mrf.mxu0 }
 0xa53   :  { %11809 = vrsqrt.f32 %v8975_v30  ;;  %v8978_v17 = vadd.f32 1e-05, %v8914_v51  ;;  %v8913_v18 = vmul.f32 0.0078125, %v8650_v45  ;;  %9128 = vperm.xlu1 %11270, %v11796_v40  }
 0xa54   :  { %v11798_v2 = vpop.eup %11797  ;;  %v11155_v29 = vpop.f32.mrf.mxu0 }
 0xa55   :  { %11811 = vrsqrt.f32 %v8978_v17  ;;  %v8977_v41 = vadd.f32 1e-05, %v8913_v18  ;;  %v8916_v22 = vmul.f32 0.0078125, %v11155_v29  ;;  %9123 = vperm.xlu0 %11269, %v11798_v2  }
 0xa56   :  { %v11800_v43 = vpop.eup %11799  ;;  %v8660_v11 = vpop.f32.mrf.mxu0 }
 0xa57   :  { %11813 = vrsqrt.f32 %v8977_v41  ;;  %v8980_v35 = vadd.f32 1e-05, %v8916_v22  ;;  %v8915_v56 = vmul.f32 0.0078125, %v8660_v11  ;;  %9138 = vperm.xlu1 %11270, %v11800_v43  }
 0xa58   :  { %v11802_v10 = vpop.eup %11801  ;;  %v11158_v14 = vpop.f32.mrf.mxu0 }
 0xa59   :  { %11815 = vrsqrt.f32 %v8980_v35  ;;  %v8979_v12 = vadd.f32 1e-05, %v8915_v56  ;;  %v8918_v33 = vmul.f32 0.0078125, %v11158_v14  ;;  %9133 = vperm.xlu0 %11269, %v11802_v10  }
 0xa5a   :  { %v11804_v30 = vpop.eup %11803  ;;  %v8670_v51 = vpop.f32.mrf.mxu0 }
 0xa5b   :  { %11817 = vrsqrt.f32 %v8979_v12  ;;  %v8982_v40 = vadd.f32 1e-05, %v8918_v33  ;;  %v8917_v45 = vmul.f32 0.0078125, %v8670_v51  ;;  %9148 = vperm.xlu1 %11270, %v11804_v30  }
 0xa5c   :  { %v11806_v17 = vpop.eup %11805  ;;  %v11161_v18 = vpop.f32.mrf.mxu0 }
 0xa5d   :  { %11819 = vrsqrt.f32 %v8982_v40  ;;  %v8981_v2 = vadd.f32 1e-05, %v8917_v45  ;;  %v8920_v29 = vmul.f32 0.0078125, %v11161_v18  ;;  %9143 = vperm.xlu0 %11269, %v11806_v17  }
 0xa5e   :  { %v11808_v41 = vpop.eup %11807  ;;  %v8680_v22 = vpop.f32.mrf.mxu0 }
 0xa5f   :  { %11821 = vrsqrt.f32 %v8981_v2  ;;  %v8984_v43 = vadd.f32 1e-05, %v8920_v29  ;;  %v8919_v11 = vmul.f32 0.0078125, %v8680_v22  ;;  %9158 = vperm.xlu1 %11270, %v11808_v41  }
 0xa60   :  { %v11810_v35 = vpop.eup %11809  ;;  %v11164_v56 = vpop.f32.mrf.mxu0 }
 0xa61   :  { %11823 = vrsqrt.f32 %v8984_v43  ;;  %v8983_v10 = vadd.f32 1e-05, %v8919_v11  ;;  %v8922_v14 = vmul.f32 0.0078125, %v11164_v56  ;;  %9153 = vperm.xlu0 %11269, %v11810_v35  }
 0xa62   :  { %v11812_v12 = vpop.eup %11811  ;;  %v8690_v33 = vpop.f32.mrf.mxu0 }
 0xa63   :  { %11825 = vrsqrt.f32 %v8983_v10  ;;  %v8986_v30 = vadd.f32 1e-05, %v8922_v14  ;;  %v8921_v51 = vmul.f32 0.0078125, %v8690_v33  ;;  %9168 = vperm.xlu1 %11270, %v11812_v12  }
 0xa64   :  { %v11814_v40 = vpop.eup %11813  ;;  %v11167_v45 = vpop.f32.mrf.mxu0 }
 0xa65   :  { %11827 = vrsqrt.f32 %v8986_v30  ;;  %v8985_v17 = vadd.f32 1e-05, %v8921_v51  ;;  %v8924_v18 = vmul.f32 0.0078125, %v11167_v45  ;;  %9163 = vperm.xlu0 %11269, %v11814_v40  }
 0xa66   :  { %v11816_v2 = vpop.eup %11815  ;;  %v8700_v29 = vpop.f32.mrf.mxu0 }
 0xa67   :  { %11829 = vrsqrt.f32 %v8985_v17  ;;  %v8988_v41 = vadd.f32 1e-05, %v8924_v18  ;;  %v8923_v22 = vmul.f32 0.0078125, %v8700_v29  ;;  %9178 = vperm.xlu1 %11270, %v11816_v2  }
 0xa68   :  { %v11818_v43 = vpop.eup %11817  ;;  %v11170_v11 = vpop.f32.mrf.mxu0 }
 0xa69   :  { %11831 = vrsqrt.f32 %v8988_v41  ;;  %v8987_v35 = vadd.f32 1e-05, %v8923_v22  ;;  %v8926_v56 = vmul.f32 0.0078125, %v11170_v11  ;;  %9173 = vperm.xlu0 %11269, %v11818_v43  }
 0xa6a   :  { %v11820_v10 = vpop.eup %11819  ;;  %v8710_v14 = vpop.f32.mrf.mxu0 }
 0xa6b   :  { %11833 = vrsqrt.f32 %v8987_v35  ;;  %v8990_v12 = vadd.f32 1e-05, %v8926_v56  ;;  %v8925_v33 = vmul.f32 0.0078125, %v8710_v14  ;;  %9188 = vperm.xlu1 %11270, %v11820_v10  }
 0xa6c   :  { %v11822_v30 = vpop.eup %11821  ;;  %v11173_v51 = vpop.f32.mrf.mxu0 }
 0xa6d   :  { %11835 = vrsqrt.f32 %v8990_v12  ;;  %v8989_v40 = vadd.f32 1e-05, %v8925_v33  ;;  %v8928_v45 = vmul.f32 0.0078125, %v11173_v51  ;;  %9183 = vperm.xlu0 %11269, %v11822_v30  }
 0xa6e   :  { %v11824_v17 = vpop.eup %11823  ;;  %v8720_v18 = vpop.f32.mrf.mxu0 }
 0xa6f   :  { %11837 = vrsqrt.f32 %v8989_v40  ;;  %v8992_v2 = vadd.f32 1e-05, %v8928_v45  ;;  %v8927_v29 = vmul.f32 0.0078125, %v8720_v18  ;;  %9198 = vperm.xlu1 %11270, %v11824_v17  }
 0xa70   :  { %v11826_v41 = vpop.eup %11825  ;;  %v11176_v22 = vpop.f32.mrf.mxu0 }
 0xa71   :  { %11839 = vrsqrt.f32 %v8992_v2  ;;  %v8991_v43 = vadd.f32 1e-05, %v8927_v29  ;;  %v8930_v11 = vmul.f32 0.0078125, %v11176_v22  ;;  %9193 = vperm.xlu0 %11269, %v11826_v41  }
 0xa72   :  { %v11828_v35 = vpop.eup %11827  ;;  %v8730_v56 = vpop.f32.mrf.mxu0 }
 0xa73   :  { %11841 = vrsqrt.f32 %v8991_v43  ;;  %v8994_v10 = vadd.f32 1e-05, %v8930_v11  ;;  %v8929_v14 = vmul.f32 0.0078125, %v8730_v56  ;;  %9208 = vperm.xlu1 %11270, %v11828_v35  }
 0xa74   :  { %v11830_v12 = vpop.eup %11829  ;;  %v11179_v33 = vpop.f32.mrf.mxu0 }
 0xa75   :  { %11843 = vrsqrt.f32 %v8994_v10  ;;  %v8993_v30 = vadd.f32 1e-05, %v8929_v14  ;;  %v8932_v51 = vmul.f32 0.0078125, %v11179_v33  ;;  %9203 = vperm.xlu0 %11269, %v11830_v12  }
 0xa76   :  { %v11832_v40 = vpop.eup %11831  ;;  %v8740_v45 = vpop.f32.mrf.mxu0 }
 0xa77   :  { %11845 = vrsqrt.f32 %v8993_v30  ;;  %v8996_v17 = vadd.f32 1e-05, %v8932_v51  ;;  %v8931_v18 = vmul.f32 0.0078125, %v8740_v45  ;;  %9218 = vperm.xlu1 %11270, %v11832_v40  }
 0xa78   :  { %v11834_v2 = vpop.eup %11833  ;;  %v11182_v29 = vpop.f32.mrf.mxu0 }
 0xa79   :  { %11847 = vrsqrt.f32 %v8996_v17  ;;  %v8995_v41 = vadd.f32 1e-05, %v8931_v18  ;;  %v8934_v22 = vmul.f32 0.0078125, %v11182_v29  ;;  %9213 = vperm.xlu0 %11269, %v11834_v2  }
 0xa7a   :  { %v11836_v43 = vpop.eup %11835  ;;  %v8750_v11 = vpop.f32.mrf.mxu0 }
 0xa7b   :  { %11849 = vrsqrt.f32 %v8995_v41  ;;  %v8998_v35 = vadd.f32 1e-05, %v8934_v22  ;;  %v8933_v56 = vmul.f32 0.0078125, %v8750_v11  ;;  %9228 = vperm.xlu1 %11270, %v11836_v43  }
 0xa7c   :  { %v11838_v10 = vpop.eup %11837  ;;  %v11185_v14 = vpop.f32.mrf.mxu0 }
 0xa7d   :  { %11851 = vrsqrt.f32 %v8998_v35  ;;  %v8997_v12 = vadd.f32 1e-05, %v8933_v56  ;;  %v8936_v33 = vmul.f32 0.0078125, %v11185_v14  ;;  %9223 = vperm.xlu0 %11269, %v11838_v10  }
 0xa7e   :  { %v11840_v30 = vpop.eup %11839  ;;  %v8760_v51 = vpop.f32.mrf.mxu0 }
 0xa7f   :  { %11853 = vrsqrt.f32 %v8997_v12  ;;  %v9000_v40 = vadd.f32 1e-05, %v8936_v33  ;;  %v8935_v45 = vmul.f32 0.0078125, %v8760_v51  ;;  %9238 = vperm.xlu1 %11270, %v11840_v30  }
 0xa80   :  { %v11842_v17 = vpop.eup %11841  ;;  %v11188_v18 = vpop.f32.mrf.mxu0 }
 0xa81   :  { %11855 = vrsqrt.f32 %v9000_v40  ;;  %v8999_v2 = vadd.f32 1e-05, %v8935_v45  ;;  %v8938_v29 = vmul.f32 0.0078125, %v11188_v18  ;;  %9233 = vperm.xlu0 %11269, %v11842_v17  }
 0xa82   :  { %v11844_v41 = vpop.eup %11843  ;;  %v8770_v22 = vpop.f32.mrf.mxu0 }
 0xa83   :  { %11857 = vrsqrt.f32 %v8999_v2  ;;  %v9002_v43 = vadd.f32 1e-05, %v8938_v29  ;;  %v8937_v11 = vmul.f32 0.0078125, %v8770_v22  ;;  %9248 = vperm.xlu1 %11270, %v11844_v41  }
 0xa84   :  { %v11846_v35 = vpop.eup %11845  ;;  %v11191_v56 = vpop.f32.mrf.mxu0 }
 0xa85   :  { %11859 = vrsqrt.f32 %v9002_v43  ;;  %v9001_v10 = vadd.f32 1e-05, %v8937_v11  ;;  %v8940_v14 = vmul.f32 0.0078125, %v11191_v56  ;;  %9243 = vperm.xlu0 %11269, %v11846_v35  }
 0xa86   :  { %v11848_v12 = vpop.eup %11847  ;;  %v8780_v33 = vpop.f32.mrf.mxu0 }
 0xa87   :  { %11861 = vrsqrt.f32 %v9001_v10  ;;  %v9004_v30 = vadd.f32 1e-05, %v8940_v14  ;;  %v8939_v51 = vmul.f32 0.0078125, %v8780_v33  ;;  %9258 = vperm.xlu1 %11270, %v11848_v12  }
 0xa88   :  { %v11850_v40 = vpop.eup %11849  ;;  %v11194_v45 = vpop.f32.mrf.mxu0 }
 0xa89   :  { %11863 = vrsqrt.f32 %v9004_v30  ;;  %v9003_v17 = vadd.f32 1e-05, %v8939_v51  ;;  %v8942_v18 = vmul.f32 0.0078125, %v11194_v45  ;;  %9253 = vperm.xlu0 %11269, %v11850_v40  }
 0xa8a   :  { %v11852_v2 = vpop.eup %11851  ;;  %v8790_v29 = vpop.f32.mrf.mxu0 }
 0xa8b   :  { %11865 = vrsqrt.f32 %v9003_v17  ;;  %v9006_v41 = vadd.f32 1e-05, %v8942_v18  ;;  %v8941_v22 = vmul.f32 0.0078125, %v8790_v29  ;;  %9268 = vperm.xlu1 %11270, %v11852_v2  }
 0xa8c   :  { %v11854_v43 = vpop.eup %11853  ;;  %v11197_v11 = vpop.f32.mrf.mxu0 }
 0xa8d   :  { %11867 = vrsqrt.f32 %v9006_v41  ;;  %v9005_v35 = vadd.f32 1e-05, %v8941_v22  ;;  %v8944_v56 = vmul.f32 0.0078125, %v11197_v11  ;;  %9263 = vperm.xlu0 %11269, %v11854_v43  }
 0xa8e   :  { %v11856_v10 = vpop.eup %11855  ;;  %v8800_v14 = vpop.f32.mrf.mxu0 }
 0xa8f   :  { %11869 = vrsqrt.f32 %v9005_v35  ;;  %v9008_v12 = vadd.f32 1e-05, %v8944_v56  ;;  %v8943_v33 = vmul.f32 0.0078125, %v8800_v14  ;;  %9278 = vperm.xlu1 %11270, %v11856_v10  }
 0xa90   :  { %v11858_v30 = vpop.eup %11857  ;;  %v11200_v51 = vpop.f32.mrf.mxu0 }
 0xa91   :  { %11871 = vrsqrt.f32 %v9008_v12  ;;  %v9007_v40 = vadd.f32 1e-05, %v8943_v33  ;;  %v8946_v45 = vmul.f32 0.0078125, %v11200_v51  ;;  %9273 = vperm.xlu0 %11269, %v11858_v30  }
 0xa92   :  { %v11860_v17 = vpop.eup %11859  ;;  %v8810_v18 = vpop.f32.mrf.mxu0 }
 0xa93   :  { %11873 = vrsqrt.f32 %v9007_v40  ;;  %v9010_v2 = vadd.f32 1e-05, %v8946_v45  ;;  %v8945_v29 = vmul.f32 0.0078125, %v8810_v18  ;;  %9288 = vperm.xlu1 %11270, %v11860_v17  }
 0xa94   :  { %v11862_v41 = vpop.eup %11861  ;;  %v11203_v22 = vpop.f32.mrf.mxu0 }
 0xa95   :  { %11875 = vrsqrt.f32 %v9010_v2  ;;  %v9009_v43 = vadd.f32 1e-05, %v8945_v29  ;;  %v8948_v11 = vmul.f32 0.0078125, %v11203_v22  ;;  %9283 = vperm.xlu0 %11269, %v11862_v41  }
 0xa96   :  { %v11864_v35 = vpop.eup %11863  ;;  %v8820_v56 = vpop.f32.mrf.mxu0 }
 0xa97   :  { %11877 = vrsqrt.f32 %v9009_v43  ;;  %v9012_v10 = vadd.f32 1e-05, %v8948_v11  ;;  %v8947_v14 = vmul.f32 0.0078125, %v8820_v56  ;;  %9298 = vperm.xlu1 %11270, %v11864_v35  }
 0xa98   :  { %v11866_v12 = vpop.eup %11865  ;;  %v11206_v33 = vpop.f32.mrf.mxu0 }
 0xa99   :  { %11879 = vrsqrt.f32 %v9012_v10  ;;  %v9011_v30 = vadd.f32 1e-05, %v8947_v14  ;;  %v8950_v51 = vmul.f32 0.0078125, %v11206_v33  ;;  %9293 = vperm.xlu0 %11269, %v11866_v12  }
 0xa9a   :  { %v11868_v40 = vpop.eup %11867  ;;  %v8830_v45 = vpop.f32.mrf.mxu0 }
 0xa9b   :  { %11881 = vrsqrt.f32 %v9011_v30  ;;  %v9014_v17 = vadd.f32 1e-05, %v8950_v51  ;;  %v8949_v18 = vmul.f32 0.0078125, %v8830_v45  ;;  %9308 = vperm.xlu1 %11270, %v11868_v40  }
 0xa9c   :  { %v11870_v2 = vpop.eup %11869  ;;  %v11209_v29 = vpop.f32.mrf.mxu0 }
 0xa9d   :  { %11883 = vrsqrt.f32 %v9014_v17  ;;  %v9013_v41 = vadd.f32 1e-05, %v8949_v18  ;;  %v8952_v22 = vmul.f32 0.0078125, %v11209_v29  ;;  %9303 = vperm.xlu0 %11269, %v11870_v2  }
 0xa9e   :  { %v11872_v43 = vpop.eup %11871  ;;  %v8840_v11 = vpop.f32.mrf.mxu0 }
 0xa9f   :  { %11885 = vrsqrt.f32 %v9013_v41  ;;  %v9016_v35 = vadd.f32 1e-05, %v8952_v22  ;;  %v8951_v56 = vmul.f32 0.0078125, %v8840_v11  ;;  %9318 = vperm.xlu1 %11270, %v11872_v43  }
 0xaa0   :  { %v11874_v10 = vpop.eup %11873  ;;  %v11212_v14 = vpop.f32.mrf.mxu0 }
 0xaa1   :  { %11887 = vrsqrt.f32 %v9016_v35  ;;  %v9015_v12 = vadd.f32 1e-05, %v8951_v56  ;;  %v8954_v33 = vmul.f32 0.0078125, %v11212_v14  ;;  %9313 = vperm.xlu0 %11269, %v11874_v10  }
 0xaa2   :  { %v11876_v30 = vpop.eup %11875  ;;  %v8850_v51 = vpop.f32.mrf.mxu0 }
 0xaa3   :  { %11889 = vrsqrt.f32 %v9015_v12  ;;  %v9018_v40 = vadd.f32 1e-05, %v8954_v33  ;;  %v8953_v45 = vmul.f32 0.0078125, %v8850_v51  ;;  %9328 = vperm.xlu1 %11270, %v11876_v30  }
 0xaa4   :  { %v11878_v17 = vpop.eup %11877  ;;  %v11215_v18 = vpop.f32.mrf.mxu0 }
 0xaa5   :  { %11891 = vrsqrt.f32 %v9018_v40  ;;  %v9017_v2 = vadd.f32 1e-05, %v8953_v45  ;;  %v8956_v29 = vmul.f32 0.0078125, %v11215_v18  ;;  %9323 = vperm.xlu0 %11269, %v11878_v17  }
 0xaa6   :  { %v11880_v41 = vpop.eup %11879  ;;  %v8860_v22 = vpop.f32.mrf.mxu0 }
 0xaa7   :  { %11893 = vrsqrt.f32 %v9017_v2  ;;  %v9020_v43 = vadd.f32 1e-05, %v8956_v29  ;;  %v8955_v11 = vmul.f32 0.0078125, %v8860_v22  ;;  %9338 = vperm.xlu1 %11270, %v11880_v41  }
 0xaa8   :  { %v11882_v35 = vpop.eup %11881  ;;  %v11218_v56 = vpop.f32.mrf.mxu0 }
 0xaa9   :  { %11895 = vrsqrt.f32 %v9020_v43  ;;  %v9019_v10 = vadd.f32 1e-05, %v8955_v11  ;;  %v8958_v14 = vmul.f32 0.0078125, %v11218_v56  ;;  %9333 = vperm.xlu0 %11269, %v11882_v35  }
 0xaaa   :  { %v11884_v12 = vpop.eup %11883  ;;  %v8870_v33 = vpop.f32.mrf.mxu0 }
 0xaab   :  { %11897 = vrsqrt.f32 %v9019_v10  ;;  %v9022_v30 = vadd.f32 1e-05, %v8958_v14  ;;  %v8957_v51 = vmul.f32 0.0078125, %v8870_v33  ;;  %9348 = vperm.xlu1 %11270, %v11884_v12  }
 0xaac   :  { %v11886_v40 = vpop.eup %11885  ;;  %v11221_v45 = vpop.f32.mrf.mxu0 }
 0xaad   :  { %11899 = vrsqrt.f32 %v9022_v30  ;;  %v9021_v17 = vadd.f32 1e-05, %v8957_v51  ;;  %v8960_v18 = vmul.f32 0.0078125, %v11221_v45  ;;  %9343 = vperm.xlu0 %11269, %v11886_v40  }
 0xaae   :  { %v11888_v2 = vpop.eup %11887  ;;  %v8880_v29 = vpop.f32.mrf.mxu0 }
 0xaaf   :  { %11901 = vrsqrt.f32 %v9021_v17  ;;  %v9024_v41 = vadd.f32 1e-05, %v8960_v18  ;;  %v8959_v22 = vmul.f32 0.0078125, %v8880_v29  ;;  %9358 = vperm.xlu1 %11270, %v11888_v2  }
 0xab0   :  { %v11890_v43 = vpop.eup %11889  ;;  %v11224_v11 = vpop.f32.mrf.mxu0 }
 0xab1   :  { %11903 = vrsqrt.f32 %v9024_v41  ;;  %v9023_v35 = vadd.f32 1e-05, %v8959_v22  ;;  %v8962_v56 = vmul.f32 0.0078125, %v11224_v11  ;;  %9353 = vperm.xlu0 %11269, %v11890_v43   ;;  %v16084_v22 = vld [vmem:[#allocation5 + $0x4] ss:$0 sm:$0xff] }
 0xab2   :  { %v11892_v10 = vpop.eup %11891  ;;  %v8890_v14 = vpop.f32.mrf.mxu0 }
 0xab3   :  { %11905 = vrsqrt.f32 %v9023_v35  ;;  %v9026_v12 = vadd.f32 1e-05, %v8962_v56  ;;  %v8961_v33 = vmul.f32 0.0078125, %v8890_v14  ;;  %9368 = vperm.xlu1 %11270, %v11892_v10   ;;  %v16087_v56 = vld [vmem:[#allocation5 + $0x5] ss:$0 sm:$0xff] }
 0xab4   :  { %v11894_v30 = vpop.eup %11893 }
 0xab5   :  { %11907 = vrsqrt.f32 %v9026_v12  ;;  %v9025_v51 = vadd.f32 1e-05, %v8961_v33  ;;  %9363 = vperm.xlu0 %11269, %v11894_v30  }
 0xab6   :  { %v11896_v40 = vpop.eup %11895 }
 0xab7   :  { %11909 = vrsqrt.f32 %v9025_v51  ;;  %9378 = vperm.xlu1 %11270, %v11896_v40  }
 0xab8   :  { %v11898_v45 = vpop.eup %11897 }
 0xab9   :  { %9373 = vperm.xlu0 %11269, %v11898_v45  }
 0xaba   :  { %v11900_v17 = vpop.eup %11899 }
 0xabb   :  { %9388 = vperm.xlu1 %11270, %v11900_v17  }
 0xabc   :  { %v11902_v18 = vpop.eup %11901 }
 0xabd   :  { %9383 = vperm.xlu0 %11269, %v11902_v18  }
 0xabe   :  { %v11904_v2 = vpop.eup %11903 }
 0xabf   :  { %9398 = vperm.xlu1 %11270, %v11904_v2  }
 0xac0   :  { %v11906_v29 = vpop.eup %11905 }
 0xac1   :  { %9393 = vperm.xlu0 %11269, %v11906_v29  }
 0xac2   :  { %v11908_v41 = vpop.eup %11907  ;;  %v9099_v43 = vpop.permute.xlu1 %9098 }
 0xac3   :  { %v9412_v11 = vmul.f32 %v9099_v43, %v15765_v48  ;;  %9408 = vperm.xlu1 %11270, %v11908_v41  }
 0xac4   :  { %v11910_v35 = vpop.eup %11909  ;;  %v9094_v10 = vpop.permute.xlu0 %9093 }
 0xac5   :  { %v9480_v14 = vmul.f32 %v16084_v22, %v9412_v11  ;;  %v9411_v12 = vmul.f32 %v9094_v10, %v15768_v20  ;;  %9403 = vperm.xlu0 %11269, %v11910_v35  }
 0xac6   :  { %v9109_v33 = vpop.permute.xlu1 %9108 }
 0xac7   :  { %v9548_v30 = vadd.f32 %v16087_v56, %v9480_v14  ;;  %v9479_v51 = vmul.f32 %v16084_v22, %v9411_v12  ;;  %v9414_v40 = vmul.f32 %v9109_v33, %v15775_v46 }
 0xac8   :  { %v9104_v45 = vpop.permute.xlu0 %9103 }
 0xac9   :  { %9612 = vst [vmem:[#allocation10 + $0x8] sm:$0xff] %v9548_v30  ;;  %v9547_v48 = vadd.f32 %v16087_v56, %v9479_v51  ;;  %v9482_v17 = vmul.f32 %v16084_v22, %v9414_v40  ;;  %v9413_v18 = vmul.f32 %v9104_v45, %v15778_v9 }
 0xaca   :  { %v9119_v2 = vpop.permute.xlu1 %9118 }
 0xacb   :  { %9611 = vst [vmem:[#allocation10] sm:$0xff] %v9547_v48  ;;  %v9550_v20 = vadd.f32 %v16087_v56, %v9482_v17  ;;  %v9481_v29 = vmul.f32 %v16084_v22, %v9413_v18  ;;  %v9416_v41 = vmul.f32 %v9119_v2, %v15785_v31 }
 0xacc   :  { %v9114_v43 = vpop.permute.xlu0 %9113 }
 0xacd   :  { %9614 = vst [vmem:[#allocation10 + $0x18] sm:$0xff] %v9550_v20  ;;  %v9549_v46 = vadd.f32 %v16087_v56, %v9481_v29  ;;  %v9484_v11 = vmul.f32 %v16084_v22, %v9416_v41  ;;  %v9415_v35 = vmul.f32 %v9114_v43, %v15788_v62 }
 0xace   :  { %v9129_v10 = vpop.permute.xlu1 %9128 }
 0xacf   :  { %9613 = vst [vmem:[#allocation10 + $0x10] sm:$0xff] %v9549_v46  ;;  %v9552_v9 = vadd.f32 %v16087_v56, %v9484_v11  ;;  %v9483_v14 = vmul.f32 %v16084_v22, %v9415_v35  ;;  %v9418_v12 = vmul.f32 %v9129_v10, %v15795_v24 }
 0xad0   :  { %v9124_v33 = vpop.permute.xlu0 %9123 }
 0xad1   :  { %9616 = vst [vmem:[#allocation10 + $0x28] sm:$0xff] %v9552_v9  ;;  %v9551_v31 = vadd.f32 %v16087_v56, %v9483_v14  ;;  %v9486_v30 = vmul.f32 %v16084_v22, %v9418_v12  ;;  %v9417_v51 = vmul.f32 %v9124_v33, %v15798_v54 }
 0xad2   :  { %v9139_v40 = vpop.permute.xlu1 %9138 }
 0xad3   :  { %9615 = vst [vmem:[#allocation10 + $0x20] sm:$0xff] %v9551_v31  ;;  %v9554_v62 = vadd.f32 %v16087_v56, %v9486_v30  ;;  %v9485_v45 = vmul.f32 %v16084_v22, %v9417_v51  ;;  %v9420_v48 = vmul.f32 %v9139_v40, %v15805_v16 }
 0xad4   :  { %v9134_v17 = vpop.permute.xlu0 %9133 }
 0xad5   :  { %9618 = vst [vmem:[#allocation10 + $0x38] sm:$0xff] %v9554_v62  ;;  %v9553_v24 = vadd.f32 %v16087_v56, %v9485_v45  ;;  %v9488_v18 = vmul.f32 %v16084_v22, %v9420_v48  ;;  %v9419_v2 = vmul.f32 %v9134_v17, %v15808_v37 }
 0xad6   :  { %v9149_v20 = vpop.permute.xlu1 %9148 }
 0xad7   :  { %9617 = vst [vmem:[#allocation10 + $0x30] sm:$0xff] %v9553_v24  ;;  %v9556_v54 = vadd.f32 %v16087_v56, %v9488_v18  ;;  %v9487_v29 = vmul.f32 %v16084_v22, %v9419_v2  ;;  %v9422_v41 = vmul.f32 %v9149_v20, %v15815_v58 }
 0xad8   :  { %v9144_v43 = vpop.permute.xlu0 %9143 }
 0xad9   :  { %9620 = vst [vmem:[#allocation10 + $0x48] sm:$0xff] %v9556_v54  ;;  %v9555_v16 = vadd.f32 %v16087_v56, %v9487_v29  ;;  %v9490_v46 = vmul.f32 %v16084_v22, %v9422_v41  ;;  %v9421_v11 = vmul.f32 %v9144_v43, %v15818_v26 }
 0xada   :  { %v9159_v35 = vpop.permute.xlu1 %9158 }
 0xadb   :  { %9619 = vst [vmem:[#allocation10 + $0x40] sm:$0xff] %v9555_v16  ;;  %v9558_v37 = vadd.f32 %v16087_v56, %v9490_v46  ;;  %v9489_v10 = vmul.f32 %v16084_v22, %v9421_v11  ;;  %v9424_v9 = vmul.f32 %v9159_v35, %v15825_v59 }
 0xadc   :  { %v9154_v14 = vpop.permute.xlu0 %9153 }
 0xadd   :  { %9622 = vst [vmem:[#allocation10 + $0x58] sm:$0xff] %v9558_v37  ;;  %v9557_v58 = vadd.f32 %v16087_v56, %v9489_v10  ;;  %v9492_v12 = vmul.f32 %v16084_v22, %v9424_v9  ;;  %v9423_v33 = vmul.f32 %v9154_v14, %v15828_v34 }
 0xade   :  { %v9169_v31 = vpop.permute.xlu1 %9168 }
 0xadf   :  { %9621 = vst [vmem:[#allocation10 + $0x50] sm:$0xff] %v9557_v58  ;;  %v9560_v26 = vadd.f32 %v16087_v56, %v9492_v12  ;;  %v9491_v30 = vmul.f32 %v16084_v22, %v9423_v33  ;;  %v9426_v51 = vmul.f32 %v9169_v31, %v15835_v8 }
 0xae0   :  { %v9164_v40 = vpop.permute.xlu0 %9163 }
 0xae1   :  { %9624 = vst [vmem:[#allocation10 + $0x68] sm:$0xff] %v9560_v26  ;;  %v9559_v59 = vadd.f32 %v16087_v56, %v9491_v30  ;;  %v9494_v62 = vmul.f32 %v16084_v22, %v9426_v51  ;;  %v9425_v45 = vmul.f32 %v9164_v40, %v15838_v60 }
 0xae2   :  { %v9179_v48 = vpop.permute.xlu1 %9178 }
 0xae3   :  { %9623 = vst [vmem:[#allocation10 + $0x60] sm:$0xff] %v9559_v59  ;;  %v9562_v34 = vadd.f32 %v16087_v56, %v9494_v62  ;;  %v9493_v17 = vmul.f32 %v16084_v22, %v9425_v45  ;;  %v9428_v24 = vmul.f32 %v9179_v48, %v15845_v36 }
 0xae4   :  { %v9174_v18 = vpop.permute.xlu0 %9173 }
 0xae5   :  { %9626 = vst [vmem:[#allocation10 + $0x78] sm:$0xff] %v9562_v34  ;;  %v9561_v8 = vadd.f32 %v16087_v56, %v9493_v17  ;;  %v9496_v2 = vmul.f32 %v16084_v22, %v9428_v24  ;;  %v9427_v20 = vmul.f32 %v9174_v18, %v15848_v19 }
 0xae6   :  { %v9189_v54 = vpop.permute.xlu1 %9188 }
 0xae7   :  { %9625 = vst [vmem:[#allocation10 + $0x70] sm:$0xff] %v9561_v8  ;;  %v9564_v60 = vadd.f32 %v16087_v56, %v9496_v2  ;;  %v9495_v29 = vmul.f32 %v16084_v22, %v9427_v20  ;;  %v9430_v41 = vmul.f32 %v9189_v54, %v15855_v50 }
 0xae8   :  { %v9184_v43 = vpop.permute.xlu0 %9183 }
 0xae9   :  { %9628 = vst [vmem:[#allocation10 + $0x88] sm:$0xff] %v9564_v60  ;;  %v9563_v36 = vadd.f32 %v16087_v56, %v9495_v29  ;;  %v9498_v16 = vmul.f32 %v16084_v22, %v9430_v41  ;;  %v9429_v46 = vmul.f32 %v9184_v43, %v15858_v21 }
 0xaea   :  { %v9199_v11 = vpop.permute.xlu1 %9198 }
 0xaeb   :  { %9627 = vst [vmem:[#allocation10 + $0x80] sm:$0xff] %v9563_v36  ;;  %v9566_v19 = vadd.f32 %v16087_v56, %v9498_v16  ;;  %v9497_v35 = vmul.f32 %v16084_v22, %v9429_v46  ;;  %v9432_v37 = vmul.f32 %v9199_v11, %v15865_v61 }
 0xaec   :  { %v9194_v10 = vpop.permute.xlu0 %9193 }
 0xaed   :  { %9630 = vst [vmem:[#allocation10 + $0x98] sm:$0xff] %v9566_v19  ;;  %v9565_v50 = vadd.f32 %v16087_v56, %v9497_v35  ;;  %v9500_v9 = vmul.f32 %v16084_v22, %v9432_v37  ;;  %v9431_v14 = vmul.f32 %v9194_v10, %v15868_v15 }
 0xaee   :  { %v9209_v58 = vpop.permute.xlu1 %9208 }
 0xaef   :  { %9629 = vst [vmem:[#allocation10 + $0x90] sm:$0xff] %v9565_v50  ;;  %v9568_v21 = vadd.f32 %v16087_v56, %v9500_v9  ;;  %v9499_v12 = vmul.f32 %v16084_v22, %v9431_v14  ;;  %v9434_v33 = vmul.f32 %v9209_v58, %v15875_v23 }
 0xaf0   :  { %v9204_v31 = vpop.permute.xlu0 %9203 }
 0xaf1   :  { %9632 = vst [vmem:[#allocation10 + $0xa8] sm:$0xff] %v9568_v21  ;;  %v9567_v61 = vadd.f32 %v16087_v56, %v9499_v12  ;;  %v9502_v26 = vmul.f32 %v16084_v22, %v9434_v33  ;;  %v9433_v30 = vmul.f32 %v9204_v31, %v15878_v28 }
 0xaf2   :  { %v9219_v51 = vpop.permute.xlu1 %9218 }
 0xaf3   :  { %9631 = vst [vmem:[#allocation10 + $0xa0] sm:$0xff] %v9567_v61  ;;  %v9570_v15 = vadd.f32 %v16087_v56, %v9502_v26  ;;  %v9501_v40 = vmul.f32 %v16084_v22, %v9433_v30  ;;  %v9436_v59 = vmul.f32 %v9219_v51, %v15885_v38 }
 0xaf4   :  { %v9214_v62 = vpop.permute.xlu0 %9213 }
 0xaf5   :  { %9634 = vst [vmem:[#allocation10 + $0xb8] sm:$0xff] %v9570_v15  ;;  %v9569_v23 = vadd.f32 %v16087_v56, %v9501_v40  ;;  %v9504_v45 = vmul.f32 %v16084_v22, %v9436_v59  ;;  %v9435_v48 = vmul.f32 %v9214_v62, %v15888_v42 }
 0xaf6   :  { %v9229_v34 = vpop.permute.xlu1 %9228 }
 0xaf7   :  { %9633 = vst [vmem:[#allocation10 + $0xb0] sm:$0xff] %v9569_v23  ;;  %v9572_v28 = vadd.f32 %v16087_v56, %v9504_v45  ;;  %v9503_v17 = vmul.f32 %v16084_v22, %v9435_v48  ;;  %v9438_v24 = vmul.f32 %v9229_v34, %v15895_v47 }
 0xaf8   :  { %v9224_v18 = vpop.permute.xlu0 %9223 }
 0xaf9   :  { %9636 = vst [vmem:[#allocation10 + $0xc8] sm:$0xff] %v9572_v28  ;;  %v9571_v38 = vadd.f32 %v16087_v56, %v9503_v17  ;;  %v9506_v8 = vmul.f32 %v16084_v22, %v9438_v24  ;;  %v9437_v2 = vmul.f32 %v9224_v18, %v15898_v57 }
 0xafa   :  { %v9239_v20 = vpop.permute.xlu1 %9238 }
 0xafb   :  { %9635 = vst [vmem:[#allocation10 + $0xc0] sm:$0xff] %v9571_v38  ;;  %v9574_v42 = vadd.f32 %v16087_v56, %v9506_v8  ;;  %v9505_v54 = vmul.f32 %v16084_v22, %v9437_v2  ;;  %v9440_v60 = vmul.f32 %v9239_v20, %v15905_v39 }
 0xafc   :  { %v9234_v29 = vpop.permute.xlu0 %9233 }
 0xafd   :  { %9638 = vst [vmem:[#allocation10 + $0xd8] sm:$0xff] %v9574_v42  ;;  %v9573_v47 = vadd.f32 %v16087_v56, %v9505_v54  ;;  %v9508_v41 = vmul.f32 %v16084_v22, %v9440_v60  ;;  %v9439_v43 = vmul.f32 %v9234_v29, %v15908_v4 }
 0xafe   :  { %v9249_v36 = vpop.permute.xlu1 %9248 }
 0xaff   :  { %9637 = vst [vmem:[#allocation10 + $0xd0] sm:$0xff] %v9573_v47  ;;  %v9576_v57 = vadd.f32 %v16087_v56, %v9508_v41  ;;  %v9507_v16 = vmul.f32 %v16084_v22, %v9439_v43  ;;  %v9442_v46 = vmul.f32 %v9249_v36, %v15915_v1 }
 0xb00   :  { %v9244_v11 = vpop.permute.xlu0 %9243 }
 0xb01   :  { %9640 = vst [vmem:[#allocation10 + $0xe8] sm:$0xff] %v9576_v57  ;;  %v9575_v39 = vadd.f32 %v16087_v56, %v9507_v16  ;;  %v9510_v19 = vmul.f32 %v16084_v22, %v9442_v46  ;;  %v9441_v35 = vmul.f32 %v9244_v11, %v15918_v13 }
 0xb02   :  { %v9259_v37 = vpop.permute.xlu1 %9258 }
 0xb03   :  { %9639 = vst [vmem:[#allocation10 + $0xe0] sm:$0xff] %v9575_v39  ;;  %v9578_v4 = vadd.f32 %v16087_v56, %v9510_v19  ;;  %v9509_v10 = vmul.f32 %v16084_v22, %v9441_v35  ;;  %v9444_v50 = vmul.f32 %v9259_v37, %v15925_v6  ;;  %v16978_v35 = vld [vmem:[#allocation150_spill] sm:$0xff] }
 0xb04   :  { %v9254_v9 = vpop.permute.xlu0 %9253 }
 0xb05   :  { %9642 = vst [vmem:[#allocation10 + $0xf8] sm:$0xff] %v9578_v4  ;;  %v9577_v1 = vadd.f32 %v16087_v56, %v9509_v10  ;;  %v9512_v14 = vmul.f32 %v16084_v22, %v9444_v50  ;;  %v9443_v58 = vmul.f32 %v9254_v9, %v15928_v3  ;;  %v16979_v50 = vld [vmem:[#allocation155_spill] sm:$0xff] }
 0xb06   :  { %v9269_v21 = vpop.permute.xlu1 %9268 }
 0xb07   :  { %9641 = vst [vmem:[#allocation10 + $0xf0] sm:$0xff] %v9577_v1  ;;  %v9580_v13 = vadd.f32 %v16087_v56, %v9512_v14  ;;  %v9511_v12 = vmul.f32 %v16084_v22, %v9443_v58  ;;  %v9446_v33 = vmul.f32 %v9269_v21, %v15935_v52  ;;  %v16980_v58 = vld [vmem:[#allocation159_spill] sm:$0xff] }
 0xb08   :  { %v9264_v31 = vpop.permute.xlu0 %9263 }
 0xb09   :  { %9644 = vst [vmem:[#allocation10 + $0x108] sm:$0xff] %v9580_v13  ;;  %v9579_v6 = vadd.f32 %v16087_v56, %v9511_v12  ;;  %v9514_v61 = vmul.f32 %v16084_v22, %v9446_v33  ;;  %v9445_v26 = vmul.f32 %v9264_v31, %v15938_v44  ;;  %v16981_v31 = vld [vmem:[#allocation161_spill] sm:$0xff] }
 0xb0a   :  { %v9279_v30 = vpop.permute.xlu1 %9278 }
 0xb0b   :  { %9643 = vst [vmem:[#allocation10 + $0x100] sm:$0xff] %v9579_v6  ;;  %v9582_v3 = vadd.f32 %v16087_v56, %v9514_v61  ;;  %v9513_v51 = vmul.f32 %v16084_v22, %v9445_v26  ;;  %v9448_v15 = vmul.f32 %v9279_v30, %v15945_v55 }
 0xb0c   :  { %v9274_v40 = vpop.permute.xlu0 %9273 }
 0xb0d   :  { %9646 = vst [vmem:[#allocation10 + $0x118] sm:$0xff] %v9582_v3  ;;  %v9581_v52 = vadd.f32 %v16087_v56, %v9513_v51  ;;  %v9516_v59 = vmul.f32 %v16084_v22, %v9448_v15  ;;  %v9447_v62 = vmul.f32 %v9274_v40, %v15948_v27  ;;  %v16982_v3 = vld [vmem:[#allocation141_spill] sm:$0xff] }
 0xb0e   :  { %v9289_v23 = vpop.permute.xlu1 %9288 }
 0xb0f   :  { %9645 = vst [vmem:[#allocation10 + $0x110] sm:$0xff] %v9581_v52  ;;  %v9584_v44 = vadd.f32 %v16087_v56, %v9516_v59  ;;  %v9515_v45 = vmul.f32 %v16084_v22, %v9447_v62  ;;  %v9450_v48 = vmul.f32 %v9289_v23, %v15955_v25  ;;  %v16983_v59 = vld [vmem:[#allocation81_spill] sm:$0xff] }
 0xb10   :  { %v9284_v34 = vpop.permute.xlu0 %9283 }
 0xb11   :  { %9648 = vst [vmem:[#allocation10 + $0x128] sm:$0xff] %v9584_v44  ;;  %v9583_v55 = vadd.f32 %v16087_v56, %v9515_v45  ;;  %v9518_v28 = vmul.f32 %v16084_v22, %v9450_v48  ;;  %v9449_v17 = vmul.f32 %v9284_v34, %v15958_v49  ;;  %v16984_v48 = vld [vmem:[#allocation84_spill] sm:$0xff] }
 0xb12   :  { %v9299_v24 = vpop.permute.xlu1 %9298 }
 0xb13   :  { %9647 = vst [vmem:[#allocation10 + $0x120] sm:$0xff] %v9583_v55  ;;  %v9586_v27 = vadd.f32 %v16087_v56, %v9518_v28  ;;  %v9517_v18 = vmul.f32 %v16084_v22, %v9449_v17  ;;  %v9452_v38 = vmul.f32 %v9299_v24, %v15965_v53  ;;  %v16985_v24 = vld [vmem:[#allocation160_spill] sm:$0xff] }
 0xb14   :  { %v9294_v8 = vpop.permute.xlu0 %9293 }
 0xb15   :  { %9650 = vst [vmem:[#allocation10 + $0x138] sm:$0xff] %v9586_v27  ;;  %v9585_v25 = vadd.f32 %v16087_v56, %v9517_v18  ;;  %v9520_v2 = vmul.f32 %v16084_v22, %v9452_v38  ;;  %v9451_v20 = vmul.f32 %v9294_v8, %v15968_v5 }
 0xb16   :  { %v9309_v42 = vpop.permute.xlu1 %9308 }
 0xb17   :  { %9649 = vst [vmem:[#allocation10 + $0x130] sm:$0xff] %v9585_v25  ;;  %v9588_v49 = vadd.f32 %v16087_v56, %v9520_v2  ;;  %v9519_v54 = vmul.f32 %v16084_v22, %v9451_v20  ;;  %v9454_v60 = vmul.f32 %v9309_v42, %v15975_v0  ;;  %v16986_v25 = vld [vmem:[#allocation164_spill] sm:$0xff] }
 0xb18   :  { %v9304_v29 = vpop.permute.xlu0 %9303 }
 0xb19   :  { %9652 = vst [vmem:[#allocation10 + $0x148] sm:$0xff] %v9588_v49  ;;  %v9587_v53 = vadd.f32 %v16087_v56, %v9519_v54  ;;  %v9522_v47 = vmul.f32 %v16084_v22, %v9454_v60  ;;  %v9453_v41 = vmul.f32 %v9304_v29, %v15978_v7  ;;  %v16987_v54 = vld [vmem:[#allocation167_spill] sm:$0xff] }
 0xb1a   :  { %v9319_v43 = vpop.permute.xlu1 %9318 }
 0xb1b   :  { %9651 = vst [vmem:[#allocation10 + $0x140] sm:$0xff] %v9587_v53  ;;  %v9590_v5 = vadd.f32 %v16087_v56, %v9522_v47  ;;  %v9521_v36 = vmul.f32 %v16084_v22, %v9453_v41  ;;  %v9456_v57 = vmul.f32 %v9319_v43, %v15985_v32  ;;  %v16988_v41 = vld [vmem:[#allocation169_spill] sm:$0xff] }
 0xb1c   :  { %v9314_v16 = vpop.permute.xlu0 %9313 }
 0xb1d   :  { %9654 = vst [vmem:[#allocation10 + $0x158] sm:$0xff] %v9590_v5  ;;  %v9589_v0 = vadd.f32 %v16087_v56, %v9521_v36  ;;  %v9524_v46 = vmul.f32 %v16084_v22, %v9456_v57  ;;  %v9455_v11 = vmul.f32 %v9314_v16, %v15988_v63  ;;  %v16989_v16 = vld [vmem:[#allocation171_spill] sm:$0xff] }
 0xb1e   :  { %v9329_v39 = vpop.permute.xlu1 %9328 }
 0xb1f   :  { %9653 = vst [vmem:[#allocation10 + $0x150] sm:$0xff] %v9589_v0  ;;  %v9592_v7 = vadd.f32 %v16087_v56, %v9524_v46  ;;  %v9523_v19 = vmul.f32 %v16084_v22, %v9455_v11  ;;  %v9458_v37 = vmul.f32 %v9329_v39, %v16978_v35 }
 0xb20   :  { %v9324_v4 = vpop.permute.xlu0 %9323 }
 0xb21   :  { %9656 = vst [vmem:[#allocation10 + $0x168] sm:$0xff] %v9592_v7  ;;  %v9591_v32 = vadd.f32 %v16087_v56, %v9523_v19  ;;  %v9526_v10 = vmul.f32 %v16084_v22, %v9458_v37  ;;  %v9457_v9 = vmul.f32 %v9324_v4, %v16979_v50  ;;  %v16990_v7 = vld [vmem:[#allocation95_spill] sm:$0xff] }
 0xb22   :  { %v9339_v1 = vpop.permute.xlu1 %9338 }
 0xb23   :  { %9655 = vst [vmem:[#allocation10 + $0x160] sm:$0xff] %v9591_v32  ;;  %v9594_v63 = vadd.f32 %v16087_v56, %v9526_v10  ;;  %v9525_v14 = vmul.f32 %v16084_v22, %v9457_v9  ;;  %v9460_v21 = vmul.f32 %v9339_v1, %v16980_v58  ;;  %v16991_v32 = vld [vmem:[#allocation83_spill] sm:$0xff] }
 0xb24   :  { %v9334_v13 = vpop.permute.xlu0 %9333 }
 0xb25   :  { %9658 = vst [vmem:[#allocation10 + $0x178] sm:$0xff] %v9594_v63  ;;  %v9593_v12 = vadd.f32 %v16087_v56, %v9525_v14  ;;  %v9528_v33 = vmul.f32 %v16084_v22, %v9460_v21  ;;  %v9459_v6 = vmul.f32 %v9334_v13, %v16981_v31  ;;  %v16992_v63 = vld [vmem:[#allocation165_spill] sm:$0xff] }
 0xb26   :  { %v9349_v61 = vpop.permute.xlu1 %9348 }
 0xb27   :  { %9657 = vst [vmem:[#allocation10 + $0x170] sm:$0xff] %v9593_v12  ;;  %v9596_v26 = vadd.f32 %v16087_v56, %v9528_v33  ;;  %v9527_v30 = vmul.f32 %v16084_v22, %v9459_v6  ;;  %v9462_v51 = vmul.f32 %v9349_v61, %v16982_v3  ;;  %v16993_v12 = vld [vmem:[#allocation97_spill] sm:$0xff] }
 0xb28   :  { %v9344_v15 = vpop.permute.xlu0 %9343 }
 0xb29   :  { %9660 = vst [vmem:[#allocation10 + $0x188] sm:$0xff] %v9596_v26  ;;  %v9595_v40 = vadd.f32 %v16087_v56, %v9527_v30  ;;  %v9530_v52 = vmul.f32 %v16084_v22, %v9462_v51  ;;  %v9461_v62 = vmul.f32 %v9344_v15, %v16983_v59  ;;  %v16994_v26 = vld [vmem:[#allocation85_spill] sm:$0xff] }
 0xb2a   :  { %v9359_v23 = vpop.permute.xlu1 %9358 }
 0xb2b   :  { %9659 = vst [vmem:[#allocation10 + $0x180] sm:$0xff] %v9595_v40  ;;  %v9598_v44 = vadd.f32 %v16087_v56, %v9530_v52  ;;  %v9529_v45 = vmul.f32 %v16084_v22, %v9461_v62  ;;  %v9464_v34 = vmul.f32 %v9359_v23, %v16984_v48  ;;  %v16995_v40 = vld [vmem:[#allocation170_spill] sm:$0xff] }
 0xb2c   :  { %v9354_v55 = vpop.permute.xlu0 %9353 }
 0xb2d   :  { %9662 = vst [vmem:[#allocation10 + $0x198] sm:$0xff] %v9598_v44  ;;  %v9597_v28 = vadd.f32 %v16087_v56, %v9529_v45  ;;  %v9532_v17 = vmul.f32 %v16084_v22, %v9464_v34  ;;  %v9463_v27 = vmul.f32 %v9354_v55, %v16985_v24 }
 0xb2e   :  { %v9369_v18 = vpop.permute.xlu1 %9368 }
 0xb2f   :  { %9661 = vst [vmem:[#allocation10 + $0x190] sm:$0xff] %v9597_v28  ;;  %v9600_v38 = vadd.f32 %v16087_v56, %v9532_v17  ;;  %v9531_v8 = vmul.f32 %v16084_v22, %v9463_v27  ;;  %v9466_v2 = vmul.f32 %v9369_v18, %v16986_v25 }
 0xb30   :  { %v9364_v20 = vpop.permute.xlu0 %9363 }
 0xb31   :  { %9664 = vst [vmem:[#allocation10 + $0x1a8] sm:$0xff] %v9600_v38  ;;  %v9599_v42 = vadd.f32 %v16087_v56, %v9531_v8  ;;  %v9534_v49 = vmul.f32 %v16084_v22, %v9466_v2  ;;  %v9465_v60 = vmul.f32 %v9364_v20, %v16987_v54 }
 0xb32   :  { %v9379_v29 = vpop.permute.xlu1 %9378 }
 0xb33   :  { %9663 = vst [vmem:[#allocation10 + $0x1a0] sm:$0xff] %v9599_v42  ;;  %v9602_v53 = vadd.f32 %v16087_v56, %v9534_v49  ;;  %v9533_v47 = vmul.f32 %v16084_v22, %v9465_v60  ;;  %v9468_v43 = vmul.f32 %v9379_v29, %v16988_v41 }
 0xb34   :  { %v9374_v5 = vpop.permute.xlu0 %9373 }
 0xb35   :  { %9666 = vst [vmem:[#allocation10 + $0x1b8] sm:$0xff] %v9602_v53  ;;  %v9601_v36 = vadd.f32 %v16087_v56, %v9533_v47  ;;  %v9536_v57 = vmul.f32 %v16084_v22, %v9468_v43  ;;  %v9467_v0 = vmul.f32 %v9374_v5, %v16989_v16 }
 0xb36   :  { %v9389_v46 = vpop.permute.xlu1 %9388 }
 0xb37   :  { %9665 = vst [vmem:[#allocation10 + $0x1b0] sm:$0xff] %v9601_v36  ;;  %v9604_v11 = vadd.f32 %v16087_v56, %v9536_v57  ;;  %v9535_v39 = vmul.f32 %v16084_v22, %v9467_v0  ;;  %v9470_v19 = vmul.f32 %v9389_v46, %v16990_v7 }
 0xb38   :  { %v9384_v35 = vpop.permute.xlu0 %9383 }
 0xb39   :  { %9668 = vst [vmem:[#allocation10 + $0x1c8] sm:$0xff] %v9604_v11  ;;  %v9603_v37 = vadd.f32 %v16087_v56, %v9535_v39  ;;  %v9538_v4 = vmul.f32 %v16084_v22, %v9470_v19  ;;  %v9469_v10 = vmul.f32 %v9384_v35, %v16991_v32 }
 0xb3a   :  { %v9399_v50 = vpop.permute.xlu1 %9398 }
 0xb3b   :  { %9667 = vst [vmem:[#allocation10 + $0x1c0] sm:$0xff] %v9603_v37  ;;  %v9606_v9 = vadd.f32 %v16087_v56, %v9538_v4  ;;  %v9537_v1 = vmul.f32 %v16084_v22, %v9469_v10  ;;  %v9472_v14 = vmul.f32 %v9399_v50, %v16992_v63 }
 0xb3c   :  { %v9394_v58 = vpop.permute.xlu0 %9393 }
 0xb3d   :  { %9670 = vst [vmem:[#allocation10 + $0x1d8] sm:$0xff] %v9606_v9  ;;  %v9605_v21 = vadd.f32 %v16087_v56, %v9537_v1  ;;  %v9540_v13 = vmul.f32 %v16084_v22, %v9472_v14  ;;  %v9471_v33 = vmul.f32 %v9394_v58, %v16993_v12 }
 0xb3e   :  { %v9409_v31 = vpop.permute.xlu1 %9408 }
 0xb3f   :  { %9669 = vst [vmem:[#allocation10 + $0x1d0] sm:$0xff] %v9605_v21  ;;  %v9608_v6 = vadd.f32 %v16087_v56, %v9540_v13  ;;  %v9539_v61 = vmul.f32 %v16084_v22, %v9471_v33  ;;  %v9474_v30 = vmul.f32 %v9409_v31, %v16994_v26 }
 0xb40   :  { %v9404_v3 = vpop.permute.xlu0 %9403 }
 0xb41   :  { %9672 = vst [vmem:[#allocation10 + $0x1e8] sm:$0xff] %v9608_v6  ;;  %v9607_v51 = vadd.f32 %v16087_v56, %v9539_v61  ;;  %v9542_v15 = vmul.f32 %v16084_v22, %v9474_v30  ;;  %v9473_v52 = vmul.f32 %v9404_v3, %v16995_v40 }
 0xb43   :  { %9671 = vst [vmem:[#allocation10 + $0x1e0] sm:$0xff] %v9607_v51  ;;  %v9610_v59 = vadd.f32 %v16087_v56, %v9542_v15  ;;  %v9541_v62 = vmul.f32 %v16084_v22, %v9473_v52 }
 0xb45   :  { %9674 = vst [vmem:[#allocation10 + $0x1f8] sm:$0xff] %v9610_v59  ;;  %v9609_v23 = vadd.f32 %v16087_v56, %v9541_v62 }
 0xb47   :  { %9673 = vst [vmem:[#allocation10 + $0x1f0] sm:$0xff] %v9609_v23 }
 0xb48   :  { %12096 = shalt.err (!%p12093_p10)
}
 0xb49   :  { %9686 = dma.vmem_to_hbm [thread:$0]  %s9681_s18, 8192, %s16292_s6, [#allocation4], %s12115_s29, %s12115_s29, %s12116_s30  }
 0xb4a   :  { %12111 = dma.done.wait [#allocation4], 8192  }
 0xb4b   :  { %12112 = vsyncadd [#allocation4], 4294959104 }
 0xb4c   :  { %9690 = vsyncpa [#allocation3], 1 }
 0xb4d   :  { %9691 = vsyncpa [#allocation6], 1 }
 0xb4e   :  { %9692 = vsyncpa [#allocation9], 1 }
 0xb4f   :  { %9693 = vsyncpa [#allocation4], 1 }

</bundles_post_ra>
